<compile_context>
chip_gen: v7x
topology: tpu7x:2x2x1
jax: 0.10.0
libtpu: 0.0.40
codegen_flags: <defaults>
</compile_context>

<pallas_src>
import functools
import math

import jax
import jax.numpy as jnp
from jax import lax
from jax.experimental import pallas as pl
from jax.experimental.pallas import tpu as pltpu

_EPS = 1e-5
_INV_SQRT2 = 0.7071067811865476
_TANH_C0 = 0.7978845608028654
_TANH_C1 = 0.044715


def _vmem_limit_bytes():
    """Generation-aware scoped-VMEM limit: ~3/4 of physical, capped at 96 MiB.

    v7x has 64 MiB/TC (-> ~48 MiB limit); v5e/v6e have 128 MiB (-> 96 MiB limit).
    """
    cap = 64 * 1024 * 1024
    try:
        info = pltpu.get_tpu_info()
        cap = int(getattr(info, "vmem_capacity_bytes", cap))
    except Exception:
        pass
    return min(int(cap * 3 // 4), 96 * 1024 * 1024)


def _gelu(y, exact):
    if exact:
        # torch.nn.GELU() default (exact erf form).
        return 0.5 * y * (1.0 + lax.erf(y * _INV_SQRT2))
    # TODO(synk): tanh-approx fallback differs from exact erf GELU by <~3e-3 abs.
    return 0.5 * y * (1.0 + jnp.tanh(_TANH_C0 * (y + _TANH_C1 * y * y * y)))


# ---------------------------------------------------------------------------
# Fused kernel: conv (single K=9*Cin bf16 matmul, f32 acc) + two-pass BatchNorm
# (train-mode batch stats) + affine + GELU.  The conv output stays resident in a
# whole-P VMEM scratch across the grid; output is written to HBM exactly once.
# ---------------------------------------------------------------------------
def _conv_bn_gelu_kernel(xcol_ref, w_ref, gamma_ref, beta_ref, o_ref, y_scr,
                         *, exact_gelu):
    i = pl.program_id(0)
    tp = xcol_ref.shape[0]

    # One MXU push with the 9 taps folded into the contraction (K = 9*Cin).
    acc = jnp.dot(xcol_ref[...], w_ref[...], preferred_element_type=jnp.float32)
    off = pl.multiple_of(i * tp, tp)
    y_scr[pl.ds(off, tp), :] = acc

    @pl.when(i == pl.num_programs(0) - 1)
    def _():
        # True two-pass BN statistics over the full batch*spatial extent (P rows),
        # computed on the VMEM-resident f32 conv output (no HBM round-trip, no
        # E[x^2]-E[x]^2 cancellation).
        y = y_scr[...]
        mean = jnp.mean(y, axis=0, keepdims=True)
        d = y - mean
        var = jnp.mean(d * d, axis=0, keepdims=True)
        inv_std = lax.rsqrt(var + _EPS)
        scale = gamma_ref[...] * inv_std
        shift = beta_ref[...] - mean * scale
        o_ref[...] = _gelu(y * scale + shift, exact_gelu).astype(o_ref.dtype)
        # TODO(synk): for Cout < 128 this store is a masked vst; a lane-folded
        # (P/m, m*Cout) output layout would make it fully lane-dense.


def _largest_tile(n, cap):
    """Largest multiple-of-8 divisor of n that is <= cap (n itself if n <= cap).

    Fallback is a single whole-P block: legal here because the fused kernel keeps
    the whole-P accumulator resident anyway.  TODO(synk): for large, awkwardly
    factored P switch to a pl.cdiv grid with in-kernel row masking.
    """
    if n <= cap:
        return n
    t = cap - (cap % 8)
    while t >= 8:
        if n % t == 0:
            return t
        t -= 8
    return n


# ---------------------------------------------------------------------------
# One conv_block(in, out, stride) = Conv2d(3x3, pad=1, bias=False) + BN(train) + GELU
# ---------------------------------------------------------------------------
def conv_bn_gelu(x_nhwc, w_hwio, gamma, beta, *, stride=1, exact_gelu=True):
    N, H, W, Cin = x_nhwc.shape
    KH, KW, _, Cout = w_hwio.shape
    H_out = (H + 2 - KH) // stride + 1
    W_out = (W + 2 - KW) // stride + 1
    P = N * H_out * W_out
    K = KH * KW * Cin

    # ---- wrapper glue: pad + im2col directly into a single (P, 9*Cin) bf16 matrix.
    # TODO(synk): avoid the HBM-materialized im2col with in-kernel halo DMA.
    xp = jnp.pad(x_nhwc.astype(jnp.bfloat16), ((0, 0), (1, 1), (1, 1), (0, 0)))
    cols = []
    for dy in range(KH):
        for dx in range(KW):
            sl = xp[:, dy:dy + stride * (H_out - 1) + 1:stride,
                       dx:dx + stride * (W_out - 1) + 1:stride, :]
            cols.append(sl.reshape(P, Cin))
    xcol = jnp.concatenate(cols, axis=1)                        # (P, K) bf16
    wmat = w_hwio.reshape(K, Cout).astype(jnp.bfloat16)         # (K, Cout) bf16
    g_row = gamma.reshape(1, Cout).astype(jnp.float32)
    b_row = beta.reshape(1, Cout).astype(jnp.float32)

    vmem_limit = _vmem_limit_bytes()
    resident = P * Cout * 4 + P * Cout * 2                      # f32 scratch + bf16 out
    if resident > vmem_limit // 2:
        raise NotImplementedError(
            "TODO(synk): tiled two-pass fallback for conv outputs too large to keep "
            "VMEM-resident")
    # Size the streamed xcol tile so 2 buffers of it + resident state + 2 buffers of
    # the weights stay inside the scoped-VMEM limit.
    x_budget = max(vmem_limit // 4,
                   vmem_limit - resident - 2 * K * Cout * 2 - (1 << 20))
    tp_cap = max(8, x_budget // (2 * K * 2))
    tp = _largest_tile(P, min(P, tp_cap))
    n_tiles = P // tp

    cost = pl.CostEstimate(
        flops=2 * P * K * Cout + 12 * P * Cout,
        transcendentals=P * Cout,
        bytes_accessed=P * K * 2 + K * Cout * 2 + P * Cout * 2 + 8 * Cout)

    out = pl.pallas_call(
        functools.partial(_conv_bn_gelu_kernel, exact_gelu=exact_gelu),
        out_shape=jax.ShapeDtypeStruct((P, Cout), jnp.bfloat16),
        grid=(n_tiles,),
        in_specs=[pl.BlockSpec((tp, K), lambda i: (i, 0)),       # streamed activations
                  pl.BlockSpec((K, Cout), lambda i: (0, 0)),     # resident weights
                  pl.BlockSpec((1, Cout), lambda i: (0, 0)),     # resident gamma
                  pl.BlockSpec((1, Cout), lambda i: (0, 0))],    # resident beta
        out_specs=pl.BlockSpec((P, Cout), lambda i: (0, 0)),     # resident output
        scratch_shapes=[pltpu.VMEM((P, Cout), jnp.float32)],     # whole-P conv acc
        compiler_params=pltpu.CompilerParams(
            # P axis carries the resident accumulator/output -> reduction-like axis.
            dimension_semantics=("arbitrary",),
            vmem_limit_bytes=vmem_limit),
        cost_estimate=cost,
    )(xcol, wmat, g_row, b_row)
    return out.reshape(N, H_out, W_out, Cout)


# ---------------------------------------------------------------------------
# BasicBlock (no residual) and the full CNN forward
# ---------------------------------------------------------------------------
def basic_block_forward(x_nhwc, blk, *, stride, exact_gelu):
    # TODO(synk): a whole BasicBlock fits VMEM at these shapes and could be a single
    # pallas_call, but that needs in-kernel im2col; kept per-conv for robust lowering.
    y = conv_bn_gelu(x_nhwc, blk["w1"], blk["g1"], blk["b1"],
                     stride=stride, exact_gelu=exact_gelu)
    return conv_bn_gelu(y, blk["w2"], blk["g2"], blk["b2"],
                        stride=1, exact_gelu=exact_gelu)


def cnn_forward(x_nchw, params, *, exact_gelu=True):
    x = jnp.transpose(x_nchw, (0, 2, 3, 1))                      # NCHW -> NHWC
    c1 = params["conv1"]
    x = conv_bn_gelu(x, c1["w"], c1["g"], c1["b"], stride=1, exact_gelu=exact_gelu)
    for s_idx, stage in enumerate(params["stages"]):
        for b_idx, blk in enumerate(stage):
            stride = (1 if s_idx == 0 else 2) if b_idx == 0 else 1
            x = basic_block_forward(x, blk, stride=stride, exact_gelu=exact_gelu)
    # AdaptiveAvgPool2d((1,1)) + flatten + Linear: at (N,64)@(64,10) a pallas_call
    # launch costs more than the matmul itself, so the head stays in XLA (per review).
    pooled = jnp.mean(x.astype(jnp.float32), axis=(1, 2))        # (N, C)
    return pooled @ params["fc_w"] + params["fc_b"]


# ---------------------------------------------------------------------------
# Deterministic parameter init (conv weights stored HWIO)
# ---------------------------------------------------------------------------
def init_cnn_params(key, in_channels, num_classes, block_config, channels_config):
    keys = iter(jax.random.split(key, 256))

    def conv_bn(cin, cout):
        w = jax.random.normal(next(keys), (3, 3, cin, cout),
                              jnp.float32) / math.sqrt(9 * cin)
        g = 1.0 + 0.1 * jax.random.normal(next(keys), (cout,), jnp.float32)
        b = 0.1 * jax.random.normal(next(keys), (cout,), jnp.float32)
        return w, g, b

    w, g, b = conv_bn(in_channels, channels_config[0])
    params = {"conv1": {"w": w, "g": g, "b": b}, "stages": []}
    stage_in = [channels_config[0], channels_config[0], channels_config[1]]
    for s in range(3):
        cout_s = channels_config[s]
        blocks = []
        for b_idx in range(block_config[s]):
            c_in = stage_in[s] if b_idx == 0 else cout_s
            w1, g1, b1 = conv_bn(c_in, cout_s)
            w2, g2, b2 = conv_bn(cout_s, cout_s)
            blocks.append({"w1": w1, "g1": g1, "b1": b1,
                           "w2": w2, "g2": g2, "b2": b2})
        params["stages"].append(blocks)
    params["fc_w"] = jax.random.normal(next(keys), (channels_config[2], num_classes),
                                       jnp.float32) / math.sqrt(channels_config[2])
    params["fc_b"] = 0.01 * jax.random.normal(next(keys), (num_classes,), jnp.float32)
    return params


# ---------------------------------------------------------------------------
# Probe: can Mosaic lower lax.erf (exact GELU)?  Otherwise tanh-approx fallback.
# ---------------------------------------------------------------------------
def _erf_probe_kernel(x_ref, o_ref):
    o_ref[...] = lax.erf(x_ref[...])


def _erf_supported_in_pallas():
    try:
        x = jnp.linspace(-3.0, 3.0, 8 * 128, dtype=jnp.float32).reshape(8, 128)
        out = pl.pallas_call(
            _erf_probe_kernel,
            out_shape=jax.ShapeDtypeStruct((8, 128), jnp.float32),
        )(x)
        jax.block_until_ready(out)
        return True
    except Exception:
        return False


# ---------------------------------------------------------------------------
# Pure-JAX reference (PyTorch CNN.forward semantics; cast_dtype selects the conv
# input precision so the Pallas bf16-MXU path can be checked tightly).
# ---------------------------------------------------------------------------
def _ref_conv_bn_gelu(x_nchw, w_hwio, gamma, beta, *, stride, exact_gelu, cast_dtype):
    y = lax.conv_general_dilated(
        x_nchw.astype(cast_dtype), w_hwio.astype(cast_dtype),
        window_strides=(stride, stride), padding=((1, 1), (1, 1)),
        dimension_numbers=("NCHW", "HWIO", "NCHW"),
        preferred_element_type=jnp.float32)
    mean = y.mean(axis=(0, 2, 3), keepdims=True)
    var = ((y - mean) ** 2).mean(axis=(0, 2, 3), keepdims=True)
    y = (y - mean) * lax.rsqrt(var + _EPS)
    y = y * gamma.reshape(1, -1, 1, 1) + beta.reshape(1, -1, 1, 1)
    return _gelu(y, exact_gelu)


def reference_cnn_forward(x_nchw, params, *, exact_gelu=True, cast_dtype=jnp.float32):
    c1 = params["conv1"]
    x = _ref_conv_bn_gelu(x_nchw, c1["w"], c1["g"], c1["b"], stride=1,
                          exact_gelu=exact_gelu, cast_dtype=cast_dtype)
    for s_idx, stage in enumerate(params["stages"]):
        for b_idx, blk in enumerate(stage):
            stride = (1 if s_idx == 0 else 2) if b_idx == 0 else 1
            x = _ref_conv_bn_gelu(x, blk["w1"], blk["g1"], blk["b1"], stride=stride,
                                  exact_gelu=exact_gelu, cast_dtype=cast_dtype)
            x = _ref_conv_bn_gelu(x, blk["w2"], blk["g2"], blk["b2"], stride=1,
                                  exact_gelu=exact_gelu, cast_dtype=cast_dtype)
    pooled = x.mean(axis=(2, 3))
    return pooled @ params["fc_w"] + params["fc_b"]


if __name__ == "__main__":
    # Small shapes consistent with the module (configurable CNN constructor).
    N, C_in, H, W = 2, 3, 16, 16
    num_classes = 10
    block_config = [1, 1, 1]
    channels_config = [16, 32, 64]

    key = jax.random.PRNGKey(0)
    kx, kp = jax.random.split(key)
    x = jax.random.normal(kx, (N, C_in, H, W), jnp.float32)      # NCHW, like PyTorch
    params = init_cnn_params(kp, C_in, num_classes, block_config, channels_config)

    exact = _erf_supported_in_pallas()

    fwd = jax.jit(functools.partial(cnn_forward, exact_gelu=exact))
    logits = jax.block_until_ready(fwd(x, params))
    assert logits.shape == (N, num_classes), logits.shape
    assert bool(jnp.all(jnp.isfinite(logits)))

    # Kernel-correctness check: reference using the same bf16 conv-input precision.
    ref_b = jax.jit(functools.partial(reference_cnn_forward, exact_gelu=exact,
                                      cast_dtype=jnp.bfloat16))(x, params)
    err_kernel = float(jnp.max(jnp.abs(logits - ref_b)))
    assert err_kernel < 4e-2, f"mismatch vs bf16-conv reference: {err_kernel}"

    # Module-parity check vs a pure-f32 reference (looser: bf16 MXU inputs by design).
    ref_f = jax.jit(functools.partial(reference_cnn_forward, exact_gelu=exact,
                                      cast_dtype=jnp.float32))(x, params)
    scale = float(jnp.max(jnp.abs(ref_f)))
    err_f32 = float(jnp.max(jnp.abs(logits - ref_f)))
    assert err_f32 < 0.02 + 0.1 * scale, f"mismatch vs f32 reference: {err_f32}"

    print("KERNEL_OK")
</pallas_src>

<mosaic_0001>
module attributes {stable_mosaic.version = 11 : i64} {
  func.func @_erf_probe_kernel(%arg0: memref<8x128xf32, #tpu.memory_space<vmem>>, %arg1: memref<8x128xf32, #tpu.memory_space<vmem>>) attributes {dimension_semantics = [], scalar_prefetch = 0 : i64, scratch_operands = 0 : i64, tpu.core_type = #tpu.core_type<tc>} {
    %c0 = arith.constant 0 : index
    %c0_0 = arith.constant 0 : index
    %0 = vector.load %arg0[%c0, %c0_0] : memref<8x128xf32, #tpu.memory_space<vmem>>, vector<8x128xf32>
    %1 = math.erf %0 : vector<8x128xf32>
    %c0_1 = arith.constant 0 : index
    %c0_2 = arith.constant 0 : index
    %2 = vector.load %arg1[%c0_1, %c0_2] : memref<8x128xf32, #tpu.memory_space<vmem>>, vector<8x128xf32>
    tpu.vector_store %arg1[%c0_1, %c0_2], %1 {strides = array<i32>} : memref<8x128xf32, #tpu.memory_space<vmem>>, vector<8x128xf32>,
    return
  }
}

module attributes {stable_mosaic.version = 11 : i64} {
  func.func @_conv_bn_gelu_kernel(%arg0: i32, %arg1: memref<512x27xbf16, #tpu.memory_space<vmem>>, %arg2: memref<27x16xbf16, #tpu.memory_space<vmem>>, %arg3: memref<1x16xf32, #tpu.memory_space<vmem>>, %arg4: memref<1x16xf32, #tpu.memory_space<vmem>>, %arg5: memref<512x16xbf16, #tpu.memory_space<vmem>>, %arg6: memref<512x16xf32, #tpu.memory_space<vmem>>) attributes {dimension_semantics = [#tpu.dimension_semantics<arbitrary>], iteration_bounds = array<i64: 1>, scalar_prefetch = 0 : i64, scratch_operands = 1 : i64, tpu.core_type = #tpu.core_type<tc>, window_params = [{transform_indices = @transform_0, window_bounds = array<i64: 512, 27>}, {pipeline_mode = #tpu.pipeline_mode<synchronous>, transform_indices = @transform_1, window_bounds = array<i64: 27, 16>}, {pipeline_mode = #tpu.pipeline_mode<synchronous>, transform_indices = @transform_2, window_bounds = array<i64: 1, 16>}, {pipeline_mode = #tpu.pipeline_mode<synchronous>, transform_indices = @transform_3, window_bounds = array<i64: 1, 16>}, {pipeline_mode = #tpu.pipeline_mode<synchronous>, transform_indices = @transform_4, window_bounds = array<i64: 512, 16>}]} {
    %c0 = arith.constant 0 : index
    %c0_0 = arith.constant 0 : index
    %0 = vector.load %arg1[%c0, %c0_0] : memref<512x27xbf16, #tpu.memory_space<vmem>>, vector<512x27xbf16>
    %c0_1 = arith.constant 0 : index
    %c0_2 = arith.constant 0 : index
    %1 = vector.load %arg2[%c0_1, %c0_2] : memref<27x16xbf16, #tpu.memory_space<vmem>>, vector<27x16xbf16>
    %cst = arith.constant dense<0.000000e+00> : vector<512x16xf32>
    %2 = tpu.matmul %0, %1, %cst {dimension_numbers = #tpu.dot_dimension_numbers<[1], [0], [0], [1], [0, 0, 1, 1], [], []>} : vector<512x27xbf16>, vector<27x16xbf16>, vector<512x16xf32> -> vector<512x16xf32>
    %c512_i32 = arith.constant 512 : i32
    %3 = arith.muli %arg0, %c512_i32 : i32
    %4 = tpu.assume_multiple %3, 512 : i32
    %5 = arith.index_cast %4 : i32 to index
    %c0_3 = arith.constant 0 : index
    %6 = vector.load %arg6[%5, %c0_3] : memref<512x16xf32, #tpu.memory_space<vmem>>, vector<512x16xf32>
    tpu.vector_store %arg6[%5, %c0_3], %2 {strides = array<i32>} : memref<512x16xf32, #tpu.memory_space<vmem>>, vector<512x16xf32>,
    %c0_i32 = arith.constant 0 : i32
    %7 = arith.cmpi eq, %arg0, %c0_i32 : i32
    %8 = arith.extui %7 : i1 to i32
    %c0_i32_4 = arith.constant 0 : i32
    %9 = arith.cmpi ne, %8, %c0_i32_4 : i32
    scf.if %9 {
      %c0_5 = arith.constant 0 : index
      %c0_6 = arith.constant 0 : index
      %10 = vector.load %arg6[%c0_5, %c0_6] : memref<512x16xf32, #tpu.memory_space<vmem>>, vector<512x16xf32>
      %cst_7 = arith.constant dense<0.000000e+00> : vector<16xf32>
      %11 = vector.multi_reduction <add>, %10, %cst_7 [0] : vector<512x16xf32> to vector<16xf32>
      %12 = vector.shape_cast %11 : vector<16xf32> to vector<1x16xf32>
      %cst_8 = arith.constant 5.120000e+02 : f32
      %13 = vector.broadcast %cst_8 : f32 to vector<1x16xf32>
      %14 = arith.divf %12, %13 : vector<1x16xf32>
      %15 = vector.broadcast %14 : vector<1x16xf32> to vector<512x16xf32>
      %16 = arith.subf %10, %15 : vector<512x16xf32>
      %17 = arith.mulf %16, %16 : vector<512x16xf32>
      %cst_9 = arith.constant dense<0.000000e+00> : vector<16xf32>
      %18 = vector.multi_reduction <add>, %17, %cst_9 [0] : vector<512x16xf32> to vector<16xf32>
      %19 = vector.shape_cast %18 : vector<16xf32> to vector<1x16xf32>
      %cst_10 = arith.constant 5.120000e+02 : f32
      %20 = vector.broadcast %cst_10 : f32 to vector<1x16xf32>
      %21 = arith.divf %19, %20 : vector<1x16xf32>
      %cst_11 = arith.constant 9.99999974E-6 : f32
      %22 = vector.broadcast %cst_11 : f32 to vector<1x16xf32>
      %23 = arith.addf %21, %22 : vector<1x16xf32>
      %24 = math.rsqrt %23 : vector<1x16xf32>
      %c0_12 = arith.constant 0 : index
      %c0_13 = arith.constant 0 : index
      %25 = vector.load %arg3[%c0_12, %c0_13] : memref<1x16xf32, #tpu.memory_space<vmem>>, vector<1x16xf32>
      %26 = arith.mulf %25, %24 : vector<1x16xf32>
      %c0_14 = arith.constant 0 : index
      %c0_15 = arith.constant 0 : index
      %27 = vector.load %arg4[%c0_14, %c0_15] : memref<1x16xf32, #tpu.memory_space<vmem>>, vector<1x16xf32>
      %28 = arith.mulf %14, %26 : vector<1x16xf32>
      %29 = arith.subf %27, %28 : vector<1x16xf32>
      %30 = vector.broadcast %26 : vector<1x16xf32> to vector<512x16xf32>
      %31 = arith.mulf %10, %30 : vector<512x16xf32>
      %32 = vector.broadcast %29 : vector<1x16xf32> to vector<512x16xf32>
      %33 = arith.addf %31, %32 : vector<512x16xf32>
      %cst_16 = arith.constant 5.000000e-01 : f32
      %34 = vector.broadcast %cst_16 : f32 to vector<512x16xf32>
      %35 = arith.mulf %34, %33 : vector<512x16xf32>
      %cst_17 = arith.constant 4.471500e-02 : f32
      %36 = vector.broadcast %cst_17 : f32 to vector<512x16xf32>
      %37 = arith.mulf %36, %33 : vector<512x16xf32>
      %38 = arith.mulf %37, %33 : vector<512x16xf32>
      %39 = arith.mulf %38, %33 : vector<512x16xf32>
      %40 = arith.addf %33, %39 : vector<512x16xf32>
      %cst_18 = arith.constant 0.797884583 : f32
      %41 = vector.broadcast %cst_18 : f32 to vector<512x16xf32>
      %42 = arith.mulf %41, %40 : vector<512x16xf32>
      %43 = math.tanh %42 : vector<512x16xf32>
      %cst_19 = arith.constant 1.000000e+00 : f32
      %44 = vector.broadcast %cst_19 : f32 to vector<512x16xf32>
      %45 = arith.addf %44, %43 : vector<512x16xf32>
      %46 = arith.mulf %35, %45 : vector<512x16xf32>
      %47 = arith.truncf %46 : vector<512x16xf32> to vector<512x16xbf16>
      %c0_20 = arith.constant 0 : index
      %c0_21 = arith.constant 0 : index
      %48 = vector.load %arg5[%c0_20, %c0_21] : memref<512x16xbf16, #tpu.memory_space<vmem>>, vector<512x16xbf16>
      tpu.vector_store %arg5[%c0_20, %c0_21], %47 {strides = array<i32>} : memref<512x16xbf16, #tpu.memory_space<vmem>>, vector<512x16xbf16>,
    } else {
    }
    return
  }
  func.func @transform_0(%arg0: i32) -> (i32, i32) {
    %c0_i32 = arith.constant 0 : i32
    %c0_i32_0 = arith.constant 0 : i32
    return %arg0, %c0_i32 : i32, i32
  }
  func.func @transform_1(%arg0: i32) -> (i32, i32) {
    %c0_i32 = arith.constant 0 : i32
    %c0_i32_0 = arith.constant 0 : i32
    %c0_i32_1 = arith.constant 0 : i32
    return %c0_i32, %c0_i32_0 : i32, i32
  }
  func.func @transform_2(%arg0: i32) -> (i32, i32) {
    %c0_i32 = arith.constant 0 : i32
    %c0_i32_0 = arith.constant 0 : i32
    %c0_i32_1 = arith.constant 0 : i32
    return %c0_i32, %c0_i32_0 : i32, i32
  }
  func.func @transform_3(%arg0: i32) -> (i32, i32) {
    %c0_i32 = arith.constant 0 : i32
    %c0_i32_0 = arith.constant 0 : i32
    %c0_i32_1 = arith.constant 0 : i32
    return %c0_i32, %c0_i32_0 : i32, i32
  }
  func.func @transform_4(%arg0: i32) -> (i32, i32) {
    %c0_i32 = arith.constant 0 : i32
    %c0_i32_0 = arith.constant 0 : i32
    %c0_i32_1 = arith.constant 0 : i32
    return %c0_i32, %c0_i32_0 : i32, i32
  }
}

module attributes {stable_mosaic.version = 11 : i64} {
  func.func @_conv_bn_gelu_kernel(%arg0: i32, %arg1: memref<512x144xbf16, #tpu.memory_space<vmem>>, %arg2: memref<144x16xbf16, #tpu.memory_space<vmem>>, %arg3: memref<1x16xf32, #tpu.memory_space<vmem>>, %arg4: memref<1x16xf32, #tpu.memory_space<vmem>>, %arg5: memref<512x16xbf16, #tpu.memory_space<vmem>>, %arg6: memref<512x16xf32, #tpu.memory_space<vmem>>) attributes {dimension_semantics = [#tpu.dimension_semantics<arbitrary>], iteration_bounds = array<i64: 1>, scalar_prefetch = 0 : i64, scratch_operands = 1 : i64, tpu.core_type = #tpu.core_type<tc>, window_params = [{transform_indices = @transform_0, window_bounds = array<i64: 512, 144>}, {pipeline_mode = #tpu.pipeline_mode<synchronous>, transform_indices = @transform_1, window_bounds = array<i64: 144, 16>}, {pipeline_mode = #tpu.pipeline_mode<synchronous>, transform_indices = @transform_2, window_bounds = array<i64: 1, 16>}, {pipeline_mode = #tpu.pipeline_mode<synchronous>, transform_indices = @transform_3, window_bounds = array<i64: 1, 16>}, {pipeline_mode = #tpu.pipeline_mode<synchronous>, transform_indices = @transform_4, window_bounds = array<i64: 512, 16>}]} {
    %c0 = arith.constant 0 : index
    %c0_0 = arith.constant 0 : index
    %0 = vector.load %arg1[%c0, %c0_0] : memref<512x144xbf16, #tpu.memory_space<vmem>>, vector<512x144xbf16>
    %c0_1 = arith.constant 0 : index
    %c0_2 = arith.constant 0 : index
    %1 = vector.load %arg2[%c0_1, %c0_2] : memref<144x16xbf16, #tpu.memory_space<vmem>>, vector<144x16xbf16>
    %cst = arith.constant dense<0.000000e+00> : vector<512x16xf32>
    %2 = tpu.matmul %0, %1, %cst {dimension_numbers = #tpu.dot_dimension_numbers<[1], [0], [0], [1], [0, 0, 1, 1], [], []>} : vector<512x144xbf16>, vector<144x16xbf16>, vector<512x16xf32> -> vector<512x16xf32>
    %c512_i32 = arith.constant 512 : i32
    %3 = arith.muli %arg0, %c512_i32 : i32
    %4 = tpu.assume_multiple %3, 512 : i32
    %5 = arith.index_cast %4 : i32 to index
    %c0_3 = arith.constant 0 : index
    %6 = vector.load %arg6[%5, %c0_3] : memref<512x16xf32, #tpu.memory_space<vmem>>, vector<512x16xf32>
    tpu.vector_store %arg6[%5, %c0_3], %2 {strides = array<i32>} : memref<512x16xf32, #tpu.memory_space<vmem>>, vector<512x16xf32>,
    %c0_i32 = arith.constant 0 : i32
    %7 = arith.cmpi eq, %arg0, %c0_i32 : i32
    %8 = arith.extui %7 : i1 to i32
    %c0_i32_4 = arith.constant 0 : i32
    %9 = arith.cmpi ne, %8, %c0_i32_4 : i32
    scf.if %9 {
      %c0_5 = arith.constant 0 : index
      %c0_6 = arith.constant 0 : index
      %10 = vector.load %arg6[%c0_5, %c0_6] : memref<512x16xf32, #tpu.memory_space<vmem>>, vector<512x16xf32>
      %cst_7 = arith.constant dense<0.000000e+00> : vector<16xf32>
      %11 = vector.multi_reduction <add>, %10, %cst_7 [0] : vector<512x16xf32> to vector<16xf32>
      %12 = vector.shape_cast %11 : vector<16xf32> to vector<1x16xf32>
      %cst_8 = arith.constant 5.120000e+02 : f32
      %13 = vector.broadcast %cst_8 : f32 to vector<1x16xf32>
      %14 = arith.divf %12, %13 : vector<1x16xf32>
      %15 = vector.broadcast %14 : vector<1x16xf32> to vector<512x16xf32>
      %16 = arith.subf %10, %15 : vector<512x16xf32>
      %17 = arith.mulf %16, %16 : vector<512x16xf32>
      %cst_9 = arith.constant dense<0.000000e+00> : vector<16xf32>
      %18 = vector.multi_reduction <add>, %17, %cst_9 [0] : vector<512x16xf32> to vector<16xf32>
      %19 = vector.shape_cast %18 : vector<16xf32> to vector<1x16xf32>
      %cst_10 = arith.constant 5.120000e+02 : f32
      %20 = vector.broadcast %cst_10 : f32 to vector<1x16xf32>
      %21 = arith.divf %19, %20 : vector<1x16xf32>
      %cst_11 = arith.constant 9.99999974E-6 : f32
      %22 = vector.broadcast %cst_11 : f32 to vector<1x16xf32>
      %23 = arith.addf %21, %22 : vector<1x16xf32>
      %24 = math.rsqrt %23 : vector<1x16xf32>
      %c0_12 = arith.constant 0 : index
      %c0_13 = arith.constant 0 : index
      %25 = vector.load %arg3[%c0_12, %c0_13] : memref<1x16xf32, #tpu.memory_space<vmem>>, vector<1x16xf32>
      %26 = arith.mulf %25, %24 : vector<1x16xf32>
      %c0_14 = arith.constant 0 : index
      %c0_15 = arith.constant 0 : index
      %27 = vector.load %arg4[%c0_14, %c0_15] : memref<1x16xf32, #tpu.memory_space<vmem>>, vector<1x16xf32>
      %28 = arith.mulf %14, %26 : vector<1x16xf32>
      %29 = arith.subf %27, %28 : vector<1x16xf32>
      %30 = vector.broadcast %26 : vector<1x16xf32> to vector<512x16xf32>
      %31 = arith.mulf %10, %30 : vector<512x16xf32>
      %32 = vector.broadcast %29 : vector<1x16xf32> to vector<512x16xf32>
      %33 = arith.addf %31, %32 : vector<512x16xf32>
      %cst_16 = arith.constant 5.000000e-01 : f32
      %34 = vector.broadcast %cst_16 : f32 to vector<512x16xf32>
      %35 = arith.mulf %34, %33 : vector<512x16xf32>
      %cst_17 = arith.constant 4.471500e-02 : f32
      %36 = vector.broadcast %cst_17 : f32 to vector<512x16xf32>
      %37 = arith.mulf %36, %33 : vector<512x16xf32>
      %38 = arith.mulf %37, %33 : vector<512x16xf32>
      %39 = arith.mulf %38, %33 : vector<512x16xf32>
      %40 = arith.addf %33, %39 : vector<512x16xf32>
      %cst_18 = arith.constant 0.797884583 : f32
      %41 = vector.broadcast %cst_18 : f32 to vector<512x16xf32>
      %42 = arith.mulf %41, %40 : vector<512x16xf32>
      %43 = math.tanh %42 : vector<512x16xf32>
      %cst_19 = arith.constant 1.000000e+00 : f32
      %44 = vector.broadcast %cst_19 : f32 to vector<512x16xf32>
      %45 = arith.addf %44, %43 : vector<512x16xf32>
      %46 = arith.mulf %35, %45 : vector<512x16xf32>
      %47 = arith.truncf %46 : vector<512x16xf32> to vector<512x16xbf16>
      %c0_20 = arith.constant 0 : index
      %c0_21 = arith.constant 0 : index
      %48 = vector.load %arg5[%c0_20, %c0_21] : memref<512x16xbf16, #tpu.memory_space<vmem>>, vector<512x16xbf16>
      tpu.vector_store %arg5[%c0_20, %c0_21], %47 {strides = array<i32>} : memref<512x16xbf16, #tpu.memory_space<vmem>>, vector<512x16xbf16>,
    } else {
    }
    return
  }
  func.func @transform_0(%arg0: i32) -> (i32, i32) {
    %c0_i32 = arith.constant 0 : i32
    %c0_i32_0 = arith.constant 0 : i32
    return %arg0, %c0_i32 : i32, i32
  }
  func.func @transform_1(%arg0: i32) -> (i32, i32) {
    %c0_i32 = arith.constant 0 : i32
    %c0_i32_0 = arith.constant 0 : i32
    %c0_i32_1 = arith.constant 0 : i32
    return %c0_i32, %c0_i32_0 : i32, i32
  }
  func.func @transform_2(%arg0: i32) -> (i32, i32) {
    %c0_i32 = arith.constant 0 : i32
    %c0_i32_0 = arith.constant 0 : i32
    %c0_i32_1 = arith.constant 0 : i32
    return %c0_i32, %c0_i32_0 : i32, i32
  }
  func.func @transform_3(%arg0: i32) -> (i32, i32) {
    %c0_i32 = arith.constant 0 : i32
    %c0_i32_0 = arith.constant 0 : i32
    %c0_i32_1 = arith.constant 0 : i32
    return %c0_i32, %c0_i32_0 : i32, i32
  }
  func.func @transform_4(%arg0: i32) -> (i32, i32) {
    %c0_i32 = arith.constant 0 : i32
    %c0_i32_0 = arith.constant 0 : i32
    %c0_i32_1 = arith.constant 0 : i32
    return %c0_i32, %c0_i32_0 : i32, i32
  }
}

module attributes {stable_mosaic.version = 11 : i64} {
  func.func @_conv_bn_gelu_kernel(%arg0: i32, %arg1: memref<128x144xbf16, #tpu.memory_space<vmem>>, %arg2: memref<144x32xbf16, #tpu.memory_space<vmem>>, %arg3: memref<1x32xf32, #tpu.memory_space<vmem>>, %arg4: memref<1x32xf32, #tpu.memory_space<vmem>>, %arg5: memref<128x32xbf16, #tpu.memory_space<vmem>>, %arg6: memref<128x32xf32, #tpu.memory_space<vmem>>) attributes {dimension_semantics = [#tpu.dimension_semantics<arbitrary>], iteration_bounds = array<i64: 1>, scalar_prefetch = 0 : i64, scratch_operands = 1 : i64, tpu.core_type = #tpu.core_type<tc>, window_params = [{transform_indices = @transform_0, window_bounds = array<i64: 128, 144>}, {pipeline_mode = #tpu.pipeline_mode<synchronous>, transform_indices = @transform_1, window_bounds = array<i64: 144, 32>}, {pipeline_mode = #tpu.pipeline_mode<synchronous>, transform_indices = @transform_2, window_bounds = array<i64: 1, 32>}, {pipeline_mode = #tpu.pipeline_mode<synchronous>, transform_indices = @transform_3, window_bounds = array<i64: 1, 32>}, {pipeline_mode = #tpu.pipeline_mode<synchronous>, transform_indices = @transform_4, window_bounds = array<i64: 128, 32>}]} {
    %c0 = arith.constant 0 : index
    %c0_0 = arith.constant 0 : index
    %0 = vector.load %arg1[%c0, %c0_0] : memref<128x144xbf16, #tpu.memory_space<vmem>>, vector<128x144xbf16>
    %c0_1 = arith.constant 0 : index
    %c0_2 = arith.constant 0 : index
    %1 = vector.load %arg2[%c0_1, %c0_2] : memref<144x32xbf16, #tpu.memory_space<vmem>>, vector<144x32xbf16>
    %cst = arith.constant dense<0.000000e+00> : vector<128x32xf32>
    %2 = tpu.matmul %0, %1, %cst {dimension_numbers = #tpu.dot_dimension_numbers<[1], [0], [0], [1], [0, 0, 1, 1], [], []>} : vector<128x144xbf16>, vector<144x32xbf16>, vector<128x32xf32> -> vector<128x32xf32>
    %c128_i32 = arith.constant 128 : i32
    %3 = arith.muli %arg0, %c128_i32 : i32
    %4 = tpu.assume_multiple %3, 128 : i32
    %5 = arith.index_cast %4 : i32 to index
    %c0_3 = arith.constant 0 : index
    %6 = vector.load %arg6[%5, %c0_3] : memref<128x32xf32, #tpu.memory_space<vmem>>, vector<128x32xf32>
    tpu.vector_store %arg6[%5, %c0_3], %2 {strides = array<i32>} : memref<128x32xf32, #tpu.memory_space<vmem>>, vector<128x32xf32>,
    %c0_i32 = arith.constant 0 : i32
    %7 = arith.cmpi eq, %arg0, %c0_i32 : i32
    %8 = arith.extui %7 : i1 to i32
    %c0_i32_4 = arith.constant 0 : i32
    %9 = arith.cmpi ne, %8, %c0_i32_4 : i32
    scf.if %9 {
      %c0_5 = arith.constant 0 : index
      %c0_6 = arith.constant 0 : index
      %10 = vector.load %arg6[%c0_5, %c0_6] : memref<128x32xf32, #tpu.memory_space<vmem>>, vector<128x32xf32>
      %cst_7 = arith.constant dense<0.000000e+00> : vector<32xf32>
      %11 = vector.multi_reduction <add>, %10, %cst_7 [0] : vector<128x32xf32> to vector<32xf32>
      %12 = vector.shape_cast %11 : vector<32xf32> to vector<1x32xf32>
      %cst_8 = arith.constant 1.280000e+02 : f32
      %13 = vector.broadcast %cst_8 : f32 to vector<1x32xf32>
      %14 = arith.divf %12, %13 : vector<1x32xf32>
      %15 = vector.broadcast %14 : vector<1x32xf32> to vector<128x32xf32>
      %16 = arith.subf %10, %15 : vector<128x32xf32>
      %17 = arith.mulf %16, %16 : vector<128x32xf32>
      %cst_9 = arith.constant dense<0.000000e+00> : vector<32xf32>
      %18 = vector.multi_reduction <add>, %17, %cst_9 [0] : vector<128x32xf32> to vector<32xf32>
      %19 = vector.shape_cast %18 : vector<32xf32> to vector<1x32xf32>
      %cst_10 = arith.constant 1.280000e+02 : f32
      %20 = vector.broadcast %cst_10 : f32 to vector<1x32xf32>
      %21 = arith.divf %19, %20 : vector<1x32xf32>
      %cst_11 = arith.constant 9.99999974E-6 : f32
      %22 = vector.broadcast %cst_11 : f32 to vector<1x32xf32>
      %23 = arith.addf %21, %22 : vector<1x32xf32>
      %24 = math.rsqrt %23 : vector<1x32xf32>
      %c0_12 = arith.constant 0 : index
      %c0_13 = arith.constant 0 : index
      %25 = vector.load %arg3[%c0_12, %c0_13] : memref<1x32xf32, #tpu.memory_space<vmem>>, vector<1x32xf32>
      %26 = arith.mulf %25, %24 : vector<1x32xf32>
      %c0_14 = arith.constant 0 : index
      %c0_15 = arith.constant 0 : index
      %27 = vector.load %arg4[%c0_14, %c0_15] : memref<1x32xf32, #tpu.memory_space<vmem>>, vector<1x32xf32>
      %28 = arith.mulf %14, %26 : vector<1x32xf32>
      %29 = arith.subf %27, %28 : vector<1x32xf32>
      %30 = vector.broadcast %26 : vector<1x32xf32> to vector<128x32xf32>
      %31 = arith.mulf %10, %30 : vector<128x32xf32>
      %32 = vector.broadcast %29 : vector<1x32xf32> to vector<128x32xf32>
      %33 = arith.addf %31, %32 : vector<128x32xf32>
      %cst_16 = arith.constant 5.000000e-01 : f32
      %34 = vector.broadcast %cst_16 : f32 to vector<128x32xf32>
      %35 = arith.mulf %34, %33 : vector<128x32xf32>
      %cst_17 = arith.constant 4.471500e-02 : f32
      %36 = vector.broadcast %cst_17 : f32 to vector<128x32xf32>
      %37 = arith.mulf %36, %33 : vector<128x32xf32>
      %38 = arith.mulf %37, %33 : vector<128x32xf32>
      %39 = arith.mulf %38, %33 : vector<128x32xf32>
      %40 = arith.addf %33, %39 : vector<128x32xf32>
      %cst_18 = arith.constant 0.797884583 : f32
      %41 = vector.broadcast %cst_18 : f32 to vector<128x32xf32>
      %42 = arith.mulf %41, %40 : vector<128x32xf32>
      %43 = math.tanh %42 : vector<128x32xf32>
      %cst_19 = arith.constant 1.000000e+00 : f32
      %44 = vector.broadcast %cst_19 : f32 to vector<128x32xf32>
      %45 = arith.addf %44, %43 : vector<128x32xf32>
      %46 = arith.mulf %35, %45 : vector<128x32xf32>
      %47 = arith.truncf %46 : vector<128x32xf32> to vector<128x32xbf16>
      %c0_20 = arith.constant 0 : index
      %c0_21 = arith.constant 0 : index
      %48 = vector.load %arg5[%c0_20, %c0_21] : memref<128x32xbf16, #tpu.memory_space<vmem>>, vector<128x32xbf16>
      tpu.vector_store %arg5[%c0_20, %c0_21], %47 {strides = array<i32>} : memref<128x32xbf16, #tpu.memory_space<vmem>>, vector<128x32xbf16>,
    } else {
    }
    return
  }
  func.func @transform_0(%arg0: i32) -> (i32, i32) {
    %c0_i32 = arith.constant 0 : i32
    %c0_i32_0 = arith.constant 0 : i32
    return %arg0, %c0_i32 : i32, i32
  }
  func.func @transform_1(%arg0: i32) -> (i32, i32) {
    %c0_i32 = arith.constant 0 : i32
    %c0_i32_0 = arith.constant 0 : i32
    %c0_i32_1 = arith.constant 0 : i32
    return %c0_i32, %c0_i32_0 : i32, i32
  }
  func.func @transform_2(%arg0: i32) -> (i32, i32) {
    %c0_i32 = arith.constant 0 : i32
    %c0_i32_0 = arith.constant 0 : i32
    %c0_i32_1 = arith.constant 0 : i32
    return %c0_i32, %c0_i32_0 : i32, i32
  }
  func.func @transform_3(%arg0: i32) -> (i32, i32) {
    %c0_i32 = arith.constant 0 : i32
    %c0_i32_0 = arith.constant 0 : i32
    %c0_i32_1 = arith.constant 0 : i32
    return %c0_i32, %c0_i32_0 : i32, i32
  }
  func.func @transform_4(%arg0: i32) -> (i32, i32) {
    %c0_i32 = arith.constant 0 : i32
    %c0_i32_0 = arith.constant 0 : i32
    %c0_i32_1 = arith.constant 0 : i32
    return %c0_i32, %c0_i32_0 : i32, i32
  }
}

module attributes {stable_mosaic.version = 11 : i64} {
  func.func @_conv_bn_gelu_kernel(%arg0: i32, %arg1: memref<128x288xbf16, #tpu.memory_space<vmem>>, %arg2: memref<288x32xbf16, #tpu.memory_space<vmem>>, %arg3: memref<1x32xf32, #tpu.memory_space<vmem>>, %arg4: memref<1x32xf32, #tpu.memory_space<vmem>>, %arg5: memref<128x32xbf16, #tpu.memory_space<vmem>>, %arg6: memref<128x32xf32, #tpu.memory_space<vmem>>) attributes {dimension_semantics = [#tpu.dimension_semantics<arbitrary>], iteration_bounds = array<i64: 1>, scalar_prefetch = 0 : i64, scratch_operands = 1 : i64, tpu.core_type = #tpu.core_type<tc>, window_params = [{transform_indices = @transform_0, window_bounds = array<i64: 128, 288>}, {pipeline_mode = #tpu.pipeline_mode<synchronous>, transform_indices = @transform_1, window_bounds = array<i64: 288, 32>}, {pipeline_mode = #tpu.pipeline_mode<synchronous>, transform_indices = @transform_2, window_bounds = array<i64: 1, 32>}, {pipeline_mode = #tpu.pipeline_mode<synchronous>, transform_indices = @transform_3, window_bounds = array<i64: 1, 32>}, {pipeline_mode = #tpu.pipeline_mode<synchronous>, transform_indices = @transform_4, window_bounds = array<i64: 128, 32>}]} {
    %c0 = arith.constant 0 : index
    %c0_0 = arith.constant 0 : index
    %0 = vector.load %arg1[%c0, %c0_0] : memref<128x288xbf16, #tpu.memory_space<vmem>>, vector<128x288xbf16>
    %c0_1 = arith.constant 0 : index
    %c0_2 = arith.constant 0 : index
    %1 = vector.load %arg2[%c0_1, %c0_2] : memref<288x32xbf16, #tpu.memory_space<vmem>>, vector<288x32xbf16>
    %cst = arith.constant dense<0.000000e+00> : vector<128x32xf32>
    %2 = tpu.matmul %0, %1, %cst {dimension_numbers = #tpu.dot_dimension_numbers<[1], [0], [0], [1], [0, 0, 1, 1], [], []>} : vector<128x288xbf16>, vector<288x32xbf16>, vector<128x32xf32> -> vector<128x32xf32>
    %c128_i32 = arith.constant 128 : i32
    %3 = arith.muli %arg0, %c128_i32 : i32
    %4 = tpu.assume_multiple %3, 128 : i32
    %5 = arith.index_cast %4 : i32 to index
    %c0_3 = arith.constant 0 : index
    %6 = vector.load %arg6[%5, %c0_3] : memref<128x32xf32, #tpu.memory_space<vmem>>, vector<128x32xf32>
    tpu.vector_store %arg6[%5, %c0_3], %2 {strides = array<i32>} : memref<128x32xf32, #tpu.memory_space<vmem>>, vector<128x32xf32>,
    %c0_i32 = arith.constant 0 : i32
    %7 = arith.cmpi eq, %arg0, %c0_i32 : i32
    %8 = arith.extui %7 : i1 to i32
    %c0_i32_4 = arith.constant 0 : i32
    %9 = arith.cmpi ne, %8, %c0_i32_4 : i32
    scf.if %9 {
      %c0_5 = arith.constant 0 : index
      %c0_6 = arith.constant 0 : index
      %10 = vector.load %arg6[%c0_5, %c0_6] : memref<128x32xf32, #tpu.memory_space<vmem>>, vector<128x32xf32>
      %cst_7 = arith.constant dense<0.000000e+00> : vector<32xf32>
      %11 = vector.multi_reduction <add>, %10, %cst_7 [0] : vector<128x32xf32> to vector<32xf32>
      %12 = vector.shape_cast %11 : vector<32xf32> to vector<1x32xf32>
      %cst_8 = arith.constant 1.280000e+02 : f32
      %13 = vector.broadcast %cst_8 : f32 to vector<1x32xf32>
      %14 = arith.divf %12, %13 : vector<1x32xf32>
      %15 = vector.broadcast %14 : vector<1x32xf32> to vector<128x32xf32>
      %16 = arith.subf %10, %15 : vector<128x32xf32>
      %17 = arith.mulf %16, %16 : vector<128x32xf32>
      %cst_9 = arith.constant dense<0.000000e+00> : vector<32xf32>
      %18 = vector.multi_reduction <add>, %17, %cst_9 [0] : vector<128x32xf32> to vector<32xf32>
      %19 = vector.shape_cast %18 : vector<32xf32> to vector<1x32xf32>
      %cst_10 = arith.constant 1.280000e+02 : f32
      %20 = vector.broadcast %cst_10 : f32 to vector<1x32xf32>
      %21 = arith.divf %19, %20 : vector<1x32xf32>
      %cst_11 = arith.constant 9.99999974E-6 : f32
      %22 = vector.broadcast %cst_11 : f32 to vector<1x32xf32>
      %23 = arith.addf %21, %22 : vector<1x32xf32>
      %24 = math.rsqrt %23 : vector<1x32xf32>
      %c0_12 = arith.constant 0 : index
      %c0_13 = arith.constant 0 : index
      %25 = vector.load %arg3[%c0_12, %c0_13] : memref<1x32xf32, #tpu.memory_space<vmem>>, vector<1x32xf32>
      %26 = arith.mulf %25, %24 : vector<1x32xf32>
      %c0_14 = arith.constant 0 : index
      %c0_15 = arith.constant 0 : index
      %27 = vector.load %arg4[%c0_14, %c0_15] : memref<1x32xf32, #tpu.memory_space<vmem>>, vector<1x32xf32>
      %28 = arith.mulf %14, %26 : vector<1x32xf32>
      %29 = arith.subf %27, %28 : vector<1x32xf32>
      %30 = vector.broadcast %26 : vector<1x32xf32> to vector<128x32xf32>
      %31 = arith.mulf %10, %30 : vector<128x32xf32>
      %32 = vector.broadcast %29 : vector<1x32xf32> to vector<128x32xf32>
      %33 = arith.addf %31, %32 : vector<128x32xf32>
      %cst_16 = arith.constant 5.000000e-01 : f32
      %34 = vector.broadcast %cst_16 : f32 to vector<128x32xf32>
      %35 = arith.mulf %34, %33 : vector<128x32xf32>
      %cst_17 = arith.constant 4.471500e-02 : f32
      %36 = vector.broadcast %cst_17 : f32 to vector<128x32xf32>
      %37 = arith.mulf %36, %33 : vector<128x32xf32>
      %38 = arith.mulf %37, %33 : vector<128x32xf32>
      %39 = arith.mulf %38, %33 : vector<128x32xf32>
      %40 = arith.addf %33, %39 : vector<128x32xf32>
      %cst_18 = arith.constant 0.797884583 : f32
      %41 = vector.broadcast %cst_18 : f32 to vector<128x32xf32>
      %42 = arith.mulf %41, %40 : vector<128x32xf32>
      %43 = math.tanh %42 : vector<128x32xf32>
      %cst_19 = arith.constant 1.000000e+00 : f32
      %44 = vector.broadcast %cst_19 : f32 to vector<128x32xf32>
      %45 = arith.addf %44, %43 : vector<128x32xf32>
      %46 = arith.mulf %35, %45 : vector<128x32xf32>
      %47 = arith.truncf %46 : vector<128x32xf32> to vector<128x32xbf16>
      %c0_20 = arith.constant 0 : index
      %c0_21 = arith.constant 0 : index
      %48 = vector.load %arg5[%c0_20, %c0_21] : memref<128x32xbf16, #tpu.memory_space<vmem>>, vector<128x32xbf16>
      tpu.vector_store %arg5[%c0_20, %c0_21], %47 {strides = array<i32>} : memref<128x32xbf16, #tpu.memory_space<vmem>>, vector<128x32xbf16>,
    } else {
    }
    return
  }
  func.func @transform_0(%arg0: i32) -> (i32, i32) {
    %c0_i32 = arith.constant 0 : i32
    %c0_i32_0 = arith.constant 0 : i32
    return %arg0, %c0_i32 : i32, i32
  }
  func.func @transform_1(%arg0: i32) -> (i32, i32) {
    %c0_i32 = arith.constant 0 : i32
    %c0_i32_0 = arith.constant 0 : i32
    %c0_i32_1 = arith.constant 0 : i32
    return %c0_i32, %c0_i32_0 : i32, i32
  }
  func.func @transform_2(%arg0: i32) -> (i32, i32) {
    %c0_i32 = arith.constant 0 : i32
    %c0_i32_0 = arith.constant 0 : i32
    %c0_i32_1 = arith.constant 0 : i32
    return %c0_i32, %c0_i32_0 : i32, i32
  }
  func.func @transform_3(%arg0: i32) -> (i32, i32) {
    %c0_i32 = arith.constant 0 : i32
    %c0_i32_0 = arith.constant 0 : i32
    %c0_i32_1 = arith.constant 0 : i32
    return %c0_i32, %c0_i32_0 : i32, i32
  }
  func.func @transform_4(%arg0: i32) -> (i32, i32) {
    %c0_i32 = arith.constant 0 : i32
    %c0_i32_0 = arith.constant 0 : i32
    %c0_i32_1 = arith.constant 0 : i32
    return %c0_i32, %c0_i32_0 : i32, i32
  }
}

module attributes {stable_mosaic.version = 11 : i64} {
  func.func @_conv_bn_gelu_kernel(%arg0: i32, %arg1: memref<32x288xbf16, #tpu.memory_space<vmem>>, %arg2: memref<288x64xbf16, #tpu.memory_space<vmem>>, %arg3: memref<1x64xf32, #tpu.memory_space<vmem>>, %arg4: memref<1x64xf32, #tpu.memory_space<vmem>>, %arg5: memref<32x64xbf16, #tpu.memory_space<vmem>>, %arg6: memref<32x64xf32, #tpu.memory_space<vmem>>) attributes {dimension_semantics = [#tpu.dimension_semantics<arbitrary>], iteration_bounds = array<i64: 1>, scalar_prefetch = 0 : i64, scratch_operands = 1 : i64, tpu.core_type = #tpu.core_type<tc>, window_params = [{transform_indices = @transform_0, window_bounds = array<i64: 32, 288>}, {pipeline_mode = #tpu.pipeline_mode<synchronous>, transform_indices = @transform_1, window_bounds = array<i64: 288, 64>}, {pipeline_mode = #tpu.pipeline_mode<synchronous>, transform_indices = @transform_2, window_bounds = array<i64: 1, 64>}, {pipeline_mode = #tpu.pipeline_mode<synchronous>, transform_indices = @transform_3, window_bounds = array<i64: 1, 64>}, {pipeline_mode = #tpu.pipeline_mode<synchronous>, transform_indices = @transform_4, window_bounds = array<i64: 32, 64>}]} {
    %c0 = arith.constant 0 : index
    %c0_0 = arith.constant 0 : index
    %0 = vector.load %arg1[%c0, %c0_0] : memref<32x288xbf16, #tpu.memory_space<vmem>>, vector<32x288xbf16>
    %c0_1 = arith.constant 0 : index
    %c0_2 = arith.constant 0 : index
    %1 = vector.load %arg2[%c0_1, %c0_2] : memref<288x64xbf16, #tpu.memory_space<vmem>>, vector<288x64xbf16>
    %cst = arith.constant dense<0.000000e+00> : vector<32x64xf32>
    %2 = tpu.matmul %0, %1, %cst {dimension_numbers = #tpu.dot_dimension_numbers<[1], [0], [0], [1], [0, 0, 1, 1], [], []>} : vector<32x288xbf16>, vector<288x64xbf16>, vector<32x64xf32> -> vector<32x64xf32>
    %c32_i32 = arith.constant 32 : i32
    %3 = arith.muli %arg0, %c32_i32 : i32
    %4 = tpu.assume_multiple %3, 32 : i32
    %5 = arith.index_cast %4 : i32 to index
    %c0_3 = arith.constant 0 : index
    %6 = vector.load %arg6[%5, %c0_3] : memref<32x64xf32, #tpu.memory_space<vmem>>, vector<32x64xf32>
    tpu.vector_store %arg6[%5, %c0_3], %2 {strides = array<i32>} : memref<32x64xf32, #tpu.memory_space<vmem>>, vector<32x64xf32>,
    %c0_i32 = arith.constant 0 : i32
    %7 = arith.cmpi eq, %arg0, %c0_i32 : i32
    %8 = arith.extui %7 : i1 to i32
    %c0_i32_4 = arith.constant 0 : i32
    %9 = arith.cmpi ne, %8, %c0_i32_4 : i32
    scf.if %9 {
      %c0_5 = arith.constant 0 : index
      %c0_6 = arith.constant 0 : index
      %10 = vector.load %arg6[%c0_5, %c0_6] : memref<32x64xf32, #tpu.memory_space<vmem>>, vector<32x64xf32>
      %cst_7 = arith.constant dense<0.000000e+00> : vector<64xf32>
      %11 = vector.multi_reduction <add>, %10, %cst_7 [0] : vector<32x64xf32> to vector<64xf32>
      %12 = vector.shape_cast %11 : vector<64xf32> to vector<1x64xf32>
      %cst_8 = arith.constant 3.200000e+01 : f32
      %13 = vector.broadcast %cst_8 : f32 to vector<1x64xf32>
      %14 = arith.divf %12, %13 : vector<1x64xf32>
      %15 = vector.broadcast %14 : vector<1x64xf32> to vector<32x64xf32>
      %16 = arith.subf %10, %15 : vector<32x64xf32>
      %17 = arith.mulf %16, %16 : vector<32x64xf32>
      %cst_9 = arith.constant dense<0.000000e+00> : vector<64xf32>
      %18 = vector.multi_reduction <add>, %17, %cst_9 [0] : vector<32x64xf32> to vector<64xf32>
      %19 = vector.shape_cast %18 : vector<64xf32> to vector<1x64xf32>
      %cst_10 = arith.constant 3.200000e+01 : f32
      %20 = vector.broadcast %cst_10 : f32 to vector<1x64xf32>
      %21 = arith.divf %19, %20 : vector<1x64xf32>
      %cst_11 = arith.constant 9.99999974E-6 : f32
      %22 = vector.broadcast %cst_11 : f32 to vector<1x64xf32>
      %23 = arith.addf %21, %22 : vector<1x64xf32>
      %24 = math.rsqrt %23 : vector<1x64xf32>
      %c0_12 = arith.constant 0 : index
      %c0_13 = arith.constant 0 : index
      %25 = vector.load %arg3[%c0_12, %c0_13] : memref<1x64xf32, #tpu.memory_space<vmem>>, vector<1x64xf32>
      %26 = arith.mulf %25, %24 : vector<1x64xf32>
      %c0_14 = arith.constant 0 : index
      %c0_15 = arith.constant 0 : index
      %27 = vector.load %arg4[%c0_14, %c0_15] : memref<1x64xf32, #tpu.memory_space<vmem>>, vector<1x64xf32>
      %28 = arith.mulf %14, %26 : vector<1x64xf32>
      %29 = arith.subf %27, %28 : vector<1x64xf32>
      %30 = vector.broadcast %26 : vector<1x64xf32> to vector<32x64xf32>
      %31 = arith.mulf %10, %30 : vector<32x64xf32>
      %32 = vector.broadcast %29 : vector<1x64xf32> to vector<32x64xf32>
      %33 = arith.addf %31, %32 : vector<32x64xf32>
      %cst_16 = arith.constant 5.000000e-01 : f32
      %34 = vector.broadcast %cst_16 : f32 to vector<32x64xf32>
      %35 = arith.mulf %34, %33 : vector<32x64xf32>
      %cst_17 = arith.constant 4.471500e-02 : f32
      %36 = vector.broadcast %cst_17 : f32 to vector<32x64xf32>
      %37 = arith.mulf %36, %33 : vector<32x64xf32>
      %38 = arith.mulf %37, %33 : vector<32x64xf32>
      %39 = arith.mulf %38, %33 : vector<32x64xf32>
      %40 = arith.addf %33, %39 : vector<32x64xf32>
      %cst_18 = arith.constant 0.797884583 : f32
      %41 = vector.broadcast %cst_18 : f32 to vector<32x64xf32>
      %42 = arith.mulf %41, %40 : vector<32x64xf32>
      %43 = math.tanh %42 : vector<32x64xf32>
      %cst_19 = arith.constant 1.000000e+00 : f32
      %44 = vector.broadcast %cst_19 : f32 to vector<32x64xf32>
      %45 = arith.addf %44, %43 : vector<32x64xf32>
      %46 = arith.mulf %35, %45 : vector<32x64xf32>
      %47 = arith.truncf %46 : vector<32x64xf32> to vector<32x64xbf16>
      %c0_20 = arith.constant 0 : index
      %c0_21 = arith.constant 0 : index
      %48 = vector.load %arg5[%c0_20, %c0_21] : memref<32x64xbf16, #tpu.memory_space<vmem>>, vector<32x64xbf16>
      tpu.vector_store %arg5[%c0_20, %c0_21], %47 {strides = array<i32>} : memref<32x64xbf16, #tpu.memory_space<vmem>>, vector<32x64xbf16>,
    } else {
    }
    return
  }
  func.func @transform_0(%arg0: i32) -> (i32, i32) {
    %c0_i32 = arith.constant 0 : i32
    %c0_i32_0 = arith.constant 0 : i32
    return %arg0, %c0_i32 : i32, i32
  }
  func.func @transform_1(%arg0: i32) -> (i32, i32) {
    %c0_i32 = arith.constant 0 : i32
    %c0_i32_0 = arith.constant 0 : i32
    %c0_i32_1 = arith.constant 0 : i32
    return %c0_i32, %c0_i32_0 : i32, i32
  }
  func.func @transform_2(%arg0: i32) -> (i32, i32) {
    %c0_i32 = arith.constant 0 : i32
    %c0_i32_0 = arith.constant 0 : i32
    %c0_i32_1 = arith.constant 0 : i32
    return %c0_i32, %c0_i32_0 : i32, i32
  }
  func.func @transform_3(%arg0: i32) -> (i32, i32) {
    %c0_i32 = arith.constant 0 : i32
    %c0_i32_0 = arith.constant 0 : i32
    %c0_i32_1 = arith.constant 0 : i32
    return %c0_i32, %c0_i32_0 : i32, i32
  }
  func.func @transform_4(%arg0: i32) -> (i32, i32) {
    %c0_i32 = arith.constant 0 : i32
    %c0_i32_0 = arith.constant 0 : i32
    %c0_i32_1 = arith.constant 0 : i32
    return %c0_i32, %c0_i32_0 : i32, i32
  }
}

module attributes {stable_mosaic.version = 11 : i64} {
  func.func @_conv_bn_gelu_kernel(%arg0: i32, %arg1: memref<32x576xbf16, #tpu.memory_space<vmem>>, %arg2: memref<576x64xbf16, #tpu.memory_space<vmem>>, %arg3: memref<1x64xf32, #tpu.memory_space<vmem>>, %arg4: memref<1x64xf32, #tpu.memory_space<vmem>>, %arg5: memref<32x64xbf16, #tpu.memory_space<vmem>>, %arg6: memref<32x64xf32, #tpu.memory_space<vmem>>) attributes {dimension_semantics = [#tpu.dimension_semantics<arbitrary>], iteration_bounds = array<i64: 1>, scalar_prefetch = 0 : i64, scratch_operands = 1 : i64, tpu.core_type = #tpu.core_type<tc>, window_params = [{transform_indices = @transform_0, window_bounds = array<i64: 32, 576>}, {pipeline_mode = #tpu.pipeline_mode<synchronous>, transform_indices = @transform_1, window_bounds = array<i64: 576, 64>}, {pipeline_mode = #tpu.pipeline_mode<synchronous>, transform_indices = @transform_2, window_bounds = array<i64: 1, 64>}, {pipeline_mode = #tpu.pipeline_mode<synchronous>, transform_indices = @transform_3, window_bounds = array<i64: 1, 64>}, {pipeline_mode = #tpu.pipeline_mode<synchronous>, transform_indices = @transform_4, window_bounds = array<i64: 32, 64>}]} {
    %c0 = arith.constant 0 : index
    %c0_0 = arith.constant 0 : index
    %0 = vector.load %arg1[%c0, %c0_0] : memref<32x576xbf16, #tpu.memory_space<vmem>>, vector<32x576xbf16>
    %c0_1 = arith.constant 0 : index
    %c0_2 = arith.constant 0 : index
    %1 = vector.load %arg2[%c0_1, %c0_2] : memref<576x64xbf16, #tpu.memory_space<vmem>>, vector<576x64xbf16>
    %cst = arith.constant dense<0.000000e+00> : vector<32x64xf32>
    %2 = tpu.matmul %0, %1, %cst {dimension_numbers = #tpu.dot_dimension_numbers<[1], [0], [0], [1], [0, 0, 1, 1], [], []>} : vector<32x576xbf16>, vector<576x64xbf16>, vector<32x64xf32> -> vector<32x64xf32>
    %c32_i32 = arith.constant 32 : i32
    %3 = arith.muli %arg0, %c32_i32 : i32
    %4 = tpu.assume_multiple %3, 32 : i32
    %5 = arith.index_cast %4 : i32 to index
    %c0_3 = arith.constant 0 : index
    %6 = vector.load %arg6[%5, %c0_3] : memref<32x64xf32, #tpu.memory_space<vmem>>, vector<32x64xf32>
    tpu.vector_store %arg6[%5, %c0_3], %2 {strides = array<i32>} : memref<32x64xf32, #tpu.memory_space<vmem>>, vector<32x64xf32>,
    %c0_i32 = arith.constant 0 : i32
    %7 = arith.cmpi eq, %arg0, %c0_i32 : i32
    %8 = arith.extui %7 : i1 to i32
    %c0_i32_4 = arith.constant 0 : i32
    %9 = arith.cmpi ne, %8, %c0_i32_4 : i32
    scf.if %9 {
      %c0_5 = arith.constant 0 : index
      %c0_6 = arith.constant 0 : index
      %10 = vector.load %arg6[%c0_5, %c0_6] : memref<32x64xf32, #tpu.memory_space<vmem>>, vector<32x64xf32>
      %cst_7 = arith.constant dense<0.000000e+00> : vector<64xf32>
      %11 = vector.multi_reduction <add>, %10, %cst_7 [0] : vector<32x64xf32> to vector<64xf32>
      %12 = vector.shape_cast %11 : vector<64xf32> to vector<1x64xf32>
      %cst_8 = arith.constant 3.200000e+01 : f32
      %13 = vector.broadcast %cst_8 : f32 to vector<1x64xf32>
      %14 = arith.divf %12, %13 : vector<1x64xf32>
      %15 = vector.broadcast %14 : vector<1x64xf32> to vector<32x64xf32>
      %16 = arith.subf %10, %15 : vector<32x64xf32>
      %17 = arith.mulf %16, %16 : vector<32x64xf32>
      %cst_9 = arith.constant dense<0.000000e+00> : vector<64xf32>
      %18 = vector.multi_reduction <add>, %17, %cst_9 [0] : vector<32x64xf32> to vector<64xf32>
      %19 = vector.shape_cast %18 : vector<64xf32> to vector<1x64xf32>
      %cst_10 = arith.constant 3.200000e+01 : f32
      %20 = vector.broadcast %cst_10 : f32 to vector<1x64xf32>
      %21 = arith.divf %19, %20 : vector<1x64xf32>
      %cst_11 = arith.constant 9.99999974E-6 : f32
      %22 = vector.broadcast %cst_11 : f32 to vector<1x64xf32>
      %23 = arith.addf %21, %22 : vector<1x64xf32>
      %24 = math.rsqrt %23 : vector<1x64xf32>
      %c0_12 = arith.constant 0 : index
      %c0_13 = arith.constant 0 : index
      %25 = vector.load %arg3[%c0_12, %c0_13] : memref<1x64xf32, #tpu.memory_space<vmem>>, vector<1x64xf32>
      %26 = arith.mulf %25, %24 : vector<1x64xf32>
      %c0_14 = arith.constant 0 : index
      %c0_15 = arith.constant 0 : index
      %27 = vector.load %arg4[%c0_14, %c0_15] : memref<1x64xf32, #tpu.memory_space<vmem>>, vector<1x64xf32>
      %28 = arith.mulf %14, %26 : vector<1x64xf32>
      %29 = arith.subf %27, %28 : vector<1x64xf32>
      %30 = vector.broadcast %26 : vector<1x64xf32> to vector<32x64xf32>
      %31 = arith.mulf %10, %30 : vector<32x64xf32>
      %32 = vector.broadcast %29 : vector<1x64xf32> to vector<32x64xf32>
      %33 = arith.addf %31, %32 : vector<32x64xf32>
      %cst_16 = arith.constant 5.000000e-01 : f32
      %34 = vector.broadcast %cst_16 : f32 to vector<32x64xf32>
      %35 = arith.mulf %34, %33 : vector<32x64xf32>
      %cst_17 = arith.constant 4.471500e-02 : f32
      %36 = vector.broadcast %cst_17 : f32 to vector<32x64xf32>
      %37 = arith.mulf %36, %33 : vector<32x64xf32>
      %38 = arith.mulf %37, %33 : vector<32x64xf32>
      %39 = arith.mulf %38, %33 : vector<32x64xf32>
      %40 = arith.addf %33, %39 : vector<32x64xf32>
      %cst_18 = arith.constant 0.797884583 : f32
      %41 = vector.broadcast %cst_18 : f32 to vector<32x64xf32>
      %42 = arith.mulf %41, %40 : vector<32x64xf32>
      %43 = math.tanh %42 : vector<32x64xf32>
      %cst_19 = arith.constant 1.000000e+00 : f32
      %44 = vector.broadcast %cst_19 : f32 to vector<32x64xf32>
      %45 = arith.addf %44, %43 : vector<32x64xf32>
      %46 = arith.mulf %35, %45 : vector<32x64xf32>
      %47 = arith.truncf %46 : vector<32x64xf32> to vector<32x64xbf16>
      %c0_20 = arith.constant 0 : index
      %c0_21 = arith.constant 0 : index
      %48 = vector.load %arg5[%c0_20, %c0_21] : memref<32x64xbf16, #tpu.memory_space<vmem>>, vector<32x64xbf16>
      tpu.vector_store %arg5[%c0_20, %c0_21], %47 {strides = array<i32>} : memref<32x64xbf16, #tpu.memory_space<vmem>>, vector<32x64xbf16>,
    } else {
    }
    return
  }
  func.func @transform_0(%arg0: i32) -> (i32, i32) {
    %c0_i32 = arith.constant 0 : i32
    %c0_i32_0 = arith.constant 0 : i32
    return %arg0, %c0_i32 : i32, i32
  }
  func.func @transform_1(%arg0: i32) -> (i32, i32) {
    %c0_i32 = arith.constant 0 : i32
    %c0_i32_0 = arith.constant 0 : i32
    %c0_i32_1 = arith.constant 0 : i32
    return %c0_i32, %c0_i32_0 : i32, i32
  }
  func.func @transform_2(%arg0: i32) -> (i32, i32) {
    %c0_i32 = arith.constant 0 : i32
    %c0_i32_0 = arith.constant 0 : i32
    %c0_i32_1 = arith.constant 0 : i32
    return %c0_i32, %c0_i32_0 : i32, i32
  }
  func.func @transform_3(%arg0: i32) -> (i32, i32) {
    %c0_i32 = arith.constant 0 : i32
    %c0_i32_0 = arith.constant 0 : i32
    %c0_i32_1 = arith.constant 0 : i32
    return %c0_i32, %c0_i32_0 : i32, i32
  }
  func.func @transform_4(%arg0: i32) -> (i32, i32) {
    %c0_i32 = arith.constant 0 : i32
    %c0_i32_0 = arith.constant 0 : i32
    %c0_i32_1 = arith.constant 0 : i32
    return %c0_i32, %c0_i32_0 : i32, i32
  }
}

</mosaic_0001>

<bundles_post_ra>
// kernel: tpu_custom_call.1
= control target key start
LH: loop header
LB: loop body
LE: loop exit
PB: predicated region body
PF: predicated region fallthrough
CT: control target
= control target key end

     0   :  { %6 = vsyncpa [#allocation3], 0  ;;  %s127_s0 = inlined_call_operand.hbm [shape: f32[8,128], index: 0, kind: input, shape index: {}]   ;;  %s128_s1 = inlined_call_operand.hbm [shape: f32[8,128], index: 1, kind: output, shape index: {}]  }
   0x1   :  { %7 = vsyncpa [#allocation4], 0  ;;  %s91_s6 = smov [#allocation2]   ;;  %s43_s10 = scalar_lea.hbm %s127_s0, 128 }
   0x2   :  { %s14_s7 = sshll.u32 %s91_s6, 4  ;;  %p44_p0 = scmp.ne.s32.totalorder %s127_s0, %s43_s10  ;;  %s15_s7 = int_to_ptr.vmem [resolvable:$true] %s14_s7 }
   0x3   :  { %p47_p1 = scmp.lt.u32.totalorder %s43_s10, %s127_s0 }
   0x5   :  { %p49_p2 = pnand %p47_p1, %p44_p0 }
   0x7   :  { %52 = shalt.err (!%p49_p2)
}
   0x8   :  { %s53_s15 = scalar_lea.vmem %s15_s7, 128  ;;  %p58_p4 = scmp.lt.s32.totalorder %s15_s7, %s15_s7 }
   0x9   :  { %p54_p3 = scmp.ne.s32.totalorder %s15_s7, %s53_s15  ;;  %p59_p5 = scmp.lt.s32.totalorder %s53_s15, %s53_s15 }
   0xb   :  { %p60_p6 = por %p59_p5, %p58_p4 }
   0xd   :  { %p61_p7 = pnand %p60_p6, %p54_p3 }
   0xf   :  { %64 = shalt.err (!%p61_p7)
}
  0x10   :  { %17 = dma.hbm_to_vmem [thread:$0]  %s127_s0, 128, %s15_s7, [#allocation3]  }
  0x11   :  { %87 = dma.done.wait [#allocation3], 128  }
  0x12   :  { %88 = vsyncadd [#allocation3], 4294967168  ;;  %v21_v0 = vld [vmem:[#allocation2] sm:$0xff]  ;;  %s92_s18 = smov [#allocation5]  }
  0x13   :  { %41 = verf.f32 %v21_v0  ;;  %s30_s19 = sshll.u32 %s92_s18, 4  ;;  %s31_s19 = int_to_ptr.vmem [resolvable:$true] %s30_s19 }
  0x14   :  { %s65_s20 = scalar_lea.vmem %s31_s19, 128  ;;  %p70_p9 = scmp.lt.s32.totalorder %s31_s19, %s31_s19 }
  0x15   :  { %p66_p8 = scmp.ne.s32.totalorder %s31_s19, %s65_s20  ;;  %p71_p10 = scmp.lt.s32.totalorder %s65_s20, %s65_s20 }
  0x17   :  { %p72_p11 = por %p71_p10, %p70_p9 }
  0x19   :  { %p73_p12 = pnand %p72_p11, %p66_p8 }
  0x1d   :  { %v42_v1 = vpop.eup %41 }
  0x1e   :  { %23 = vst [vmem:[#allocation5] sm:$0xff] %v42_v1 }
  0x1f   :  { %76 = shalt.err (!%p73_p12)
}
  0x20   :  { %s77_s0 = scalar_lea.hbm %s128_s1, 128 }
  0x21   :  { %p78_p13 = scmp.ne.s32.totalorder %s128_s1, %s77_s0  ;;  %p81_p0 = scmp.lt.u32.totalorder %s77_s0, %s128_s1 }
  0x23   :  { %p83_p1 = pnand %p81_p0, %p78_p13 }
  0x25   :  { %86 = shalt.err (!%p83_p1)
}
  0x26   :  { %33 = dma.vmem_to_hbm [thread:$0]  %s31_s19, 128, %s128_s1, [#allocation4]  }
  0x27   :  { %89 = dma.done.wait [#allocation4], 128  }
  0x28   :  { %90 = vsyncadd [#allocation4], 4294967168 }
  0x29   :  { %37 = vsyncpa [#allocation3], 1 }
  0x2a   :  { %38 = vsyncpa [#allocation4], 1 }

// kernel: cnn_forward.7
= control target key start
LH: loop header
LB: loop body
LE: loop exit
PB: predicated region body
PF: predicated region fallthrough
CT: control target
= control target key end

     0   :  { %vm354_vm0 = vcmask 1044480   ;;  %vm355_vm1 = vcmask 1045504   ;;  %vm257_vm2 = vcmask 220160   ;;  %v2710_v1 = vmov 65535   ;;  %s5835_s1 = inlined_call_operand.vmem [shape: bf16[27,16], index: 1, kind: input, shape index: {}]   ;;  %s5836_s0 = inlined_call_operand.vmem [shape: bf16[512,27], index: 0, kind: input, shape index: {}]   ;;  %s5837_s2 = inlined_call_operand.vmem [shape: f32[1,16], index: 2, kind: input, shape index: {}]   ;;  %s5838_s3 = inlined_call_operand.vmem [shape: f32[1,16], index: 3, kind: input, shape index: {}]   ;;  %s5839_s4 = inlined_call_operand.vmem [shape: bf16[512,16], index: 4, kind: output, shape index: {}]  }
   0x1   :  { %v2531_v0 = vld [vmem:[%s5835_s1] sm:$0xff]   ;;  %v356_v2 = vsel %vm354_vm0, 4294967295, %v2710_v1  ;;  %v2532_v3 = vld [vmem:[%s5835_s1 + $0x8] sm:$0x3f]   ;;  %v2535_v8 = vld [vmem:[%s5836_s0 + $0x10] sm:$0xff]   ;;  %vm652_vm3 = vcmask 130048  }
   0x2   :  { %2458 = vmatprep.subr.bf16.mxu0 %v2531_v0  ;;  %v357_v4 = vsel %vm355_vm1, %v356_v2, 0  ;;  %v2533_v5 = vld [vmem:[%s5836_s0] sm:$0xff]   ;;  %2526 = vmatprep.subr.bf16.mxu1 %v2531_v0  ;;  %v2534_v7 = vld [vmem:[%s5836_s0 + $0x8] sm:$0xff]   ;;  %v2536_v9 = vld [vmem:[%s5836_s0 + $0x18] sm:$0xff]   ;;  %vm2161_vm4 = vcmask 125952  }
   0x3   :  { %2459 = vmatpush3.bf16.msra.mxu0 %v2531_v0  ;;  %v359_v6 = vand.u32 %v2532_v3, %v357_v4  ;;  %2528 = vmatpush3.bf16.msra.mxu1 %v2531_v0  ;;  %v2537_v10 = vld [vmem:[%s5836_s0 + $0x20] sm:$0xff]   ;;  %v2550_v12 = vld [vmem:[%s5836_s0 + $0x88] sm:$0xff]   ;;  %v2551_v13 = vld [vmem:[%s5836_s0 + $0x90] sm:$0xff]  }
   0x4   :  { %2462 = vmatprep.mubr.msk.bf16.mxu0 %vm257_vm2, %v2533_v5  ;;  %v2549_v11 = vld [vmem:[%s5836_s0 + $0x80] sm:$0xff]   ;;  %v2538_v14 = vld [vmem:[%s5836_s0 + $0x28] sm:$0xff]   ;;  %v2539_v15 = vld [vmem:[%s5836_s0 + $0x30] sm:$0xff]  }
   0x5   :  { %2460 = vmatprep.subr.bf16.mxu0 %v359_v6  ;;  %2527 = vmatprep.subr.bf16.mxu1 %v359_v6  ;;  %v2552_v16 = vld [vmem:[%s5836_s0 + $0x98] sm:$0xff]   ;;  %v2553_v17 = vld [vmem:[%s5836_s0 + $0xa0] sm:$0xff]   ;;  %v2554_v20 = vld [vmem:[%s5836_s0 + $0xa8] sm:$0xff]  }
   0x6   :  { %2494 = vmatprep.mubr.msk.bf16.mxu1 %vm257_vm2, %v2549_v11  ;;  %v2540_v18 = vld [vmem:[%s5836_s0 + $0x38] sm:$0xff]   ;;  %v2541_v19 = vld [vmem:[%s5836_s0 + $0x40] sm:$0xff]   ;;  %v2555_v21 = vld [vmem:[%s5836_s0 + $0xb0] sm:$0xff]  }
   0x7   :  { %2461 = vmatpush3.bf16.msra.mxu0 %v359_v6  ;;  %2529 = vmatpush3.bf16.msra.mxu1 %v359_v6  ;;  %v2542_v22 = vld [vmem:[%s5836_s0 + $0x48] sm:$0xff]   ;;  %v2543_v23 = vld [vmem:[%s5836_s0 + $0x50] sm:$0xff]   ;;  %v2556_v24 = vld [vmem:[%s5836_s0 + $0xb8] sm:$0xff]  }
   0x8   :  { %v2557_v25 = vld [vmem:[%s5836_s0 + $0xc0] sm:$0xff]   ;;  %v2544_v26 = vld [vmem:[%s5836_s0 + $0x58] sm:$0xff]   ;;  %v2558_v28 = vld [vmem:[%s5836_s0 + $0xc8] sm:$0xff]  }
   0x9   :  { %v2545_v27 = vld [vmem:[%s5836_s0 + $0x60] sm:$0xff]   ;;  %v2559_v29 = vld [vmem:[%s5836_s0 + $0xd0] sm:$0xff]   ;;  %v2546_v30 = vld [vmem:[%s5836_s0 + $0x68] sm:$0xff]  }
   0xa   :  { %2463 = vmatmul.mubr.msk.bf16.vlgmr.msra.gmra.mrb[0].mxu0 %vm257_vm2, %v2534_v7  ;;  %2495 = vmatmul.mubr.msk.bf16.vlgmr.msra.gmra.mrb[0].mxu1 %vm257_vm2, %v2550_v12  ;;  %v2547_v31 = vld [vmem:[%s5836_s0 + $0x70] sm:$0xff]   ;;  %v2560_v32 = vld [vmem:[%s5836_s0 + $0xd8] sm:$0xff]   ;;  %v2561_v33 = vld [vmem:[%s5836_s0 + $0xe0] sm:$0xff]  }
   0xb   :  { %2466 = vmatprep.mubr.msk.bf16.mxu0 %vm257_vm2, %v2535_v8  ;;  %2498 = vmatprep.mubr.msk.bf16.mxu1 %vm257_vm2, %v2551_v13  ;;  %v2548_v34 = vld [vmem:[%s5836_s0 + $0x78] sm:$0xff]   ;;  %v2562_v35 = vld [vmem:[%s5836_s0 + $0xe8] sm:$0xff]   ;;  %v2563_v36 = vld [vmem:[%s5836_s0 + $0xf0] sm:$0xff]  }
   0xc   :  { %v2564_v37 = vld [vmem:[%s5836_s0 + $0xf8] sm:$0xff]  }
  0x12   :  { %2467 = vmatmul.mubr.msk.bf16.gmra.mrb[4].mxu0 %vm257_vm2, %v2536_v9  ;;  %2499 = vmatmul.mubr.msk.bf16.gmra.mrb[4].mxu1 %vm257_vm2, %v2552_v16 }
  0x13   :  { %2470 = vmatprep.mubr.msk.bf16.mxu0 %vm257_vm2, %v2537_v10  ;;  %2502 = vmatprep.mubr.msk.bf16.mxu1 %vm257_vm2, %v2553_v17 }
  0x1a   :  { %2471 = vmatmul.mubr.msk.bf16.gmra.mrb[8].mxu0 %vm257_vm2, %v2538_v14  ;;  %2503 = vmatmul.mubr.msk.bf16.gmra.mrb[8].mxu1 %vm257_vm2, %v2554_v20 }
  0x1b   :  { %2474 = vmatprep.mubr.msk.bf16.mxu0 %vm257_vm2, %v2539_v15  ;;  %2506 = vmatprep.mubr.msk.bf16.mxu1 %vm257_vm2, %v2555_v21 }
  0x22   :  { %2475 = vmatmul.mubr.msk.bf16.gmra.mrb[12].mxu0 %vm257_vm2, %v2540_v18  ;;  %2507 = vmatmul.mubr.msk.bf16.gmra.mrb[12].mxu1 %vm257_vm2, %v2556_v24 }
  0x23   :  { %2478 = vmatprep.mubr.msk.bf16.mxu0 %vm257_vm2, %v2541_v19  ;;  %2510 = vmatprep.mubr.msk.bf16.mxu1 %vm257_vm2, %v2557_v25 }
  0x2a   :  { %2479 = vmatmul.mubr.msk.bf16.gmra.mrb[16].mxu0 %vm257_vm2, %v2542_v22  ;;  %2511 = vmatmul.mubr.msk.bf16.gmra.mrb[16].mxu1 %vm257_vm2, %v2558_v28 }
  0x2b   :  { %2482 = vmatprep.mubr.msk.bf16.mxu0 %vm257_vm2, %v2543_v23  ;;  %2514 = vmatprep.mubr.msk.bf16.mxu1 %vm257_vm2, %v2559_v29 }
  0x32   :  { %2483 = vmatmul.mubr.msk.bf16.gmra.mrb[20].mxu0 %vm257_vm2, %v2544_v26  ;;  %2515 = vmatmul.mubr.msk.bf16.gmra.mrb[20].mxu1 %vm257_vm2, %v2560_v32 }
  0x33   :  { %2486 = vmatprep.mubr.msk.bf16.mxu0 %vm257_vm2, %v2545_v27  ;;  %2518 = vmatprep.mubr.msk.bf16.mxu1 %vm257_vm2, %v2561_v33 }
  0x3a   :  { %2487 = vmatmul.mubr.msk.bf16.gmra.mrb[24].mxu0 %vm257_vm2, %v2546_v30  ;;  %2519 = vmatmul.mubr.msk.bf16.gmra.mrb[24].mxu1 %vm257_vm2, %v2562_v35 }
  0x3b   :  { %2490 = vmatprep.mubr.msk.bf16.mxu0 %vm257_vm2, %v2547_v31  ;;  %2522 = vmatprep.mubr.msk.bf16.mxu1 %vm257_vm2, %v2563_v36 }
  0x42   :  { %2491 = vmatmul.mubr.msk.bf16.gmra.mrb[28].mxu0 %vm257_vm2, %v2548_v34  ;;  %2523 = vmatmul.mubr.msk.bf16.gmra.mrb[28].mxu1 %vm257_vm2, %v2564_v37 }
  0xdd   :  { %v2464_v38 = vpop.f32.mrb[0].mxu0  ;;  %v2496_v49 = vpop.f32.mrb[0].mxu1 }
  0xde   :  { %655 = vst.msk [vmem:[#allocation2 + $0x10] sm:$0xff] %vm652_vm3, %v2464_v38  ;;  %v395_v39 = vpop.f32.mrb[1].mxu0  ;;  %687 = vst.msk [vmem:[#allocation2 + $0x110] sm:$0xff] %vm652_vm3, %v2496_v49  ;;  %v523_v52 = vpop.f32.mrb[1].mxu1 }
  0xdf   :  { %653 = vst.msk [vmem:[#allocation2] sm:$0xff] %vm652_vm3, %v395_v39  ;;  %v2465_v40 = vpop.f32.mrb[2].mxu0  ;;  %685 = vst.msk [vmem:[#allocation2 + $0x100] sm:$0xff] %vm652_vm3, %v523_v52  ;;  %v2497_v55 = vpop.f32.mrb[2].mxu1 }
  0xe0   :  { %656 = vst.msk [vmem:[#allocation2 + $0x18] sm:$0xff] %vm652_vm3, %v2465_v40  ;;  %v398_v41 = vpop.f32.mrb[3].mxu0  ;;  %688 = vst.msk [vmem:[#allocation2 + $0x118] sm:$0xff] %vm652_vm3, %v2497_v55  ;;  %v526_v57 = vpop.f32.mrb[3].mxu1 }
  0xe1   :  { %654 = vst.msk [vmem:[#allocation2 + $0x8] sm:$0xff] %vm652_vm3, %v398_v41  ;;  %686 = vst.msk [vmem:[#allocation2 + $0x108] sm:$0xff] %vm652_vm3, %v526_v57 }
  0xe5   :  { %v2468_v42 = vpop.f32.mrb[4].mxu0  ;;  %v2878_v46 = vld [vmem:[#allocation2 + $0x10] sm:$0xff]  ;;  %v2500_v6 = vpop.f32.mrb[4].mxu1 }
  0xe6   :  { %v2874_v43 = vld [vmem:[#allocation2] sm:$0xff]  ;;  %659 = vst.msk [vmem:[#allocation2 + $0x30] sm:$0xff] %vm652_vm3, %v2468_v42  ;;  %v411_v44 = vpop.f32.mrb[5].mxu0  ;;  %v788_v56 = vsel %vm652_vm3, %v2878_v46, 0.0  ;;  %691 = vst.msk [vmem:[#allocation2 + $0x130] sm:$0xff] %vm652_vm3, %v2500_v6  ;;  %v539_v8 = vpop.f32.mrb[5].mxu1 }
  0xe7   :  { %657 = vst.msk [vmem:[#allocation2 + $0x20] sm:$0xff] %vm652_vm3, %v411_v44  ;;  %v2469_v45 = vpop.f32.mrb[6].mxu0  ;;  %v785_v50 = vsel %vm652_vm3, %v2874_v43, 0.0  ;;  %v2889_v53 = vld [vmem:[#allocation2 + $0x18] sm:$0xff]  ;;  %689 = vst.msk [vmem:[#allocation2 + $0x120] sm:$0xff] %vm652_vm3, %v539_v8  ;;  %v2501_v11 = vpop.f32.mrb[6].mxu1 }
  0xe8   :  { %v2880_v47 = vld [vmem:[#allocation2 + $0x8] sm:$0xff]  ;;  %660 = vst.msk [vmem:[#allocation2 + $0x38] sm:$0xff] %vm652_vm3, %v2469_v45  ;;  %v414_v48 = vpop.f32.mrb[7].mxu0  ;;  %v790_v59 = vsel %vm652_vm3, %v2889_v53, 0.0  ;;  %692 = vst.msk [vmem:[#allocation2 + $0x138] sm:$0xff] %vm652_vm3, %v2501_v11  ;;  %v542_v13 = vpop.f32.mrb[7].mxu1 }
  0xe9   :  { %v786_v51 = vsel %vm652_vm3, %v2880_v47, 0.0  ;;  %658 = vst.msk [vmem:[#allocation2 + $0x28] sm:$0xff] %vm652_vm3, %v414_v48  ;;  %690 = vst.msk [vmem:[#allocation2 + $0x128] sm:$0xff] %vm652_vm3, %v542_v13 }
  0xea   :  { %v787_v54 = vadd.f32 %v786_v51, %v785_v50 }
  0xec   :  { %v789_v58 = vadd.f32 %v788_v56, %v787_v54 }
  0xed   :  { %v2472_v60 = vpop.f32.mrb[8].mxu0  ;;  %v2904_v2 = vld [vmem:[#allocation2 + $0x30] sm:$0xff]  ;;  %v2504_v26 = vpop.f32.mrb[8].mxu1 }
  0xee   :  { %v2898_v61 = vld [vmem:[#allocation2 + $0x20] sm:$0xff]  ;;  %v791_v62 = vadd.f32 %v790_v59, %v789_v58  ;;  %663 = vst.msk [vmem:[#allocation2 + $0x50] sm:$0xff] %vm652_vm3, %v2472_v60  ;;  %v427_v63 = vpop.f32.mrb[9].mxu0  ;;  %v796_v12 = vsel %vm652_vm3, %v2904_v2, 0.0  ;;  %695 = vst.msk [vmem:[#allocation2 + $0x150] sm:$0xff] %vm652_vm3, %v2504_v26  ;;  %v555_v28 = vpop.f32.mrb[9].mxu1 }
  0xef   :  { %v792_v0 = vsel %vm652_vm3, %v2898_v61, 0.0  ;;  %661 = vst.msk [vmem:[#allocation2 + $0x40] sm:$0xff] %vm652_vm3, %v427_v63  ;;  %v2473_v1 = vpop.f32.mrb[10].mxu0  ;;  %v2913_v9 = vld [vmem:[#allocation2 + $0x38] sm:$0xff]  ;;  %693 = vst.msk [vmem:[#allocation2 + $0x140] sm:$0xff] %vm652_vm3, %v555_v28  ;;  %v2505_v31 = vpop.f32.mrb[10].mxu1 }
  0xf0   :  { %v793_v3 = vadd.f32 %v792_v0, %v791_v62  ;;  %v2906_v4 = vld [vmem:[#allocation2 + $0x28] sm:$0xff]  ;;  %664 = vst.msk [vmem:[#allocation2 + $0x58] sm:$0xff] %vm652_vm3, %v2473_v1  ;;  %v430_v5 = vpop.f32.mrb[11].mxu0  ;;  %v798_v15 = vsel %vm652_vm3, %v2913_v9, 0.0  ;;  %696 = vst.msk [vmem:[#allocation2 + $0x158] sm:$0xff] %vm652_vm3, %v2505_v31  ;;  %v558_v33 = vpop.f32.mrb[11].mxu1 }
  0xf1   :  { %v794_v7 = vsel %vm652_vm3, %v2906_v4, 0.0  ;;  %662 = vst.msk [vmem:[#allocation2 + $0x48] sm:$0xff] %vm652_vm3, %v430_v5  ;;  %694 = vst.msk [vmem:[#allocation2 + $0x148] sm:$0xff] %vm652_vm3, %v558_v33 }
  0xf2   :  { %v795_v10 = vadd.f32 %v794_v7, %v793_v3 }
  0xf4   :  { %v797_v14 = vadd.f32 %v796_v12, %v795_v10 }
  0xf5   :  { %v2476_v16 = vpop.f32.mrb[12].mxu0  ;;  %v2928_v22 = vld [vmem:[#allocation2 + $0x50] sm:$0xff]  ;;  %v2508_v49 = vpop.f32.mrb[12].mxu1 }
  0xf6   :  { %v2922_v17 = vld [vmem:[#allocation2 + $0x40] sm:$0xff]  ;;  %v799_v18 = vadd.f32 %v798_v15, %v797_v14  ;;  %667 = vst.msk [vmem:[#allocation2 + $0x70] sm:$0xff] %vm652_vm3, %v2476_v16  ;;  %v443_v19 = vpop.f32.mrb[13].mxu0  ;;  %v804_v32 = vsel %vm652_vm3, %v2928_v22, 0.0  ;;  %699 = vst.msk [vmem:[#allocation2 + $0x170] sm:$0xff] %vm652_vm3, %v2508_v49  ;;  %v571_v51 = vpop.f32.mrb[13].mxu1 }
  0xf7   :  { %v800_v20 = vsel %vm652_vm3, %v2922_v17, 0.0  ;;  %665 = vst.msk [vmem:[#allocation2 + $0x60] sm:$0xff] %vm652_vm3, %v443_v19  ;;  %v2477_v21 = vpop.f32.mrb[14].mxu0  ;;  %v2937_v29 = vld [vmem:[#allocation2 + $0x58] sm:$0xff]  ;;  %697 = vst.msk [vmem:[#allocation2 + $0x160] sm:$0xff] %vm652_vm3, %v571_v51  ;;  %v2509_v55 = vpop.f32.mrb[14].mxu1 }
  0xf8   :  { %v801_v23 = vadd.f32 %v800_v20, %v799_v18  ;;  %v2930_v24 = vld [vmem:[#allocation2 + $0x48] sm:$0xff]  ;;  %668 = vst.msk [vmem:[#allocation2 + $0x78] sm:$0xff] %vm652_vm3, %v2477_v21  ;;  %v446_v25 = vpop.f32.mrb[15].mxu0  ;;  %v806_v35 = vsel %vm652_vm3, %v2937_v29, 0.0  ;;  %700 = vst.msk [vmem:[#allocation2 + $0x178] sm:$0xff] %vm652_vm3, %v2509_v55  ;;  %v574_v57 = vpop.f32.mrb[15].mxu1 }
  0xf9   :  { %v802_v27 = vsel %vm652_vm3, %v2930_v24, 0.0  ;;  %666 = vst.msk [vmem:[#allocation2 + $0x68] sm:$0xff] %vm652_vm3, %v446_v25  ;;  %698 = vst.msk [vmem:[#allocation2 + $0x168] sm:$0xff] %vm652_vm3, %v574_v57 }
  0xfa   :  { %v803_v30 = vadd.f32 %v802_v27, %v801_v23 }
  0xfc   :  { %v805_v34 = vadd.f32 %v804_v32, %v803_v30 }
  0xfd   :  { %v2480_v36 = vpop.f32.mrb[16].mxu0  ;;  %v2952_v42 = vld [vmem:[#allocation2 + $0x70] sm:$0xff]  ;;  %v2512_v10 = vpop.f32.mrb[16].mxu1 }
  0xfe   :  { %v2946_v37 = vld [vmem:[#allocation2 + $0x60] sm:$0xff]  ;;  %v807_v38 = vadd.f32 %v806_v35, %v805_v34  ;;  %671 = vst.msk [vmem:[#allocation2 + $0x90] sm:$0xff] %vm652_vm3, %v2480_v36  ;;  %v459_v39 = vpop.f32.mrb[17].mxu0  ;;  %v812_v56 = vsel %vm652_vm3, %v2952_v42, 0.0  ;;  %703 = vst.msk [vmem:[#allocation2 + $0x190] sm:$0xff] %vm652_vm3, %v2512_v10  ;;  %v587_v12 = vpop.f32.mrb[17].mxu1 }
  0xff   :  { %v808_v40 = vsel %vm652_vm3, %v2946_v37, 0.0  ;;  %669 = vst.msk [vmem:[#allocation2 + $0x80] sm:$0xff] %vm652_vm3, %v459_v39  ;;  %v2481_v41 = vpop.f32.mrb[18].mxu0  ;;  %v2961_v52 = vld [vmem:[#allocation2 + $0x78] sm:$0xff]  ;;  %701 = vst.msk [vmem:[#allocation2 + $0x180] sm:$0xff] %vm652_vm3, %v587_v12  ;;  %v2513_v15 = vpop.f32.mrb[18].mxu1 }
 0x100   :  { %v809_v44 = vadd.f32 %v808_v40, %v807_v38  ;;  %v2954_v45 = vld [vmem:[#allocation2 + $0x68] sm:$0xff]  ;;  %672 = vst.msk [vmem:[#allocation2 + $0x98] sm:$0xff] %vm652_vm3, %v2481_v41  ;;  %v462_v48 = vpop.f32.mrb[19].mxu0  ;;  %v814_v59 = vsel %vm652_vm3, %v2961_v52, 0.0  ;;  %704 = vst.msk [vmem:[#allocation2 + $0x198] sm:$0xff] %vm652_vm3, %v2513_v15  ;;  %v590_v18 = vpop.f32.mrb[19].mxu1 }
 0x101   :  { %v810_v50 = vsel %vm652_vm3, %v2954_v45, 0.0  ;;  %670 = vst.msk [vmem:[#allocation2 + $0x88] sm:$0xff] %vm652_vm3, %v462_v48  ;;  %702 = vst.msk [vmem:[#allocation2 + $0x188] sm:$0xff] %vm652_vm3, %v590_v18 }
 0x102   :  { %v811_v54 = vadd.f32 %v810_v50, %v809_v44 }
 0x104   :  { %v813_v58 = vadd.f32 %v812_v56, %v811_v54 }
 0x105   :  { %v2484_v60 = vpop.f32.mrb[20].mxu0  ;;  %v2976_v5 = vld [vmem:[#allocation2 + $0x90] sm:$0xff]  ;;  %v2516_v34 = vpop.f32.mrb[20].mxu1 }
 0x106   :  { %v2970_v62 = vld [vmem:[#allocation2 + $0x80] sm:$0xff]  ;;  %v815_v63 = vadd.f32 %v814_v59, %v813_v58  ;;  %675 = vst.msk [vmem:[#allocation2 + $0xb0] sm:$0xff] %vm652_vm3, %v2484_v60  ;;  %v475_v0 = vpop.f32.mrb[21].mxu0  ;;  %v820_v16 = vsel %vm652_vm3, %v2976_v5, 0.0  ;;  %707 = vst.msk [vmem:[#allocation2 + $0x1b0] sm:$0xff] %vm652_vm3, %v2516_v34  ;;  %v603_v36 = vpop.f32.mrb[21].mxu1 }
 0x107   :  { %v816_v1 = vsel %vm652_vm3, %v2970_v62, 0.0  ;;  %673 = vst.msk [vmem:[#allocation2 + $0xa0] sm:$0xff] %vm652_vm3, %v475_v0  ;;  %v2485_v3 = vpop.f32.mrb[22].mxu0  ;;  %v2985_v13 = vld [vmem:[#allocation2 + $0x98] sm:$0xff]  ;;  %705 = vst.msk [vmem:[#allocation2 + $0x1a0] sm:$0xff] %vm652_vm3, %v603_v36  ;;  %v2517_v40 = vpop.f32.mrb[22].mxu1 }
 0x108   :  { %v817_v6 = vadd.f32 %v816_v1, %v815_v63  ;;  %v2978_v7 = vld [vmem:[#allocation2 + $0x88] sm:$0xff]  ;;  %676 = vst.msk [vmem:[#allocation2 + $0xb8] sm:$0xff] %vm652_vm3, %v2485_v3  ;;  %v478_v8 = vpop.f32.mrb[23].mxu0  ;;  %v822_v20 = vsel %vm652_vm3, %v2985_v13, 0.0  ;;  %708 = vst.msk [vmem:[#allocation2 + $0x1b8] sm:$0xff] %vm652_vm3, %v2517_v40  ;;  %v606_v44 = vpop.f32.mrb[23].mxu1 }
 0x109   :  { %v818_v11 = vsel %vm652_vm3, %v2978_v7, 0.0  ;;  %674 = vst.msk [vmem:[#allocation2 + $0xa8] sm:$0xff] %vm652_vm3, %v478_v8  ;;  %706 = vst.msk [vmem:[#allocation2 + $0x1a8] sm:$0xff] %vm652_vm3, %v606_v44  ;;  %v3055_v34 = vld [vmem:[#allocation2 + $0x100] sm:$0xff] }
 0x10a   :  { %v819_v14 = vadd.f32 %v818_v11, %v817_v6  ;;  %v848_v44 = vsel %vm652_vm3, %v3055_v34, 0.0 }
 0x10c   :  { %v821_v19 = vadd.f32 %v820_v16, %v819_v14 }
 0x10d   :  { %v2488_v21 = vpop.f32.mrb[24].mxu0  ;;  %v3000_v30 = vld [vmem:[#allocation2 + $0xb0] sm:$0xff]  ;;  %v2520_v0 = vpop.f32.mrb[24].mxu1 }
 0x10e   :  { %v2994_v23 = vld [vmem:[#allocation2 + $0xa0] sm:$0xff]  ;;  %v823_v25 = vadd.f32 %v822_v20, %v821_v19  ;;  %679 = vst.msk [vmem:[#allocation2 + $0xd0] sm:$0xff] %vm652_vm3, %v2488_v21  ;;  %v491_v26 = vpop.f32.mrb[25].mxu0  ;;  %v828_v41 = vsel %vm652_vm3, %v3000_v30, 0.0  ;;  %711 = vst.msk [vmem:[#allocation2 + $0x1d0] sm:$0xff] %vm652_vm3, %v2520_v0  ;;  %v619_v3 = vpop.f32.mrb[25].mxu1 }
 0x10f   :  { %v824_v27 = vsel %vm652_vm3, %v2994_v23, 0.0  ;;  %677 = vst.msk [vmem:[#allocation2 + $0xc0] sm:$0xff] %vm652_vm3, %v491_v26  ;;  %v2489_v28 = vpop.f32.mrb[26].mxu0  ;;  %v3009_v38 = vld [vmem:[#allocation2 + $0xb8] sm:$0xff]  ;;  %709 = vst.msk [vmem:[#allocation2 + $0x1c0] sm:$0xff] %vm652_vm3, %v619_v3  ;;  %v2521_v10 = vpop.f32.mrb[26].mxu1 }
 0x110   :  { %v825_v31 = vadd.f32 %v824_v27, %v823_v25  ;;  %v3002_v32 = vld [vmem:[#allocation2 + $0xa8] sm:$0xff]  ;;  %680 = vst.msk [vmem:[#allocation2 + $0xd8] sm:$0xff] %vm652_vm3, %v2489_v28  ;;  %v494_v33 = vpop.f32.mrb[27].mxu0  ;;  %v830_v49 = vsel %vm652_vm3, %v3009_v38, 0.0  ;;  %712 = vst.msk [vmem:[#allocation2 + $0x1d8] sm:$0xff] %vm652_vm3, %v2521_v10  ;;  %v622_v12 = vpop.f32.mrb[27].mxu1 }
 0x111   :  { %v826_v35 = vsel %vm652_vm3, %v3002_v32, 0.0  ;;  %678 = vst.msk [vmem:[#allocation2 + $0xc8] sm:$0xff] %vm652_vm3, %v494_v33  ;;  %710 = vst.msk [vmem:[#allocation2 + $0x1c8] sm:$0xff] %vm652_vm3, %v622_v12  ;;  %v3082_v10 = vld [vmem:[#allocation2 + $0x128] sm:$0xff] }
 0x112   :  { %v827_v39 = vadd.f32 %v826_v35, %v825_v31 }
 0x114   :  { %v829_v48 = vadd.f32 %v828_v41, %v827_v39 }
 0x115   :  { %v2492_v50 = vpop.f32.mrb[28].mxu0  ;;  %v3024_v58 = vld [vmem:[#allocation2 + $0xd0] sm:$0xff]  ;;  %v2524_v26 = vpop.f32.mrb[28].mxu1 }
 0x116   :  { %v3018_v51 = vld [vmem:[#allocation2 + $0xc0] sm:$0xff]  ;;  %v831_v54 = vadd.f32 %v830_v49, %v829_v48  ;;  %683 = vst.msk [vmem:[#allocation2 + $0xf0] sm:$0xff] %vm652_vm3, %v2492_v50  ;;  %v507_v55 = vpop.f32.mrb[29].mxu0  ;;  %v836_v11 = vsel %vm652_vm3, %v3024_v58, 0.0  ;;  %715 = vst.msk [vmem:[#allocation2 + $0x1f0] sm:$0xff] %vm652_vm3, %v2524_v26  ;;  %v635_v28 = vpop.f32.mrb[29].mxu1 }
 0x117   :  { %v832_v56 = vsel %vm652_vm3, %v3018_v51, 0.0  ;;  %681 = vst.msk [vmem:[#allocation2 + $0xe0] sm:$0xff] %vm652_vm3, %v507_v55  ;;  %v2493_v57 = vpop.f32.mrb[30].mxu0  ;;  %v3033_v6 = vld [vmem:[#allocation2 + $0xd8] sm:$0xff]  ;;  %713 = vst.msk [vmem:[#allocation2 + $0x1e0] sm:$0xff] %vm652_vm3, %v635_v28  ;;  %v2525_v35 = vpop.f32.mrb[30].mxu1 }
 0x118   :  { %v833_v59 = vadd.f32 %v832_v56, %v831_v54  ;;  %v3026_v60 = vld [vmem:[#allocation2 + $0xc8] sm:$0xff]  ;;  %684 = vst.msk [vmem:[#allocation2 + $0xf8] sm:$0xff] %vm652_vm3, %v2493_v57  ;;  %v510_v63 = vpop.f32.mrb[31].mxu0  ;;  %v838_v15 = vsel %vm652_vm3, %v3033_v6, 0.0  ;;  %716 = vst.msk [vmem:[#allocation2 + $0x1f8] sm:$0xff] %vm652_vm3, %v2525_v35  ;;  %v638_v39 = vpop.f32.mrb[31].mxu1 }
 0x119   :  { %v834_v1 = vsel %vm652_vm3, %v3026_v60, 0.0  ;;  %682 = vst.msk [vmem:[#allocation2 + $0xe8] sm:$0xff] %vm652_vm3, %v510_v63  ;;  %714 = vst.msk [vmem:[#allocation2 + $0x1e8] sm:$0xff] %vm652_vm3, %v638_v39  ;;  %v3066_v49 = vld [vmem:[#allocation2 + $0x108] sm:$0xff]  ;;  %v3068_v50 = vld [vmem:[#allocation2 + $0x110] sm:$0xff] }
 0x11a   :  { %v835_v8 = vadd.f32 %v834_v1, %v833_v59  ;;  %v850_v55 = vsel %vm652_vm3, %v3066_v49, 0.0  ;;  %v3072_v56 = vld [vmem:[#allocation2 + $0x118] sm:$0xff]  ;;  %v3074_v59 = vld [vmem:[#allocation2 + $0x120] sm:$0xff]  ;;  %v852_v63 = vsel %vm652_vm3, %v3068_v50, 0.0  ;;  %v3098_v35 = vld [vmem:[#allocation2 + $0x148] sm:$0xff] }
 0x11b   :  { %v854_v1 = vsel %vm652_vm3, %v3072_v56, 0.0  ;;  %v856_v3 = vsel %vm652_vm3, %v3074_v59, 0.0 }
 0x11c   :  { %v837_v14 = vadd.f32 %v836_v11, %v835_v8  ;;  %v3084_v11 = vld [vmem:[#allocation2 + $0x130] sm:$0xff] }
 0x11d   :  { %v3046_v20 = vld [vmem:[#allocation2 + $0xf0] sm:$0xff] }
 0x11e   :  { %v3042_v16 = vld [vmem:[#allocation2 + $0xe0] sm:$0xff]  ;;  %v839_v18 = vadd.f32 %v838_v15, %v837_v14  ;;  %v844_v36 = vsel %vm652_vm3, %v3046_v20, 0.0  ;;  %v858_v14 = vsel %vm652_vm3, %v3082_v10, 0.0  ;;  %v3088_v15 = vld [vmem:[#allocation2 + $0x138] sm:$0xff] }
 0x11f   :  { %v840_v19 = vsel %vm652_vm3, %v3042_v16, 0.0  ;;  %v3053_v31 = vld [vmem:[#allocation2 + $0xf8] sm:$0xff] }
 0x120   :  { %v841_v21 = vadd.f32 %v840_v19, %v839_v18  ;;  %v3048_v25 = vld [vmem:[#allocation2 + $0xe8] sm:$0xff]  ;;  %v846_v41 = vsel %vm652_vm3, %v3053_v31, 0.0  ;;  %v3090_v19 = vld [vmem:[#allocation2 + $0x140] sm:$0xff] }
 0x121   :  { %v842_v27 = vsel %vm652_vm3, %v3048_v25, 0.0  ;;  %v864_v28 = vsel %vm652_vm3, %v3090_v19, 0.0 }
 0x122   :  { %v843_v33 = vadd.f32 %v842_v27, %v841_v21  ;;  %v860_v21 = vsel %vm652_vm3, %v3084_v11, 0.0  ;;  %v862_v27 = vsel %vm652_vm3, %v3088_v15, 0.0 }
 0x124   :  { %v845_v40 = vadd.f32 %v844_v36, %v843_v33  ;;  %v3100_v36 = vld [vmem:[#allocation2 + $0x150] sm:$0xff] }
 0x126   :  { %v847_v48 = vadd.f32 %v846_v41, %v845_v40  ;;  %v866_v40 = vsel %vm652_vm3, %v3098_v35, 0.0  ;;  %v3104_v41 = vld [vmem:[#allocation2 + $0x158] sm:$0xff] }
 0x128   :  { %v849_v54 = vadd.f32 %v848_v44, %v847_v48  ;;  %v3106_v48 = vld [vmem:[#allocation2 + $0x160] sm:$0xff] }
 0x12a   :  { %v851_v57 = vadd.f32 %v850_v55, %v849_v54  ;;  %v868_v54 = vsel %vm652_vm3, %v3100_v36, 0.0 }
 0x12c   :  { %v853_v0 = vadd.f32 %v852_v63, %v851_v57  ;;  %v870_v57 = vsel %vm652_vm3, %v3104_v41, 0.0  ;;  %v872_v63 = vsel %vm652_vm3, %v3106_v48, 0.0 }
 0x12e   :  { %v855_v8 = vadd.f32 %v854_v1, %v853_v0  ;;  %v3114_v1 = vld [vmem:[#allocation2 + $0x168] sm:$0xff] }
 0x130   :  { %v857_v12 = vadd.f32 %v856_v3, %v855_v8  ;;  %v3116_v3 = vld [vmem:[#allocation2 + $0x170] sm:$0xff] }
 0x132   :  { %v859_v18 = vadd.f32 %v858_v14, %v857_v12  ;;  %v874_v12 = vsel %vm652_vm3, %v3114_v1, 0.0  ;;  %v3120_v14 = vld [vmem:[#allocation2 + $0x178] sm:$0xff] }
 0x134   :  { %v861_v26 = vadd.f32 %v860_v21, %v859_v18  ;;  %v3122_v21 = vld [vmem:[#allocation2 + $0x180] sm:$0xff] }
 0x135   :  { %6016 = vst [vmem:[#allocation3_spill] sm:$0xff] %v3122_v21 }
 0x136   :  { %v863_v33 = vadd.f32 %v862_v27, %v861_v26  ;;  %v876_v26 = vsel %vm652_vm3, %v3116_v3, 0.0 }
 0x138   :  { %v865_v39 = vadd.f32 %v864_v28, %v863_v33  ;;  %v878_v28 = vsel %vm652_vm3, %v3120_v14, 0.0  ;;  %v880_v33 = vsel %vm652_vm3, %v3122_v21, 0.0 }
 0x13a   :  { %v867_v44 = vadd.f32 %v866_v40, %v865_v39  ;;  %v3130_v40 = vld [vmem:[#allocation2 + $0x188] sm:$0xff] }
 0x13b   :  { %6017 = vst [vmem:[#allocation4_spill] sm:$0xff] %v3130_v40 }
 0x13c   :  { %v869_v55 = vadd.f32 %v868_v54, %v867_v44  ;;  %v3132_v44 = vld [vmem:[#allocation2 + $0x190] sm:$0xff] }
 0x13d   :  { %6018 = vst [vmem:[#allocation5_spill] sm:$0xff] %v3132_v44 }
 0x13e   :  { %v871_v0 = vadd.f32 %v870_v57, %v869_v55  ;;  %v882_v55 = vsel %vm652_vm3, %v3130_v40, 0.0  ;;  %v3136_v57 = vld [vmem:[#allocation2 + $0x198] sm:$0xff] }
 0x13f   :  { %6019 = vst [vmem:[#allocation6_spill] sm:$0xff] %v3136_v57 }
 0x140   :  { %v873_v8 = vadd.f32 %v872_v63, %v871_v0  ;;  %v3138_v0 = vld [vmem:[#allocation2 + $0x1a0] sm:$0xff] }
 0x141   :  { %6020 = vst [vmem:[#allocation7_spill] sm:$0xff] %v3138_v0 }
 0x142   :  { %v875_v18 = vadd.f32 %v874_v12, %v873_v8  ;;  %v884_v8 = vsel %vm652_vm3, %v3132_v44, 0.0  ;;  %v3154_v44 = vld [vmem:[#allocation2 + $0x1c0] sm:$0xff] }
 0x143   :  { %6024 = vst [vmem:[#allocation11_spill] sm:$0xff] %v3154_v44 }
 0x144   :  { %v877_v27 = vadd.f32 %v876_v26, %v875_v18  ;;  %v886_v18 = vsel %vm652_vm3, %v3136_v57, 0.0  ;;  %v888_v26 = vsel %vm652_vm3, %v3138_v0, 0.0 }
 0x146   :  { %v879_v39 = vadd.f32 %v878_v28, %v877_v27  ;;  %v3146_v28 = vld [vmem:[#allocation2 + $0x1a8] sm:$0xff] }
 0x147   :  { %6021 = vst [vmem:[#allocation8_spill] sm:$0xff] %v3146_v28 }
 0x148   :  { %v881_v54 = vadd.f32 %v880_v33, %v879_v39  ;;  %v3148_v33 = vld [vmem:[#allocation2 + $0x1b0] sm:$0xff] }
 0x149   :  { %6022 = vst [vmem:[#allocation9_spill] sm:$0xff] %v3148_v33 }
 0x14a   :  { %v883_v63 = vadd.f32 %v882_v55, %v881_v54  ;;  %v890_v54 = vsel %vm652_vm3, %v3146_v28, 0.0  ;;  %v3152_v55 = vld [vmem:[#allocation2 + $0x1b8] sm:$0xff] }
 0x14b   :  { %6023 = vst [vmem:[#allocation10_spill] sm:$0xff] %v3152_v55 }
 0x14c   :  { %v885_v12 = vadd.f32 %v884_v8, %v883_v63  ;;  %v892_v63 = vsel %vm652_vm3, %v3148_v33, 0.0 }
 0x14e   :  { %v887_v27 = vadd.f32 %v886_v18, %v885_v12  ;;  %v894_v12 = vsel %vm652_vm3, %v3152_v55, 0.0  ;;  %v896_v18 = vsel %vm652_vm3, %v3154_v44, 0.0  ;;  %v3172_v55 = vld [vmem:[#allocation2 + $0x1e0] sm:$0xff] }
 0x14f   :  { %6028 = vst [vmem:[#allocation15_spill] sm:$0xff] %v3172_v55  ;;  %v904_v44 = vsel %vm652_vm3, %v3172_v55, 0.0 }
 0x150   :  { %v889_v39 = vadd.f32 %v888_v26, %v887_v27  ;;  %v3162_v26 = vld [vmem:[#allocation2 + $0x1c8] sm:$0xff]  ;;  %v3164_v27 = vld [vmem:[#allocation2 + $0x1d0] sm:$0xff] }
 0x151   :  { %6025 = vst [vmem:[#allocation12_spill] sm:$0xff] %v3162_v26  ;;  %6026 = vst [vmem:[#allocation13_spill] sm:$0xff] %v3164_v27 }
 0x152   :  { %v891_v40 = vadd.f32 %v890_v54, %v889_v39  ;;  %v898_v39 = vsel %vm652_vm3, %v3162_v26, 0.0  ;;  %v3168_v54 = vld [vmem:[#allocation2 + $0x1d8] sm:$0xff] }
 0x153   :  { %6027 = vst [vmem:[#allocation14_spill] sm:$0xff] %v3168_v54 }
 0x154   :  { %v893_v8 = vadd.f32 %v892_v63, %v891_v40  ;;  %v900_v40 = vsel %vm652_vm3, %v3164_v27, 0.0 }
 0x156   :  { %v895_v0 = vadd.f32 %v894_v12, %v893_v8  ;;  %v902_v8 = vsel %vm652_vm3, %v3168_v54, 0.0 }
 0x158   :  { %v897_v28 = vadd.f32 %v896_v18, %v895_v0  ;;  %v3178_v18 = vld [vmem:[#allocation2 + $0x1e8] sm:$0xff] }
 0x159   :  { %6029 = vst [vmem:[#allocation16_spill] sm:$0xff] %v3178_v18  ;;  %v906_v26 = vsel %vm652_vm3, %v3178_v18, 0.0 }
 0x15a   :  { %v899_v57 = vadd.f32 %v898_v39, %v897_v28  ;;  %v3182_v28 = vld [vmem:[#allocation2 + $0x1f0] sm:$0xff] }
 0x15b   :  { %6030 = vst [vmem:[#allocation17_spill] sm:$0xff] %v3182_v28 }
 0x15c   :  { %v901_v63 = vadd.f32 %v900_v40, %v899_v57  ;;  %v908_v57 = vsel %vm652_vm3, %v3182_v28, 0.0  ;;  %v3186_v40 = vld [vmem:[#allocation2 + $0x1f8] sm:$0xff] }
 0x15d   :  { %6031 = vst [vmem:[#allocation18_spill] sm:$0xff] %v3186_v40 }
 0x15e   :  { %v903_v12 = vadd.f32 %v902_v8, %v901_v63  ;;  %v910_v63 = vsel %vm652_vm3, %v3186_v40, 0.0 }
 0x160   :  { %v905_v0 = vadd.f32 %v904_v44, %v903_v12 }
 0x162   :  { %v907_v39 = vadd.f32 %v906_v26, %v905_v0 }
 0x164   :  { %v909_v27 = vadd.f32 %v908_v57, %v907_v39 }
 0x166   :  { %v911_v8 = vadd.f32 %v910_v63, %v909_v27 }
 0x168   :  { %v912_v55 = vrot.slane %v911_v8, 4 }
 0x16a   :  { %v913_v44 = vadd.f32 %v912_v55, %v911_v8 }
 0x16c   :  { %v914_v12 = vrot.slane %v913_v44, 2 }
 0x16e   :  { %v915_v54 = vadd.f32 %v914_v12, %v913_v44 }
 0x170   :  { %v916_v33 = vrot.slane %v915_v54, 1 }
 0x172   :  { %v917_v21 = vadd.f32 %v916_v33, %v915_v54 }
 0x174   :  { %v3190_v18 = vmul.f32 0.001953125, %v917_v21 }
 0x176   :  { %v920_v26 = vsub.f32 %v2874_v43, %v3190_v18  ;;  %v921_v0 = vsub.f32 %v2880_v47, %v3190_v18  ;;  %v922_v39 = vsub.f32 %v2878_v46, %v3190_v18  ;;  %v923_v27 = vsub.f32 %v2889_v53, %v3190_v18 }
 0x177   :  { %v924_v63 = vsub.f32 %v2898_v61, %v3190_v18  ;;  %v925_v21 = vsub.f32 %v2906_v4, %v3190_v18  ;;  %v926_v46 = vsub.f32 %v2904_v2, %v3190_v18  ;;  %v927_v61 = vsub.f32 %v2913_v9, %v3190_v18 }
 0x178   :  { %v984_v57 = vmul.f32 %v920_v26, %v920_v26  ;;  %v985_v55 = vmul.f32 %v921_v0, %v921_v0  ;;  %v986_v33 = vmul.f32 %v922_v39, %v922_v39  ;;  %v987_v54 = vmul.f32 %v923_v27, %v923_v27 }
 0x179   :  { %v988_v44 = vmul.f32 %v924_v63, %v924_v63  ;;  %v989_v26 = vmul.f32 %v925_v21, %v925_v21  ;;  %v928_v39 = vsub.f32 %v2922_v17, %v3190_v18  ;;  %v990_v27 = vmul.f32 %v926_v46, %v926_v46 }
 0x17a   :  { %v1048_v43 = vsel %vm652_vm3, %v984_v57, 0.0  ;;  %v1049_v47 = vsel %vm652_vm3, %v985_v55, 0.0  ;;  %v1051_v53 = vsel %vm652_vm3, %v986_v33, 0.0  ;;  %v1053_v0 = vsel %vm652_vm3, %v987_v54, 0.0 }
 0x17b   :  { %v1050_v8 = vadd.f32 %v1049_v47, %v1048_v43  ;;  %v1055_v57 = vsel %vm652_vm3, %v988_v44, 0.0  ;;  %v929_v2 = vsub.f32 %v2930_v24, %v3190_v18  ;;  %v991_v63 = vmul.f32 %v927_v61, %v927_v61 }
 0x17c   :  { %v1057_v33 = vsel %vm652_vm3, %v989_v26, 0.0  ;;  %v930_v9 = vsub.f32 %v2928_v22, %v3190_v18  ;;  %v992_v21 = vmul.f32 %v928_v39, %v928_v39  ;;  %v1059_v54 = vsel %vm652_vm3, %v990_v27, 0.0 }
 0x17d   :  { %v1052_v12 = vadd.f32 %v1051_v53, %v1050_v8  ;;  %v931_v17 = vsub.f32 %v2937_v29, %v3190_v18  ;;  %v993_v8 = vmul.f32 %v929_v2, %v929_v2  ;;  %v1061_v46 = vsel %vm652_vm3, %v991_v63, 0.0 }
 0x17e   :  { %v932_v24 = vsub.f32 %v2946_v37, %v3190_v18  ;;  %v994_v53 = vmul.f32 %v930_v9, %v930_v9  ;;  %v933_v22 = vsub.f32 %v2954_v45, %v3190_v18  ;;  %v934_v29 = vsub.f32 %v2952_v42, %v3190_v18 }
 0x17f   :  { %v1054_v4 = vadd.f32 %v1053_v0, %v1052_v12  ;;  %v1063_v12 = vsel %vm652_vm3, %v992_v21, 0.0  ;;  %v995_v26 = vmul.f32 %v931_v17, %v931_v17  ;;  %v1065_v0 = vsel %vm652_vm3, %v993_v8, 0.0 }
 0x180   :  { %v996_v39 = vmul.f32 %v932_v24, %v932_v24  ;;  %v1067_v27 = vsel %vm652_vm3, %v994_v53, 0.0  ;;  %v935_v37 = vsub.f32 %v2961_v52, %v3190_v18  ;;  %v936_v45 = vsub.f32 %v2970_v62, %v3190_v18 }
 0x181   :  { %v1056_v55 = vadd.f32 %v1055_v57, %v1054_v4  ;;  %v1069_v2 = vsel %vm652_vm3, %v995_v26, 0.0  ;;  %v937_v42 = vsub.f32 %v2978_v7, %v3190_v18  ;;  %v938_v17 = vsub.f32 %v2976_v5, %v3190_v18 }
 0x182   :  { %v999_v21 = vmul.f32 %v935_v37, %v935_v37  ;;  %v1000_v8 = vmul.f32 %v936_v45, %v936_v45  ;;  %v939_v24 = vsub.f32 %v2985_v13, %v3190_v18  ;;  %v942_v37 = vsub.f32 %v3000_v30, %v3190_v18 }
 0x183   :  { %v1058_v43 = vadd.f32 %v1057_v33, %v1056_v55  ;;  %v997_v55 = vmul.f32 %v933_v22, %v933_v22  ;;  %v998_v33 = vmul.f32 %v934_v29, %v934_v29  ;;  %v1001_v53 = vmul.f32 %v937_v42, %v937_v42 }
 0x184   :  { %v940_v22 = vsub.f32 %v2994_v23, %v3190_v18  ;;  %v1002_v26 = vmul.f32 %v938_v17, %v938_v17  ;;  %v941_v29 = vsub.f32 %v3002_v32, %v3190_v18  ;;  %v943_v45 = vsub.f32 %v3009_v38, %v3190_v18 }
 0x185   :  { %v1060_v47 = vadd.f32 %v1059_v54, %v1058_v43  ;;  %v1071_v43 = vsel %vm652_vm3, %v996_v39, 0.0  ;;  %v1073_v54 = vsel %vm652_vm3, %v997_v55, 0.0  ;;  %v1003_v39 = vmul.f32 %v939_v24, %v939_v24 }
 0x186   :  { %v1004_v55 = vmul.f32 %v940_v22, %v940_v22  ;;  %v944_v42 = vsub.f32 %v3018_v51, %v3190_v18  ;;  %v945_v17 = vsub.f32 %v3026_v60, %v3190_v18  ;;  %v946_v24 = vsub.f32 %v3024_v58, %v3190_v18 }
 0x187   :  { %v1062_v44 = vadd.f32 %v1061_v46, %v1060_v47  ;;  %v1075_v46 = vsel %vm652_vm3, %v998_v33, 0.0  ;;  %v1005_v33 = vmul.f32 %v941_v29, %v941_v29  ;;  %v947_v22 = vsub.f32 %v3033_v6, %v3190_v18 }
 0x188   :  { %v948_v29 = vsub.f32 %v3042_v16, %v3190_v18 }
 0x189   :  { %v1064_v61 = vadd.f32 %v1063_v12, %v1062_v44  ;;  %v1077_v12 = vsel %vm652_vm3, %v999_v21, 0.0  ;;  %v1006_v21 = vmul.f32 %v942_v37, %v942_v37  ;;  %v949_v37 = vsub.f32 %v3048_v25, %v3190_v18 }
 0x18b   :  { %v1066_v4 = vadd.f32 %v1065_v0, %v1064_v61  ;;  %v1079_v0 = vsel %vm652_vm3, %v1000_v8, 0.0  ;;  %v1007_v8 = vmul.f32 %v943_v45, %v943_v45  ;;  %v950_v45 = vsub.f32 %v3046_v20, %v3190_v18 }
 0x18d   :  { %v1068_v57 = vadd.f32 %v1067_v27, %v1066_v4  ;;  %v1081_v27 = vsel %vm652_vm3, %v1001_v53, 0.0  ;;  %v1008_v53 = vmul.f32 %v944_v42, %v944_v42  ;;  %v951_v42 = vsub.f32 %v3053_v31, %v3190_v18 }
 0x18f   :  { %v1070_v63 = vadd.f32 %v1069_v2, %v1068_v57  ;;  %v1083_v2 = vsel %vm652_vm3, %v1002_v26, 0.0  ;;  %v1009_v26 = vmul.f32 %v945_v17, %v945_v17  ;;  %v952_v17 = vsub.f32 %v3055_v34, %v3190_v18 }
 0x191   :  { %v1072_v9 = vadd.f32 %v1071_v43, %v1070_v63  ;;  %v1085_v43 = vsel %vm652_vm3, %v1003_v39, 0.0  ;;  %v1010_v39 = vmul.f32 %v946_v24, %v946_v24  ;;  %v953_v24 = vsub.f32 %v3066_v49, %v3190_v18 }
 0x193   :  { %v1074_v47 = vadd.f32 %v1073_v54, %v1072_v9  ;;  %v1087_v54 = vsel %vm652_vm3, %v1004_v55, 0.0  ;;  %v1011_v55 = vmul.f32 %v947_v22, %v947_v22  ;;  %v954_v22 = vsub.f32 %v3068_v50, %v3190_v18 }
 0x195   :  { %v1076_v44 = vadd.f32 %v1075_v46, %v1074_v47  ;;  %v1089_v46 = vsel %vm652_vm3, %v1005_v33, 0.0  ;;  %v1012_v33 = vmul.f32 %v948_v29, %v948_v29  ;;  %v955_v29 = vsub.f32 %v3072_v56, %v3190_v18 }
 0x197   :  { %v1078_v61 = vadd.f32 %v1077_v12, %v1076_v44  ;;  %v1091_v12 = vsel %vm652_vm3, %v1006_v21, 0.0  ;;  %v1013_v21 = vmul.f32 %v949_v37, %v949_v37  ;;  %v956_v37 = vsub.f32 %v3074_v59, %v3190_v18 }
 0x199   :  { %v1080_v4 = vadd.f32 %v1079_v0, %v1078_v61  ;;  %v1093_v0 = vsel %vm652_vm3, %v1007_v8, 0.0  ;;  %v1014_v8 = vmul.f32 %v950_v45, %v950_v45  ;;  %v957_v45 = vsub.f32 %v3082_v10, %v3190_v18 }
 0x19b   :  { %v1082_v57 = vadd.f32 %v1081_v27, %v1080_v4  ;;  %v1095_v27 = vsel %vm652_vm3, %v1008_v53, 0.0  ;;  %v1015_v53 = vmul.f32 %v951_v42, %v951_v42  ;;  %v958_v42 = vsub.f32 %v3084_v11, %v3190_v18 }
 0x19d   :  { %v1084_v63 = vadd.f32 %v1083_v2, %v1082_v57  ;;  %v1097_v2 = vsel %vm652_vm3, %v1009_v26, 0.0  ;;  %v1016_v26 = vmul.f32 %v952_v17, %v952_v17  ;;  %v959_v17 = vsub.f32 %v3088_v15, %v3190_v18 }
 0x19f   :  { %v1086_v9 = vadd.f32 %v1085_v43, %v1084_v63  ;;  %v1099_v43 = vsel %vm652_vm3, %v1010_v39, 0.0  ;;  %v1017_v39 = vmul.f32 %v953_v24, %v953_v24  ;;  %v960_v24 = vsub.f32 %v3090_v19, %v3190_v18 }
 0x1a1   :  { %v1088_v47 = vadd.f32 %v1087_v54, %v1086_v9  ;;  %v1101_v54 = vsel %vm652_vm3, %v1011_v55, 0.0  ;;  %v1018_v55 = vmul.f32 %v954_v22, %v954_v22  ;;  %v961_v22 = vsub.f32 %v3098_v35, %v3190_v18 }
 0x1a3   :  { %v1090_v44 = vadd.f32 %v1089_v46, %v1088_v47  ;;  %v1103_v46 = vsel %vm652_vm3, %v1012_v33, 0.0  ;;  %v1019_v33 = vmul.f32 %v955_v29, %v955_v29  ;;  %v962_v29 = vsub.f32 %v3100_v36, %v3190_v18 }
 0x1a5   :  { %v1092_v61 = vadd.f32 %v1091_v12, %v1090_v44  ;;  %v1105_v12 = vsel %vm652_vm3, %v1013_v21, 0.0  ;;  %v1020_v21 = vmul.f32 %v956_v37, %v956_v37  ;;  %v963_v37 = vsub.f32 %v3104_v41, %v3190_v18 }
 0x1a7   :  { %v1094_v4 = vadd.f32 %v1093_v0, %v1092_v61  ;;  %v1107_v0 = vsel %vm652_vm3, %v1014_v8, 0.0  ;;  %v1021_v8 = vmul.f32 %v957_v45, %v957_v45  ;;  %v964_v45 = vsub.f32 %v3106_v48, %v3190_v18 }
 0x1a9   :  { %v1096_v57 = vadd.f32 %v1095_v27, %v1094_v4  ;;  %v1109_v27 = vsel %vm652_vm3, %v1015_v53, 0.0  ;;  %v1022_v53 = vmul.f32 %v958_v42, %v958_v42  ;;  %v965_v42 = vsub.f32 %v3114_v1, %v3190_v18 }
 0x1ab   :  { %v1098_v63 = vadd.f32 %v1097_v2, %v1096_v57  ;;  %v1111_v2 = vsel %vm652_vm3, %v1016_v26, 0.0  ;;  %v1023_v26 = vmul.f32 %v959_v17, %v959_v17  ;;  %v966_v17 = vsub.f32 %v3116_v3, %v3190_v18 }
 0x1ad   :  { %v1100_v9 = vadd.f32 %v1099_v43, %v1098_v63  ;;  %v1113_v43 = vsel %vm652_vm3, %v1017_v39, 0.0  ;;  %v1024_v39 = vmul.f32 %v960_v24, %v960_v24  ;;  %v967_v24 = vsub.f32 %v3120_v14, %v3190_v18 }
 0x1af   :  { %v1102_v47 = vadd.f32 %v1101_v54, %v1100_v9  ;;  %v1115_v54 = vsel %vm652_vm3, %v1018_v55, 0.0  ;;  %v1025_v55 = vmul.f32 %v961_v22, %v961_v22  ;;  %v6032_v22 = vld [vmem:[#allocation3_spill] sm:$0xff] }
 0x1b1   :  { %v1104_v44 = vadd.f32 %v1103_v46, %v1102_v47  ;;  %v1117_v46 = vsel %vm652_vm3, %v1019_v33, 0.0  ;;  %v1026_v33 = vmul.f32 %v962_v29, %v962_v29 }
 0x1b3   :  { %v1106_v61 = vadd.f32 %v1105_v12, %v1104_v44  ;;  %v1119_v12 = vsel %vm652_vm3, %v1020_v21, 0.0  ;;  %v1027_v21 = vmul.f32 %v963_v37, %v963_v37 }
 0x1b5   :  { %v1108_v4 = vadd.f32 %v1107_v0, %v1106_v61  ;;  %v1121_v0 = vsel %vm652_vm3, %v1021_v8, 0.0  ;;  %v1028_v8 = vmul.f32 %v964_v45, %v964_v45 }
 0x1b7   :  { %v1110_v57 = vadd.f32 %v1109_v27, %v1108_v4  ;;  %v1123_v27 = vsel %vm652_vm3, %v1022_v53, 0.0  ;;  %v1029_v53 = vmul.f32 %v965_v42, %v965_v42 }
 0x1b9   :  { %v1112_v63 = vadd.f32 %v1111_v2, %v1110_v57  ;;  %v1125_v2 = vsel %vm652_vm3, %v1023_v26, 0.0  ;;  %v968_v26 = vsub.f32 %v6032_v22, %v3190_v18  ;;  %v1137_v37 = vsel %vm652_vm3, %v1029_v53, 0.0  ;;  %v6037_v53 = vld [vmem:[#allocation8_spill] sm:$0xff] }
 0x1bb   :  { %v1114_v9 = vadd.f32 %v1113_v43, %v1112_v63  ;;  %v1127_v43 = vsel %vm652_vm3, %v1024_v39, 0.0  ;;  %v6033_v39 = vld [vmem:[#allocation4_spill] sm:$0xff]  ;;  %v1032_v45 = vmul.f32 %v968_v26, %v968_v26 }
 0x1bd   :  { %v1116_v47 = vadd.f32 %v1115_v54, %v1114_v9  ;;  %v1129_v54 = vsel %vm652_vm3, %v1025_v55, 0.0 }
 0x1bf   :  { %v1118_v44 = vadd.f32 %v1117_v46, %v1116_v47  ;;  %v1131_v46 = vsel %vm652_vm3, %v1026_v33, 0.0 }
 0x1c1   :  { %v1120_v61 = vadd.f32 %v1119_v12, %v1118_v44  ;;  %v1133_v12 = vsel %vm652_vm3, %v1027_v21, 0.0 }
 0x1c3   :  { %v1122_v4 = vadd.f32 %v1121_v0, %v1120_v61  ;;  %v1030_v0 = vmul.f32 %v966_v17, %v966_v17  ;;  %v6036_v17 = vld [vmem:[#allocation7_spill] sm:$0xff] }
 0x1c5   :  { %v1124_v57 = vadd.f32 %v1123_v27, %v1122_v4  ;;  %v1135_v4 = vsel %vm652_vm3, %v1028_v8, 0.0  ;;  %v969_v27 = vsub.f32 %v6033_v39, %v3190_v18  ;;  %v1139_v33 = vsel %vm652_vm3, %v1030_v0, 0.0 }
 0x1c6   :  { %v972_v8 = vsub.f32 %v6036_v17, %v3190_v18 }
 0x1c7   :  { %v1126_v63 = vadd.f32 %v1125_v2, %v1124_v57  ;;  %v1031_v57 = vmul.f32 %v967_v24, %v967_v24  ;;  %v6034_v2 = vld [vmem:[#allocation5_spill] sm:$0xff]  ;;  %v1033_v21 = vmul.f32 %v969_v27, %v969_v27 }
 0x1c8   :  { %v1036_v27 = vmul.f32 %v972_v8, %v972_v8 }
 0x1c9   :  { %v1128_v9 = vadd.f32 %v1127_v43, %v1126_v63  ;;  %v970_v63 = vsub.f32 %v6034_v2, %v3190_v18  ;;  %v1145_v26 = vsel %vm652_vm3, %v1033_v21, 0.0 }
 0x1ca   :  { %v1151_v21 = vsel %vm652_vm3, %v1036_v27, 0.0 }
 0x1cb   :  { %v1130_v47 = vadd.f32 %v1129_v54, %v1128_v9  ;;  %v6035_v9 = vld [vmem:[#allocation6_spill] sm:$0xff]  ;;  %v1141_v54 = vsel %vm652_vm3, %v1031_v57, 0.0 }
 0x1cc   :  { %v971_v42 = vsub.f32 %v6035_v9, %v3190_v18 }
 0x1cd   :  { %v1132_v44 = vadd.f32 %v1131_v46, %v1130_v47  ;;  %v1034_v46 = vmul.f32 %v970_v63, %v970_v63 }
 0x1cf   :  { %v1134_v61 = vadd.f32 %v1133_v12, %v1132_v44  ;;  %v1143_v44 = vsel %vm652_vm3, %v1032_v45, 0.0  ;;  %v973_v12 = vsub.f32 %v6037_v53, %v3190_v18  ;;  %v1147_v57 = vsel %vm652_vm3, %v1034_v46, 0.0 }
 0x1d1   :  { %v1136_v29 = vadd.f32 %v1135_v4, %v1134_v61  ;;  %v1035_v61 = vmul.f32 %v971_v42, %v971_v42  ;;  %v6038_v4 = vld [vmem:[#allocation9_spill] sm:$0xff] }
 0x1d3   :  { %v1138_v55 = vadd.f32 %v1137_v37, %v1136_v29  ;;  %v974_v29 = vsub.f32 %v6038_v4, %v3190_v18  ;;  %v1149_v45 = vsel %vm652_vm3, %v1035_v61, 0.0 }
 0x1d5   :  { %v1140_v43 = vadd.f32 %v1139_v33, %v1138_v55  ;;  %v6039_v55 = vld [vmem:[#allocation10_spill] sm:$0xff]  ;;  %v1037_v33 = vmul.f32 %v973_v12, %v973_v12 }
 0x1d6   :  { %v975_v63 = vsub.f32 %v6039_v55, %v3190_v18 }
 0x1d7   :  { %v1142_v47 = vadd.f32 %v1141_v54, %v1140_v43  ;;  %v6040_v54 = vld [vmem:[#allocation11_spill] sm:$0xff]  ;;  %v1153_v46 = vsel %vm652_vm3, %v1037_v33, 0.0 }
 0x1d8   :  { %v976_v42 = vsub.f32 %v6040_v54, %v3190_v18 }
 0x1d9   :  { %v1144_v24 = vadd.f32 %v1143_v44, %v1142_v47  ;;  %v1038_v47 = vmul.f32 %v974_v29, %v974_v29 }
 0x1da   :  { %v1040_v55 = vmul.f32 %v976_v42, %v976_v42 }
 0x1db   :  { %v1146_v0 = vadd.f32 %v1145_v26, %v1144_v24  ;;  %v6041_v24 = vld [vmem:[#allocation12_spill] sm:$0xff]  ;;  %v1039_v26 = vmul.f32 %v975_v63, %v975_v63  ;;  %v1155_v61 = vsel %vm652_vm3, %v1038_v47, 0.0 }
 0x1dc   :  { %v977_v8 = vsub.f32 %v6041_v24, %v3190_v18  ;;  %v1159_v33 = vsel %vm652_vm3, %v1040_v55, 0.0 }
 0x1dd   :  { %v1148_v37 = vadd.f32 %v1147_v57, %v1146_v0  ;;  %v6042_v57 = vld [vmem:[#allocation13_spill] sm:$0xff]  ;;  %v1157_v27 = vsel %vm652_vm3, %v1039_v26, 0.0 }
 0x1de   :  { %v978_v12 = vsub.f32 %v6042_v57, %v3190_v18  ;;  %v1041_v54 = vmul.f32 %v977_v8, %v977_v8  ;;  %v982_v8 = vsub.f32 %v3182_v28, %v3190_v18 }
 0x1df   :  { %v1150_v43 = vadd.f32 %v1149_v45, %v1148_v37  ;;  %v6043_v45 = vld [vmem:[#allocation14_spill] sm:$0xff] }
 0x1e0   :  { %v979_v29 = vsub.f32 %v6043_v45, %v3190_v18  ;;  %v1042_v24 = vmul.f32 %v978_v12, %v978_v12  ;;  %v1161_v47 = vsel %vm652_vm3, %v1041_v54, 0.0  ;;  %v983_v12 = vsub.f32 %v3186_v40, %v3190_v18 }
 0x1e1   :  { %v1152_v44 = vadd.f32 %v1151_v21, %v1150_v43  ;;  %v6044_v21 = vld [vmem:[#allocation15_spill] sm:$0xff] }
 0x1e2   :  { %v980_v63 = vsub.f32 %v6044_v21, %v3190_v18  ;;  %v1043_v57 = vmul.f32 %v979_v29, %v979_v29  ;;  %v1163_v26 = vsel %vm652_vm3, %v1042_v24, 0.0  ;;  %v1047_v54 = vmul.f32 %v983_v12, %v983_v12 }
 0x1e3   :  { %v1154_v0 = vadd.f32 %v1153_v46, %v1152_v44  ;;  %v6045_v46 = vld [vmem:[#allocation16_spill] sm:$0xff] }
 0x1e4   :  { %v981_v42 = vsub.f32 %v6045_v46, %v3190_v18  ;;  %v1165_v55 = vsel %vm652_vm3, %v1043_v57, 0.0  ;;  %v1173_v24 = vsel %vm652_vm3, %v1047_v54, 0.0  ;;  %v2695_v54 = vld [vmem:[#allocation2] sm:$0xff] }
 0x1e5   :  { %v1156_v37 = vadd.f32 %v1155_v61, %v1154_v0  ;;  %v1044_v61 = vmul.f32 %v980_v63, %v980_v63 }
 0x1e7   :  { %v1158_v43 = vadd.f32 %v1157_v27, %v1156_v37  ;;  %v1045_v27 = vmul.f32 %v981_v42, %v981_v42  ;;  %v1167_v29 = vsel %vm652_vm3, %v1044_v61, 0.0  ;;  %v1190_v61 = vlaneseq }
 0x1e9   :  { %v1160_v44 = vadd.f32 %v1159_v33, %v1158_v43  ;;  %v1046_v33 = vmul.f32 %v982_v8, %v982_v8  ;;  %v3384_v12 = vshrl.u32 %v1190_v61, 7 }
 0x1eb   :  { %v1162_v0 = vadd.f32 %v1161_v47, %v1160_v44  ;;  %v1169_v44 = vsel %vm652_vm3, %v1045_v27, 0.0  ;;  %v1171_v63 = vsel %vm652_vm3, %v1046_v33, 0.0  ;;  %v5870_v27 = vsub.s32 0, %v3384_v12 }
 0x1ed   :  { %v1164_v37 = vadd.f32 %v1163_v26, %v1162_v0 }
 0x1ef   :  { %v1166_v43 = vadd.f32 %v1165_v55, %v1164_v37 }
 0x1f1   :  { %v1168_v46 = vadd.f32 %v1167_v29, %v1166_v43  ;;  %v2707_v29 = vld [vmem:[#allocation2 + $0x60] sm:$0xff] }
 0x1f3   :  { %v1170_v47 = vadd.f32 %v1169_v44, %v1168_v46  ;;  %v1184_v46 = vld [vmem:[%s5837_s2] sm:$0x1] }
 0x1f5   :  { %v1172_v28 = vadd.f32 %v1171_v63, %v1170_v47  ;;  %v2696_v47 = vld [vmem:[#allocation2 + $0x8] sm:$0xff] }
 0x1f7   :  { %v1174_v0 = vadd.f32 %v1173_v24, %v1172_v28  ;;  %v2697_v24 = vld [vmem:[#allocation2 + $0x10] sm:$0xff] }
 0x1f9   :  { %v1175_v26 = vrot.slane %v1174_v0, 4 }
 0x1fb   :  { %v1176_v40 = vadd.f32 %v1175_v26, %v1174_v0 }
 0x1fd   :  { %v1177_v42 = vrot.slane %v1176_v40, 2 }
 0x1ff   :  { %v1178_v21 = vadd.f32 %v1177_v42, %v1176_v40  ;;  %v3393_v40 = vld [vmem:[%s5838_s3] sm:$0x1] }
 0x200   :  { %v2699_v42 = vld [vmem:[#allocation2 + $0x20] sm:$0xff] }
 0x201   :  { %v1179_v57 = vrot.slane %v1178_v21, 1 }
 0x203   :  { %v1180_v37 = vadd.f32 %v1179_v57, %v1178_v21 }
 0x205   :  { %v1181_v8 = vmul.f32 0.001953125, %v1180_v37  ;;  %v2700_v37 = vld [vmem:[#allocation2 + $0x28] sm:$0xff] }
 0x207   :  { %v1182_v55 = vadd.f32 1e-05, %v1181_v8 }
 0x209   :  { %2565 = vrsqrt.f32 %v1182_v55  ;;  %v2701_v55 = vld [vmem:[#allocation2 + $0x30] sm:$0xff] }
 0x213   :  { %v2566_v43 = vpop.eup %2565 }
 0x214   :  { %v1185_v28 = vmul.f32 %v2566_v43, %v1184_v46  ;;  %v2702_v46 = vld [vmem:[#allocation2 + $0x38] sm:$0xff] }
 0x216   :  { %v3396_v21 = vmul.f32 %v1185_v28, %v3190_v18  ;;  %v3400_v33 = vrot.slane %v1185_v28, %v5870_v27  ;;  %v2698_v18 = vld [vmem:[#allocation2 + $0x18] sm:$0xff]  ;;  %v2703_v28 = vld [vmem:[#allocation2 + $0x40] sm:$0xff]  ;;  %v2708_v27 = vld [vmem:[#allocation2 + $0x68] sm:$0xff] }
 0x218   :  { %v3405_v44 = vmul.f32 %v2695_v54, %v3400_v33  ;;  %v3408_v63 = vmul.f32 %v2696_v47, %v3400_v33  ;;  %v3411_v0 = vmul.f32 %v2697_v24, %v3400_v33  ;;  %v3414_v26 = vmul.f32 %v2698_v18, %v3400_v33  ;;  %v2704_v47 = vld [vmem:[#allocation2 + $0x48] sm:$0xff]  ;;  %v2705_v18 = vld [vmem:[#allocation2 + $0x50] sm:$0xff] }
 0x219   :  { %v3417_v57 = vmul.f32 %v2699_v42, %v3400_v33  ;;  %v3420_v8 = vmul.f32 %v2700_v37, %v3400_v33  ;;  %v3423_v61 = vmul.f32 %v2701_v55, %v3400_v33  ;;  %v3426_v43 = vmul.f32 %v2702_v46, %v3400_v33  ;;  %v2706_v37 = vld [vmem:[#allocation2 + $0x58] sm:$0xff] }
 0x21a   :  { %v3429_v54 = vmul.f32 %v2703_v28, %v3400_v33  ;;  %v3432_v24 = vmul.f32 %v2704_v47, %v3400_v33  ;;  %v3435_v42 = vmul.f32 %v2705_v18, %v3400_v33  ;;  %v3438_v55 = vmul.f32 %v2706_v37, %v3400_v33 }
 0x21b   :  { %v3441_v46 = vmul.f32 %v2707_v29, %v3400_v33  ;;  %v3444_v28 = vmul.f32 %v2708_v27, %v3400_v33  ;;  %v3451_v18 = vmul.f32 %v3400_v33, %v2961_v52  ;;  %v3455_v37 = vmul.f32 %v3400_v33, %v2970_v62 }
 0x21c   :  { %6046 = vst [vmem:[#allocation3_spill] sm:$0xff] %v3429_v54  ;;  %v2709_v54 = vld [vmem:[#allocation2 + $0x70] sm:$0xff]  ;;  %v3459_v29 = vmul.f32 %v3400_v33, %v2978_v7  ;;  %v3463_v27 = vmul.f32 %v3400_v33, %v2976_v5  ;;  %v3471_v52 = vmul.f32 %v3400_v33, %v2994_v23  ;;  %v3475_v62 = vmul.f32 %v3400_v33, %v3002_v32 }
 0x21d   :  { %v3447_v47 = vmul.f32 %v2709_v54, %v3400_v33  ;;  %v3467_v54 = vmul.f32 %v3400_v33, %v2985_v13  ;;  %v3479_v7 = vmul.f32 %v3400_v33, %v3000_v30  ;;  %v3483_v5 = vmul.f32 %v3400_v33, %v3009_v38 }
 0x21e   :  { %v3487_v13 = vmul.f32 %v3400_v33, %v3018_v51  ;;  %v3491_v23 = vmul.f32 %v3400_v33, %v3026_v60  ;;  %v3495_v32 = vmul.f32 %v3400_v33, %v3024_v58  ;;  %v3499_v30 = vmul.f32 %v3400_v33, %v3033_v6 }
 0x21f   :  { %v3503_v38 = vmul.f32 %v3400_v33, %v3042_v16  ;;  %v3507_v51 = vmul.f32 %v3400_v33, %v3048_v25  ;;  %v3511_v60 = vmul.f32 %v3400_v33, %v3046_v20  ;;  %v3515_v58 = vmul.f32 %v3400_v33, %v3053_v31 }
 0x220   :  { %v3519_v6 = vmul.f32 %v3400_v33, %v3055_v34  ;;  %v3523_v16 = vmul.f32 %v3400_v33, %v3066_v49  ;;  %v3527_v25 = vmul.f32 %v3400_v33, %v3068_v50  ;;  %v3531_v20 = vmul.f32 %v3400_v33, %v3072_v56 }
 0x221   :  { %v3535_v31 = vmul.f32 %v3400_v33, %v3074_v59  ;;  %v3539_v34 = vmul.f32 %v3400_v33, %v3082_v10  ;;  %v3543_v49 = vmul.f32 %v3400_v33, %v3084_v11  ;;  %v3547_v50 = vmul.f32 %v3400_v33, %v3088_v15 }
 0x222   :  { %v3551_v56 = vmul.f32 %v3400_v33, %v3090_v19  ;;  %v3555_v59 = vmul.f32 %v3400_v33, %v3098_v35  ;;  %v3559_v10 = vmul.f32 %v3400_v33, %v3100_v36  ;;  %v3563_v11 = vmul.f32 %v3400_v33, %v3104_v41 }
 0x223   :  { %v3567_v15 = vmul.f32 %v3400_v33, %v3106_v48  ;;  %v3571_v19 = vmul.f32 %v3400_v33, %v3114_v1  ;;  %v3575_v35 = vmul.f32 %v3400_v33, %v3116_v3  ;;  %v3579_v36 = vmul.f32 %v3400_v33, %v3120_v14 }
 0x224   :  { %v3583_v41 = vmul.f32 %v3400_v33, %v6032_v22  ;;  %v3587_v48 = vmul.f32 %v3400_v33, %v6033_v39  ;;  %v3591_v1 = vmul.f32 %v3400_v33, %v6034_v2  ;;  %v3595_v3 = vmul.f32 %v3400_v33, %v6035_v9 }
 0x225   :  { %v3599_v14 = vmul.f32 %v3400_v33, %v6036_v17  ;;  %v3603_v22 = vmul.f32 %v3400_v33, %v6037_v53  ;;  %v3607_v39 = vmul.f32 %v3400_v33, %v6038_v4  ;;  %v3627_v4 = vmul.f32 %v3400_v33, %v6043_v45  ;;  %v6065_v45 = vld [vmem:[#allocation18_spill] sm:$0xff] }
 0x226   :  { %6047 = vst [vmem:[#allocation4_spill] sm:$0xff] %v3587_v48  ;;  %6048 = vst [vmem:[#allocation5_spill] sm:$0xff] %v3591_v1  ;;  %v6052_v48 = vld [vmem:[#allocation10_spill] sm:$0xff]  ;;  %v6054_v1 = vld [vmem:[#allocation11_spill] sm:$0xff] }
 0x227   :  { %6049 = vst [vmem:[#allocation6_spill] sm:$0xff] %v3595_v3  ;;  %6050 = vst [vmem:[#allocation7_spill] sm:$0xff] %v3599_v14  ;;  %v3611_v2 = vmul.f32 %v3400_v33, %v6052_v48  ;;  %v3615_v9 = vmul.f32 %v3400_v33, %v6054_v1  ;;  %v6056_v3 = vld [vmem:[#allocation12_spill] sm:$0xff]  ;;  %v6058_v14 = vld [vmem:[#allocation13_spill] sm:$0xff]  ;;  %v6061_v48 = vsub.f32 %v3393_v40, %v3396_v21 }
 0x228   :  { %6051 = vst [vmem:[#allocation8_spill] sm:$0xff] %v3607_v39  ;;  %v3619_v17 = vmul.f32 %v3400_v33, %v6056_v3  ;;  %v3623_v53 = vmul.f32 %v3400_v33, %v6058_v14  ;;  %v6060_v39 = vsub.s32 0, %v3384_v12  ;;  %v6062_v1 = vld [vmem:[#allocation15_spill] sm:$0xff]  ;;  %v6063_v3 = vld [vmem:[#allocation16_spill] sm:$0xff]  ;;  %v6064_v14 = vld [vmem:[#allocation17_spill] sm:$0xff]  ;;  %v3650_v12 = vmul.f32 %v3400_v33, %v6065_v45 }
 0x229   :  { %6053 = vst [vmem:[#allocation9_spill] sm:$0xff] %v3611_v2  ;;  %6055 = vst [vmem:[#allocation14_spill] sm:$0xff] %v3615_v9  ;;  %v3638_v9 = vmul.f32 %v3400_v33, %v6062_v1  ;;  %v6074_v1 = vld [vmem:[#allocation3_spill] sm:$0xff] }
 0x22a   :  { %6057 = vst [vmem:[#allocation10_spill] sm:$0xff] %v3619_v17  ;;  %6059 = vst [vmem:[#allocation11_spill] sm:$0xff] %v3623_v53  ;;  %v3634_v2 = vrot.slane %v6061_v48, %v6060_v39  ;;  %v3642_v17 = vmul.f32 %v3400_v33, %v6063_v3  ;;  %v3646_v53 = vmul.f32 %v3400_v33, %v6064_v14 }
 0x22c   :  { %v3654_v40 = vadd.f32 %v3634_v2, %v3405_v44  ;;  %v3658_v21 = vadd.f32 %v3634_v2, %v3408_v63  ;;  %v3662_v39 = vadd.f32 %v3634_v2, %v3411_v0  ;;  %v3666_v48 = vadd.f32 %v3634_v2, %v3414_v26 }
 0x22d   :  { %v3670_v33 = vadd.f32 %v3634_v2, %v3417_v57  ;;  %v3674_v44 = vadd.f32 %v3634_v2, %v3420_v8  ;;  %v3678_v63 = vadd.f32 %v3634_v2, %v3423_v61  ;;  %v3682_v0 = vadd.f32 %v3634_v2, %v3426_v43  ;;  %v6112_v14 = vld [vmem:[#allocation4_spill] sm:$0xff]  ;;  %v6114_v45 = vld [vmem:[#allocation5_spill] sm:$0xff] }
 0x22e   :  { %6066 = vst [vmem:[#allocation12_spill] sm:$0xff] %v3654_v40  ;;  %6067 = vst [vmem:[#allocation13_spill] sm:$0xff] %v3658_v21  ;;  %v3686_v26 = vadd.f32 %v3634_v2, %v6074_v1  ;;  %v3690_v57 = vadd.f32 %v3634_v2, %v3432_v24  ;;  %v3694_v8 = vadd.f32 %v3634_v2, %v3435_v42  ;;  %v6116_v1 = vld [vmem:[#allocation6_spill] sm:$0xff] }
 0x22f   :  { %6068 = vst [vmem:[#allocation15_spill] sm:$0xff] %v3662_v39  ;;  %6069 = vst [vmem:[#allocation16_spill] sm:$0xff] %v3666_v48  ;;  %v3698_v61 = vadd.f32 %v3634_v2, %v3438_v55  ;;  %v3702_v43 = vadd.f32 %v3634_v2, %v3441_v46  ;;  %v3706_v3 = vadd.f32 %v3634_v2, %v3444_v28 }
 0x230   :  { %6070 = vst [vmem:[#allocation17_spill] sm:$0xff] %v3670_v33  ;;  %6071 = vst [vmem:[#allocation18_spill] sm:$0xff] %v3674_v44  ;;  %v3710_v24 = vadd.f32 %v3634_v2, %v3447_v47  ;;  %v3714_v42 = vadd.f32 %v3634_v2, %v3451_v18  ;;  %v3718_v55 = vadd.f32 %v3634_v2, %v3455_v37 }
 0x231   :  { %6072 = vst [vmem:[#allocation19_spill] sm:$0xff] %v3678_v63  ;;  %6073 = vst [vmem:[#allocation20_spill] sm:$0xff] %v3682_v0  ;;  %v3722_v46 = vadd.f32 %v3634_v2, %v3459_v29  ;;  %v3726_v28 = vadd.f32 %v3634_v2, %v3463_v27  ;;  %v3730_v47 = vadd.f32 %v3634_v2, %v3467_v54 }
 0x232   :  { %6075 = vst [vmem:[#allocation3_spill] sm:$0xff] %v3686_v26  ;;  %6076 = vst [vmem:[#allocation21_spill] sm:$0xff] %v3690_v57  ;;  %v3734_v18 = vadd.f32 %v3634_v2, %v3471_v52  ;;  %v3738_v37 = vadd.f32 %v3634_v2, %v3475_v62  ;;  %v3742_v29 = vadd.f32 %v3634_v2, %v3479_v7 }
 0x233   :  { %6077 = vst [vmem:[#allocation22_spill] sm:$0xff] %v3694_v8  ;;  %6078 = vst [vmem:[#allocation23_spill] sm:$0xff] %v3698_v61  ;;  %v3746_v27 = vadd.f32 %v3634_v2, %v3483_v5  ;;  %v3750_v54 = vadd.f32 %v3634_v2, %v3487_v13  ;;  %v3754_v52 = vadd.f32 %v3634_v2, %v3491_v23 }
 0x234   :  { %6079 = vst [vmem:[#allocation24_spill] sm:$0xff] %v3702_v43  ;;  %6080 = vst [vmem:[#allocation25_spill] sm:$0xff] %v3706_v3  ;;  %v3758_v62 = vadd.f32 %v3634_v2, %v3495_v32  ;;  %v3762_v7 = vadd.f32 %v3634_v2, %v3499_v30  ;;  %v3766_v5 = vadd.f32 %v3634_v2, %v3503_v38 }
 0x235   :  { %6081 = vst [vmem:[#allocation26_spill] sm:$0xff] %v3710_v24  ;;  %6082 = vst [vmem:[#allocation27_spill] sm:$0xff] %v3714_v42  ;;  %v3770_v13 = vadd.f32 %v3634_v2, %v3507_v51  ;;  %v3774_v23 = vadd.f32 %v3634_v2, %v3511_v60  ;;  %v3778_v32 = vadd.f32 %v3634_v2, %v3515_v58 }
 0x236   :  { %6083 = vst [vmem:[#allocation28_spill] sm:$0xff] %v3718_v55  ;;  %6084 = vst [vmem:[#allocation29_spill] sm:$0xff] %v3722_v46  ;;  %v3782_v30 = vadd.f32 %v3634_v2, %v3519_v6  ;;  %v3786_v38 = vadd.f32 %v3634_v2, %v3523_v16  ;;  %v3790_v51 = vadd.f32 %v3634_v2, %v3527_v25 }
 0x237   :  { %6085 = vst [vmem:[#allocation30_spill] sm:$0xff] %v3734_v18  ;;  %6086 = vst [vmem:[#allocation31_spill] sm:$0xff] %v3746_v27  ;;  %v3794_v60 = vadd.f32 %v3634_v2, %v3531_v20  ;;  %v3798_v58 = vadd.f32 %v3634_v2, %v3535_v31  ;;  %v3802_v6 = vadd.f32 %v3634_v2, %v3539_v34 }
 0x238   :  { %6087 = vst [vmem:[#allocation32_spill] sm:$0xff] %v3750_v54  ;;  %6088 = vst [vmem:[#allocation33_spill] sm:$0xff] %v3754_v52  ;;  %v3806_v16 = vadd.f32 %v3634_v2, %v3543_v49  ;;  %v3810_v25 = vadd.f32 %v3634_v2, %v3547_v50  ;;  %v3814_v20 = vadd.f32 %v3634_v2, %v3551_v56 }
 0x239   :  { %6089 = vst [vmem:[#allocation34_spill] sm:$0xff] %v3758_v62  ;;  %6090 = vst [vmem:[#allocation35_spill] sm:$0xff] %v3762_v7  ;;  %v3818_v31 = vadd.f32 %v3634_v2, %v3555_v59  ;;  %v3822_v34 = vadd.f32 %v3634_v2, %v3559_v10  ;;  %v3826_v49 = vadd.f32 %v3634_v2, %v3563_v11 }
 0x23a   :  { %6091 = vst [vmem:[#allocation36_spill] sm:$0xff] %v3766_v5  ;;  %6092 = vst [vmem:[#allocation37_spill] sm:$0xff] %v3770_v13  ;;  %v3830_v50 = vadd.f32 %v3634_v2, %v3567_v15  ;;  %v3834_v56 = vadd.f32 %v3634_v2, %v3571_v19  ;;  %v3838_v59 = vadd.f32 %v3634_v2, %v3575_v35 }
 0x23b   :  { %6093 = vst [vmem:[#allocation38_spill] sm:$0xff] %v3774_v23  ;;  %6094 = vst [vmem:[#allocation39_spill] sm:$0xff] %v3778_v32  ;;  %v3842_v10 = vadd.f32 %v3634_v2, %v3579_v36  ;;  %v3846_v11 = vadd.f32 %v3634_v2, %v3583_v41  ;;  %v3850_v15 = vadd.f32 %v3634_v2, %v6112_v14 }
 0x23c   :  { %6095 = vst [vmem:[#allocation40_spill] sm:$0xff] %v3782_v30  ;;  %6096 = vst [vmem:[#allocation41_spill] sm:$0xff] %v3786_v38  ;;  %v3854_v19 = vadd.f32 %v3634_v2, %v6114_v45  ;;  %v3858_v35 = vadd.f32 %v3634_v2, %v6116_v1  ;;  %v3866_v41 = vadd.f32 %v3634_v2, %v3603_v22 }
 0x23d   :  { %6097 = vst [vmem:[#allocation42_spill] sm:$0xff] %v3790_v51  ;;  %6098 = vst [vmem:[#allocation43_spill] sm:$0xff] %v3794_v60 }
 0x23e   :  { %6099 = vst [vmem:[#allocation44_spill] sm:$0xff] %v3798_v58  ;;  %6100 = vst [vmem:[#allocation45_spill] sm:$0xff] %v3802_v6 }
 0x23f   :  { %6101 = vst [vmem:[#allocation46_spill] sm:$0xff] %v3806_v16  ;;  %6102 = vst [vmem:[#allocation47_spill] sm:$0xff] %v3810_v25 }
 0x240   :  { %6103 = vst [vmem:[#allocation48_spill] sm:$0xff] %v3814_v20  ;;  %6104 = vst [vmem:[#allocation49_spill] sm:$0xff] %v3818_v31 }
 0x241   :  { %6105 = vst [vmem:[#allocation50_spill] sm:$0xff] %v3822_v34  ;;  %6106 = vst [vmem:[#allocation51_spill] sm:$0xff] %v3826_v49 }
 0x242   :  { %6107 = vst [vmem:[#allocation52_spill] sm:$0xff] %v3830_v50  ;;  %6108 = vst [vmem:[#allocation53_spill] sm:$0xff] %v3834_v56 }
 0x243   :  { %6109 = vst [vmem:[#allocation54_spill] sm:$0xff] %v3838_v59  ;;  %6110 = vst [vmem:[#allocation55_spill] sm:$0xff] %v3842_v10  ;;  %v6118_v59 = vld [vmem:[#allocation7_spill] sm:$0xff] }
 0x244   :  { %6111 = vst [vmem:[#allocation56_spill] sm:$0xff] %v3846_v11  ;;  %6113 = vst [vmem:[#allocation4_spill] sm:$0xff] %v3850_v15  ;;  %v3862_v36 = vadd.f32 %v3634_v2, %v6118_v59  ;;  %v6121_v11 = vld [vmem:[#allocation8_spill] sm:$0xff]  ;;  %v6123_v15 = vld [vmem:[#allocation9_spill] sm:$0xff] }
 0x245   :  { %6115 = vst [vmem:[#allocation5_spill] sm:$0xff] %v3854_v19  ;;  %6117 = vst [vmem:[#allocation6_spill] sm:$0xff] %v3858_v35  ;;  %v3870_v14 = vadd.f32 %v3634_v2, %v6121_v11  ;;  %v3874_v45 = vadd.f32 %v3634_v2, %v6123_v15  ;;  %v6125_v19 = vld [vmem:[#allocation14_spill] sm:$0xff]  ;;  %v3890_v11 = vadd.f32 %v3634_v2, %v3627_v4  ;;  %v3912_v4 = vmul.f32 0.5, %v3658_v21 }
 0x246   :  { %6119 = vst [vmem:[#allocation7_spill] sm:$0xff] %v3862_v36  ;;  %6120 = vst [vmem:[#allocation57_spill] sm:$0xff] %v3866_v41  ;;  %v3878_v1 = vadd.f32 %v3634_v2, %v6125_v19  ;;  %v6127_v35 = vld [vmem:[#allocation10_spill] sm:$0xff]  ;;  %v6129_v36 = vld [vmem:[#allocation11_spill] sm:$0xff]  ;;  %v3894_v15 = vadd.f32 %v3634_v2, %v3638_v9  ;;  %v3898_v19 = vadd.f32 %v3634_v2, %v3642_v17  ;;  %v3915_v9 = vmul.f32 0.5, %v3662_v39 }
 0x247   :  { %6122 = vst [vmem:[#allocation8_spill] sm:$0xff] %v3870_v14  ;;  %6124 = vst [vmem:[#allocation9_spill] sm:$0xff] %v3874_v45  ;;  %v3882_v59 = vadd.f32 %v3634_v2, %v6127_v35  ;;  %v3886_v22 = vadd.f32 %v3634_v2, %v6129_v36  ;;  %v3902_v35 = vadd.f32 %v3634_v2, %v3646_v53  ;;  %v3918_v17 = vmul.f32 0.5, %v3666_v48 }
 0x248   :  { %6126 = vst [vmem:[#allocation14_spill] sm:$0xff] %v3878_v1  ;;  %6131 = vst [vmem:[#allocation58_spill] sm:$0xff] %v3890_v11  ;;  %v3906_v36 = vadd.f32 %v3634_v2, %v3650_v12  ;;  %v3924_v53 = vmul.f32 0.5, %v3674_v44  ;;  %v3927_v2 = vmul.f32 0.5, %v3678_v63  ;;  %v3930_v12 = vmul.f32 0.5, %v3682_v0 }
 0x249   :  { %6128 = vst [vmem:[#allocation10_spill] sm:$0xff] %v3882_v59  ;;  %6130 = vst [vmem:[#allocation11_spill] sm:$0xff] %v3886_v22  ;;  %v3909_v22 = vmul.f32 0.5, %v3654_v40 }
 0x24a   :  { %6132 = vst [vmem:[#allocation59_spill] sm:$0xff] %v3894_v15  ;;  %6133 = vst [vmem:[#allocation60_spill] sm:$0xff] %v3898_v19  ;;  %v3921_v19 = vmul.f32 0.5, %v3670_v33 }
 0x24b   :  { %6134 = vst [vmem:[#allocation61_spill] sm:$0xff] %v3902_v35  ;;  %6135 = vst [vmem:[#allocation62_spill] sm:$0xff] %v3906_v36 }
 0x24c   :  { %6136 = vst [vmem:[#allocation63_spill] sm:$0xff] %v3909_v22  ;;  %6137 = vst [vmem:[#allocation64_spill] sm:$0xff] %v3912_v4  ;;  %v3933_v4 = vmul.f32 0.5, %v3686_v26  ;;  %v6182_v22 = vld [vmem:[#allocation54_spill] sm:$0xff] }
 0x24d   :  { %6138 = vst [vmem:[#allocation65_spill] sm:$0xff] %v3915_v9  ;;  %6139 = vst [vmem:[#allocation66_spill] sm:$0xff] %v3918_v17  ;;  %v3936_v9 = vmul.f32 0.5, %v3690_v57  ;;  %v3939_v17 = vmul.f32 0.5, %v3694_v8 }
 0x24e   :  { %6140 = vst [vmem:[#allocation67_spill] sm:$0xff] %v3921_v19  ;;  %6141 = vst [vmem:[#allocation68_spill] sm:$0xff] %v3924_v53  ;;  %v3942_v19 = vmul.f32 0.5, %v3698_v61  ;;  %v3945_v53 = vmul.f32 0.5, %v3702_v43 }
 0x24f   :  { %6142 = vst [vmem:[#allocation69_spill] sm:$0xff] %v3927_v2  ;;  %6143 = vst [vmem:[#allocation70_spill] sm:$0xff] %v3930_v12  ;;  %v3948_v2 = vmul.f32 0.5, %v3706_v3  ;;  %v3951_v12 = vmul.f32 0.5, %v3710_v24 }
 0x250   :  { %6144 = vst [vmem:[#allocation71_spill] sm:$0xff] %v3933_v4  ;;  %6145 = vst [vmem:[#allocation72_spill] sm:$0xff] %v3936_v9  ;;  %v3954_v4 = vmul.f32 0.5, %v3714_v42  ;;  %v3957_v9 = vmul.f32 0.5, %v3718_v55 }
 0x251   :  { %6146 = vst [vmem:[#allocation73_spill] sm:$0xff] %v3939_v17  ;;  %6147 = vst [vmem:[#allocation74_spill] sm:$0xff] %v3942_v19  ;;  %v3960_v17 = vmul.f32 0.5, %v3722_v46  ;;  %v3963_v19 = vmul.f32 0.5, %v3726_v28 }
 0x252   :  { %6148 = vst [vmem:[#allocation75_spill] sm:$0xff] %v3945_v53  ;;  %6149 = vst [vmem:[#allocation76_spill] sm:$0xff] %v3948_v2  ;;  %v3966_v53 = vmul.f32 0.5, %v3730_v47  ;;  %v3969_v2 = vmul.f32 0.5, %v3734_v18 }
 0x253   :  { %6150 = vst [vmem:[#allocation77_spill] sm:$0xff] %v3951_v12  ;;  %6151 = vst [vmem:[#allocation78_spill] sm:$0xff] %v3954_v4  ;;  %v3972_v12 = vmul.f32 0.5, %v3738_v37  ;;  %v3975_v4 = vmul.f32 0.5, %v3742_v29 }
 0x254   :  { %6152 = vst [vmem:[#allocation79_spill] sm:$0xff] %v3957_v9  ;;  %6153 = vst [vmem:[#allocation80_spill] sm:$0xff] %v3960_v17  ;;  %v3978_v9 = vmul.f32 0.5, %v3746_v27  ;;  %v3981_v17 = vmul.f32 0.5, %v3750_v54 }
 0x255   :  { %6154 = vst [vmem:[#allocation81_spill] sm:$0xff] %v3963_v19  ;;  %6155 = vst [vmem:[#allocation82_spill] sm:$0xff] %v3966_v53  ;;  %v3984_v19 = vmul.f32 0.5, %v3754_v52  ;;  %v3987_v53 = vmul.f32 0.5, %v3758_v62 }
 0x256   :  { %6156 = vst [vmem:[#allocation83_spill] sm:$0xff] %v3969_v2  ;;  %6157 = vst [vmem:[#allocation84_spill] sm:$0xff] %v3972_v12  ;;  %v3990_v2 = vmul.f32 0.5, %v3762_v7  ;;  %v3993_v12 = vmul.f32 0.5, %v3766_v5 }
 0x257   :  { %6158 = vst [vmem:[#allocation85_spill] sm:$0xff] %v3975_v4  ;;  %6159 = vst [vmem:[#allocation86_spill] sm:$0xff] %v3978_v9  ;;  %v3996_v4 = vmul.f32 0.5, %v3770_v13  ;;  %v3999_v9 = vmul.f32 0.5, %v3774_v23 }
 0x258   :  { %6160 = vst [vmem:[#allocation87_spill] sm:$0xff] %v3981_v17  ;;  %6161 = vst [vmem:[#allocation88_spill] sm:$0xff] %v3984_v19  ;;  %v4002_v17 = vmul.f32 0.5, %v3778_v32  ;;  %v4005_v19 = vmul.f32 0.5, %v3782_v30 }
 0x259   :  { %6162 = vst [vmem:[#allocation89_spill] sm:$0xff] %v3987_v53  ;;  %6163 = vst [vmem:[#allocation90_spill] sm:$0xff] %v3990_v2  ;;  %v4008_v53 = vmul.f32 0.5, %v3786_v38  ;;  %v4011_v2 = vmul.f32 0.5, %v3790_v51 }
 0x25a   :  { %6164 = vst [vmem:[#allocation91_spill] sm:$0xff] %v3993_v12  ;;  %6165 = vst [vmem:[#allocation92_spill] sm:$0xff] %v3996_v4  ;;  %v4014_v12 = vmul.f32 0.5, %v3794_v60  ;;  %v4017_v4 = vmul.f32 0.5, %v3798_v58 }
 0x25b   :  { %6166 = vst [vmem:[#allocation93_spill] sm:$0xff] %v3999_v9  ;;  %6167 = vst [vmem:[#allocation94_spill] sm:$0xff] %v4002_v17  ;;  %v4020_v9 = vmul.f32 0.5, %v3802_v6  ;;  %v4023_v17 = vmul.f32 0.5, %v3806_v16 }
 0x25c   :  { %6168 = vst [vmem:[#allocation95_spill] sm:$0xff] %v4005_v19  ;;  %6169 = vst [vmem:[#allocation96_spill] sm:$0xff] %v4008_v53  ;;  %v4026_v19 = vmul.f32 0.5, %v3810_v25  ;;  %v4029_v53 = vmul.f32 0.5, %v3814_v20 }
 0x25d   :  { %6170 = vst [vmem:[#allocation97_spill] sm:$0xff] %v4011_v2  ;;  %6171 = vst [vmem:[#allocation98_spill] sm:$0xff] %v4014_v12  ;;  %v4032_v2 = vmul.f32 0.5, %v3818_v31  ;;  %v4035_v12 = vmul.f32 0.5, %v3822_v34  ;;  %v6185_v31 = vld [vmem:[#allocation56_spill] sm:$0xff] }
 0x25e   :  { %6172 = vst [vmem:[#allocation99_spill] sm:$0xff] %v4017_v4  ;;  %6173 = vst [vmem:[#allocation100_spill] sm:$0xff] %v4020_v9  ;;  %v4038_v4 = vmul.f32 0.5, %v3826_v49  ;;  %v4041_v9 = vmul.f32 0.5, %v3830_v50  ;;  %v6187_v34 = vld [vmem:[#allocation4_spill] sm:$0xff]  ;;  %v6189_v49 = vld [vmem:[#allocation5_spill] sm:$0xff] }
 0x25f   :  { %6174 = vst [vmem:[#allocation101_spill] sm:$0xff] %v4023_v17  ;;  %6175 = vst [vmem:[#allocation102_spill] sm:$0xff] %v4026_v19  ;;  %v4044_v17 = vmul.f32 0.5, %v3834_v56  ;;  %v4047_v19 = vmul.f32 0.5, %v6182_v22  ;;  %v6191_v50 = vld [vmem:[#allocation6_spill] sm:$0xff]  ;;  %v6193_v56 = vld [vmem:[#allocation7_spill] sm:$0xff] }
 0x260   :  { %6176 = vst [vmem:[#allocation103_spill] sm:$0xff] %v4029_v53  ;;  %6177 = vst [vmem:[#allocation104_spill] sm:$0xff] %v4032_v2  ;;  %v4050_v53 = vmul.f32 0.5, %v3842_v10  ;;  %v4053_v2 = vmul.f32 0.5, %v6185_v31 }
 0x261   :  { %6178 = vst [vmem:[#allocation105_spill] sm:$0xff] %v4035_v12  ;;  %6179 = vst [vmem:[#allocation106_spill] sm:$0xff] %v4038_v4  ;;  %v4056_v12 = vmul.f32 0.5, %v6187_v34  ;;  %v4059_v4 = vmul.f32 0.5, %v6189_v49  ;;  %v1409_v49 = vmul.f32 0.044715, %v3718_v55 }
 0x262   :  { %6180 = vst [vmem:[#allocation107_spill] sm:$0xff] %v4041_v9  ;;  %6181 = vst [vmem:[#allocation108_spill] sm:$0xff] %v4044_v17  ;;  %v4062_v9 = vmul.f32 0.5, %v6191_v50  ;;  %v4065_v17 = vmul.f32 0.5, %v6193_v56  ;;  %v6200_v50 = vld [vmem:[#allocation11_spill] sm:$0xff] }
 0x263   :  { %6183 = vst [vmem:[#allocation109_spill] sm:$0xff] %v4047_v19  ;;  %6184 = vst [vmem:[#allocation110_spill] sm:$0xff] %v4050_v53  ;;  %v4068_v19 = vmul.f32 0.5, %v3866_v41  ;;  %v4071_v53 = vmul.f32 0.5, %v3870_v14  ;;  %v6204_v14 = vld [vmem:[#allocation60_spill] sm:$0xff] }
 0x264   :  { %6186 = vst [vmem:[#allocation111_spill] sm:$0xff] %v4053_v2  ;;  %6188 = vst [vmem:[#allocation112_spill] sm:$0xff] %v4056_v12  ;;  %v4074_v2 = vmul.f32 0.5, %v3874_v45  ;;  %v4077_v12 = vmul.f32 0.5, %v3878_v1  ;;  %v1406_v1 = vmul.f32 0.044715, %v3706_v3 }
 0x265   :  { %6190 = vst [vmem:[#allocation113_spill] sm:$0xff] %v4059_v4  ;;  %6192 = vst [vmem:[#allocation114_spill] sm:$0xff] %v4062_v9  ;;  %v4080_v4 = vmul.f32 0.5, %v3882_v59  ;;  %v4083_v9 = vmul.f32 0.5, %v6200_v50  ;;  %v1394_v50 = vmul.f32 0.044715, %v3658_v21 }
 0x266   :  { %6194 = vst [vmem:[#allocation115_spill] sm:$0xff] %v4065_v17  ;;  %6195 = vst [vmem:[#allocation116_spill] sm:$0xff] %v4068_v19  ;;  %v4086_v17 = vmul.f32 0.5, %v3890_v11  ;;  %v4089_v19 = vmul.f32 0.5, %v3894_v15  ;;  %v1397_v15 = vmul.f32 0.044715, %v3670_v33 }
 0x267   :  { %6196 = vst [vmem:[#allocation117_spill] sm:$0xff] %v4071_v53  ;;  %6197 = vst [vmem:[#allocation118_spill] sm:$0xff] %v4074_v2  ;;  %v4092_v53 = vmul.f32 0.5, %v6204_v14  ;;  %v4095_v2 = vmul.f32 0.5, %v3902_v35  ;;  %v1400_v35 = vmul.f32 0.044715, %v3682_v0  ;;  %v4119_v41 = vmul.f32 %v1394_v50, %v3658_v21 }
 0x268   :  { %6198 = vst [vmem:[#allocation119_spill] sm:$0xff] %v4077_v12  ;;  %6199 = vst [vmem:[#allocation120_spill] sm:$0xff] %v4080_v4  ;;  %v4098_v12 = vmul.f32 0.5, %v3906_v36  ;;  %v1393_v4 = vmul.f32 0.044715, %v3654_v40 }
 0x269   :  { %6201 = vst [vmem:[#allocation121_spill] sm:$0xff] %v4083_v9  ;;  %6202 = vst [vmem:[#allocation122_spill] sm:$0xff] %v4086_v17  ;;  %v1395_v9 = vmul.f32 0.044715, %v3662_v39  ;;  %v1396_v17 = vmul.f32 0.044715, %v3666_v48 }
 0x26a   :  { %6203 = vst [vmem:[#allocation123_spill] sm:$0xff] %v4089_v19  ;;  %6205 = vst [vmem:[#allocation124_spill] sm:$0xff] %v4092_v53  ;;  %v1398_v19 = vmul.f32 0.044715, %v3674_v44  ;;  %v1399_v53 = vmul.f32 0.044715, %v3678_v63  ;;  %v4113_v11 = vmul.f32 %v1393_v4, %v3654_v40 }
 0x26b   :  { %6206 = vst [vmem:[#allocation125_spill] sm:$0xff] %v4095_v2  ;;  %6207 = vst [vmem:[#allocation126_spill] sm:$0xff] %v4098_v12  ;;  %v1401_v2 = vmul.f32 0.044715, %v3686_v26  ;;  %v1402_v12 = vmul.f32 0.044715, %v3690_v57  ;;  %v4125_v31 = vmul.f32 %v1395_v9, %v3662_v39 }
 0x26c   :  { %v1403_v36 = vmul.f32 0.044715, %v3694_v8  ;;  %v1404_v14 = vmul.f32 0.044715, %v3698_v61  ;;  %6208 = vst [vmem:[#allocation127_spill] sm:$0xff] %v4113_v11  ;;  %6209 = vst [vmem:[#allocation128_spill] sm:$0xff] %v4119_v41 }
 0x26d   :  { %v1405_v59 = vmul.f32 0.044715, %v3702_v43  ;;  %v1407_v45 = vmul.f32 0.044715, %v3710_v24  ;;  %v1408_v56 = vmul.f32 0.044715, %v3714_v42  ;;  %v4131_v24 = vmul.f32 %v1396_v17, %v3666_v48 }
 0x26e   :  { %v1410_v34 = vmul.f32 0.044715, %v3722_v46  ;;  %6210 = vst [vmem:[#allocation129_spill] sm:$0xff] %v4125_v31  ;;  %v1411_v4 = vmul.f32 0.044715, %v3726_v28  ;;  %v4137_v46 = vmul.f32 %v1397_v15, %v3670_v33 }
 0x26f   :  { %v1412_v11 = vmul.f32 0.044715, %v3730_v47  ;;  %v1413_v40 = vmul.f32 0.044715, %v3734_v18  ;;  %6211 = vst [vmem:[#allocation130_spill] sm:$0xff] %v4131_v24  ;;  %v4143_v18 = vmul.f32 %v1398_v19, %v3674_v44 }
 0x270   :  { %v1414_v50 = vmul.f32 0.044715, %v3738_v37  ;;  %v1415_v41 = vmul.f32 0.044715, %v3742_v29  ;;  %v1416_v21 = vmul.f32 0.044715, %v3746_v27  ;;  %v4149_v27 = vmul.f32 %v1399_v53, %v3678_v63 }
 0x271   :  { %6212 = vst [vmem:[#allocation131_spill] sm:$0xff] %v4137_v46  ;;  %v1417_v9 = vmul.f32 0.044715, %v3750_v54  ;;  %v1418_v31 = vmul.f32 0.044715, %v3754_v52  ;;  %6213 = vst [vmem:[#allocation132_spill] sm:$0xff] %v4143_v18 }
 0x272   :  { %v1419_v39 = vmul.f32 0.044715, %v3758_v62  ;;  %v1420_v17 = vmul.f32 0.044715, %v3762_v7  ;;  %v1421_v24 = vmul.f32 0.044715, %v3766_v5  ;;  %v4155_v62 = vmul.f32 %v1400_v35, %v3682_v0 }
 0x273   :  { %v1422_v48 = vmul.f32 0.044715, %v3770_v13  ;;  %6214 = vst [vmem:[#allocation133_spill] sm:$0xff] %v4149_v27  ;;  %v1423_v15 = vmul.f32 0.044715, %v3774_v23  ;;  %v4161_v13 = vmul.f32 %v1401_v2, %v3686_v26  ;;  %v6218_v0 = vld [vmem:[#allocation49_spill] sm:$0xff] }
 0x274   :  { %v1424_v46 = vmul.f32 0.044715, %v3778_v32  ;;  %v1425_v33 = vmul.f32 0.044715, %v3782_v30  ;;  %6215 = vst [vmem:[#allocation134_spill] sm:$0xff] %v4155_v62  ;;  %v4167_v30 = vmul.f32 %v1402_v12, %v3690_v57  ;;  %v6220_v2 = vld [vmem:[#allocation50_spill] sm:$0xff] }
 0x275   :  { %v1426_v19 = vmul.f32 0.044715, %v3786_v38  ;;  %v1427_v18 = vmul.f32 0.044715, %v3790_v51  ;;  %v1428_v44 = vmul.f32 0.044715, %v3794_v60  ;;  %v4173_v60 = vmul.f32 %v1403_v36, %v3694_v8 }
 0x276   :  { %6216 = vst [vmem:[#allocation135_spill] sm:$0xff] %v4161_v13  ;;  %v1429_v53 = vmul.f32 0.044715, %v3798_v58  ;;  %v1430_v27 = vmul.f32 0.044715, %v3802_v6  ;;  %6217 = vst [vmem:[#allocation136_spill] sm:$0xff] %v4167_v30 }
 0x277   :  { %v1431_v63 = vmul.f32 0.044715, %v3806_v16  ;;  %v1432_v35 = vmul.f32 0.044715, %v3810_v25  ;;  %v1433_v62 = vmul.f32 0.044715, %v3814_v20  ;;  %v4179_v16 = vmul.f32 %v1404_v14, %v3698_v61 }
 0x278   :  { %v1434_v51 = vmul.f32 0.044715, %v6218_v0  ;;  %6219 = vst [vmem:[#allocation137_spill] sm:$0xff] %v4173_v60  ;;  %v1435_v13 = vmul.f32 0.044715, %v6220_v2  ;;  %v6221_v26 = vld [vmem:[#allocation51_spill] sm:$0xff]  ;;  %v4185_v0 = vmul.f32 %v1405_v59, %v3702_v43 }
 0x279   :  { %v1436_v58 = vmul.f32 0.044715, %v6221_v26  ;;  %v6222_v38 = vld [vmem:[#allocation52_spill] sm:$0xff]  ;;  %6223 = vst [vmem:[#allocation138_spill] sm:$0xff] %v4179_v16  ;;  %v6224_v12 = vld [vmem:[#allocation53_spill] sm:$0xff]  ;;  %v6230_v14 = vld [vmem:[#allocation6_spill] sm:$0xff] }
 0x27a   :  { %v1437_v6 = vmul.f32 0.044715, %v6222_v38  ;;  %v1438_v30 = vmul.f32 0.044715, %v6224_v12  ;;  %v1439_v57 = vmul.f32 0.044715, %v6182_v22  ;;  %v4191_v38 = vmul.f32 %v1406_v1, %v3706_v3 }
 0x27b   :  { %v1440_v20 = vmul.f32 0.044715, %v3842_v10  ;;  %6225 = vst [vmem:[#allocation139_spill] sm:$0xff] %v4185_v0  ;;  %v6226_v36 = vld [vmem:[#allocation56_spill] sm:$0xff]  ;;  %v6228_v25 = vld [vmem:[#allocation5_spill] sm:$0xff]  ;;  %v6231_v61 = vld [vmem:[#allocation7_spill] sm:$0xff] }
 0x27c   :  { %v1441_v60 = vmul.f32 0.044715, %v6226_v36  ;;  %v6227_v8 = vld [vmem:[#allocation4_spill] sm:$0xff]  ;;  %v1443_v26 = vmul.f32 0.044715, %v6228_v25  ;;  %6229 = vst [vmem:[#allocation140_spill] sm:$0xff] %v4191_v38  ;;  %v4203_v25 = vmul.f32 %v1408_v56, %v3714_v42  ;;  %v4219_v42 = vmul.f32 %v1411_v4, %v3726_v28 }
 0x27d   :  { %v1442_v2 = vmul.f32 0.044715, %v6227_v8  ;;  %v1444_v16 = vmul.f32 0.044715, %v6230_v14  ;;  %v1445_v12 = vmul.f32 0.044715, %v6231_v61 }
 0x27e   :  { %v6232_v32 = vld [vmem:[#allocation57_spill] sm:$0xff]  ;;  %v6233_v23 = vld [vmem:[#allocation26_spill] sm:$0xff]  ;;  %v6235_v59 = vld [vmem:[#allocation8_spill] sm:$0xff]  ;;  %6238 = vst [vmem:[#allocation142_spill] sm:$0xff] %v4203_v25 }
 0x27f   :  { %v1446_v22 = vmul.f32 0.044715, %v6232_v32  ;;  %v4197_v10 = vmul.f32 %v1407_v45, %v6233_v23  ;;  %v1447_v0 = vmul.f32 0.044715, %v6235_v59  ;;  %v6236_v43 = vld [vmem:[#allocation9_spill] sm:$0xff]  ;;  %v6237_v5 = vld [vmem:[#allocation14_spill] sm:$0xff]  ;;  %v4209_v32 = vmul.f32 %v1409_v49, %v3718_v55 }
 0x280   :  { %v1448_v36 = vmul.f32 0.044715, %v6236_v43  ;;  %v1449_v8 = vmul.f32 0.044715, %v6237_v5  ;;  %v6239_v1 = vld [vmem:[#allocation10_spill] sm:$0xff]  ;;  %v6240_v3 = vld [vmem:[#allocation11_spill] sm:$0xff]  ;;  %v4231_v55 = vmul.f32 %v1415_v41, %v3742_v29 }
 0x281   :  { %6234 = vst [vmem:[#allocation141_spill] sm:$0xff] %v4197_v10  ;;  %v1450_v38 = vmul.f32 0.044715, %v6239_v1  ;;  %v1451_v14 = vmul.f32 0.044715, %v6240_v3  ;;  %v6241_v7 = vld [vmem:[#allocation58_spill] sm:$0xff]  ;;  %v4222_v3 = vmul.f32 %v1412_v11, %v3730_v47 }
 0x282   :  { %v1452_v61 = vmul.f32 0.044715, %v6241_v7  ;;  %6242 = vst [vmem:[#allocation143_spill] sm:$0xff] %v4209_v32  ;;  %v6243_v45 = vld [vmem:[#allocation59_spill] sm:$0xff]  ;;  %v6244_v23 = vld [vmem:[#allocation60_spill] sm:$0xff]  ;;  %v6245_v52 = vld [vmem:[#allocation61_spill] sm:$0xff]  ;;  %v4228_v32 = vmul.f32 %v1414_v50, %v3738_v37 }
 0x283   :  { %v1453_v10 = vmul.f32 0.044715, %v6243_v45  ;;  %v1454_v59 = vmul.f32 0.044715, %v6244_v23  ;;  %v1455_v43 = vmul.f32 0.044715, %v6245_v52 }
 0x284   :  { %v6246_v54 = vld [vmem:[#allocation29_spill] sm:$0xff]  ;;  %v6248_v56 = vld [vmem:[#allocation62_spill] sm:$0xff]  ;;  %6249 = vst [vmem:[#allocation145_spill] sm:$0xff] %v4219_v42  ;;  %6250 = vst [vmem:[#allocation146_spill] sm:$0xff] %v4222_v3 }
 0x285   :  { %v4215_v5 = vmul.f32 %v1410_v34, %v6246_v54  ;;  %v1456_v25 = vmul.f32 0.044715, %v6248_v56  ;;  %v6251_v7 = vld [vmem:[#allocation30_spill] sm:$0xff]  ;;  %6253 = vst [vmem:[#allocation147_spill] sm:$0xff] %v4228_v32  ;;  %6254 = vst [vmem:[#allocation148_spill] sm:$0xff] %v4231_v55  ;;  %v6255_v52 = vld [vmem:[#allocation31_spill] sm:$0xff] }
 0x286   :  { %v4225_v49 = vmul.f32 %v1413_v40, %v6251_v7  ;;  %v4234_v34 = vmul.f32 %v1416_v21, %v6255_v52  ;;  %v6259_v4 = vld [vmem:[#allocation33_spill] sm:$0xff]  ;;  %v6261_v11 = vld [vmem:[#allocation34_spill] sm:$0xff]  ;;  %v6263_v40 = vld [vmem:[#allocation35_spill] sm:$0xff] }
 0x287   :  { %6247 = vst [vmem:[#allocation144_spill] sm:$0xff] %v4215_v5  ;;  %v6257_v5 = vld [vmem:[#allocation32_spill] sm:$0xff]  ;;  %v4240_v42 = vmul.f32 %v1418_v31, %v6259_v4  ;;  %v4243_v3 = vmul.f32 %v1419_v39, %v6261_v11  ;;  %v6267_v41 = vld [vmem:[#allocation37_spill] sm:$0xff]  ;;  %v6269_v21 = vld [vmem:[#allocation38_spill] sm:$0xff] }
 0x288   :  { %6252 = vst [vmem:[#allocation30_spill] sm:$0xff] %v4225_v49  ;;  %6256 = vst [vmem:[#allocation31_spill] sm:$0xff] %v4234_v34  ;;  %v4237_v54 = vmul.f32 %v1417_v9, %v6257_v5  ;;  %v4246_v49 = vmul.f32 %v1420_v17, %v6263_v40  ;;  %v6265_v50 = vld [vmem:[#allocation36_spill] sm:$0xff]  ;;  %v4252_v55 = vmul.f32 %v1422_v48, %v6267_v41  ;;  %v6271_v9 = vld [vmem:[#allocation39_spill] sm:$0xff] }
 0x289   :  { %6260 = vst [vmem:[#allocation33_spill] sm:$0xff] %v4240_v42  ;;  %6262 = vst [vmem:[#allocation34_spill] sm:$0xff] %v4243_v3  ;;  %v4249_v32 = vmul.f32 %v1421_v24, %v6265_v50  ;;  %v4255_v34 = vmul.f32 %v1423_v15, %v6269_v21  ;;  %v6273_v31 = vld [vmem:[#allocation40_spill] sm:$0xff]  ;;  %v6275_v39 = vld [vmem:[#allocation41_spill] sm:$0xff] }
 0x28a   :  { %6258 = vst [vmem:[#allocation32_spill] sm:$0xff] %v4237_v54  ;;  %6264 = vst [vmem:[#allocation35_spill] sm:$0xff] %v4246_v49  ;;  %v4258_v54 = vmul.f32 %v1424_v46, %v6271_v9  ;;  %v4261_v42 = vmul.f32 %v1425_v33, %v6273_v31  ;;  %v4264_v3 = vmul.f32 %v1426_v19, %v6275_v39  ;;  %v6277_v17 = vld [vmem:[#allocation42_spill] sm:$0xff]  ;;  %v6279_v24 = vld [vmem:[#allocation43_spill] sm:$0xff] }
 0x28b   :  { %6266 = vst [vmem:[#allocation36_spill] sm:$0xff] %v4249_v32  ;;  %6268 = vst [vmem:[#allocation37_spill] sm:$0xff] %v4252_v55  ;;  %v4267_v49 = vmul.f32 %v1427_v18, %v6277_v17  ;;  %v4270_v32 = vmul.f32 %v1428_v44, %v6279_v24  ;;  %v6281_v48 = vld [vmem:[#allocation44_spill] sm:$0xff]  ;;  %v6283_v15 = vld [vmem:[#allocation45_spill] sm:$0xff] }
 0x28c   :  { %6270 = vst [vmem:[#allocation38_spill] sm:$0xff] %v4255_v34  ;;  %6272 = vst [vmem:[#allocation39_spill] sm:$0xff] %v4258_v54  ;;  %v4273_v55 = vmul.f32 %v1429_v53, %v6281_v48  ;;  %v4276_v34 = vmul.f32 %v1430_v27, %v6283_v15  ;;  %v6285_v46 = vld [vmem:[#allocation46_spill] sm:$0xff]  ;;  %v6287_v33 = vld [vmem:[#allocation47_spill] sm:$0xff] }
 0x28d   :  { %6274 = vst [vmem:[#allocation40_spill] sm:$0xff] %v4261_v42  ;;  %6276 = vst [vmem:[#allocation41_spill] sm:$0xff] %v4264_v3  ;;  %v4279_v54 = vmul.f32 %v1431_v63, %v6285_v46  ;;  %v4282_v42 = vmul.f32 %v1432_v35, %v6287_v33  ;;  %v6289_v19 = vld [vmem:[#allocation48_spill] sm:$0xff]  ;;  %v6291_v18 = vld [vmem:[#allocation49_spill] sm:$0xff] }
 0x28e   :  { %6278 = vst [vmem:[#allocation42_spill] sm:$0xff] %v4267_v49  ;;  %6280 = vst [vmem:[#allocation43_spill] sm:$0xff] %v4270_v32  ;;  %v4285_v3 = vmul.f32 %v1433_v62, %v6289_v19  ;;  %v4288_v49 = vmul.f32 %v1434_v51, %v6291_v18  ;;  %v6293_v44 = vld [vmem:[#allocation50_spill] sm:$0xff]  ;;  %v6295_v53 = vld [vmem:[#allocation51_spill] sm:$0xff] }
 0x28f   :  { %6282 = vst [vmem:[#allocation44_spill] sm:$0xff] %v4273_v55  ;;  %6284 = vst [vmem:[#allocation45_spill] sm:$0xff] %v4276_v34  ;;  %v4291_v32 = vmul.f32 %v1435_v13, %v6293_v44  ;;  %v4294_v55 = vmul.f32 %v1436_v58, %v6295_v53  ;;  %v6297_v27 = vld [vmem:[#allocation52_spill] sm:$0xff]  ;;  %v6299_v63 = vld [vmem:[#allocation53_spill] sm:$0xff] }
 0x290   :  { %6286 = vst [vmem:[#allocation46_spill] sm:$0xff] %v4279_v54  ;;  %6288 = vst [vmem:[#allocation47_spill] sm:$0xff] %v4282_v42  ;;  %v4297_v34 = vmul.f32 %v1437_v6, %v6297_v27  ;;  %v4300_v54 = vmul.f32 %v1438_v30, %v6299_v63  ;;  %v6301_v35 = vld [vmem:[#allocation54_spill] sm:$0xff]  ;;  %v6303_v62 = vld [vmem:[#allocation55_spill] sm:$0xff] }
 0x291   :  { %6290 = vst [vmem:[#allocation48_spill] sm:$0xff] %v4285_v3  ;;  %6292 = vst [vmem:[#allocation49_spill] sm:$0xff] %v4288_v49  ;;  %v4303_v42 = vmul.f32 %v1439_v57, %v6301_v35  ;;  %v4306_v3 = vmul.f32 %v1440_v20, %v6303_v62  ;;  %v6305_v51 = vld [vmem:[#allocation56_spill] sm:$0xff]  ;;  %v6309_v58 = vld [vmem:[#allocation5_spill] sm:$0xff] }
 0x292   :  { %6294 = vst [vmem:[#allocation50_spill] sm:$0xff] %v4291_v32  ;;  %6296 = vst [vmem:[#allocation51_spill] sm:$0xff] %v4294_v55  ;;  %v4309_v49 = vmul.f32 %v1441_v60, %v6305_v51  ;;  %v6307_v13 = vld [vmem:[#allocation4_spill] sm:$0xff]  ;;  %v4315_v55 = vmul.f32 %v1443_v26, %v6309_v58  ;;  %v6310_v6 = vld [vmem:[#allocation6_spill] sm:$0xff]  ;;  %v4336_v26 = vmul.f32 %v1450_v38, %v6239_v1 }
 0x293   :  { %6298 = vst [vmem:[#allocation52_spill] sm:$0xff] %v4297_v34  ;;  %6300 = vst [vmem:[#allocation53_spill] sm:$0xff] %v4300_v54  ;;  %v4312_v32 = vmul.f32 %v1442_v2, %v6307_v13  ;;  %v4318_v34 = vmul.f32 %v1444_v16, %v6310_v6  ;;  %v6312_v30 = vld [vmem:[#allocation7_spill] sm:$0xff]  ;;  %v6314_v57 = vld [vmem:[#allocation57_spill] sm:$0xff] }
 0x294   :  { %6302 = vst [vmem:[#allocation54_spill] sm:$0xff] %v4303_v42  ;;  %6304 = vst [vmem:[#allocation55_spill] sm:$0xff] %v4306_v3  ;;  %v4321_v54 = vmul.f32 %v1445_v12, %v6312_v30  ;;  %v4324_v42 = vmul.f32 %v1446_v22, %v6314_v57  ;;  %v6315_v20 = vld [vmem:[#allocation8_spill] sm:$0xff]  ;;  %v6316_v60 = vld [vmem:[#allocation9_spill] sm:$0xff]  ;;  %v4345_v22 = vmul.f32 %v1453_v10, %v6243_v45 }
 0x295   :  { %6306 = vst [vmem:[#allocation56_spill] sm:$0xff] %v4309_v49  ;;  %6308 = vst [vmem:[#allocation4_spill] sm:$0xff] %v4312_v32  ;;  %v4327_v3 = vmul.f32 %v1447_v0, %v6315_v20  ;;  %v4330_v49 = vmul.f32 %v1448_v36, %v6316_v60  ;;  %v6318_v2 = vld [vmem:[#allocation14_spill] sm:$0xff]  ;;  %v6320_v16 = vld [vmem:[#allocation11_spill] sm:$0xff]  ;;  %v4348_v0 = vmul.f32 %v1454_v59, %v6244_v23 }
 0x296   :  { %6311 = vst [vmem:[#allocation5_spill] sm:$0xff] %v4318_v34  ;;  %6313 = vst [vmem:[#allocation7_spill] sm:$0xff] %v4321_v54  ;;  %v4333_v32 = vmul.f32 %v1449_v8, %v6318_v2  ;;  %v4339_v34 = vmul.f32 %v1451_v14, %v6320_v16  ;;  %v6322_v12 = vld [vmem:[#allocation58_spill] sm:$0xff]  ;;  %v6326_v36 = vld [vmem:[#allocation61_spill] sm:$0xff]  ;;  %v4354_v8 = vmul.f32 %v1456_v25, %v6248_v56 }
 0x297   :  { %6317 = vst [vmem:[#allocation57_spill] sm:$0xff] %v4330_v49  ;;  %6319 = vst [vmem:[#allocation8_spill] sm:$0xff] %v4336_v26  ;;  %v4342_v54 = vmul.f32 %v1452_v61, %v6322_v12  ;;  %v4351_v49 = vmul.f32 %v1455_v43, %v6326_v36  ;;  %v6329_v38 = vld [vmem:[#allocation12_spill] sm:$0xff]  ;;  %v6330_v26 = vld [vmem:[#allocation127_spill] sm:$0xff] }
 0x298   :  { %6321 = vst [vmem:[#allocation149_spill] sm:$0xff] %v4339_v34  ;;  %6324 = vst [vmem:[#allocation151_spill] sm:$0xff] %v4345_v22  ;;  %v4358_v1 = vmul.f32 %v6330_v26, %v6329_v38  ;;  %v6332_v14 = vld [vmem:[#allocation13_spill] sm:$0xff]  ;;  %v6333_v34 = vld [vmem:[#allocation128_spill] sm:$0xff] }
 0x299   :  { %6323 = vst [vmem:[#allocation150_spill] sm:$0xff] %v4342_v54  ;;  %6325 = vst [vmem:[#allocation152_spill] sm:$0xff] %v4348_v0  ;;  %v4362_v61 = vmul.f32 %v6333_v34, %v6332_v14  ;;  %v6335_v54 = vld [vmem:[#allocation15_spill] sm:$0xff]  ;;  %v6336_v10 = vld [vmem:[#allocation129_spill] sm:$0xff] }
 0x29a   :  { %6327 = vst [vmem:[#allocation153_spill] sm:$0xff] %v4351_v49  ;;  %6328 = vst [vmem:[#allocation154_spill] sm:$0xff] %v4354_v8  ;;  %v4366_v22 = vmul.f32 %v6336_v10, %v6335_v54  ;;  %v6338_v59 = vld [vmem:[#allocation16_spill] sm:$0xff]  ;;  %v6339_v0 = vld [vmem:[#allocation130_spill] sm:$0xff] }
 0x29b   :  { %6331 = vst [vmem:[#allocation127_spill] sm:$0xff] %v4358_v1  ;;  %6334 = vst [vmem:[#allocation128_spill] sm:$0xff] %v4362_v61  ;;  %v4370_v23 = vmul.f32 %v6339_v0, %v6338_v59  ;;  %v6341_v43 = vld [vmem:[#allocation17_spill] sm:$0xff]  ;;  %v6342_v49 = vld [vmem:[#allocation131_spill] sm:$0xff] }
 0x29c   :  { %6337 = vst [vmem:[#allocation129_spill] sm:$0xff] %v4366_v22  ;;  %v4374_v25 = vmul.f32 %v6342_v49, %v6341_v43  ;;  %v6344_v8 = vld [vmem:[#allocation18_spill] sm:$0xff]  ;;  %v6345_v56 = vld [vmem:[#allocation132_spill] sm:$0xff]  ;;  %v6347_v1 = vld [vmem:[#allocation19_spill] sm:$0xff] }
 0x29d   :  { %6340 = vst [vmem:[#allocation130_spill] sm:$0xff] %v4370_v23  ;;  %v4378_v26 = vmul.f32 %v6345_v56, %v6344_v8  ;;  %v6348_v38 = vld [vmem:[#allocation133_spill] sm:$0xff]  ;;  %v6350_v61 = vld [vmem:[#allocation20_spill] sm:$0xff]  ;;  %v6351_v14 = vld [vmem:[#allocation134_spill] sm:$0xff] }
 0x29e   :  { %6343 = vst [vmem:[#allocation131_spill] sm:$0xff] %v4374_v25  ;;  %v4382_v34 = vmul.f32 %v6348_v38, %v6347_v1  ;;  %v4386_v10 = vmul.f32 %v6351_v14, %v6350_v61  ;;  %v6353_v22 = vld [vmem:[#allocation3_spill] sm:$0xff]  ;;  %v6356_v23 = vld [vmem:[#allocation21_spill] sm:$0xff]  ;;  %v6357_v59 = vld [vmem:[#allocation136_spill] sm:$0xff] }
 0x29f   :  { %6346 = vst [vmem:[#allocation132_spill] sm:$0xff] %v4378_v26  ;;  %v6354_v54 = vld [vmem:[#allocation135_spill] sm:$0xff]  ;;  %v4394_v49 = vmul.f32 %v6357_v59, %v6356_v23  ;;  %v6359_v25 = vld [vmem:[#allocation22_spill] sm:$0xff]  ;;  %v6360_v43 = vld [vmem:[#allocation137_spill] sm:$0xff] }
 0x2a0   :  { %6349 = vst [vmem:[#allocation133_spill] sm:$0xff] %v4382_v34  ;;  %6352 = vst [vmem:[#allocation134_spill] sm:$0xff] %v4386_v10  ;;  %v4390_v0 = vmul.f32 %v6354_v54, %v6353_v22  ;;  %v4398_v56 = vmul.f32 %v6360_v43, %v6359_v25  ;;  %v6362_v26 = vld [vmem:[#allocation23_spill] sm:$0xff]  ;;  %v6363_v8 = vld [vmem:[#allocation138_spill] sm:$0xff] }
 0x2a1   :  { %6358 = vst [vmem:[#allocation136_spill] sm:$0xff] %v4394_v49  ;;  %v4402_v38 = vmul.f32 %v6363_v8, %v6362_v26  ;;  %v6365_v34 = vld [vmem:[#allocation24_spill] sm:$0xff]  ;;  %v6366_v1 = vld [vmem:[#allocation139_spill] sm:$0xff]  ;;  %v6368_v10 = vld [vmem:[#allocation25_spill] sm:$0xff] }
 0x2a2   :  { %6355 = vst [vmem:[#allocation135_spill] sm:$0xff] %v4390_v0  ;;  %6361 = vst [vmem:[#allocation137_spill] sm:$0xff] %v4398_v56  ;;  %v4406_v14 = vmul.f32 %v6366_v1, %v6365_v34  ;;  %v6369_v61 = vld [vmem:[#allocation140_spill] sm:$0xff]  ;;  %v6371_v0 = vld [vmem:[#allocation26_spill] sm:$0xff] }
 0x2a3   :  { %6364 = vst [vmem:[#allocation138_spill] sm:$0xff] %v4402_v38  ;;  %v4410_v54 = vmul.f32 %v6369_v61, %v6368_v10  ;;  %v6372_v22 = vld [vmem:[#allocation141_spill] sm:$0xff]  ;;  %v6374_v49 = vld [vmem:[#allocation27_spill] sm:$0xff]  ;;  %v6375_v23 = vld [vmem:[#allocation142_spill] sm:$0xff] }
 0x2a4   :  { %6367 = vst [vmem:[#allocation24_spill] sm:$0xff] %v4406_v14  ;;  %v4414_v59 = vmul.f32 %v6372_v22, %v6371_v0  ;;  %v4418_v43 = vmul.f32 %v6375_v23, %v6374_v49  ;;  %v6377_v56 = vld [vmem:[#allocation28_spill] sm:$0xff]  ;;  %v6378_v25 = vld [vmem:[#allocation143_spill] sm:$0xff]  ;;  %v6380_v38 = vld [vmem:[#allocation29_spill] sm:$0xff] }
 0x2a5   :  { %6370 = vst [vmem:[#allocation139_spill] sm:$0xff] %v4410_v54  ;;  %v4422_v8 = vmul.f32 %v6378_v25, %v6377_v56  ;;  %v6381_v26 = vld [vmem:[#allocation144_spill] sm:$0xff]  ;;  %v6383_v14 = vld [vmem:[#allocation145_spill] sm:$0xff]  ;;  %v6385_v54 = vld [vmem:[#allocation146_spill] sm:$0xff] }
 0x2a6   :  { %6373 = vst [vmem:[#allocation25_spill] sm:$0xff] %v4414_v59  ;;  %6376 = vst [vmem:[#allocation140_spill] sm:$0xff] %v4418_v43  ;;  %v4426_v1 = vmul.f32 %v6381_v26, %v6380_v38  ;;  %v4430_v61 = vmul.f32 %v6383_v14, %v3726_v28  ;;  %v4434_v22 = vmul.f32 %v6385_v54, %v3730_v47  ;;  %v6387_v59 = vld [vmem:[#allocation30_spill] sm:$0xff]  ;;  %v6389_v43 = vld [vmem:[#allocation147_spill] sm:$0xff] }
 0x2a7   :  { %6379 = vst [vmem:[#allocation26_spill] sm:$0xff] %v4422_v8  ;;  %v4438_v23 = vmul.f32 %v6387_v59, %v6251_v7  ;;  %v4442_v25 = vmul.f32 %v6389_v43, %v3738_v37  ;;  %v6391_v8 = vld [vmem:[#allocation148_spill] sm:$0xff] }
 0x2a8   :  { %6382 = vst [vmem:[#allocation141_spill] sm:$0xff] %v4426_v1  ;;  %6384 = vst [vmem:[#allocation27_spill] sm:$0xff] %v4430_v61  ;;  %v4446_v26 = vmul.f32 %v6391_v8, %v3742_v29  ;;  %v6393_v1 = vld [vmem:[#allocation31_spill] sm:$0xff]  ;;  %v6395_v61 = vld [vmem:[#allocation32_spill] sm:$0xff] }
 0x2a9   :  { %6386 = vst [vmem:[#allocation142_spill] sm:$0xff] %v4434_v22  ;;  %6388 = vst [vmem:[#allocation28_spill] sm:$0xff] %v4438_v23  ;;  %v4450_v14 = vmul.f32 %v6393_v1, %v6255_v52  ;;  %v4454_v54 = vmul.f32 %v6395_v61, %v6257_v5  ;;  %v6397_v22 = vld [vmem:[#allocation33_spill] sm:$0xff]  ;;  %v6399_v23 = vld [vmem:[#allocation34_spill] sm:$0xff] }
 0x2aa   :  { %6390 = vst [vmem:[#allocation143_spill] sm:$0xff] %v4442_v25  ;;  %6392 = vst [vmem:[#allocation29_spill] sm:$0xff] %v4446_v26  ;;  %v4458_v59 = vmul.f32 %v6397_v22, %v6259_v4  ;;  %v4462_v43 = vmul.f32 %v6399_v23, %v6261_v11  ;;  %v6401_v25 = vld [vmem:[#allocation35_spill] sm:$0xff]  ;;  %v6403_v26 = vld [vmem:[#allocation36_spill] sm:$0xff] }
 0x2ab   :  { %6394 = vst [vmem:[#allocation144_spill] sm:$0xff] %v4450_v14  ;;  %6396 = vst [vmem:[#allocation145_spill] sm:$0xff] %v4454_v54  ;;  %v4466_v8 = vmul.f32 %v6401_v25, %v6263_v40  ;;  %v4470_v1 = vmul.f32 %v6403_v26, %v6265_v50  ;;  %v6405_v14 = vld [vmem:[#allocation37_spill] sm:$0xff]  ;;  %v6407_v54 = vld [vmem:[#allocation38_spill] sm:$0xff] }
 0x2ac   :  { %6398 = vst [vmem:[#allocation146_spill] sm:$0xff] %v4458_v59  ;;  %6400 = vst [vmem:[#allocation30_spill] sm:$0xff] %v4462_v43  ;;  %v4474_v61 = vmul.f32 %v6405_v14, %v6267_v41  ;;  %v4478_v22 = vmul.f32 %v6407_v54, %v6269_v21  ;;  %v6409_v59 = vld [vmem:[#allocation39_spill] sm:$0xff]  ;;  %v6411_v43 = vld [vmem:[#allocation40_spill] sm:$0xff] }
 0x2ad   :  { %6402 = vst [vmem:[#allocation147_spill] sm:$0xff] %v4466_v8  ;;  %6404 = vst [vmem:[#allocation148_spill] sm:$0xff] %v4470_v1  ;;  %v4482_v23 = vmul.f32 %v6409_v59, %v6271_v9  ;;  %v4486_v25 = vmul.f32 %v6411_v43, %v6273_v31  ;;  %v6413_v8 = vld [vmem:[#allocation41_spill] sm:$0xff]  ;;  %v6415_v1 = vld [vmem:[#allocation42_spill] sm:$0xff] }
 0x2ae   :  { %6406 = vst [vmem:[#allocation31_spill] sm:$0xff] %v4474_v61  ;;  %6408 = vst [vmem:[#allocation32_spill] sm:$0xff] %v4478_v22  ;;  %v4490_v26 = vmul.f32 %v6413_v8, %v6275_v39  ;;  %v4494_v14 = vmul.f32 %v6415_v1, %v6277_v17  ;;  %v6417_v61 = vld [vmem:[#allocation43_spill] sm:$0xff]  ;;  %v6419_v22 = vld [vmem:[#allocation44_spill] sm:$0xff] }
 0x2af   :  { %6410 = vst [vmem:[#allocation33_spill] sm:$0xff] %v4482_v23  ;;  %6412 = vst [vmem:[#allocation34_spill] sm:$0xff] %v4486_v25  ;;  %v4498_v54 = vmul.f32 %v6417_v61, %v6279_v24  ;;  %v4502_v59 = vmul.f32 %v6419_v22, %v6281_v48  ;;  %v6421_v23 = vld [vmem:[#allocation45_spill] sm:$0xff]  ;;  %v6423_v25 = vld [vmem:[#allocation46_spill] sm:$0xff] }
 0x2b0   :  { %6414 = vst [vmem:[#allocation35_spill] sm:$0xff] %v4490_v26  ;;  %6416 = vst [vmem:[#allocation36_spill] sm:$0xff] %v4494_v14  ;;  %v4506_v43 = vmul.f32 %v6421_v23, %v6283_v15  ;;  %v4510_v8 = vmul.f32 %v6423_v25, %v6285_v46  ;;  %v6425_v26 = vld [vmem:[#allocation47_spill] sm:$0xff]  ;;  %v6427_v14 = vld [vmem:[#allocation48_spill] sm:$0xff] }
 0x2b1   :  { %6418 = vst [vmem:[#allocation37_spill] sm:$0xff] %v4498_v54  ;;  %6420 = vst [vmem:[#allocation38_spill] sm:$0xff] %v4502_v59  ;;  %v4514_v1 = vmul.f32 %v6425_v26, %v6287_v33  ;;  %v4518_v61 = vmul.f32 %v6427_v14, %v6289_v19  ;;  %v6429_v54 = vld [vmem:[#allocation49_spill] sm:$0xff]  ;;  %v6431_v59 = vld [vmem:[#allocation50_spill] sm:$0xff] }
 0x2b2   :  { %6422 = vst [vmem:[#allocation39_spill] sm:$0xff] %v4506_v43  ;;  %6424 = vst [vmem:[#allocation40_spill] sm:$0xff] %v4510_v8  ;;  %v4522_v22 = vmul.f32 %v6429_v54, %v6291_v18  ;;  %v4526_v23 = vmul.f32 %v6431_v59, %v6293_v44  ;;  %v6433_v43 = vld [vmem:[#allocation51_spill] sm:$0xff]  ;;  %v6435_v8 = vld [vmem:[#allocation52_spill] sm:$0xff] }
 0x2b3   :  { %6426 = vst [vmem:[#allocation41_spill] sm:$0xff] %v4514_v1  ;;  %6428 = vst [vmem:[#allocation42_spill] sm:$0xff] %v4518_v61  ;;  %v4530_v25 = vmul.f32 %v6433_v43, %v6295_v53  ;;  %v4534_v26 = vmul.f32 %v6435_v8, %v6297_v27  ;;  %v6436_v1 = vld [vmem:[#allocation53_spill] sm:$0xff]  ;;  %v6438_v61 = vld [vmem:[#allocation54_spill] sm:$0xff] }
 0x2b4   :  { %6430 = vst [vmem:[#allocation43_spill] sm:$0xff] %v4522_v22  ;;  %6432 = vst [vmem:[#allocation44_spill] sm:$0xff] %v4526_v23  ;;  %v4538_v14 = vmul.f32 %v6436_v1, %v6299_v63  ;;  %v4542_v54 = vmul.f32 %v6438_v61, %v6301_v35  ;;  %v6440_v22 = vld [vmem:[#allocation55_spill] sm:$0xff]  ;;  %v6441_v23 = vld [vmem:[#allocation56_spill] sm:$0xff]  ;;  %v4558_v1 = vmul.f32 %v4315_v55, %v6309_v58 }
 0x2b5   :  { %6434 = vst [vmem:[#allocation45_spill] sm:$0xff] %v4530_v25  ;;  %v4546_v59 = vmul.f32 %v6440_v22, %v6303_v62  ;;  %v4550_v43 = vmul.f32 %v6441_v23, %v6305_v51  ;;  %v6442_v25 = vld [vmem:[#allocation4_spill] sm:$0xff]  ;;  %v4570_v23 = vmul.f32 %v4324_v42, %v6314_v57 }
 0x2b6   :  { %6437 = vst [vmem:[#allocation46_spill] sm:$0xff] %v4538_v14  ;;  %6439 = vst [vmem:[#allocation47_spill] sm:$0xff] %v4542_v54  ;;  %v4554_v8 = vmul.f32 %v6442_v25, %v6307_v13  ;;  %v6444_v14 = vld [vmem:[#allocation5_spill] sm:$0xff]  ;;  %v6446_v54 = vld [vmem:[#allocation7_spill] sm:$0xff]  ;;  %v4574_v25 = vmul.f32 %v4327_v3, %v6315_v20 }
 0x2b7   :  { %v4562_v61 = vmul.f32 %v6444_v14, %v6310_v6  ;;  %v4566_v22 = vmul.f32 %v6446_v54, %v6312_v30  ;;  %6448 = vst [vmem:[#allocation51_spill] sm:$0xff] %v4570_v23  ;;  %v4582_v14 = vmul.f32 %v4333_v32, %v6318_v2  ;;  %v6454_v6 = vld [vmem:[#allocation8_spill] sm:$0xff]  ;;  %v6458_v23 = vld [vmem:[#allocation150_spill] sm:$0xff] }
 0x2b8   :  { %6443 = vst [vmem:[#allocation48_spill] sm:$0xff] %v4554_v8  ;;  %6449 = vst [vmem:[#allocation52_spill] sm:$0xff] %v4574_v25  ;;  %v6450_v8 = vld [vmem:[#allocation57_spill] sm:$0xff]  ;;  %v4594_v3 = vmul.f32 %v6458_v23, %v6322_v12  ;;  %v6460_v25 = vld [vmem:[#allocation151_spill] sm:$0xff] }
 0x2b9   :  { %6445 = vst [vmem:[#allocation49_spill] sm:$0xff] %v4562_v61  ;;  %6447 = vst [vmem:[#allocation50_spill] sm:$0xff] %v4566_v22  ;;  %v4578_v55 = vmul.f32 %v6450_v8, %v6316_v60  ;;  %v6453_v61 = vld [vmem:[#allocation10_spill] sm:$0xff]  ;;  %v6456_v22 = vld [vmem:[#allocation149_spill] sm:$0xff]  ;;  %v4598_v8 = vmul.f32 %v6460_v25, %v6243_v45 }
 0x2ba   :  { %6452 = vst [vmem:[#allocation54_spill] sm:$0xff] %v4582_v14  ;;  %v4586_v54 = vmul.f32 %v6454_v6, %v6453_v61  ;;  %v4590_v42 = vmul.f32 %v6456_v22, %v6320_v16  ;;  %6459 = vst [vmem:[#allocation4_spill] sm:$0xff] %v4594_v3  ;;  %v6463_v60 = vld [vmem:[#allocation152_spill] sm:$0xff]  ;;  %v6465_v14 = vld [vmem:[#allocation153_spill] sm:$0xff] }
 0x2bb   :  { %6451 = vst [vmem:[#allocation53_spill] sm:$0xff] %v4578_v55  ;;  %6461 = vst [vmem:[#allocation5_spill] sm:$0xff] %v4598_v8  ;;  %v6462_v55 = vld [vmem:[#allocation60_spill] sm:$0xff]  ;;  %v4606_v6 = vmul.f32 %v6465_v14, %v6326_v36  ;;  %v6468_v61 = vld [vmem:[#allocation154_spill] sm:$0xff] }
 0x2bc   :  { %6455 = vst [vmem:[#allocation55_spill] sm:$0xff] %v4586_v54  ;;  %6457 = vst [vmem:[#allocation56_spill] sm:$0xff] %v4590_v42  ;;  %v4602_v32 = vmul.f32 %v6463_v60, %v6462_v55  ;;  %v6467_v54 = vld [vmem:[#allocation62_spill] sm:$0xff]  ;;  %v6470_v42 = vld [vmem:[#allocation12_spill] sm:$0xff] }
 0x2bd   :  { %6466 = vst [vmem:[#allocation57_spill] sm:$0xff] %v4606_v6  ;;  %v4610_v22 = vmul.f32 %v6468_v61, %v6467_v54  ;;  %v6471_v16 = vld [vmem:[#allocation127_spill] sm:$0xff]  ;;  %v6473_v3 = vld [vmem:[#allocation13_spill] sm:$0xff]  ;;  %v6474_v12 = vld [vmem:[#allocation128_spill] sm:$0xff] }
 0x2be   :  { %6464 = vst [vmem:[#allocation7_spill] sm:$0xff] %v4602_v32  ;;  %v4614_v23 = vadd.f32 %v6471_v16, %v6470_v42  ;;  %v1586_v25 = vadd.f32 %v6474_v12, %v6473_v3  ;;  %v6475_v8 = vld [vmem:[#allocation15_spill] sm:$0xff]  ;;  %v6476_v45 = vld [vmem:[#allocation129_spill] sm:$0xff]  ;;  %v6478_v60 = vld [vmem:[#allocation16_spill] sm:$0xff] }
 0x2bf   :  { %6469 = vst [vmem:[#allocation8_spill] sm:$0xff] %v4610_v22  ;;  %v4620_v2 = vadd.f32 %v6476_v45, %v6475_v8  ;;  %v6479_v32 = vld [vmem:[#allocation130_spill] sm:$0xff]  ;;  %v6481_v14 = vld [vmem:[#allocation17_spill] sm:$0xff]  ;;  %v6482_v6 = vld [vmem:[#allocation131_spill] sm:$0xff] }
 0x2c0   :  { %6472 = vst [vmem:[#allocation149_spill] sm:$0xff] %v4614_v23  ;;  %v4624_v55 = vadd.f32 %v6479_v32, %v6478_v60  ;;  %v4628_v36 = vadd.f32 %v6482_v6, %v6481_v14  ;;  %v6484_v61 = vld [vmem:[#allocation18_spill] sm:$0xff]  ;;  %v6485_v22 = vld [vmem:[#allocation132_spill] sm:$0xff]  ;;  %v6487_v16 = vld [vmem:[#allocation19_spill] sm:$0xff] }
 0x2c1   :  { %6477 = vst [vmem:[#allocation150_spill] sm:$0xff] %v4620_v2  ;;  %v4632_v54 = vadd.f32 %v6485_v22, %v6484_v61  ;;  %v6488_v42 = vld [vmem:[#allocation133_spill] sm:$0xff]  ;;  %v6489_v12 = vld [vmem:[#allocation20_spill] sm:$0xff]  ;;  %v6490_v3 = vld [vmem:[#allocation134_spill] sm:$0xff] }
 0x2c2   :  { %6480 = vst [vmem:[#allocation151_spill] sm:$0xff] %v4624_v55  ;;  %6483 = vst [vmem:[#allocation152_spill] sm:$0xff] %v4628_v36  ;;  %v4636_v23 = vadd.f32 %v6488_v42, %v6487_v16  ;;  %v4640_v45 = vadd.f32 %v6490_v3, %v6489_v12  ;;  %v6491_v8 = vld [vmem:[#allocation3_spill] sm:$0xff]  ;;  %v6493_v60 = vld [vmem:[#allocation21_spill] sm:$0xff] }
 0x2c3   :  { %6486 = vst [vmem:[#allocation153_spill] sm:$0xff] %v4632_v54  ;;  %v6492_v2 = vld [vmem:[#allocation135_spill] sm:$0xff]  ;;  %v6494_v55 = vld [vmem:[#allocation136_spill] sm:$0xff]  ;;  %v6495_v14 = vld [vmem:[#allocation22_spill] sm:$0xff] }
 0x2c4   :  { %v4644_v32 = vadd.f32 %v6492_v2, %v6491_v8  ;;  %v4648_v6 = vadd.f32 %v6494_v55, %v6493_v60  ;;  %v6496_v36 = vld [vmem:[#allocation137_spill] sm:$0xff]  ;;  %v6497_v61 = vld [vmem:[#allocation23_spill] sm:$0xff]  ;;  %v6498_v54 = vld [vmem:[#allocation138_spill] sm:$0xff] }
 0x2c5   :  { %v4652_v22 = vadd.f32 %v6496_v36, %v6495_v14  ;;  %v4656_v16 = vadd.f32 %v6498_v54, %v6497_v61  ;;  %v6499_v42 = vld [vmem:[#allocation24_spill] sm:$0xff]  ;;  %v6500_v3 = vld [vmem:[#allocation139_spill] sm:$0xff]  ;;  %v6501_v8 = vld [vmem:[#allocation25_spill] sm:$0xff] }
 0x2c6   :  { %v4660_v12 = vadd.f32 %v6499_v42, %v6365_v34  ;;  %v4664_v2 = vadd.f32 %v6500_v3, %v6368_v10  ;;  %v4668_v55 = vadd.f32 %v6501_v8, %v6371_v0  ;;  %v6502_v60 = vld [vmem:[#allocation140_spill] sm:$0xff]  ;;  %v6503_v14 = vld [vmem:[#allocation26_spill] sm:$0xff]  ;;  %v6504_v61 = vld [vmem:[#allocation141_spill] sm:$0xff] }
 0x2c7   :  { %v4672_v36 = vadd.f32 %v6502_v60, %v6374_v49  ;;  %v4676_v54 = vadd.f32 %v6503_v14, %v6377_v56  ;;  %v4680_v34 = vadd.f32 %v6504_v61, %v6380_v38  ;;  %v6505_v42 = vld [vmem:[#allocation27_spill] sm:$0xff]  ;;  %v6506_v3 = vld [vmem:[#allocation142_spill] sm:$0xff]  ;;  %v6507_v8 = vld [vmem:[#allocation28_spill] sm:$0xff] }
 0x2c8   :  { %v4684_v10 = vadd.f32 %v6505_v42, %v3726_v28  ;;  %v4688_v0 = vadd.f32 %v6506_v3, %v3730_v47  ;;  %v4692_v49 = vadd.f32 %v6507_v8, %v6251_v7  ;;  %v6508_v60 = vld [vmem:[#allocation143_spill] sm:$0xff]  ;;  %v6509_v14 = vld [vmem:[#allocation29_spill] sm:$0xff]  ;;  %v6510_v61 = vld [vmem:[#allocation144_spill] sm:$0xff] }
 0x2c9   :  { %v4696_v56 = vadd.f32 %v6508_v60, %v3738_v37  ;;  %v4700_v38 = vadd.f32 %v6509_v14, %v3742_v29  ;;  %v4704_v28 = vadd.f32 %v6510_v61, %v6255_v52  ;;  %v6511_v42 = vld [vmem:[#allocation145_spill] sm:$0xff]  ;;  %v6512_v3 = vld [vmem:[#allocation146_spill] sm:$0xff]  ;;  %v6514_v60 = vld [vmem:[#allocation147_spill] sm:$0xff] }
 0x2ca   :  { %v4708_v47 = vadd.f32 %v6511_v42, %v6257_v5  ;;  %v4712_v7 = vadd.f32 %v6512_v3, %v6259_v4  ;;  %v6513_v8 = vld [vmem:[#allocation30_spill] sm:$0xff]  ;;  %v4720_v29 = vadd.f32 %v6514_v60, %v6263_v40  ;;  %v6515_v14 = vld [vmem:[#allocation148_spill] sm:$0xff]  ;;  %v6516_v61 = vld [vmem:[#allocation31_spill] sm:$0xff] }
 0x2cb   :  { %v4716_v37 = vadd.f32 %v6513_v8, %v6261_v11  ;;  %v4724_v52 = vadd.f32 %v6515_v14, %v6265_v50  ;;  %v4728_v5 = vadd.f32 %v6516_v61, %v6267_v41  ;;  %v6517_v42 = vld [vmem:[#allocation32_spill] sm:$0xff]  ;;  %v6518_v3 = vld [vmem:[#allocation33_spill] sm:$0xff]  ;;  %v6519_v8 = vld [vmem:[#allocation34_spill] sm:$0xff] }
 0x2cc   :  { %v4732_v4 = vadd.f32 %v6517_v42, %v6269_v21  ;;  %v4736_v11 = vadd.f32 %v6518_v3, %v6271_v9  ;;  %v4740_v40 = vadd.f32 %v6519_v8, %v6273_v31  ;;  %v6520_v60 = vld [vmem:[#allocation35_spill] sm:$0xff]  ;;  %v6521_v14 = vld [vmem:[#allocation36_spill] sm:$0xff]  ;;  %v6522_v61 = vld [vmem:[#allocation37_spill] sm:$0xff] }
 0x2cd   :  { %v4744_v50 = vadd.f32 %v6520_v60, %v6275_v39  ;;  %v4748_v41 = vadd.f32 %v6521_v14, %v6277_v17  ;;  %v4752_v21 = vadd.f32 %v6522_v61, %v6279_v24  ;;  %v6523_v42 = vld [vmem:[#allocation38_spill] sm:$0xff]  ;;  %v6524_v3 = vld [vmem:[#allocation39_spill] sm:$0xff]  ;;  %v6525_v8 = vld [vmem:[#allocation40_spill] sm:$0xff] }
 0x2ce   :  { %v4756_v9 = vadd.f32 %v6523_v42, %v6281_v48  ;;  %v4760_v31 = vadd.f32 %v6524_v3, %v6283_v15  ;;  %v4764_v39 = vadd.f32 %v6525_v8, %v6285_v46  ;;  %v6526_v60 = vld [vmem:[#allocation41_spill] sm:$0xff]  ;;  %v6527_v14 = vld [vmem:[#allocation42_spill] sm:$0xff]  ;;  %v6528_v61 = vld [vmem:[#allocation43_spill] sm:$0xff] }
 0x2cf   :  { %v4768_v17 = vadd.f32 %v6526_v60, %v6287_v33  ;;  %v4772_v24 = vadd.f32 %v6527_v14, %v6289_v19  ;;  %v4776_v48 = vadd.f32 %v6528_v61, %v6291_v18  ;;  %v6529_v42 = vld [vmem:[#allocation44_spill] sm:$0xff]  ;;  %v6530_v3 = vld [vmem:[#allocation45_spill] sm:$0xff]  ;;  %v4788_v33 = vadd.f32 %v4534_v26, %v6297_v27  ;;  %v6531_v8 = vld [vmem:[#allocation46_spill] sm:$0xff] }
 0x2d0   :  { %v4780_v15 = vadd.f32 %v6529_v42, %v6293_v44  ;;  %v4784_v46 = vadd.f32 %v6530_v3, %v6295_v53  ;;  %v4792_v19 = vadd.f32 %v6531_v8, %v6299_v63  ;;  %v6532_v60 = vld [vmem:[#allocation47_spill] sm:$0xff]  ;;  %v4800_v44 = vadd.f32 %v4546_v59, %v6303_v62  ;;  %v6533_v14 = vld [vmem:[#allocation48_spill] sm:$0xff]  ;;  %v6535_v26 = vld [vmem:[#allocation6_spill] sm:$0xff] }
 0x2d1   :  { %v4796_v18 = vadd.f32 %v6532_v60, %v6301_v35  ;;  %v4804_v53 = vadd.f32 %v4550_v43, %v6305_v51  ;;  %v4808_v27 = vadd.f32 %v6533_v14, %v6307_v13  ;;  %v4812_v63 = vadd.f32 %v4558_v1, %v6309_v58  ;;  %v6536_v61 = vld [vmem:[#allocation49_spill] sm:$0xff]  ;;  %v6538_v42 = vld [vmem:[#allocation50_spill] sm:$0xff]  ;;  %v6540_v59 = vld [vmem:[#allocation51_spill] sm:$0xff] }
 0x2d2   :  { %v4816_v35 = vadd.f32 %v6536_v61, %v6535_v26  ;;  %v4820_v62 = vadd.f32 %v6538_v42, %v6312_v30  ;;  %v4824_v51 = vadd.f32 %v6540_v59, %v6314_v57  ;;  %v6542_v43 = vld [vmem:[#allocation52_spill] sm:$0xff]  ;;  %v6544_v3 = vld [vmem:[#allocation9_spill] sm:$0xff]  ;;  %v6547_v1 = vld [vmem:[#allocation14_spill] sm:$0xff] }
 0x2d3   :  { %6534 = vst [vmem:[#allocation154_spill] sm:$0xff] %v4812_v63  ;;  %v4828_v13 = vadd.f32 %v6542_v43, %v6315_v20  ;;  %v6545_v8 = vld [vmem:[#allocation53_spill] sm:$0xff]  ;;  %v6548_v60 = vld [vmem:[#allocation54_spill] sm:$0xff]  ;;  %v6551_v61 = vld [vmem:[#allocation55_spill] sm:$0xff] }
 0x2d4   :  { %6537 = vst [vmem:[#allocation12_spill] sm:$0xff] %v4816_v35  ;;  %6539 = vst [vmem:[#allocation127_spill] sm:$0xff] %v4820_v62  ;;  %v4832_v58 = vadd.f32 %v6545_v8, %v6544_v3  ;;  %v4836_v14 = vadd.f32 %v6548_v60, %v6547_v1  ;;  %v6550_v26 = vld [vmem:[#allocation10_spill] sm:$0xff]  ;;  %v6553_v42 = vld [vmem:[#allocation11_spill] sm:$0xff] }
 0x2d5   :  { %6541 = vst [vmem:[#allocation13_spill] sm:$0xff] %v4824_v51  ;;  %6543 = vst [vmem:[#allocation128_spill] sm:$0xff] %v4828_v13  ;;  %v4840_v30 = vadd.f32 %v6551_v61, %v6550_v26  ;;  %v6554_v62 = vld [vmem:[#allocation56_spill] sm:$0xff]  ;;  %v6556_v59 = vld [vmem:[#allocation58_spill] sm:$0xff] }
 0x2d6   :  { %6546 = vst [vmem:[#allocation15_spill] sm:$0xff] %v4832_v58  ;;  %6549 = vst [vmem:[#allocation129_spill] sm:$0xff] %v4836_v14  ;;  %v4844_v57 = vadd.f32 %v6554_v62, %v6553_v42  ;;  %v6557_v51 = vld [vmem:[#allocation4_spill] sm:$0xff]  ;;  %v6559_v43 = vld [vmem:[#allocation59_spill] sm:$0xff]  ;;  %v1650_v62 = vmul.f32 0.7978846, %v1586_v25 }
 0x2d7   :  { %6552 = vst [vmem:[#allocation16_spill] sm:$0xff] %v4840_v30  ;;  %v4848_v20 = vadd.f32 %v6557_v51, %v6556_v59  ;;  %v6560_v13 = vld [vmem:[#allocation5_spill] sm:$0xff]  ;;  %v6562_v8 = vld [vmem:[#allocation60_spill] sm:$0xff]  ;;  %v6563_v58 = vld [vmem:[#allocation7_spill] sm:$0xff]  ;;  %v1658_v25 = vmul.f32 0.7978846, %v4648_v6 }
 0x2d8   :  { %6555 = vst [vmem:[#allocation130_spill] sm:$0xff] %v4844_v57  ;;  %v4852_v3 = vadd.f32 %v6560_v13, %v6559_v43  ;;  %v4856_v1 = vadd.f32 %v6563_v58, %v6562_v8  ;;  %v6564_v60 = vld [vmem:[#allocation61_spill] sm:$0xff]  ;;  %v6567_v42 = vld [vmem:[#allocation62_spill] sm:$0xff]  ;;  %v6568_v57 = vld [vmem:[#allocation8_spill] sm:$0xff]  ;;  %v1655_v8 = vmul.f32 0.7978846, %v4636_v23 }
 0x2d9   :  { %6558 = vst [vmem:[#allocation17_spill] sm:$0xff] %v4848_v20  ;;  %v6565_v14 = vld [vmem:[#allocation57_spill] sm:$0xff]  ;;  %v4865_v35 = vadd.f32 %v6568_v57, %v6567_v42  ;;  %v6569_v51 = vld [vmem:[#allocation150_spill] sm:$0xff]  ;;  %v6570_v20 = vld [vmem:[#allocation151_spill] sm:$0xff]  ;;  %v1659_v57 = vmul.f32 0.7978846, %v4652_v22 }
 0x2da   :  { %6561 = vst [vmem:[#allocation131_spill] sm:$0xff] %v4852_v3  ;;  %v4860_v26 = vadd.f32 %v6565_v14, %v6564_v60  ;;  %v6566_v61 = vld [vmem:[#allocation149_spill] sm:$0xff]  ;;  %v1651_v59 = vmul.f32 0.7978846, %v6569_v51  ;;  %v1652_v13 = vmul.f32 0.7978846, %v6570_v20 }
 0x2db   :  { %v1649_v30 = vmul.f32 0.7978846, %v6566_v61  ;;  %v6571_v43 = vld [vmem:[#allocation152_spill] sm:$0xff]  ;;  %v6572_v63 = vld [vmem:[#allocation153_spill] sm:$0xff]  ;;  %v1656_v14 = vmul.f32 0.7978846, %v4640_v45 }
 0x2dc   :  { %v1653_v3 = vmul.f32 0.7978846, %v6571_v43  ;;  %v1654_v58 = vmul.f32 0.7978846, %v6572_v63  ;;  %v1657_v60 = vmul.f32 0.7978846, %v4644_v32 }
 0x2dd   :  { %2567 = vtanh.f32 %v1649_v30  ;;  %v1660_v61 = vmul.f32 0.7978846, %v4656_v16  ;;  %v1661_v20 = vmul.f32 0.7978846, %v4660_v12  ;;  %v1662_v42 = vmul.f32 0.7978846, %v4664_v2 }
 0x2de   :  { %2569 = vtanh.f32 %v1650_v62  ;;  %v1663_v63 = vmul.f32 0.7978846, %v4668_v55  ;;  %v1664_v23 = vmul.f32 0.7978846, %v4672_v36  ;;  %v1665_v45 = vmul.f32 0.7978846, %v4676_v54 }
 0x2df   :  { %2571 = vtanh.f32 %v1651_v59  ;;  %v1666_v32 = vmul.f32 0.7978846, %v4680_v34  ;;  %v4884_v6 = vmul.f32 0.7978846, %v4684_v10  ;;  %v4887_v22 = vmul.f32 0.7978846, %v4688_v0 }
 0x2e0   :  { %2573 = vtanh.f32 %v1652_v13  ;;  %v4890_v16 = vmul.f32 0.7978846, %v4692_v49  ;;  %v4893_v12 = vmul.f32 0.7978846, %v4696_v56  ;;  %v4896_v2 = vmul.f32 0.7978846, %v4700_v38 }
 0x2e1   :  { %2575 = vtanh.f32 %v1653_v3  ;;  %v4899_v55 = vmul.f32 0.7978846, %v4704_v28  ;;  %v4902_v36 = vmul.f32 0.7978846, %v4708_v47  ;;  %v4905_v54 = vmul.f32 0.7978846, %v4712_v7 }
 0x2e2   :  { %2577 = vtanh.f32 %v1654_v58  ;;  %v4908_v34 = vmul.f32 0.7978846, %v4716_v37  ;;  %v4911_v10 = vmul.f32 0.7978846, %v4720_v29  ;;  %v4914_v0 = vmul.f32 0.7978846, %v4724_v52 }
 0x2e3   :  { %2579 = vtanh.f32 %v1655_v8  ;;  %v4917_v49 = vmul.f32 0.7978846, %v4728_v5  ;;  %v4920_v56 = vmul.f32 0.7978846, %v4732_v4  ;;  %v4923_v38 = vmul.f32 0.7978846, %v4736_v11 }
 0x2e4   :  { %2581 = vtanh.f32 %v1656_v14  ;;  %v4926_v28 = vmul.f32 0.7978846, %v4740_v40  ;;  %v4929_v47 = vmul.f32 0.7978846, %v4744_v50  ;;  %v4932_v7 = vmul.f32 0.7978846, %v4748_v41 }
 0x2e5   :  { %2583 = vtanh.f32 %v1657_v60  ;;  %v4935_v29 = vmul.f32 0.7978846, %v4752_v21  ;;  %v4938_v52 = vmul.f32 0.7978846, %v4756_v9  ;;  %v4941_v5 = vmul.f32 0.7978846, %v4760_v31 }
 0x2e6   :  { %2585 = vtanh.f32 %v1658_v25  ;;  %v4944_v11 = vmul.f32 0.7978846, %v4764_v39  ;;  %v4947_v40 = vmul.f32 0.7978846, %v4768_v17  ;;  %v4950_v50 = vmul.f32 0.7978846, %v4772_v24 }
 0x2e7   :  { %v2568_v37 = vpop.eup %2567  ;;  %2587 = vtanh.f32 %v1659_v57  ;;  %v4953_v21 = vmul.f32 0.7978846, %v4776_v48  ;;  %v4956_v9 = vmul.f32 0.7978846, %v4780_v15  ;;  %v4959_v31 = vmul.f32 0.7978846, %v4784_v46 }
 0x2e8   :  { %v2570_v4 = vpop.eup %2569  ;;  %2589 = vtanh.f32 %v1660_v61  ;;  %v4962_v30 = vmul.f32 0.7978846, %v4788_v33  ;;  %v4965_v17 = vmul.f32 0.7978846, %v4792_v19  ;;  %v4968_v24 = vmul.f32 0.7978846, %v4796_v18 }
 0x2e9   :  { %v2572_v41 = vpop.eup %2571  ;;  %2591 = vtanh.f32 %v1661_v20  ;;  %v4971_v3 = vmul.f32 0.7978846, %v4800_v44  ;;  %v4974_v15 = vmul.f32 0.7978846, %v4804_v53  ;;  %v4977_v46 = vmul.f32 0.7978846, %v4808_v27 }
 0x2ea   :  { %v2574_v39 = vpop.eup %2573  ;;  %2593 = vtanh.f32 %v1662_v42  ;;  %v6573_v62 = vld [vmem:[#allocation154_spill] sm:$0xff]  ;;  %v6574_v19 = vld [vmem:[#allocation12_spill] sm:$0xff]  ;;  %v6575_v18 = vld [vmem:[#allocation127_spill] sm:$0xff] }
 0x2eb   :  { %v2576_v48 = vpop.eup %2575  ;;  %2595 = vtanh.f32 %v1663_v63  ;;  %v4980_v51 = vmul.f32 0.7978846, %v6573_v62  ;;  %v4983_v59 = vmul.f32 0.7978846, %v6574_v19  ;;  %v4986_v13 = vmul.f32 0.7978846, %v6575_v18 }
 0x2ec   :  { %v2578_v33 = vpop.eup %2577  ;;  %2597 = vtanh.f32 %v1664_v23  ;;  %v6576_v43 = vld [vmem:[#allocation13_spill] sm:$0xff]  ;;  %v6577_v53 = vld [vmem:[#allocation128_spill] sm:$0xff]  ;;  %v6578_v27 = vld [vmem:[#allocation15_spill] sm:$0xff] }
 0x2ed   :  { %v2580_v44 = vpop.eup %2579  ;;  %v4989_v58 = vmul.f32 0.7978846, %v6576_v43  ;;  %v4992_v8 = vmul.f32 0.7978846, %v6577_v53  ;;  %v4995_v14 = vmul.f32 0.7978846, %v6578_v27  ;;  %2599 = vtanh.f32 %v1665_v45 }
 0x2ee   :  { %v2582_v60 = vpop.eup %2581  ;;  %v6579_v25 = vld [vmem:[#allocation129_spill] sm:$0xff]  ;;  %v6580_v61 = vld [vmem:[#allocation16_spill] sm:$0xff]  ;;  %v6581_v42 = vld [vmem:[#allocation130_spill] sm:$0xff]  ;;  %2601 = vtanh.f32 %v1666_v32  ;;  %v5013_v45 = vmul.f32 0.7978846, %v4856_v1  ;;  %v1777_v32 = vadd.f32 1.0, %v2568_v37 }
 0x2ef   :  { %v4998_v57 = vmul.f32 0.7978846, %v6579_v25  ;;  %v5001_v20 = vmul.f32 0.7978846, %v6580_v61  ;;  %v5004_v63 = vmul.f32 0.7978846, %v6581_v42  ;;  %v2584_v23 = vpop.eup %2583  ;;  %2603 = vtanh.f32 %v4884_v6 }
 0x2f0   :  { %v6582_v62 = vld [vmem:[#allocation17_spill] sm:$0xff]  ;;  %v6583_v18 = vld [vmem:[#allocation131_spill] sm:$0xff]  ;;  %6585 = vst [vmem:[#allocation132_spill] sm:$0xff] %v5013_v45  ;;  %v2586_v53 = vpop.eup %2585  ;;  %v5017_v27 = vmul.f32 0.7978846, %v4860_v26  ;;  %2605 = vtanh.f32 %v4887_v22  ;;  %v1778_v42 = vadd.f32 1.0, %v2570_v4 }
 0x2f1   :  { %v5007_v19 = vmul.f32 0.7978846, %v6582_v62  ;;  %v5010_v43 = vmul.f32 0.7978846, %v6583_v18  ;;  %v5020_v25 = vmul.f32 0.7978846, %v4865_v35  ;;  %v2588_v61 = vpop.eup %2587  ;;  %2607 = vtanh.f32 %v4890_v16 }
 0x2f2   :  { %6586 = vst [vmem:[#allocation19_spill] sm:$0xff] %v5017_v27  ;;  %v1779_v62 = vadd.f32 1.0, %v2572_v41  ;;  %v1780_v18 = vadd.f32 1.0, %v2574_v39  ;;  %v2590_v1 = vpop.eup %2589  ;;  %2609 = vtanh.f32 %v4893_v12  ;;  %v1781_v6 = vadd.f32 1.0, %v2576_v48  ;;  %v6588_v12 = vld [vmem:[#allocation63_spill] sm:$0xff] }
 0x2f3   :  { %6584 = vst [vmem:[#allocation18_spill] sm:$0xff] %v5010_v43  ;;  %6587 = vst [vmem:[#allocation133_spill] sm:$0xff] %v5020_v25  ;;  %v1782_v45 = vadd.f32 1.0, %v2578_v33  ;;  %v1783_v43 = vadd.f32 1.0, %v2580_v44  ;;  %v2592_v26 = vpop.eup %2591  ;;  %2611 = vtanh.f32 %v4896_v2  ;;  %v1784_v35 = vadd.f32 1.0, %v2582_v60  ;;  %v6589_v33 = vld [vmem:[#allocation64_spill] sm:$0xff] }
 0x2f4   :  { %v1785_v25 = vadd.f32 1.0, %v2584_v23  ;;  %v1786_v27 = vadd.f32 1.0, %v2586_v53  ;;  %v2594_v22 = vpop.eup %2593  ;;  %2613 = vtanh.f32 %v4899_v55  ;;  %v1787_v37 = vadd.f32 1.0, %v2588_v61  ;;  %v6590_v23 = vld [vmem:[#allocation65_spill] sm:$0xff]  ;;  %v6591_v55 = vld [vmem:[#allocation66_spill] sm:$0xff] }
 0x2f5   :  { %v1788_v16 = vadd.f32 1.0, %v2590_v1  ;;  %v1789_v4 = vadd.f32 1.0, %v2592_v26  ;;  %v2596_v41 = vpop.eup %2595  ;;  %2615 = vtanh.f32 %v4902_v36  ;;  %v1790_v39 = vadd.f32 1.0, %v2594_v22  ;;  %v6592_v26 = vld [vmem:[#allocation67_spill] sm:$0xff]  ;;  %v6593_v22 = vld [vmem:[#allocation68_spill] sm:$0xff] }
 0x2f6   :  { %v5029_v48 = vmul.f32 %v1777_v32, %v6588_v12  ;;  %v5032_v44 = vmul.f32 %v1778_v42, %v6589_v33  ;;  %v2598_v2 = vpop.eup %2597  ;;  %2617 = vtanh.f32 %v4905_v54  ;;  %v1791_v60 = vadd.f32 1.0, %v2596_v41  ;;  %v6594_v41 = vld [vmem:[#allocation69_spill] sm:$0xff]  ;;  %v6595_v33 = vld [vmem:[#allocation70_spill] sm:$0xff] }
 0x2f7   :  { %v5036_v53 = vmul.f32 %v1779_v62, %v6590_v23  ;;  %v5039_v61 = vmul.f32 %v1780_v18, %v6591_v55  ;;  %v2600_v1 = vpop.eup %2599  ;;  %2619 = vtanh.f32 %v4908_v34  ;;  %v1792_v36 = vadd.f32 1.0, %v2598_v2  ;;  %v6596_v2 = vld [vmem:[#allocation71_spill] sm:$0xff]  ;;  %v6597_v55 = vld [vmem:[#allocation72_spill] sm:$0xff] }
 0x2f8   :  { %v5043_v32 = vmul.f32 %v1781_v6, %v6592_v26  ;;  %v5046_v42 = vmul.f32 %v1782_v45, %v6593_v22  ;;  %v2602_v12 = vpop.eup %2601  ;;  %2621 = vtanh.f32 %v4911_v10  ;;  %v1793_v54 = vadd.f32 1.0, %v2600_v1  ;;  %v6598_v1 = vld [vmem:[#allocation73_spill] sm:$0xff]  ;;  %v6599_v22 = vld [vmem:[#allocation74_spill] sm:$0xff] }
 0x2f9   :  { %v5050_v62 = vmul.f32 %v1783_v43, %v6594_v41  ;;  %v5053_v18 = vmul.f32 %v1784_v35, %v6595_v33  ;;  %v2604_v23 = vpop.eup %2603  ;;  %2623 = vtanh.f32 %v4914_v0  ;;  %v1794_v34 = vadd.f32 1.0, %v2602_v12  ;;  %v6600_v12 = vld [vmem:[#allocation75_spill] sm:$0xff]  ;;  %v6601_v33 = vld [vmem:[#allocation76_spill] sm:$0xff] }
 0x2fa   :  { %v5057_v6 = vmul.f32 %v1785_v25, %v6596_v2  ;;  %v5060_v45 = vmul.f32 %v1786_v27, %v6597_v55  ;;  %v2606_v26 = vpop.eup %2605  ;;  %2625 = vtanh.f32 %v4917_v49  ;;  %v1795_v10 = vadd.f32 1.0, %v2604_v23  ;;  %v6602_v23 = vld [vmem:[#allocation77_spill] sm:$0xff]  ;;  %v6603_v55 = vld [vmem:[#allocation78_spill] sm:$0xff] }
 0x2fb   :  { %v5064_v43 = vmul.f32 %v1787_v37, %v6598_v1  ;;  %v5067_v35 = vmul.f32 %v1788_v16, %v6599_v22  ;;  %v2608_v41 = vpop.eup %2607  ;;  %2627 = vtanh.f32 %v4920_v56  ;;  %v1796_v0 = vadd.f32 1.0, %v2606_v26  ;;  %v6604_v26 = vld [vmem:[#allocation79_spill] sm:$0xff]  ;;  %v6605_v22 = vld [vmem:[#allocation80_spill] sm:$0xff] }
 0x2fc   :  { %v5071_v25 = vmul.f32 %v1789_v4, %v6600_v12  ;;  %v5074_v27 = vmul.f32 %v1790_v39, %v6601_v33  ;;  %v2610_v2 = vpop.eup %2609  ;;  %2629 = vtanh.f32 %v4923_v38  ;;  %v1797_v49 = vadd.f32 1.0, %v2608_v41  ;;  %v6606_v41 = vld [vmem:[#allocation81_spill] sm:$0xff]  ;;  %v6607_v33 = vld [vmem:[#allocation82_spill] sm:$0xff] }
 0x2fd   :  { %v5078_v37 = vmul.f32 %v1791_v60, %v6602_v23  ;;  %v5081_v16 = vmul.f32 %v1792_v36, %v6603_v55  ;;  %v2612_v1 = vpop.eup %2611  ;;  %2631 = vtanh.f32 %v4926_v28  ;;  %v1798_v56 = vadd.f32 1.0, %v2610_v2  ;;  %v6608_v2 = vld [vmem:[#allocation83_spill] sm:$0xff]  ;;  %v6609_v55 = vld [vmem:[#allocation84_spill] sm:$0xff] }
 0x2fe   :  { %v5085_v4 = vmul.f32 %v1793_v54, %v6604_v26  ;;  %v5088_v39 = vmul.f32 %v1794_v34, %v6605_v22  ;;  %v2614_v12 = vpop.eup %2613  ;;  %2633 = vtanh.f32 %v4929_v47  ;;  %v1799_v38 = vadd.f32 1.0, %v2612_v1  ;;  %v6610_v1 = vld [vmem:[#allocation85_spill] sm:$0xff] }
 0x2ff   :  { %v5092_v60 = vmul.f32 %v1795_v10, %v6606_v41  ;;  %v5095_v36 = vmul.f32 %v1796_v0, %v6607_v33  ;;  %v2616_v23 = vpop.eup %2615  ;;  %2635 = vtanh.f32 %v4932_v7  ;;  %v1800_v28 = vadd.f32 1.0, %v2614_v12  ;;  %v6611_v12 = vld [vmem:[#allocation86_spill] sm:$0xff]  ;;  %v6612_v33 = vld [vmem:[#allocation87_spill] sm:$0xff] }
 0x300   :  { %v5099_v54 = vmul.f32 %v1797_v49, %v6608_v2  ;;  %v5102_v34 = vmul.f32 %v1798_v56, %v6609_v55  ;;  %v2618_v26 = vpop.eup %2617  ;;  %2637 = vtanh.f32 %v4935_v29  ;;  %v1801_v47 = vadd.f32 1.0, %v2616_v23  ;;  %v6613_v55 = vld [vmem:[#allocation88_spill] sm:$0xff]  ;;  %v6646_v23 = vld [vmem:[#allocation18_spill] sm:$0xff]  ;;  %v6650_v0 = vld [vmem:[#allocation19_spill] sm:$0xff] }
 0x301   :  { %v5106_v10 = vmul.f32 %v1799_v38, %v6610_v1  ;;  %v2620_v22 = vpop.eup %2619  ;;  %2639 = vtanh.f32 %v4938_v52  ;;  %v1802_v7 = vadd.f32 1.0, %v2618_v26  ;;  %v5112_v49 = vmul.f32 %v1800_v28, %v6611_v12  ;;  %v6648_v56 = vld [vmem:[#allocation132_spill] sm:$0xff] }
 0x302   :  { %v2622_v41 = vpop.eup %2621  ;;  %2641 = vtanh.f32 %v4941_v5  ;;  %v1803_v29 = vadd.f32 1.0, %v2620_v22  ;;  %v5118_v38 = vmul.f32 %v1801_v47, %v6612_v33  ;;  %v6615_v22 = vld [vmem:[#allocation89_spill] sm:$0xff] }
 0x303   :  { %v2624_v2 = vpop.eup %2623  ;;  %2643 = vtanh.f32 %v4944_v11  ;;  %v1804_v52 = vadd.f32 1.0, %v2622_v41  ;;  %v5124_v28 = vmul.f32 %v1802_v7, %v6613_v55  ;;  %v6617_v41 = vld [vmem:[#allocation90_spill] sm:$0xff] }
 0x304   :  { %v2626_v1 = vpop.eup %2625  ;;  %2645 = vtanh.f32 %v4947_v40  ;;  %v1805_v5 = vadd.f32 1.0, %v2624_v2  ;;  %v5130_v47 = vmul.f32 %v1803_v29, %v6615_v22  ;;  %v6619_v2 = vld [vmem:[#allocation91_spill] sm:$0xff] }
 0x305   :  { %6614 = vst [vmem:[#allocation20_spill] sm:$0xff] %v5124_v28  ;;  %v2628_v33 = vpop.eup %2627  ;;  %2647 = vtanh.f32 %v4950_v50  ;;  %v1806_v11 = vadd.f32 1.0, %v2626_v1  ;;  %v5136_v7 = vmul.f32 %v1804_v52, %v6617_v41  ;;  %v6620_v1 = vld [vmem:[#allocation92_spill] sm:$0xff]  ;;  %v6652_v28 = vld [vmem:[#allocation133_spill] sm:$0xff] }
 0x306   :  { %6616 = vst [vmem:[#allocation134_spill] sm:$0xff] %v5130_v47  ;;  %v2630_v26 = vpop.eup %2629  ;;  %2649 = vtanh.f32 %v4953_v21  ;;  %v1807_v40 = vadd.f32 1.0, %v2628_v33  ;;  %v5142_v29 = vmul.f32 %v1805_v5, %v6619_v2  ;;  %v6621_v33 = vld [vmem:[#allocation93_spill] sm:$0xff] }
 0x307   :  { %6618 = vst [vmem:[#allocation3_spill] sm:$0xff] %v5136_v7  ;;  %v2632_v12 = vpop.eup %2631  ;;  %2651 = vtanh.f32 %v4956_v9  ;;  %v1808_v50 = vadd.f32 1.0, %v2630_v26  ;;  %v5148_v52 = vmul.f32 %v1806_v11, %v6620_v1  ;;  %v6623_v26 = vld [vmem:[#allocation94_spill] sm:$0xff] }
 0x308   :  { %v2634_v55 = vpop.eup %2633  ;;  %2653 = vtanh.f32 %v4959_v31  ;;  %v1809_v21 = vadd.f32 1.0, %v2632_v12  ;;  %v5154_v5 = vmul.f32 %v1807_v40, %v6621_v33  ;;  %v6624_v12 = vld [vmem:[#allocation95_spill] sm:$0xff] }
 0x309   :  { %v2636_v22 = vpop.eup %2635  ;;  %2655 = vtanh.f32 %v4962_v30  ;;  %v1810_v9 = vadd.f32 1.0, %v2634_v55  ;;  %v5160_v11 = vmul.f32 %v1808_v50, %v6623_v26  ;;  %v6626_v55 = vld [vmem:[#allocation96_spill] sm:$0xff] }
 0x30a   :  { %6622 = vst [vmem:[#allocation135_spill] sm:$0xff] %v5154_v5  ;;  %v2638_v41 = vpop.eup %2637  ;;  %2657 = vtanh.f32 %v4965_v17  ;;  %v1811_v31 = vadd.f32 1.0, %v2636_v22  ;;  %v5166_v40 = vmul.f32 %v1809_v21, %v6624_v12  ;;  %v6627_v22 = vld [vmem:[#allocation97_spill] sm:$0xff] }
 0x30b   :  { %v2640_v2 = vpop.eup %2639  ;;  %2659 = vtanh.f32 %v4968_v24  ;;  %v1812_v30 = vadd.f32 1.0, %v2638_v41  ;;  %v5172_v50 = vmul.f32 %v1810_v9, %v6626_v55  ;;  %v6629_v41 = vld [vmem:[#allocation98_spill] sm:$0xff] }
 0x30c   :  { %6625 = vst [vmem:[#allocation21_spill] sm:$0xff] %v5166_v40  ;;  %v2642_v1 = vpop.eup %2641  ;;  %2661 = vtanh.f32 %v4971_v3  ;;  %v1813_v17 = vadd.f32 1.0, %v2640_v2  ;;  %v5178_v21 = vmul.f32 %v1811_v31, %v6627_v22  ;;  %v6630_v2 = vld [vmem:[#allocation99_spill] sm:$0xff] }
 0x30d   :  { %v2644_v33 = vpop.eup %2643  ;;  %2663 = vtanh.f32 %v4974_v15  ;;  %v1814_v24 = vadd.f32 1.0, %v2642_v1  ;;  %v5184_v9 = vmul.f32 %v1812_v30, %v6629_v41  ;;  %v6632_v1 = vld [vmem:[#allocation100_spill] sm:$0xff] }
 0x30e   :  { %6628 = vst [vmem:[#allocation136_spill] sm:$0xff] %v5178_v21  ;;  %v2646_v26 = vpop.eup %2645  ;;  %2665 = vtanh.f32 %v4977_v46  ;;  %v1815_v3 = vadd.f32 1.0, %v2644_v33  ;;  %v5190_v31 = vmul.f32 %v1813_v17, %v6630_v2  ;;  %v6633_v33 = vld [vmem:[#allocation101_spill] sm:$0xff] }
 0x30f   :  { %v2648_v12 = vpop.eup %2647  ;;  %2667 = vtanh.f32 %v4980_v51  ;;  %v1816_v15 = vadd.f32 1.0, %v2646_v26  ;;  %v5196_v30 = vmul.f32 %v1814_v24, %v6632_v1  ;;  %v6635_v26 = vld [vmem:[#allocation102_spill] sm:$0xff] }
 0x310   :  { %6631 = vst [vmem:[#allocation22_spill] sm:$0xff] %v5190_v31  ;;  %v2650_v55 = vpop.eup %2649  ;;  %2669 = vtanh.f32 %v4983_v59  ;;  %v1817_v46 = vadd.f32 1.0, %v2648_v12  ;;  %v5202_v17 = vmul.f32 %v1815_v3, %v6633_v33  ;;  %v6636_v12 = vld [vmem:[#allocation103_spill] sm:$0xff] }
 0x311   :  { %v2652_v22 = vpop.eup %2651  ;;  %2671 = vtanh.f32 %v4986_v13  ;;  %v1818_v51 = vadd.f32 1.0, %v2650_v55  ;;  %v5208_v24 = vmul.f32 %v1816_v15, %v6635_v26  ;;  %v6638_v55 = vld [vmem:[#allocation104_spill] sm:$0xff] }
 0x312   :  { %6634 = vst [vmem:[#allocation137_spill] sm:$0xff] %v5202_v17  ;;  %v2654_v41 = vpop.eup %2653  ;;  %2673 = vtanh.f32 %v4989_v58  ;;  %v1819_v59 = vadd.f32 1.0, %v2652_v22  ;;  %v5214_v3 = vmul.f32 %v1817_v46, %v6636_v12  ;;  %v6639_v22 = vld [vmem:[#allocation105_spill] sm:$0xff] }
 0x313   :  { %v2656_v2 = vpop.eup %2655  ;;  %2675 = vtanh.f32 %v4992_v8  ;;  %v1820_v13 = vadd.f32 1.0, %v2654_v41  ;;  %v5220_v15 = vmul.f32 %v1818_v51, %v6638_v55  ;;  %v6641_v41 = vld [vmem:[#allocation106_spill] sm:$0xff] }
 0x314   :  { %6637 = vst [vmem:[#allocation23_spill] sm:$0xff] %v5214_v3  ;;  %v2658_v1 = vpop.eup %2657  ;;  %2677 = vtanh.f32 %v4995_v14  ;;  %v1821_v58 = vadd.f32 1.0, %v2656_v2  ;;  %v5226_v46 = vmul.f32 %v1819_v59, %v6639_v22  ;;  %v6642_v2 = vld [vmem:[#allocation107_spill] sm:$0xff] }
 0x315   :  { %v2660_v33 = vpop.eup %2659  ;;  %2679 = vtanh.f32 %v4998_v57  ;;  %v1822_v8 = vadd.f32 1.0, %v2658_v1  ;;  %v5232_v51 = vmul.f32 %v1820_v13, %v6641_v41  ;;  %v6643_v1 = vld [vmem:[#allocation108_spill] sm:$0xff] }
 0x316   :  { %6640 = vst [vmem:[#allocation138_spill] sm:$0xff] %v5226_v46  ;;  %v2662_v26 = vpop.eup %2661  ;;  %2681 = vtanh.f32 %v5001_v20  ;;  %v1823_v14 = vadd.f32 1.0, %v2660_v33  ;;  %v5238_v59 = vmul.f32 %v1821_v58, %v6642_v2  ;;  %v6644_v33 = vld [vmem:[#allocation109_spill] sm:$0xff] }
 0x317   :  { %v2664_v12 = vpop.eup %2663  ;;  %2683 = vtanh.f32 %v5004_v63  ;;  %v1824_v57 = vadd.f32 1.0, %v2662_v26  ;;  %v5244_v13 = vmul.f32 %v1822_v8, %v6643_v1  ;;  %v6647_v26 = vld [vmem:[#allocation110_spill] sm:$0xff] }
 0x318   :  { %v2666_v55 = vpop.eup %2665  ;;  %2685 = vtanh.f32 %v5007_v19  ;;  %v1825_v20 = vadd.f32 1.0, %v2664_v12  ;;  %v5250_v58 = vmul.f32 %v1823_v14, %v6644_v33  ;;  %v6649_v12 = vld [vmem:[#allocation111_spill] sm:$0xff] }
 0x319   :  { %v2668_v22 = vpop.eup %2667  ;;  %2687 = vtanh.f32 %v6646_v23  ;;  %v1826_v63 = vadd.f32 1.0, %v2666_v55  ;;  %v5256_v8 = vmul.f32 %v1824_v57, %v6647_v26  ;;  %v6651_v55 = vld [vmem:[#allocation112_spill] sm:$0xff] }
 0x31a   :  { %6645 = vst [vmem:[#allocation24_spill] sm:$0xff] %v5250_v58  ;;  %v2670_v41 = vpop.eup %2669  ;;  %2689 = vtanh.f32 %v6648_v56  ;;  %v1827_v19 = vadd.f32 1.0, %v2668_v22  ;;  %v5262_v14 = vmul.f32 %v1825_v20, %v6649_v12  ;;  %v6653_v22 = vld [vmem:[#allocation113_spill] sm:$0xff] }
 0x31b   :  { %v2672_v2 = vpop.eup %2671  ;;  %2691 = vtanh.f32 %v6650_v0  ;;  %v1828_v23 = vadd.f32 1.0, %v2670_v41  ;;  %v5268_v57 = vmul.f32 %v1826_v63, %v6651_v55  ;;  %v6654_v0 = vld [vmem:[#allocation114_spill] sm:$0xff] }
 0x31c   :  { %v2674_v1 = vpop.eup %2673  ;;  %2693 = vtanh.f32 %v6652_v28  ;;  %v1829_v56 = vadd.f32 1.0, %v2672_v2  ;;  %v5274_v20 = vmul.f32 %v1827_v19, %v6653_v22  ;;  %v6655_v2 = vld [vmem:[#allocation115_spill] sm:$0xff]  ;;  %v2407_v19 = vpack.c.bf16 %v5256_v8, %v5256_v8 }
 0x31d   :  { %v2676_v33 = vpop.eup %2675  ;;  %v1830_v47 = vadd.f32 1.0, %v2674_v1  ;;  %v5279_v41 = vmul.f32 %v1828_v23, %v6654_v0  ;;  %v6656_v0 = vld [vmem:[#allocation116_spill] sm:$0xff] }
 0x31e   :  { %v2678_v26 = vpop.eup %2677  ;;  %v1831_v28 = vadd.f32 1.0, %v2676_v33  ;;  %v5286_v7 = vmul.f32 %v1829_v56, %v6655_v2  ;;  %v6657_v2 = vld [vmem:[#allocation117_spill] sm:$0xff]  ;;  %2209 = vst.msk [vmem:[%s5839_s4 + $0xbc] sm:$0xf] %vm2161_vm4, %v2407_v19 }
 0x31f   :  { %v2680_v22 = vpop.eup %2679  ;;  %v1832_v23 = vadd.f32 1.0, %v2678_v26  ;;  %v5293_v12 = vmul.f32 %v1830_v47, %v6656_v0  ;;  %v6658_v0 = vld [vmem:[#allocation118_spill] sm:$0xff] }
 0x320   :  { %v2682_v55 = vpop.eup %2681  ;;  %v1833_v56 = vadd.f32 1.0, %v2680_v22  ;;  %v5300_v5 = vmul.f32 %v1831_v28, %v6657_v2  ;;  %v6659_v2 = vld [vmem:[#allocation119_spill] sm:$0xff]  ;;  %v6727_v8 = vpack.c.bf16 %v5286_v7, %v5286_v7 }
 0x321   :  { %v2684_v1 = vpop.eup %2683  ;;  %v1834_v47 = vadd.f32 1.0, %v2682_v55  ;;  %v5307_v40 = vmul.f32 %v1832_v23, %v6658_v0  ;;  %v6660_v0 = vld [vmem:[#allocation120_spill] sm:$0xff] }
 0x322   :  { %v2686_v33 = vpop.eup %2685  ;;  %v1835_v28 = vadd.f32 1.0, %v2684_v1  ;;  %v5314_v21 = vmul.f32 %v1833_v56, %v6659_v2  ;;  %v6661_v2 = vld [vmem:[#allocation121_spill] sm:$0xff]  ;;  %v2414_v63 = vpack.c.bf16 %v5300_v5, %v5300_v5  ;;  %2214 = vst.msk [vmem:[%s5839_s4 + $0xd0] sm:$0xf] %vm2161_vm4, %v6727_v8 }
 0x323   :  { %v2688_v26 = vpop.eup %2687  ;;  %v1836_v23 = vadd.f32 1.0, %v2686_v33  ;;  %v5321_v31 = vmul.f32 %v1834_v47, %v6660_v0  ;;  %v6662_v0 = vld [vmem:[#allocation122_spill] sm:$0xff]  ;;  %v6729_v7 = vpack.c.bf16 %v5307_v40, %v5307_v40 }
 0x324   :  { %v2690_v22 = vpop.eup %2689  ;;  %v1837_v56 = vadd.f32 1.0, %v2688_v26  ;;  %v5328_v17 = vmul.f32 %v1835_v28, %v6661_v2  ;;  %v6663_v2 = vld [vmem:[#allocation123_spill] sm:$0xff]  ;;  %2216 = vst.msk [vmem:[%s5839_s4 + $0xd8] sm:$0xf] %vm2161_vm4, %v2414_v63 }
 0x325   :  { %v2692_v55 = vpop.eup %2691  ;;  %v1838_v47 = vadd.f32 1.0, %v2690_v22  ;;  %v5335_v3 = vmul.f32 %v1836_v23, %v6662_v0  ;;  %v2408_v22 = vpack.c.bf16 %v5262_v14, %v5262_v14  ;;  %v6664_v23 = vld [vmem:[#allocation124_spill] sm:$0xff]  ;;  %v6728_v14 = vpack.c.bf16 %v5293_v12, %v5293_v12  ;;  %2217 = vst.msk [vmem:[%s5839_s4 + $0xdc] sm:$0xf] %vm2161_vm4, %v6729_v7 }
 0x326   :  { %v2694_v1 = vpop.eup %2693  ;;  %v1839_v28 = vadd.f32 1.0, %v2692_v55  ;;  %v5342_v46 = vmul.f32 %v1837_v56, %v6663_v2  ;;  %v6665_v55 = vld [vmem:[#allocation125_spill] sm:$0xff]  ;;  %v2411_v56 = vpack.c.bf16 %v5279_v41, %v5279_v41  ;;  %v2418_v2 = vpack.c.bf16 %v5328_v17, %v5328_v17 }
 0x327   :  { %v1840_v33 = vadd.f32 1.0, %v2694_v1  ;;  %v5349_v0 = vmul.f32 %v1838_v47, %v6664_v23  ;;  %v6666_v47 = vld [vmem:[#allocation126_spill] sm:$0xff]  ;;  %v2419_v1 = vpack.c.bf16 %v5335_v3, %v5335_v3  ;;  %2210 = vst.msk [vmem:[%s5839_s4 + $0xc0] sm:$0xf] %vm2161_vm4, %v2408_v22  ;;  %2215 = vst.msk [vmem:[%s5839_s4 + $0xd4] sm:$0xf] %vm2161_vm4, %v6728_v14  ;;  %v6731_v5 = vpack.c.bf16 %v5321_v31, %v5321_v31 }
 0x328   :  { %v5356_v58 = vmul.f32 %v1839_v28, %v6665_v55  ;;  %v6667_v55 = vpack.c.bf16 %v5029_v48, %v5029_v48  ;;  %v6669_v28 = vpack.c.bf16 %v5036_v53, %v5036_v53  ;;  %v6670_v48 = vpack.c.bf16 %v5039_v61, %v5039_v61  ;;  %2213 = vst.msk [vmem:[%s5839_s4 + $0xcc] sm:$0xf] %vm2161_vm4, %v2411_v56 }
 0x329   :  { %v5365_v23 = vmul.f32 %v1840_v33, %v6666_v47  ;;  %v2421_v47 = vpack.c.bf16 %v5349_v0, %v5349_v0  ;;  %v6668_v33 = vpack.c.bf16 %v5032_v44, %v5032_v44  ;;  %v6671_v44 = vpack.c.bf16 %v5043_v32, %v5043_v32  ;;  %2219 = vst.msk [vmem:[%s5839_s4 + $0xe4] sm:$0xf] %vm2161_vm4, %v6731_v5 }
 0x32a   :  { %v2422_v26 = vpack.c.bf16 %v5356_v58, %v5356_v58  ;;  %2162 = vst.msk [vmem:[%s5839_s4] sm:$0xf] %vm2161_vm4, %v6667_v55  ;;  %2164 = vst.msk [vmem:[%s5839_s4 + $0x8] sm:$0xf] %vm2161_vm4, %v6669_v28  ;;  %v6672_v53 = vpack.c.bf16 %v5046_v42, %v5046_v42  ;;  %v6673_v61 = vpack.c.bf16 %v5050_v62, %v5050_v62 }
 0x32b   :  { %2163 = vst.msk [vmem:[%s5839_s4 + $0x4] sm:$0xf] %vm2161_vm4, %v6668_v33  ;;  %2165 = vst.msk [vmem:[%s5839_s4 + $0xc] sm:$0xf] %vm2161_vm4, %v6670_v48  ;;  %v6674_v32 = vpack.c.bf16 %v5053_v18, %v5053_v18  ;;  %v6675_v42 = vpack.c.bf16 %v5057_v6, %v5057_v6  ;;  %v6676_v62 = vpack.c.bf16 %v5060_v45, %v5060_v45 }
 0x32c   :  { %2166 = vst.msk [vmem:[%s5839_s4 + $0x10] sm:$0xf] %vm2161_vm4, %v6671_v44  ;;  %2167 = vst.msk [vmem:[%s5839_s4 + $0x14] sm:$0xf] %vm2161_vm4, %v6672_v53  ;;  %v6677_v18 = vpack.c.bf16 %v5064_v43, %v5064_v43  ;;  %v6678_v6 = vpack.c.bf16 %v5067_v35, %v5067_v35  ;;  %v6679_v45 = vpack.c.bf16 %v5071_v25, %v5071_v25  ;;  %v6700_v53 = vld [vmem:[#allocation135_spill] sm:$0xff] }
 0x32d   :  { %2168 = vst.msk [vmem:[%s5839_s4 + $0x18] sm:$0xf] %vm2161_vm4, %v6673_v61  ;;  %2169 = vst.msk [vmem:[%s5839_s4 + $0x1c] sm:$0xf] %vm2161_vm4, %v6674_v32  ;;  %v6680_v43 = vpack.c.bf16 %v5074_v27, %v5074_v27  ;;  %v6681_v35 = vpack.c.bf16 %v5078_v37, %v5078_v37  ;;  %v6682_v25 = vpack.c.bf16 %v5081_v16, %v5081_v16 }
 0x32e   :  { %2170 = vst.msk [vmem:[%s5839_s4 + $0x20] sm:$0xf] %vm2161_vm4, %v6675_v42  ;;  %2171 = vst.msk [vmem:[%s5839_s4 + $0x24] sm:$0xf] %vm2161_vm4, %v6676_v62  ;;  %v6683_v27 = vpack.c.bf16 %v5085_v4, %v5085_v4  ;;  %v6684_v37 = vpack.c.bf16 %v5088_v39, %v5088_v39  ;;  %v6685_v16 = vpack.c.bf16 %v5092_v60, %v5092_v60 }
 0x32f   :  { %2172 = vst.msk [vmem:[%s5839_s4 + $0x28] sm:$0xf] %vm2161_vm4, %v6677_v18  ;;  %2173 = vst.msk [vmem:[%s5839_s4 + $0x2c] sm:$0xf] %vm2161_vm4, %v6678_v6  ;;  %v6686_v4 = vpack.c.bf16 %v5095_v36, %v5095_v36  ;;  %v6687_v39 = vpack.c.bf16 %v5099_v54, %v5099_v54  ;;  %v6688_v60 = vpack.c.bf16 %v5102_v34, %v5102_v34 }
 0x330   :  { %2174 = vst.msk [vmem:[%s5839_s4 + $0x30] sm:$0xf] %vm2161_vm4, %v6679_v45  ;;  %2175 = vst.msk [vmem:[%s5839_s4 + $0x34] sm:$0xf] %vm2161_vm4, %v6680_v43  ;;  %v6689_v36 = vpack.c.bf16 %v5106_v10, %v5106_v10  ;;  %v6690_v54 = vpack.c.bf16 %v5112_v49, %v5112_v49  ;;  %v6691_v34 = vpack.c.bf16 %v5118_v38, %v5118_v38  ;;  %v6692_v10 = vld [vmem:[#allocation20_spill] sm:$0xff]  ;;  %v6694_v49 = vld [vmem:[#allocation134_spill] sm:$0xff] }
 0x331   :  { %2176 = vst.msk [vmem:[%s5839_s4 + $0x38] sm:$0xf] %vm2161_vm4, %v6681_v35  ;;  %2177 = vst.msk [vmem:[%s5839_s4 + $0x3c] sm:$0xf] %vm2161_vm4, %v6682_v25  ;;  %v6693_v28 = vpack.c.bf16 %v6692_v10, %v6692_v10  ;;  %v6695_v55 = vpack.c.bf16 %v6694_v49, %v6694_v49  ;;  %v6696_v38 = vld [vmem:[#allocation3_spill] sm:$0xff]  ;;  %v6698_v48 = vpack.c.bf16 %v5142_v29, %v5142_v29 }
 0x332   :  { %2178 = vst.msk [vmem:[%s5839_s4 + $0x40] sm:$0xf] %vm2161_vm4, %v6683_v27  ;;  %2179 = vst.msk [vmem:[%s5839_s4 + $0x44] sm:$0xf] %vm2161_vm4, %v6684_v37  ;;  %v6697_v33 = vpack.c.bf16 %v6696_v38, %v6696_v38  ;;  %v6699_v44 = vpack.c.bf16 %v5148_v52, %v5148_v52  ;;  %v6701_v61 = vpack.c.bf16 %v6700_v53, %v6700_v53  ;;  %v6703_v52 = vld [vmem:[#allocation21_spill] sm:$0xff] }
 0x333   :  { %2180 = vst.msk [vmem:[%s5839_s4 + $0x48] sm:$0xf] %vm2161_vm4, %v6685_v16  ;;  %2181 = vst.msk [vmem:[%s5839_s4 + $0x4c] sm:$0xf] %vm2161_vm4, %v6686_v4  ;;  %v6702_v29 = vpack.c.bf16 %v5160_v11, %v5160_v11  ;;  %v6704_v32 = vpack.c.bf16 %v6703_v52, %v6703_v52  ;;  %v6705_v42 = vpack.c.bf16 %v5172_v50, %v5172_v50  ;;  %v6706_v11 = vld [vmem:[#allocation136_spill] sm:$0xff]  ;;  %v6709_v50 = vld [vmem:[#allocation22_spill] sm:$0xff] }
 0x334   :  { %2182 = vst.msk [vmem:[%s5839_s4 + $0x50] sm:$0xf] %vm2161_vm4, %v6687_v39  ;;  %2183 = vst.msk [vmem:[%s5839_s4 + $0x54] sm:$0xf] %vm2161_vm4, %v6688_v60  ;;  %v6707_v62 = vpack.c.bf16 %v6706_v11, %v6706_v11  ;;  %v6708_v18 = vpack.c.bf16 %v5184_v9, %v5184_v9  ;;  %v6710_v6 = vpack.c.bf16 %v6709_v50, %v6709_v50  ;;  %v6712_v9 = vld [vmem:[#allocation137_spill] sm:$0xff] }
 0x335   :  { %2184 = vst.msk [vmem:[%s5839_s4 + $0x58] sm:$0xf] %vm2161_vm4, %v6689_v36  ;;  %2185 = vst.msk [vmem:[%s5839_s4 + $0x5c] sm:$0xf] %vm2161_vm4, %v6690_v54  ;;  %v6711_v45 = vpack.c.bf16 %v5196_v30, %v5196_v30  ;;  %v6713_v43 = vpack.c.bf16 %v6712_v9, %v6712_v9  ;;  %v6714_v35 = vpack.c.bf16 %v5208_v24, %v5208_v24  ;;  %v6715_v30 = vld [vmem:[#allocation23_spill] sm:$0xff]  ;;  %v6718_v24 = vld [vmem:[#allocation138_spill] sm:$0xff] }
 0x336   :  { %2186 = vst.msk [vmem:[%s5839_s4 + $0x60] sm:$0xf] %vm2161_vm4, %v6691_v34  ;;  %2187 = vst.msk [vmem:[%s5839_s4 + $0x64] sm:$0xf] %vm2161_vm4, %v6693_v28  ;;  %v6716_v25 = vpack.c.bf16 %v6715_v30, %v6715_v30  ;;  %v6717_v27 = vpack.c.bf16 %v5220_v15, %v5220_v15  ;;  %v6719_v37 = vpack.c.bf16 %v6718_v24, %v6718_v24 }
 0x337   :  { %2188 = vst.msk [vmem:[%s5839_s4 + $0x68] sm:$0xf] %vm2161_vm4, %v6695_v55  ;;  %2189 = vst.msk [vmem:[%s5839_s4 + $0x6c] sm:$0xf] %vm2161_vm4, %v6697_v33  ;;  %v6720_v16 = vpack.c.bf16 %v5232_v51, %v5232_v51  ;;  %v6721_v15 = vpack.c.bf16 %v5238_v59, %v5238_v59  ;;  %v6722_v4 = vpack.c.bf16 %v5244_v13, %v5244_v13  ;;  %v6723_v51 = vld [vmem:[#allocation24_spill] sm:$0xff] }
 0x338   :  { %2190 = vst.msk [vmem:[%s5839_s4 + $0x70] sm:$0xf] %vm2161_vm4, %v6698_v48  ;;  %2191 = vst.msk [vmem:[%s5839_s4 + $0x74] sm:$0xf] %vm2161_vm4, %v6699_v44  ;;  %v6724_v39 = vpack.c.bf16 %v6723_v51, %v6723_v51  ;;  %v6725_v59 = vpack.c.bf16 %v5268_v57, %v5268_v57  ;;  %v6726_v13 = vpack.c.bf16 %v5274_v20, %v5274_v20 }
 0x339   :  { %2192 = vst.msk [vmem:[%s5839_s4 + $0x78] sm:$0xf] %vm2161_vm4, %v6701_v61  ;;  %2193 = vst.msk [vmem:[%s5839_s4 + $0x7c] sm:$0xf] %vm2161_vm4, %v6702_v29  ;;  %v6730_v57 = vpack.c.bf16 %v5314_v21, %v5314_v21  ;;  %v6732_v40 = vpack.c.bf16 %v5342_v46, %v5342_v46  ;;  %v6733_v21 = vpack.c.bf16 %v5365_v23, %v5365_v23 }
 0x33a   :  { %2194 = vst.msk [vmem:[%s5839_s4 + $0x80] sm:$0xf] %vm2161_vm4, %v6704_v32  ;;  %2195 = vst.msk [vmem:[%s5839_s4 + $0x84] sm:$0xf] %vm2161_vm4, %v6705_v42 }
 0x33b   :  { %2196 = vst.msk [vmem:[%s5839_s4 + $0x88] sm:$0xf] %vm2161_vm4, %v6707_v62  ;;  %2197 = vst.msk [vmem:[%s5839_s4 + $0x8c] sm:$0xf] %vm2161_vm4, %v6708_v18 }
 0x33c   :  { %2198 = vst.msk [vmem:[%s5839_s4 + $0x90] sm:$0xf] %vm2161_vm4, %v6710_v6  ;;  %2199 = vst.msk [vmem:[%s5839_s4 + $0x94] sm:$0xf] %vm2161_vm4, %v6711_v45 }
 0x33d   :  { %2200 = vst.msk [vmem:[%s5839_s4 + $0x98] sm:$0xf] %vm2161_vm4, %v6713_v43  ;;  %2201 = vst.msk [vmem:[%s5839_s4 + $0x9c] sm:$0xf] %vm2161_vm4, %v6714_v35 }
 0x33e   :  { %2202 = vst.msk [vmem:[%s5839_s4 + $0xa0] sm:$0xf] %vm2161_vm4, %v6716_v25  ;;  %2203 = vst.msk [vmem:[%s5839_s4 + $0xa4] sm:$0xf] %vm2161_vm4, %v6717_v27 }
 0x33f   :  { %2204 = vst.msk [vmem:[%s5839_s4 + $0xa8] sm:$0xf] %vm2161_vm4, %v6719_v37  ;;  %2205 = vst.msk [vmem:[%s5839_s4 + $0xac] sm:$0xf] %vm2161_vm4, %v6720_v16 }
 0x340   :  { %2206 = vst.msk [vmem:[%s5839_s4 + $0xb0] sm:$0xf] %vm2161_vm4, %v6721_v15  ;;  %2207 = vst.msk [vmem:[%s5839_s4 + $0xb4] sm:$0xf] %vm2161_vm4, %v6722_v4 }
 0x341   :  { %2208 = vst.msk [vmem:[%s5839_s4 + $0xb8] sm:$0xf] %vm2161_vm4, %v6724_v39  ;;  %2211 = vst.msk [vmem:[%s5839_s4 + $0xc4] sm:$0xf] %vm2161_vm4, %v6725_v59 }
 0x342   :  { %2212 = vst.msk [vmem:[%s5839_s4 + $0xc8] sm:$0xf] %vm2161_vm4, %v6726_v13  ;;  %2218 = vst.msk [vmem:[%s5839_s4 + $0xe0] sm:$0xf] %vm2161_vm4, %v6730_v57 }
 0x343   :  { %2220 = vst.msk [vmem:[%s5839_s4 + $0xe8] sm:$0xf] %vm2161_vm4, %v2418_v2  ;;  %2221 = vst.msk [vmem:[%s5839_s4 + $0xec] sm:$0xf] %vm2161_vm4, %v2419_v1 }
 0x344   :  { %2222 = vst.msk [vmem:[%s5839_s4 + $0xf0] sm:$0xf] %vm2161_vm4, %v6732_v40  ;;  %2223 = vst.msk [vmem:[%s5839_s4 + $0xf4] sm:$0xf] %vm2161_vm4, %v2421_v47 }
 0x345   :  { %2224 = vst.msk [vmem:[%s5839_s4 + $0xf8] sm:$0xf] %vm2161_vm4, %v2422_v26  ;;  %2225 = vst.msk [vmem:[%s5839_s4 + $0xfc] sm:$0xf] %vm2161_vm4, %v6733_v21 }

// kernel: cnn_forward.8
= control target key start
LH: loop header
LB: loop body
LE: loop exit
PB: predicated region body
PF: predicated region fallthrough
CT: control target
= control target key end

     0   :  { %v2910_v0 = vmov 0   ;;  %vm442_vm0 = vcmask 130048   ;;  %vm2338_vm1 = vcmask 125952   ;;  %s6151_s1 = inlined_call_operand.vmem [shape: bf16[144,16], index: 1, kind: input, shape index: {}]   ;;  %s6152_s0 = inlined_call_operand.vmem [shape: bf16[512,144], index: 0, kind: input, shape index: {}]   ;;  %s6153_s2 = inlined_call_operand.vmem [shape: f32[1,16], index: 2, kind: input, shape index: {}]   ;;  %s6154_s3 = inlined_call_operand.vmem [shape: f32[1,16], index: 3, kind: input, shape index: {}]   ;;  %s6155_s4 = inlined_call_operand.vmem [shape: bf16[512,16], index: 4, kind: output, shape index: {}]  }
   0x1   :  { %539 = vmatprep.subr.bf16.mxu0 %v2910_v0  ;;  %v2659_v1 = vld [vmem:[%s6151_s1] sm:$0xff]   ;;  %2640 = vmatprep.subr.bf16.mxu1 %v2910_v0  ;;  %v2660_v2 = vld [vmem:[%s6151_s1 + $0x8] sm:$0xff]   ;;  %v2661_v3 = vld [vmem:[%s6151_s1 + $0x10] sm:$0xff]  }
   0x2   :  { %540 = vmatpush1.bf16.msra.mxu0 %v2659_v1  ;;  %2649 = vmatpush1.bf16.msra.mxu1 %v2659_v1  ;;  %v2662_v4 = vld [vmem:[%s6151_s1 + $0x18] sm:$0xff]   ;;  %v2670_v5 = vld [vmem:[%s6152_s0 + $0x4] ss:$8 sps:$4 sm:$0xff]   ;;  %v2665_v9 = vld [vmem:[%s6151_s1 + $0x30] sm:$0xff]  }
   0x3   :  { %541 = vmatprep.subr.bf16.mxu0 %v2910_v0  ;;  %2641 = vmatprep.subr.bf16.mxu1 %v2910_v0  ;;  %v2663_v6 = vld [vmem:[%s6151_s1 + $0x20] sm:$0xff]   ;;  %v2664_v7 = vld [vmem:[%s6151_s1 + $0x28] sm:$0xff]   ;;  %v2666_v10 = vld [vmem:[%s6151_s1 + $0x38] sm:$0xff]  }
   0x4   :  { %2480 = vmatprep.mubr.msk.bf16.mxu0 %vm442_vm0, %v2670_v5  ;;  %v2694_v8 = vld [vmem:[%s6152_s0 + $0x104] ss:$8 sps:$4 sm:$0xff]   ;;  %v2668_v12 = vld [vmem:[%s6152_s0] ss:$8 sps:$4 sm:$0xff]   ;;  %v2671_v13 = vld [vmem:[%s6152_s0 + $0x14] ss:$8 sps:$4 sm:$0xff]  }
   0x5   :  { %2496 = vmatprep.mubr.msk.bf16.mxu1 %vm442_vm0, %v2694_v8  ;;  %v2667_v11 = vld [vmem:[%s6151_s1 + $0x40] sm:$0xff]   ;;  %v2698_v15 = vld [vmem:[%s6152_s0 + $0x114] ss:$8 sps:$4 sm:$0xff]   ;;  %v2673_v16 = vld [vmem:[%s6152_s0 + $0x10] ss:$8 sps:$4 sm:$0xff]  }
   0x6   :  { %542 = vmatpush1.bf16.msra.mxu0 %v2660_v2  ;;  %2650 = vmatpush1.bf16.msra.mxu1 %v2660_v2  ;;  %v2692_v14 = vld [vmem:[%s6152_s0 + $0x100] ss:$8 sps:$4 sm:$0xff]   ;;  %v2674_v17 = vld [vmem:[%s6152_s0 + $0x24] ss:$8 sps:$4 sm:$0xff]   ;;  %v2700_v18 = vld [vmem:[%s6152_s0 + $0x110] ss:$8 sps:$4 sm:$0xff]  }
   0x7   :  { %543 = vmatprep.subr.bf16.mxu0 %v2910_v0  ;;  %2642 = vmatprep.subr.bf16.mxu1 %v2910_v0  ;;  %v2704_v19 = vld [vmem:[%s6152_s0 + $0x124] ss:$8 sps:$4 sm:$0xff]   ;;  %v2676_v20 = vld [vmem:[%s6152_s0 + $0x20] ss:$8 sps:$4 sm:$0xff]   ;;  %v2677_v21 = vld [vmem:[%s6152_s0 + $0x34] ss:$8 sps:$4 sm:$0xff]  }
   0x8   :  { %v2706_v22 = vld [vmem:[%s6152_s0 + $0x120] ss:$8 sps:$4 sm:$0xff]   ;;  %v2710_v23 = vld [vmem:[%s6152_s0 + $0x134] ss:$8 sps:$4 sm:$0xff]   ;;  %v2679_v24 = vld [vmem:[%s6152_s0 + $0x30] ss:$8 sps:$4 sm:$0xff]  }
   0x9   :  { %v2712_v25 = vld [vmem:[%s6152_s0 + $0x130] ss:$8 sps:$4 sm:$0xff]   ;;  %v2680_v26 = vld [vmem:[%s6152_s0 + $0x44] ss:$8 sps:$4 sm:$0xff]   ;;  %v2682_v28 = vld [vmem:[%s6152_s0 + $0x40] ss:$8 sps:$4 sm:$0xff]  }
   0xa   :  { %544 = vmatpush1.bf16.msra.mxu0 %v2661_v3  ;;  %2651 = vmatpush1.bf16.msra.mxu1 %v2661_v3  ;;  %v2716_v27 = vld [vmem:[%s6152_s0 + $0x144] ss:$8 sps:$4 sm:$0xff]   ;;  %v2718_v29 = vld [vmem:[%s6152_s0 + $0x140] ss:$8 sps:$4 sm:$0xff]   ;;  %v2683_v30 = vld [vmem:[%s6152_s0 + $0x54] ss:$8 sps:$4 sm:$0xff]  }
   0xb   :  { %545 = vmatprep.subr.bf16.mxu0 %v2910_v0  ;;  %2643 = vmatprep.subr.bf16.mxu1 %v2910_v0  ;;  %v2722_v31 = vld [vmem:[%s6152_s0 + $0x154] ss:$8 sps:$4 sm:$0xff]   ;;  %v2685_v32 = vld [vmem:[%s6152_s0 + $0x50] ss:$8 sps:$4 sm:$0xff]   ;;  %v2686_v34 = vld [vmem:[%s6152_s0 + $0x64] ss:$8 sps:$4 sm:$0xff]  }
   0xc   :  { %v2724_v33 = vld [vmem:[%s6152_s0 + $0x150] ss:$8 sps:$4 sm:$0xff]   ;;  %v2728_v35 = vld [vmem:[%s6152_s0 + $0x164] ss:$8 sps:$4 sm:$0xff]   ;;  %v2688_v36 = vld [vmem:[%s6152_s0 + $0x60] ss:$8 sps:$4 sm:$0xff]  }
   0xd   :  { %v2730_v37 = vld [vmem:[%s6152_s0 + $0x160] ss:$8 sps:$4 sm:$0xff]   ;;  %v2689_v38 = vld [vmem:[%s6152_s0 + $0x74] ss:$8 sps:$4 sm:$0xff]   ;;  %v2691_v40 = vld [vmem:[%s6152_s0 + $0x70] ss:$8 sps:$4 sm:$0xff]  }
   0xe   :  { %546 = vmatpush1.bf16.msra.mxu0 %v2662_v4  ;;  %2652 = vmatpush1.bf16.msra.mxu1 %v2662_v4  ;;  %v2734_v39 = vld [vmem:[%s6152_s0 + $0x174] ss:$8 sps:$4 sm:$0xff]   ;;  %v2736_v41 = vld [vmem:[%s6152_s0 + $0x170] ss:$8 sps:$4 sm:$0xff]   ;;  %v2695_v42 = vld [vmem:[%s6152_s0 + $0x84] ss:$8 sps:$4 sm:$0xff]  }
   0xf   :  { %547 = vmatprep.subr.bf16.mxu0 %v2910_v0  ;;  %2644 = vmatprep.subr.bf16.mxu1 %v2910_v0  ;;  %v2740_v43 = vld [vmem:[%s6152_s0 + $0x184] ss:$8 sps:$4 sm:$0xff]   ;;  %v2697_v44 = vld [vmem:[%s6152_s0 + $0x80] ss:$8 sps:$4 sm:$0xff]   ;;  %v2701_v46 = vld [vmem:[%s6152_s0 + $0x94] ss:$8 sps:$4 sm:$0xff]  }
  0x10   :  { %v2742_v45 = vld [vmem:[%s6152_s0 + $0x180] ss:$8 sps:$4 sm:$0xff]   ;;  %v2743_v47 = vld [vmem:[%s6152_s0 + $0x194] ss:$8 sps:$4 sm:$0xff]   ;;  %v2703_v48 = vld [vmem:[%s6152_s0 + $0x90] ss:$8 sps:$4 sm:$0xff]  }
  0x11   :  { %v2745_v49 = vld [vmem:[%s6152_s0 + $0x190] ss:$8 sps:$4 sm:$0xff]   ;;  %v2707_v50 = vld [vmem:[%s6152_s0 + $0xa4] ss:$8 sps:$4 sm:$0xff]   ;;  %v2709_v52 = vld [vmem:[%s6152_s0 + $0xa0] ss:$8 sps:$4 sm:$0xff]  }
  0x12   :  { %548 = vmatpush1.bf16.msra.mxu0 %v2663_v6  ;;  %2653 = vmatpush1.bf16.msra.mxu1 %v2663_v6  ;;  %v2746_v51 = vld [vmem:[%s6152_s0 + $0x1a4] ss:$8 sps:$4 sm:$0xff]   ;;  %v2748_v53 = vld [vmem:[%s6152_s0 + $0x1a0] ss:$8 sps:$4 sm:$0xff]   ;;  %v2713_v54 = vld [vmem:[%s6152_s0 + $0xb4] ss:$8 sps:$4 sm:$0xff]  }
  0x13   :  { %549 = vmatprep.subr.bf16.mxu0 %v2910_v0  ;;  %2645 = vmatprep.subr.bf16.mxu1 %v2910_v0  ;;  %v2749_v55 = vld [vmem:[%s6152_s0 + $0x1b4] ss:$8 sps:$4 sm:$0xff]   ;;  %v2715_v56 = vld [vmem:[%s6152_s0 + $0xb0] ss:$8 sps:$4 sm:$0xff]   ;;  %v2719_v58 = vld [vmem:[%s6152_s0 + $0xc4] ss:$8 sps:$4 sm:$0xff]  }
  0x14   :  { %v2751_v57 = vld [vmem:[%s6152_s0 + $0x1b0] ss:$8 sps:$4 sm:$0xff]   ;;  %v2752_v59 = vld [vmem:[%s6152_s0 + $0x1c4] ss:$8 sps:$4 sm:$0xff]   ;;  %v2721_v60 = vld [vmem:[%s6152_s0 + $0xc0] ss:$8 sps:$4 sm:$0xff]  }
  0x15   :  { %v2754_v61 = vld [vmem:[%s6152_s0 + $0x1c0] ss:$8 sps:$4 sm:$0xff]   ;;  %v2725_v62 = vld [vmem:[%s6152_s0 + $0xd4] ss:$8 sps:$4 sm:$0xff]   ;;  %v2757_v1 = vld [vmem:[%s6152_s0 + $0x1d0] ss:$8 sps:$4 sm:$0xff]  }
  0x16   :  { %550 = vmatpush1.bf16.msra.mxu0 %v2664_v7  ;;  %2654 = vmatpush1.bf16.msra.mxu1 %v2664_v7  ;;  %v2755_v63 = vld [vmem:[%s6152_s0 + $0x1d4] ss:$8 sps:$4 sm:$0xff]   ;;  %v2731_v2 = vld [vmem:[%s6152_s0 + $0xe4] ss:$8 sps:$4 sm:$0xff]   ;;  %v2733_v4 = vld [vmem:[%s6152_s0 + $0xe0] ss:$8 sps:$4 sm:$0xff]  }
  0x17   :  { %551 = vmatprep.subr.bf16.mxu0 %v2910_v0  ;;  %2646 = vmatprep.subr.bf16.mxu1 %v2910_v0  ;;  %v2758_v3 = vld [vmem:[%s6152_s0 + $0x1e4] ss:$8 sps:$4 sm:$0xff]   ;;  %v2760_v5 = vld [vmem:[%s6152_s0 + $0x1e0] ss:$8 sps:$4 sm:$0xff]   ;;  %v2737_v6 = vld [vmem:[%s6152_s0 + $0xf4] ss:$8 sps:$4 sm:$0xff]  }
  0x18   :  { %v2761_v7 = vld [vmem:[%s6152_s0 + $0x1f4] ss:$8 sps:$4 sm:$0xff]   ;;  %v2739_v8 = vld [vmem:[%s6152_s0 + $0xf0] ss:$8 sps:$4 sm:$0xff]  }
  0x1a   :  { %552 = vmatpush1.bf16.msra.mxu0 %v2665_v9  ;;  %2655 = vmatpush1.bf16.msra.mxu1 %v2665_v9  ;;  %v2763_v9 = vld [vmem:[%s6152_s0 + $0x1f0] ss:$8 sps:$4 sm:$0xff]  }
  0x1b   :  { %553 = vmatprep.subr.bf16.mxu0 %v2910_v0  ;;  %2647 = vmatprep.subr.bf16.mxu1 %v2910_v0 }
  0x1e   :  { %554 = vmatpush1.bf16.msra.mxu0 %v2666_v10  ;;  %2656 = vmatpush1.bf16.msra.mxu1 %v2666_v10 }
  0x1f   :  { %555 = vmatprep.subr.bf16.mxu0 %v2910_v0  ;;  %2648 = vmatprep.subr.bf16.mxu1 %v2910_v0  ;;  %v2727_v0 = vld [vmem:[%s6152_s0 + $0xd0] ss:$8 sps:$4 sm:$0xff]  }
  0x22   :  { %556 = vmatpush1.bf16.msra.mxu0 %v2667_v11  ;;  %2657 = vmatpush1.bf16.msra.mxu1 %v2667_v11 }
  0x25   :  { %572 = vmatmul.mubr.bf16.vlgmr.msra.gmra.mrb[0].mxu0 %v2668_v12  ;;  %700 = vmatmul.mubr.bf16.vlgmr.msra.gmra.mrb[0].mxu1 %v2692_v14 }
  0x26   :  { %2481 = vmatprep.mubr.msk.bf16.mxu0 %vm442_vm0, %v2671_v13  ;;  %2497 = vmatprep.mubr.msk.bf16.mxu1 %vm442_vm0, %v2698_v15 }
  0x2d   :  { %580 = vmatmul.mubr.bf16.gmra.mrb[4].mxu0 %v2673_v16  ;;  %708 = vmatmul.mubr.bf16.gmra.mrb[4].mxu1 %v2700_v18 }
  0x2e   :  { %2482 = vmatprep.mubr.msk.bf16.mxu0 %vm442_vm0, %v2674_v17  ;;  %2498 = vmatprep.mubr.msk.bf16.mxu1 %vm442_vm0, %v2704_v19 }
  0x35   :  { %588 = vmatmul.mubr.bf16.gmra.mrb[8].mxu0 %v2676_v20  ;;  %716 = vmatmul.mubr.bf16.gmra.mrb[8].mxu1 %v2706_v22 }
  0x36   :  { %2483 = vmatprep.mubr.msk.bf16.mxu0 %vm442_vm0, %v2677_v21  ;;  %2499 = vmatprep.mubr.msk.bf16.mxu1 %vm442_vm0, %v2710_v23 }
  0x3d   :  { %596 = vmatmul.mubr.bf16.gmra.mrb[12].mxu0 %v2679_v24  ;;  %724 = vmatmul.mubr.bf16.gmra.mrb[12].mxu1 %v2712_v25 }
  0x3e   :  { %2484 = vmatprep.mubr.msk.bf16.mxu0 %vm442_vm0, %v2680_v26  ;;  %2500 = vmatprep.mubr.msk.bf16.mxu1 %vm442_vm0, %v2716_v27 }
  0x45   :  { %604 = vmatmul.mubr.bf16.gmra.mrb[16].mxu0 %v2682_v28  ;;  %732 = vmatmul.mubr.bf16.gmra.mrb[16].mxu1 %v2718_v29 }
  0x46   :  { %2485 = vmatprep.mubr.msk.bf16.mxu0 %vm442_vm0, %v2683_v30  ;;  %2501 = vmatprep.mubr.msk.bf16.mxu1 %vm442_vm0, %v2722_v31 }
  0x4d   :  { %612 = vmatmul.mubr.bf16.gmra.mrb[20].mxu0 %v2685_v32  ;;  %740 = vmatmul.mubr.bf16.gmra.mrb[20].mxu1 %v2724_v33 }
  0x4e   :  { %2486 = vmatprep.mubr.msk.bf16.mxu0 %vm442_vm0, %v2686_v34  ;;  %2502 = vmatprep.mubr.msk.bf16.mxu1 %vm442_vm0, %v2728_v35 }
  0x55   :  { %620 = vmatmul.mubr.bf16.gmra.mrb[24].mxu0 %v2688_v36  ;;  %748 = vmatmul.mubr.bf16.gmra.mrb[24].mxu1 %v2730_v37 }
  0x56   :  { %2487 = vmatprep.mubr.msk.bf16.mxu0 %vm442_vm0, %v2689_v38  ;;  %2503 = vmatprep.mubr.msk.bf16.mxu1 %vm442_vm0, %v2734_v39 }
  0x5d   :  { %628 = vmatmul.mubr.bf16.gmra.mrb[28].mxu0 %v2691_v40  ;;  %756 = vmatmul.mubr.bf16.gmra.mrb[28].mxu1 %v2736_v41 }
  0x5e   :  { %2488 = vmatprep.mubr.msk.bf16.mxu0 %vm442_vm0, %v2695_v42  ;;  %2504 = vmatprep.mubr.msk.bf16.mxu1 %vm442_vm0, %v2740_v43 }
  0x65   :  { %636 = vmatmul.mubr.bf16.gmra.mrb[32].mxu0 %v2697_v44  ;;  %764 = vmatmul.mubr.bf16.gmra.mrb[32].mxu1 %v2742_v45 }
  0x66   :  { %2489 = vmatprep.mubr.msk.bf16.mxu0 %vm442_vm0, %v2701_v46  ;;  %2505 = vmatprep.mubr.msk.bf16.mxu1 %vm442_vm0, %v2743_v47 }
  0x6d   :  { %644 = vmatmul.mubr.bf16.gmra.mrb[36].mxu0 %v2703_v48  ;;  %772 = vmatmul.mubr.bf16.gmra.mrb[36].mxu1 %v2745_v49 }
  0x6e   :  { %2490 = vmatprep.mubr.msk.bf16.mxu0 %vm442_vm0, %v2707_v50  ;;  %2506 = vmatprep.mubr.msk.bf16.mxu1 %vm442_vm0, %v2746_v51 }
  0x75   :  { %652 = vmatmul.mubr.bf16.gmra.mrb[40].mxu0 %v2709_v52  ;;  %780 = vmatmul.mubr.bf16.gmra.mrb[40].mxu1 %v2748_v53 }
  0x76   :  { %2491 = vmatprep.mubr.msk.bf16.mxu0 %vm442_vm0, %v2713_v54  ;;  %2507 = vmatprep.mubr.msk.bf16.mxu1 %vm442_vm0, %v2749_v55 }
  0x7d   :  { %660 = vmatmul.mubr.bf16.gmra.mrb[44].mxu0 %v2715_v56  ;;  %788 = vmatmul.mubr.bf16.gmra.mrb[44].mxu1 %v2751_v57 }
  0x7e   :  { %2492 = vmatprep.mubr.msk.bf16.mxu0 %vm442_vm0, %v2719_v58  ;;  %2508 = vmatprep.mubr.msk.bf16.mxu1 %vm442_vm0, %v2752_v59 }
  0x85   :  { %668 = vmatmul.mubr.bf16.gmra.mrb[48].mxu0 %v2721_v60  ;;  %796 = vmatmul.mubr.bf16.gmra.mrb[48].mxu1 %v2754_v61 }
  0x86   :  { %2493 = vmatprep.mubr.msk.bf16.mxu0 %vm442_vm0, %v2725_v62  ;;  %2509 = vmatprep.mubr.msk.bf16.mxu1 %vm442_vm0, %v2755_v63 }
  0x8d   :  { %676 = vmatmul.mubr.bf16.gmra.mrb[52].mxu0 %v2727_v0  ;;  %804 = vmatmul.mubr.bf16.gmra.mrb[52].mxu1 %v2757_v1 }
  0x8e   :  { %2494 = vmatprep.mubr.msk.bf16.mxu0 %vm442_vm0, %v2731_v2  ;;  %2510 = vmatprep.mubr.msk.bf16.mxu1 %vm442_vm0, %v2758_v3 }
  0x95   :  { %684 = vmatmul.mubr.bf16.gmra.mrb[56].mxu0 %v2733_v4  ;;  %812 = vmatmul.mubr.bf16.gmra.mrb[56].mxu1 %v2760_v5 }
  0x96   :  { %2495 = vmatprep.mubr.msk.bf16.mxu0 %vm442_vm0, %v2737_v6  ;;  %2511 = vmatprep.mubr.msk.bf16.mxu1 %vm442_vm0, %v2761_v7 }
  0x9d   :  { %692 = vmatmul.mubr.bf16.gmra.mrb[60].mxu0 %v2739_v8  ;;  %820 = vmatmul.mubr.bf16.gmra.mrb[60].mxu1 %v2763_v9 }
  0xf8   :  { %v573_v10 = vpop.f32.mrb[0].mxu0  ;;  %v701_v11 = vpop.f32.mrb[0].mxu1 }
  0xf9   :  { %830 = vst.msk [vmem:[#allocation2] sm:$0xff] %vm442_vm0, %v573_v10  ;;  %v575_v12 = vpop.f32.mrb[1].mxu0  ;;  %862 = vst.msk [vmem:[#allocation2 + $0x100] sm:$0xff] %vm442_vm0, %v701_v11  ;;  %v703_v13 = vpop.f32.mrb[1].mxu1 }
  0xfa   :  { %v576_v14 = vpop.f32.mrb[2].mxu0  ;;  %v704_v15 = vpop.f32.mrb[2].mxu1 }
  0xfb   :  { %831 = vst.msk [vmem:[#allocation2 + $0x8] sm:$0xff] %vm442_vm0, %v576_v14  ;;  %v578_v16 = vpop.f32.mrb[3].mxu0  ;;  %863 = vst.msk [vmem:[#allocation2 + $0x108] sm:$0xff] %vm442_vm0, %v704_v15  ;;  %v706_v17 = vpop.f32.mrb[3].mxu1 }
 0x100   :  { %v581_v18 = vpop.f32.mrb[4].mxu0  ;;  %v709_v19 = vpop.f32.mrb[4].mxu1  ;;  %v3209_v51 = vld [vmem:[#allocation2] sm:$0xff] }
 0x101   :  { %832 = vst.msk [vmem:[#allocation2 + $0x10] sm:$0xff] %vm442_vm0, %v581_v18  ;;  %v583_v20 = vpop.f32.mrb[5].mxu0  ;;  %864 = vst.msk [vmem:[#allocation2 + $0x110] sm:$0xff] %vm442_vm0, %v709_v19  ;;  %v711_v21 = vpop.f32.mrb[5].mxu1  ;;  %v962_v60 = vsel %vm442_vm0, %v3209_v51, 0.0 }
 0x102   :  { %v584_v22 = vpop.f32.mrb[6].mxu0  ;;  %v712_v23 = vpop.f32.mrb[6].mxu1  ;;  %v3207_v50 = vld [vmem:[#allocation2 + $0x8] sm:$0xff] }
 0x103   :  { %833 = vst.msk [vmem:[#allocation2 + $0x18] sm:$0xff] %vm442_vm0, %v584_v22  ;;  %v586_v24 = vpop.f32.mrb[7].mxu0  ;;  %865 = vst.msk [vmem:[#allocation2 + $0x118] sm:$0xff] %vm442_vm0, %v712_v23  ;;  %v714_v25 = vpop.f32.mrb[7].mxu1  ;;  %v963_v55 = vsel %vm442_vm0, %v3207_v50, 0.0 }
 0x104   :  { %v964_v0 = vadd.f32 %v963_v55, %v962_v60 }
 0x108   :  { %v589_v26 = vpop.f32.mrb[8].mxu0  ;;  %v717_v27 = vpop.f32.mrb[8].mxu1  ;;  %v3211_v52 = vld [vmem:[#allocation2 + $0x10] sm:$0xff] }
 0x109   :  { %834 = vst.msk [vmem:[#allocation2 + $0x20] sm:$0xff] %vm442_vm0, %v589_v26  ;;  %v591_v28 = vpop.f32.mrb[9].mxu0  ;;  %866 = vst.msk [vmem:[#allocation2 + $0x120] sm:$0xff] %vm442_vm0, %v717_v27  ;;  %v719_v29 = vpop.f32.mrb[9].mxu1  ;;  %v965_v61 = vsel %vm442_vm0, %v3211_v52, 0.0 }
 0x10a   :  { %v592_v30 = vpop.f32.mrb[10].mxu0  ;;  %v720_v31 = vpop.f32.mrb[10].mxu1  ;;  %v3223_v1 = vld [vmem:[#allocation2 + $0x18] sm:$0xff]  ;;  %v966_v2 = vadd.f32 %v965_v61, %v964_v0 }
 0x10b   :  { %835 = vst.msk [vmem:[#allocation2 + $0x28] sm:$0xff] %vm442_vm0, %v592_v30  ;;  %v594_v32 = vpop.f32.mrb[11].mxu0  ;;  %867 = vst.msk [vmem:[#allocation2 + $0x128] sm:$0xff] %vm442_vm0, %v720_v31  ;;  %v722_v33 = vpop.f32.mrb[11].mxu1  ;;  %v967_v4 = vsel %vm442_vm0, %v3223_v1, 0.0 }
 0x10c   :  { %v968_v10 = vadd.f32 %v967_v4, %v966_v2 }
 0x110   :  { %v597_v34 = vpop.f32.mrb[12].mxu0  ;;  %v725_v35 = vpop.f32.mrb[12].mxu1  ;;  %v3225_v3 = vld [vmem:[#allocation2 + $0x20] sm:$0xff] }
 0x111   :  { %836 = vst.msk [vmem:[#allocation2 + $0x30] sm:$0xff] %vm442_vm0, %v597_v34  ;;  %v599_v36 = vpop.f32.mrb[13].mxu0  ;;  %868 = vst.msk [vmem:[#allocation2 + $0x130] sm:$0xff] %vm442_vm0, %v725_v35  ;;  %v727_v37 = vpop.f32.mrb[13].mxu1  ;;  %v969_v7 = vsel %vm442_vm0, %v3225_v3, 0.0 }
 0x112   :  { %v600_v38 = vpop.f32.mrb[14].mxu0  ;;  %v728_v39 = vpop.f32.mrb[14].mxu1  ;;  %v3233_v11 = vld [vmem:[#allocation2 + $0x28] sm:$0xff]  ;;  %v970_v16 = vadd.f32 %v969_v7, %v968_v10 }
 0x113   :  { %837 = vst.msk [vmem:[#allocation2 + $0x38] sm:$0xff] %vm442_vm0, %v600_v38  ;;  %v602_v40 = vpop.f32.mrb[15].mxu0  ;;  %869 = vst.msk [vmem:[#allocation2 + $0x138] sm:$0xff] %vm442_vm0, %v728_v39  ;;  %v730_v41 = vpop.f32.mrb[15].mxu1  ;;  %v971_v18 = vsel %vm442_vm0, %v3233_v11, 0.0 }
 0x114   :  { %v972_v20 = vadd.f32 %v971_v18, %v970_v16 }
 0x118   :  { %v605_v42 = vpop.f32.mrb[16].mxu0  ;;  %v733_v43 = vpop.f32.mrb[16].mxu1  ;;  %v3237_v17 = vld [vmem:[#allocation2 + $0x30] sm:$0xff] }
 0x119   :  { %838 = vst.msk [vmem:[#allocation2 + $0x40] sm:$0xff] %vm442_vm0, %v605_v42  ;;  %v607_v44 = vpop.f32.mrb[17].mxu0  ;;  %870 = vst.msk [vmem:[#allocation2 + $0x140] sm:$0xff] %vm442_vm0, %v733_v43  ;;  %v735_v45 = vpop.f32.mrb[17].mxu1  ;;  %v973_v19 = vsel %vm442_vm0, %v3237_v17, 0.0 }
 0x11a   :  { %v608_v46 = vpop.f32.mrb[18].mxu0  ;;  %v736_v47 = vpop.f32.mrb[18].mxu1  ;;  %v3243_v21 = vld [vmem:[#allocation2 + $0x38] sm:$0xff]  ;;  %v974_v26 = vadd.f32 %v973_v19, %v972_v20 }
 0x11b   :  { %839 = vst.msk [vmem:[#allocation2 + $0x48] sm:$0xff] %vm442_vm0, %v608_v46  ;;  %v610_v48 = vpop.f32.mrb[19].mxu0  ;;  %871 = vst.msk [vmem:[#allocation2 + $0x148] sm:$0xff] %vm442_vm0, %v736_v47  ;;  %v738_v49 = vpop.f32.mrb[19].mxu1  ;;  %v975_v30 = vsel %vm442_vm0, %v3243_v21, 0.0 }
 0x11c   :  { %v976_v34 = vadd.f32 %v975_v30, %v974_v26 }
 0x120   :  { %v613_v53 = vpop.f32.mrb[20].mxu0  ;;  %v741_v54 = vpop.f32.mrb[20].mxu1  ;;  %v3247_v27 = vld [vmem:[#allocation2 + $0x40] sm:$0xff] }
 0x121   :  { %840 = vst.msk [vmem:[#allocation2 + $0x50] sm:$0xff] %vm442_vm0, %v613_v53  ;;  %v615_v56 = vpop.f32.mrb[21].mxu0  ;;  %872 = vst.msk [vmem:[#allocation2 + $0x150] sm:$0xff] %vm442_vm0, %v741_v54  ;;  %v743_v57 = vpop.f32.mrb[21].mxu1  ;;  %v977_v33 = vsel %vm442_vm0, %v3247_v27, 0.0 }
 0x122   :  { %v616_v58 = vpop.f32.mrb[22].mxu0  ;;  %v744_v59 = vpop.f32.mrb[22].mxu1  ;;  %v3255_v35 = vld [vmem:[#allocation2 + $0x48] sm:$0xff]  ;;  %v978_v36 = vadd.f32 %v977_v33, %v976_v34 }
 0x123   :  { %841 = vst.msk [vmem:[#allocation2 + $0x58] sm:$0xff] %vm442_vm0, %v616_v58  ;;  %v618_v62 = vpop.f32.mrb[23].mxu0  ;;  %873 = vst.msk [vmem:[#allocation2 + $0x158] sm:$0xff] %vm442_vm0, %v744_v59  ;;  %v746_v63 = vpop.f32.mrb[23].mxu1  ;;  %v979_v40 = vsel %vm442_vm0, %v3255_v35, 0.0 }
 0x124   :  { %v980_v48 = vadd.f32 %v979_v40, %v978_v36 }
 0x128   :  { %v621_v5 = vpop.f32.mrb[24].mxu0  ;;  %v749_v6 = vpop.f32.mrb[24].mxu1  ;;  %v3257_v37 = vld [vmem:[#allocation2 + $0x50] sm:$0xff] }
 0x129   :  { %842 = vst.msk [vmem:[#allocation2 + $0x60] sm:$0xff] %vm442_vm0, %v621_v5  ;;  %v623_v8 = vpop.f32.mrb[25].mxu0  ;;  %874 = vst.msk [vmem:[#allocation2 + $0x160] sm:$0xff] %vm442_vm0, %v749_v6  ;;  %v751_v9 = vpop.f32.mrb[25].mxu1  ;;  %v981_v45 = vsel %vm442_vm0, %v3257_v37, 0.0 }
 0x12a   :  { %v624_v12 = vpop.f32.mrb[26].mxu0  ;;  %v752_v13 = vpop.f32.mrb[26].mxu1  ;;  %v3267_v49 = vld [vmem:[#allocation2 + $0x58] sm:$0xff]  ;;  %v982_v53 = vadd.f32 %v981_v45, %v980_v48 }
 0x12b   :  { %843 = vst.msk [vmem:[#allocation2 + $0x68] sm:$0xff] %vm442_vm0, %v624_v12  ;;  %v626_v14 = vpop.f32.mrb[27].mxu0  ;;  %875 = vst.msk [vmem:[#allocation2 + $0x168] sm:$0xff] %vm442_vm0, %v752_v13  ;;  %v754_v15 = vpop.f32.mrb[27].mxu1  ;;  %v983_v55 = vsel %vm442_vm0, %v3267_v49, 0.0 }
 0x12c   :  { %v984_v61 = vadd.f32 %v983_v55, %v982_v53 }
 0x130   :  { %v629_v22 = vpop.f32.mrb[28].mxu0  ;;  %v757_v23 = vpop.f32.mrb[28].mxu1  ;;  %v3269_v54 = vld [vmem:[#allocation2 + $0x60] sm:$0xff] }
 0x131   :  { %844 = vst.msk [vmem:[#allocation2 + $0x70] sm:$0xff] %vm442_vm0, %v629_v22  ;;  %v631_v24 = vpop.f32.mrb[29].mxu0  ;;  %876 = vst.msk [vmem:[#allocation2 + $0x170] sm:$0xff] %vm442_vm0, %v757_v23  ;;  %v759_v25 = vpop.f32.mrb[29].mxu1  ;;  %v985_v58 = vsel %vm442_vm0, %v3269_v54, 0.0 }
 0x132   :  { %v632_v28 = vpop.f32.mrb[30].mxu0  ;;  %v760_v29 = vpop.f32.mrb[30].mxu1  ;;  %v3277_v62 = vld [vmem:[#allocation2 + $0x68] sm:$0xff]  ;;  %v986_v5 = vadd.f32 %v985_v58, %v984_v61 }
 0x133   :  { %845 = vst.msk [vmem:[#allocation2 + $0x78] sm:$0xff] %vm442_vm0, %v632_v28  ;;  %v634_v31 = vpop.f32.mrb[31].mxu0  ;;  %877 = vst.msk [vmem:[#allocation2 + $0x178] sm:$0xff] %vm442_vm0, %v760_v29  ;;  %v762_v32 = vpop.f32.mrb[31].mxu1  ;;  %v987_v7 = vsel %vm442_vm0, %v3277_v62, 0.0 }
 0x134   :  { %v988_v9 = vadd.f32 %v987_v7, %v986_v5 }
 0x138   :  { %v637_v38 = vpop.f32.mrb[32].mxu0  ;;  %v765_v39 = vpop.f32.mrb[32].mxu1  ;;  %v3281_v6 = vld [vmem:[#allocation2 + $0x70] sm:$0xff] }
 0x139   :  { %846 = vst.msk [vmem:[#allocation2 + $0x80] sm:$0xff] %vm442_vm0, %v637_v38  ;;  %v639_v41 = vpop.f32.mrb[33].mxu0  ;;  %878 = vst.msk [vmem:[#allocation2 + $0x180] sm:$0xff] %vm442_vm0, %v765_v39  ;;  %v767_v42 = vpop.f32.mrb[33].mxu1  ;;  %v989_v8 = vsel %vm442_vm0, %v3281_v6, 0.0 }
 0x13a   :  { %v640_v43 = vpop.f32.mrb[34].mxu0  ;;  %v768_v44 = vpop.f32.mrb[34].mxu1  ;;  %v3287_v10 = vld [vmem:[#allocation2 + $0x78] sm:$0xff]  ;;  %v990_v16 = vadd.f32 %v989_v8, %v988_v9 }
 0x13b   :  { %847 = vst.msk [vmem:[#allocation2 + $0x88] sm:$0xff] %vm442_vm0, %v640_v43  ;;  %v642_v46 = vpop.f32.mrb[35].mxu0  ;;  %879 = vst.msk [vmem:[#allocation2 + $0x188] sm:$0xff] %vm442_vm0, %v768_v44  ;;  %v770_v47 = vpop.f32.mrb[35].mxu1  ;;  %v991_v22 = vsel %vm442_vm0, %v3287_v10, 0.0 }
 0x13c   :  { %v992_v26 = vadd.f32 %v991_v22, %v990_v16 }
 0x140   :  { %v645_v56 = vpop.f32.mrb[36].mxu0  ;;  %v773_v57 = vpop.f32.mrb[36].mxu1  ;;  %v3291_v18 = vld [vmem:[#allocation2 + $0x80] sm:$0xff] }
 0x141   :  { %848 = vst.msk [vmem:[#allocation2 + $0x90] sm:$0xff] %vm442_vm0, %v645_v56  ;;  %v647_v59 = vpop.f32.mrb[37].mxu0  ;;  %880 = vst.msk [vmem:[#allocation2 + $0x190] sm:$0xff] %vm442_vm0, %v773_v57  ;;  %v775_v60 = vpop.f32.mrb[37].mxu1  ;;  %v993_v25 = vsel %vm442_vm0, %v3291_v18, 0.0 }
 0x142   :  { %v648_v63 = vpop.f32.mrb[38].mxu0  ;;  %v776_v0 = vpop.f32.mrb[38].mxu1  ;;  %v3299_v28 = vld [vmem:[#allocation2 + $0x88] sm:$0xff]  ;;  %v994_v29 = vadd.f32 %v993_v25, %v992_v26 }
 0x143   :  { %849 = vst.msk [vmem:[#allocation2 + $0x98] sm:$0xff] %vm442_vm0, %v648_v63  ;;  %v650_v2 = vpop.f32.mrb[39].mxu0  ;;  %881 = vst.msk [vmem:[#allocation2 + $0x198] sm:$0xff] %vm442_vm0, %v776_v0  ;;  %v778_v4 = vpop.f32.mrb[39].mxu1  ;;  %v995_v33 = vsel %vm442_vm0, %v3299_v28, 0.0 }
 0x144   :  { %v996_v43 = vadd.f32 %v995_v33, %v994_v29 }
 0x148   :  { %v653_v12 = vpop.f32.mrb[40].mxu0  ;;  %v781_v13 = vpop.f32.mrb[40].mxu1  ;;  %v3301_v30 = vld [vmem:[#allocation2 + $0x90] sm:$0xff] }
 0x149   :  { %850 = vst.msk [vmem:[#allocation2 + $0xa0] sm:$0xff] %vm442_vm0, %v653_v12  ;;  %v655_v14 = vpop.f32.mrb[41].mxu0  ;;  %882 = vst.msk [vmem:[#allocation2 + $0x1a0] sm:$0xff] %vm442_vm0, %v781_v13  ;;  %v783_v15 = vpop.f32.mrb[41].mxu1  ;;  %v997_v40 = vsel %vm442_vm0, %v3301_v30, 0.0 }
 0x14a   :  { %v656_v19 = vpop.f32.mrb[42].mxu0  ;;  %v784_v20 = vpop.f32.mrb[42].mxu1  ;;  %v3311_v44 = vld [vmem:[#allocation2 + $0x98] sm:$0xff]  ;;  %v998_v45 = vadd.f32 %v997_v40, %v996_v43 }
 0x14b   :  { %851 = vst.msk [vmem:[#allocation2 + $0xa8] sm:$0xff] %vm442_vm0, %v656_v19  ;;  %v658_v23 = vpop.f32.mrb[43].mxu0  ;;  %883 = vst.msk [vmem:[#allocation2 + $0x1a8] sm:$0xff] %vm442_vm0, %v784_v20  ;;  %v786_v24 = vpop.f32.mrb[43].mxu1  ;;  %v999_v47 = vsel %vm442_vm0, %v3311_v44, 0.0 }
 0x14c   :  { %v1000_v58 = vadd.f32 %v999_v47, %v998_v45 }
 0x150   :  { %v661_v31 = vpop.f32.mrb[44].mxu0  ;;  %v789_v32 = vpop.f32.mrb[44].mxu1  ;;  %v3313_v46 = vld [vmem:[#allocation2 + $0xa0] sm:$0xff] }
 0x151   :  { %852 = vst.msk [vmem:[#allocation2 + $0xb0] sm:$0xff] %vm442_vm0, %v661_v31  ;;  %v663_v34 = vpop.f32.mrb[45].mxu0  ;;  %884 = vst.msk [vmem:[#allocation2 + $0x1b0] sm:$0xff] %vm442_vm0, %v789_v32  ;;  %v791_v36 = vpop.f32.mrb[45].mxu1  ;;  %v1001_v55 = vsel %vm442_vm0, %v3313_v46, 0.0 }
 0x152   :  { %v664_v38 = vpop.f32.mrb[46].mxu0  ;;  %v792_v39 = vpop.f32.mrb[46].mxu1  ;;  %v3321_v59 = vld [vmem:[#allocation2 + $0xa8] sm:$0xff]  ;;  %v1002_v2 = vadd.f32 %v1001_v55, %v1000_v58 }
 0x153   :  { %853 = vst.msk [vmem:[#allocation2 + $0xb8] sm:$0xff] %vm442_vm0, %v664_v38  ;;  %v666_v41 = vpop.f32.mrb[47].mxu0  ;;  %885 = vst.msk [vmem:[#allocation2 + $0x1b8] sm:$0xff] %vm442_vm0, %v792_v39  ;;  %v794_v42 = vpop.f32.mrb[47].mxu1  ;;  %v1003_v5 = vsel %vm442_vm0, %v3321_v59, 0.0 }
 0x154   :  { %v1004_v8 = vadd.f32 %v1003_v5, %v1002_v2 }
 0x158   :  { %v669_v48 = vpop.f32.mrb[48].mxu0  ;;  %v797_v53 = vpop.f32.mrb[48].mxu1  ;;  %v3325_v4 = vld [vmem:[#allocation2 + $0xb0] sm:$0xff] }
 0x159   :  { %854 = vst.msk [vmem:[#allocation2 + $0xc0] sm:$0xff] %vm442_vm0, %v669_v48  ;;  %v671_v56 = vpop.f32.mrb[49].mxu0  ;;  %886 = vst.msk [vmem:[#allocation2 + $0x1c0] sm:$0xff] %vm442_vm0, %v797_v53  ;;  %v799_v57 = vpop.f32.mrb[49].mxu1  ;;  %v1005_v7 = vsel %vm442_vm0, %v3325_v4, 0.0 }
 0x15a   :  { %v672_v60 = vpop.f32.mrb[50].mxu0  ;;  %v800_v61 = vpop.f32.mrb[50].mxu1  ;;  %v3331_v9 = vld [vmem:[#allocation2 + $0xb8] sm:$0xff]  ;;  %v1006_v16 = vadd.f32 %v1005_v7, %v1004_v8 }
 0x15b   :  { %855 = vst.msk [vmem:[#allocation2 + $0xc8] sm:$0xff] %vm442_vm0, %v672_v60  ;;  %v674_v63 = vpop.f32.mrb[51].mxu0  ;;  %887 = vst.msk [vmem:[#allocation2 + $0x1c8] sm:$0xff] %vm442_vm0, %v800_v61  ;;  %v802_v0 = vpop.f32.mrb[51].mxu1  ;;  %v1007_v23 = vsel %vm442_vm0, %v3331_v9, 0.0 }
 0x15c   :  { %v1008_v29 = vadd.f32 %v1007_v23, %v1006_v16  ;;  %v3375_v23 = vld [vmem:[#allocation2 + $0x100] sm:$0xff] }
 0x160   :  { %v677_v12 = vpop.f32.mrb[52].mxu0  ;;  %v805_v13 = vpop.f32.mrb[52].mxu1  ;;  %v3335_v19 = vld [vmem:[#allocation2 + $0xc0] sm:$0xff] }
 0x161   :  { %856 = vst.msk [vmem:[#allocation2 + $0xd0] sm:$0xff] %vm442_vm0, %v677_v12  ;;  %v679_v14 = vpop.f32.mrb[53].mxu0  ;;  %888 = vst.msk [vmem:[#allocation2 + $0x1d0] sm:$0xff] %vm442_vm0, %v805_v13  ;;  %v807_v15 = vpop.f32.mrb[53].mxu1  ;;  %v1009_v26 = vsel %vm442_vm0, %v3335_v19, 0.0 }
 0x162   :  { %v680_v20 = vpop.f32.mrb[54].mxu0  ;;  %v808_v22 = vpop.f32.mrb[54].mxu1  ;;  %v3343_v31 = vld [vmem:[#allocation2 + $0xc8] sm:$0xff]  ;;  %v1010_v32 = vadd.f32 %v1009_v26, %v1008_v29 }
 0x163   :  { %857 = vst.msk [vmem:[#allocation2 + $0xd8] sm:$0xff] %vm442_vm0, %v680_v20  ;;  %v682_v24 = vpop.f32.mrb[55].mxu0  ;;  %889 = vst.msk [vmem:[#allocation2 + $0x1d8] sm:$0xff] %vm442_vm0, %v808_v22  ;;  %v810_v25 = vpop.f32.mrb[55].mxu1  ;;  %v1011_v38 = vsel %vm442_vm0, %v3343_v31, 0.0  ;;  %v3381_v29 = vld [vmem:[#allocation2 + $0x108] sm:$0xff] }
 0x164   :  { %v1012_v48 = vadd.f32 %v1011_v38, %v1010_v32 }
 0x168   :  { %v3345_v33 = vld [vmem:[#allocation2 + $0xd0] sm:$0xff]  ;;  %v685_v34 = vpop.f32.mrb[56].mxu0  ;;  %v813_v36 = vpop.f32.mrb[56].mxu1 }
 0x169   :  { %858 = vst.msk [vmem:[#allocation2 + $0xe0] sm:$0xff] %vm442_vm0, %v685_v34  ;;  %v687_v39 = vpop.f32.mrb[57].mxu0  ;;  %890 = vst.msk [vmem:[#allocation2 + $0x1e0] sm:$0xff] %vm442_vm0, %v813_v36  ;;  %v815_v40 = vpop.f32.mrb[57].mxu1  ;;  %v1013_v43 = vsel %vm442_vm0, %v3345_v33, 0.0  ;;  %v1025_v34 = vsel %vm442_vm0, %v3375_v23, 0.0 }
 0x16a   :  { %v688_v41 = vpop.f32.mrb[58].mxu0  ;;  %v816_v42 = vpop.f32.mrb[58].mxu1  ;;  %v3355_v53 = vld [vmem:[#allocation2 + $0xd8] sm:$0xff]  ;;  %v1014_v55 = vadd.f32 %v1013_v43, %v1012_v48  ;;  %v3385_v36 = vld [vmem:[#allocation2 + $0x110] sm:$0xff]  ;;  %v1027_v39 = vsel %vm442_vm0, %v3381_v29, 0.0  ;;  %v3393_v43 = vld [vmem:[#allocation2 + $0x120] sm:$0xff] }
 0x16b   :  { %859 = vst.msk [vmem:[#allocation2 + $0xe8] sm:$0xff] %vm442_vm0, %v688_v41  ;;  %v690_v45 = vpop.f32.mrb[59].mxu0  ;;  %891 = vst.msk [vmem:[#allocation2 + $0x1e8] sm:$0xff] %vm442_vm0, %v816_v42  ;;  %v818_v47 = vpop.f32.mrb[59].mxu1  ;;  %v1015_v56 = vsel %vm442_vm0, %v3355_v53, 0.0  ;;  %v3389_v40 = vld [vmem:[#allocation2 + $0x118] sm:$0xff] }
 0x16c   :  { %v1016_v2 = vadd.f32 %v1015_v56, %v1014_v55  ;;  %v1029_v42 = vsel %vm442_vm0, %v3385_v36, 0.0  ;;  %v1031_v47 = vsel %vm442_vm0, %v3389_v40, 0.0  ;;  %v3397_v48 = vld [vmem:[#allocation2 + $0x128] sm:$0xff]  ;;  %v1033_v56 = vsel %vm442_vm0, %v3393_v43, 0.0 }
 0x170   :  { %v3359_v57 = vld [vmem:[#allocation2 + $0xe0] sm:$0xff]  ;;  %v693_v58 = vpop.f32.mrb[60].mxu0  ;;  %v821_v60 = vpop.f32.mrb[60].mxu1 }
 0x171   :  { %v1017_v61 = vsel %vm442_vm0, %v3359_v57, 0.0  ;;  %860 = vst.msk [vmem:[#allocation2 + $0xf0] sm:$0xff] %vm442_vm0, %v693_v58  ;;  %v695_v63 = vpop.f32.mrb[61].mxu0  ;;  %892 = vst.msk [vmem:[#allocation2 + $0x1f0] sm:$0xff] %vm442_vm0, %v821_v60  ;;  %v823_v0 = vpop.f32.mrb[61].mxu1  ;;  %v3401_v58 = vld [vmem:[#allocation2 + $0x130] sm:$0xff] }
 0x172   :  { %v3365_v5 = vld [vmem:[#allocation2 + $0xe8] sm:$0xff]  ;;  %v696_v7 = vpop.f32.mrb[62].mxu0  ;;  %v824_v8 = vpop.f32.mrb[62].mxu1  ;;  %v1018_v14 = vadd.f32 %v1017_v61, %v1016_v2  ;;  %v1035_v61 = vsel %vm442_vm0, %v3397_v48, 0.0  ;;  %v3405_v63 = vld [vmem:[#allocation2 + $0x138] sm:$0xff]  ;;  %v1037_v2 = vsel %vm442_vm0, %v3401_v58, 0.0 }
 0x173   :  { %861 = vst.msk [vmem:[#allocation2 + $0xf8] sm:$0xff] %vm442_vm0, %v696_v7  ;;  %v698_v12 = vpop.f32.mrb[63].mxu0  ;;  %893 = vst.msk [vmem:[#allocation2 + $0x1f8] sm:$0xff] %vm442_vm0, %v824_v8  ;;  %v826_v13 = vpop.f32.mrb[63].mxu1  ;;  %v1019_v15 = vsel %vm442_vm0, %v3365_v5, 0.0  ;;  %v3409_v7 = vld [vmem:[#allocation2 + $0x140] sm:$0xff] }
 0x174   :  { %v1020_v16 = vadd.f32 %v1019_v15, %v1018_v14  ;;  %v1039_v12 = vsel %vm442_vm0, %v3405_v63, 0.0  ;;  %v3413_v13 = vld [vmem:[#allocation2 + $0x148] sm:$0xff]  ;;  %v1041_v15 = vsel %vm442_vm0, %v3409_v7, 0.0 }
 0x178   :  { %v3371_v20 = vld [vmem:[#allocation2 + $0xf0] sm:$0xff] }
 0x179   :  { %v1021_v22 = vsel %vm442_vm0, %v3371_v20, 0.0 }
 0x17a   :  { %v1022_v24 = vadd.f32 %v1021_v22, %v1020_v16  ;;  %v3377_v25 = vld [vmem:[#allocation2 + $0xf8] sm:$0xff]  ;;  %v3417_v16 = vld [vmem:[#allocation2 + $0x150] sm:$0xff] }
 0x17b   :  { %v1023_v26 = vsel %vm442_vm0, %v3377_v25, 0.0 }
 0x17c   :  { %v1024_v32 = vadd.f32 %v1023_v26, %v1022_v24  ;;  %v1043_v24 = vsel %vm442_vm0, %v3413_v13, 0.0  ;;  %v3421_v26 = vld [vmem:[#allocation2 + $0x158] sm:$0xff] }
 0x17e   :  { %v1026_v38 = vadd.f32 %v1025_v34, %v1024_v32  ;;  %v1045_v34 = vsel %vm442_vm0, %v3417_v16, 0.0 }
 0x180   :  { %v1028_v41 = vadd.f32 %v1027_v39, %v1026_v38  ;;  %v3425_v38 = vld [vmem:[#allocation2 + $0x160] sm:$0xff] }
 0x182   :  { %v1030_v45 = vadd.f32 %v1029_v42, %v1028_v41  ;;  %v1047_v41 = vsel %vm442_vm0, %v3421_v26, 0.0  ;;  %v3429_v42 = vld [vmem:[#allocation2 + $0x168] sm:$0xff] }
 0x184   :  { %v1032_v55 = vadd.f32 %v1031_v47, %v1030_v45  ;;  %v1049_v47 = vsel %vm442_vm0, %v3425_v38, 0.0 }
 0x186   :  { %v1034_v60 = vadd.f32 %v1033_v56, %v1032_v55  ;;  %v3433_v55 = vld [vmem:[#allocation2 + $0x170] sm:$0xff] }
 0x188   :  { %v1036_v0 = vadd.f32 %v1035_v61, %v1034_v60  ;;  %v1051_v60 = vsel %vm442_vm0, %v3429_v42, 0.0  ;;  %v3437_v61 = vld [vmem:[#allocation2 + $0x178] sm:$0xff] }
 0x189   :  { %6332 = vst [vmem:[#allocation3_spill] sm:$0xff] %v3437_v61 }
 0x18a   :  { %v1038_v8 = vadd.f32 %v1037_v2, %v1036_v0  ;;  %v1053_v2 = vsel %vm442_vm0, %v3433_v55, 0.0 }
 0x18c   :  { %v1040_v14 = vadd.f32 %v1039_v12, %v1038_v8  ;;  %v3441_v8 = vld [vmem:[#allocation2 + $0x180] sm:$0xff] }
 0x18d   :  { %6333 = vst [vmem:[#allocation4_spill] sm:$0xff] %v3441_v8 }
 0x18e   :  { %v1042_v22 = vadd.f32 %v1041_v15, %v1040_v14  ;;  %v1055_v14 = vsel %vm442_vm0, %v3437_v61, 0.0 }
 0x190   :  { %v1044_v32 = vadd.f32 %v1043_v24, %v1042_v22  ;;  %v3445_v22 = vld [vmem:[#allocation2 + $0x188] sm:$0xff]  ;;  %v1057_v24 = vsel %vm442_vm0, %v3441_v8, 0.0 }
 0x191   :  { %6334 = vst [vmem:[#allocation5_spill] sm:$0xff] %v3445_v22 }
 0x192   :  { %v1046_v39 = vadd.f32 %v1045_v34, %v1044_v32  ;;  %v3449_v34 = vld [vmem:[#allocation2 + $0x190] sm:$0xff] }
 0x193   :  { %6335 = vst [vmem:[#allocation6_spill] sm:$0xff] %v3449_v34 }
 0x194   :  { %v1048_v45 = vadd.f32 %v1047_v41, %v1046_v39  ;;  %v1059_v39 = vsel %vm442_vm0, %v3445_v22, 0.0 }
 0x196   :  { %v1050_v56 = vadd.f32 %v1049_v47, %v1048_v45  ;;  %v3453_v45 = vld [vmem:[#allocation2 + $0x198] sm:$0xff]  ;;  %v1061_v47 = vsel %vm442_vm0, %v3449_v34, 0.0 }
 0x197   :  { %6336 = vst [vmem:[#allocation7_spill] sm:$0xff] %v3453_v45  ;;  %v3469_v34 = vld [vmem:[#allocation2 + $0x1b8] sm:$0xff] }
 0x198   :  { %v1052_v0 = vadd.f32 %v1051_v60, %v1050_v56  ;;  %v3457_v60 = vld [vmem:[#allocation2 + $0x1a0] sm:$0xff]  ;;  %6340 = vst [vmem:[#allocation11_spill] sm:$0xff] %v3469_v34 }
 0x199   :  { %6337 = vst [vmem:[#allocation8_spill] sm:$0xff] %v3457_v60 }
 0x19a   :  { %v1054_v12 = vadd.f32 %v1053_v2, %v1052_v0  ;;  %v1063_v0 = vsel %vm442_vm0, %v3453_v45, 0.0  ;;  %v3473_v45 = vld [vmem:[#allocation2 + $0x1c0] sm:$0xff] }
 0x19b   :  { %6341 = vst [vmem:[#allocation12_spill] sm:$0xff] %v3473_v45 }
 0x19c   :  { %v1056_v15 = vadd.f32 %v1055_v14, %v1054_v12  ;;  %v3461_v12 = vld [vmem:[#allocation2 + $0x1a8] sm:$0xff]  ;;  %v1065_v14 = vsel %vm442_vm0, %v3457_v60, 0.0 }
 0x19d   :  { %6338 = vst [vmem:[#allocation9_spill] sm:$0xff] %v3461_v12  ;;  %v3477_v60 = vld [vmem:[#allocation2 + $0x1c8] sm:$0xff] }
 0x19e   :  { %v1058_v32 = vadd.f32 %v1057_v24, %v1056_v15  ;;  %v3465_v24 = vld [vmem:[#allocation2 + $0x1b0] sm:$0xff]  ;;  %6342 = vst [vmem:[#allocation13_spill] sm:$0xff] %v3477_v60 }
 0x19f   :  { %6339 = vst [vmem:[#allocation10_spill] sm:$0xff] %v3465_v24 }
 0x1a0   :  { %v1060_v41 = vadd.f32 %v1059_v39, %v1058_v32  ;;  %v1067_v32 = vsel %vm442_vm0, %v3461_v12, 0.0  ;;  %v3481_v12 = vld [vmem:[#allocation2 + $0x1d0] sm:$0xff] }
 0x1a1   :  { %6343 = vst [vmem:[#allocation14_spill] sm:$0xff] %v3481_v12 }
 0x1a2   :  { %v1062_v56 = vadd.f32 %v1061_v47, %v1060_v41  ;;  %v1069_v41 = vsel %vm442_vm0, %v3465_v24, 0.0  ;;  %v3485_v24 = vld [vmem:[#allocation2 + $0x1d8] sm:$0xff] }
 0x1a3   :  { %6344 = vst [vmem:[#allocation15_spill] sm:$0xff] %v3485_v24 }
 0x1a4   :  { %v1064_v2 = vadd.f32 %v1063_v0, %v1062_v56  ;;  %v1071_v56 = vsel %vm442_vm0, %v3469_v34, 0.0  ;;  %v3491_v34 = vld [vmem:[#allocation2 + $0x1e0] sm:$0xff] }
 0x1a5   :  { %6345 = vst [vmem:[#allocation16_spill] sm:$0xff] %v3491_v34 }
 0x1a6   :  { %v1066_v15 = vadd.f32 %v1065_v14, %v1064_v2  ;;  %v1073_v2 = vsel %vm442_vm0, %v3473_v45, 0.0  ;;  %v3495_v45 = vld [vmem:[#allocation2 + $0x1e8] sm:$0xff] }
 0x1a7   :  { %6346 = vst [vmem:[#allocation17_spill] sm:$0xff] %v3495_v45 }
 0x1a8   :  { %v1068_v39 = vadd.f32 %v1067_v32, %v1066_v15  ;;  %v1075_v15 = vsel %vm442_vm0, %v3477_v60, 0.0  ;;  %v3497_v60 = vld [vmem:[#allocation2 + $0x1f0] sm:$0xff] }
 0x1a9   :  { %6347 = vst [vmem:[#allocation18_spill] sm:$0xff] %v3497_v60 }
 0x1aa   :  { %v1070_v47 = vadd.f32 %v1069_v41, %v1068_v39  ;;  %v1077_v39 = vsel %vm442_vm0, %v3481_v12, 0.0 }
 0x1ac   :  { %v1072_v0 = vadd.f32 %v1071_v56, %v1070_v47  ;;  %v1079_v47 = vsel %vm442_vm0, %v3485_v24, 0.0  ;;  %v3503_v24 = vld [vmem:[#allocation2 + $0x1f8] sm:$0xff] }
 0x1ad   :  { %6348 = vst [vmem:[#allocation19_spill] sm:$0xff] %v3503_v24 }
 0x1ae   :  { %v1074_v14 = vadd.f32 %v1073_v2, %v1072_v0  ;;  %v1081_v0 = vsel %vm442_vm0, %v3491_v34, 0.0 }
 0x1b0   :  { %v1076_v32 = vadd.f32 %v1075_v15, %v1074_v14  ;;  %v1083_v14 = vsel %vm442_vm0, %v3495_v45, 0.0 }
 0x1b2   :  { %v1078_v41 = vadd.f32 %v1077_v39, %v1076_v32  ;;  %v1085_v32 = vsel %vm442_vm0, %v3497_v60, 0.0 }
 0x1b4   :  { %v1080_v56 = vadd.f32 %v1079_v47, %v1078_v41  ;;  %v1087_v41 = vsel %vm442_vm0, %v3503_v24, 0.0 }
 0x1b6   :  { %v1082_v2 = vadd.f32 %v1081_v0, %v1080_v56 }
 0x1b8   :  { %v1084_v15 = vadd.f32 %v1083_v14, %v1082_v2 }
 0x1ba   :  { %v1086_v39 = vadd.f32 %v1085_v32, %v1084_v15 }
 0x1bc   :  { %v1088_v47 = vadd.f32 %v1087_v41, %v1086_v39 }
 0x1be   :  { %v1089_v34 = vrot.slane %v1088_v47, 4 }
 0x1c0   :  { %v1090_v56 = vadd.f32 %v1089_v34, %v1088_v47 }
 0x1c2   :  { %v1091_v0 = vrot.slane %v1090_v56, 2 }
 0x1c4   :  { %v1092_v12 = vadd.f32 %v1091_v0, %v1090_v56 }
 0x1c6   :  { %v1093_v22 = vrot.slane %v1092_v12, 1 }
 0x1c8   :  { %v1094_v8 = vadd.f32 %v1093_v22, %v1092_v12 }
 0x1ca   :  { %v3507_v61 = vmul.f32 0.001953125, %v1094_v8 }
 0x1cc   :  { %v1097_v2 = vsub.f32 %v3209_v51, %v3507_v61  ;;  %v1098_v14 = vsub.f32 %v3207_v50, %v3507_v61  ;;  %v1099_v15 = vsub.f32 %v3211_v52, %v3507_v61  ;;  %v1100_v32 = vsub.f32 %v3223_v1, %v3507_v61 }
 0x1cd   :  { %v1101_v41 = vsub.f32 %v3225_v3, %v3507_v61  ;;  %v1102_v8 = vsub.f32 %v3233_v11, %v3507_v61  ;;  %v1103_v52 = vsub.f32 %v3237_v17, %v3507_v61  ;;  %v1104_v3 = vsub.f32 %v3243_v21, %v3507_v61 }
 0x1ce   :  { %v1161_v39 = vmul.f32 %v1097_v2, %v1097_v2  ;;  %v1162_v34 = vmul.f32 %v1098_v14, %v1098_v14  ;;  %v1163_v22 = vmul.f32 %v1099_v15, %v1099_v15  ;;  %v1164_v12 = vmul.f32 %v1100_v32, %v1100_v32 }
 0x1cf   :  { %v1165_v56 = vmul.f32 %v1101_v41, %v1101_v41  ;;  %v1166_v2 = vmul.f32 %v1102_v8, %v1102_v8  ;;  %v1105_v15 = vsub.f32 %v3247_v27, %v3507_v61  ;;  %v1167_v32 = vmul.f32 %v1103_v52, %v1103_v52 }
 0x1d0   :  { %v1225_v51 = vsel %vm442_vm0, %v1161_v39, 0.0  ;;  %v1226_v50 = vsel %vm442_vm0, %v1162_v34, 0.0  ;;  %v1228_v1 = vsel %vm442_vm0, %v1163_v22, 0.0  ;;  %v1230_v14 = vsel %vm442_vm0, %v1164_v12, 0.0 }
 0x1d1   :  { %v1227_v47 = vadd.f32 %v1226_v50, %v1225_v51  ;;  %v1232_v39 = vsel %vm442_vm0, %v1165_v56, 0.0  ;;  %v1106_v17 = vsub.f32 %v3255_v35, %v3507_v61  ;;  %v1168_v41 = vmul.f32 %v1104_v3, %v1104_v3 }
 0x1d2   :  { %v1234_v22 = vsel %vm442_vm0, %v1166_v2, 0.0  ;;  %v1107_v21 = vsub.f32 %v3257_v37, %v3507_v61  ;;  %v1169_v8 = vmul.f32 %v1105_v15, %v1105_v15  ;;  %v1236_v12 = vsel %vm442_vm0, %v1167_v32, 0.0 }
 0x1d3   :  { %v1229_v0 = vadd.f32 %v1228_v1, %v1227_v47  ;;  %v1108_v27 = vsub.f32 %v3267_v49, %v3507_v61  ;;  %v1170_v47 = vmul.f32 %v1106_v17, %v1106_v17  ;;  %v1238_v52 = vsel %vm442_vm0, %v1168_v41, 0.0 }
 0x1d4   :  { %v1109_v35 = vsub.f32 %v3269_v54, %v3507_v61  ;;  %v1171_v1 = vmul.f32 %v1107_v21, %v1107_v21  ;;  %v1110_v37 = vsub.f32 %v3277_v62, %v3507_v61  ;;  %v1111_v49 = vsub.f32 %v3281_v6, %v3507_v61 }
 0x1d5   :  { %v1231_v11 = vadd.f32 %v1230_v14, %v1229_v0  ;;  %v1240_v0 = vsel %vm442_vm0, %v1169_v8, 0.0  ;;  %v1172_v2 = vmul.f32 %v1108_v27, %v1108_v27  ;;  %v1242_v14 = vsel %vm442_vm0, %v1170_v47, 0.0 }
 0x1d6   :  { %v1173_v15 = vmul.f32 %v1109_v35, %v1109_v35  ;;  %v1244_v32 = vsel %vm442_vm0, %v1171_v1, 0.0  ;;  %v1112_v54 = vsub.f32 %v3287_v10, %v3507_v61  ;;  %v1113_v62 = vsub.f32 %v3291_v18, %v3507_v61 }
 0x1d7   :  { %v1233_v34 = vadd.f32 %v1232_v39, %v1231_v11  ;;  %v1246_v17 = vsel %vm442_vm0, %v1172_v2, 0.0  ;;  %v1114_v6 = vsub.f32 %v3299_v28, %v3507_v61  ;;  %v1115_v10 = vsub.f32 %v3301_v30, %v3507_v61 }
 0x1d8   :  { %v1176_v8 = vmul.f32 %v1112_v54, %v1112_v54  ;;  %v1177_v27 = vmul.f32 %v1113_v62, %v1113_v62 }
 0x1d9   :  { %v1235_v51 = vadd.f32 %v1234_v22, %v1233_v34  ;;  %v1174_v34 = vmul.f32 %v1110_v37, %v1110_v37  ;;  %v1175_v22 = vmul.f32 %v1111_v49, %v1111_v49  ;;  %v1178_v35 = vmul.f32 %v1114_v6, %v1114_v6 }
 0x1da   :  { %v1254_v1 = vsel %vm442_vm0, %v1176_v8, 0.0  ;;  %v1179_v37 = vmul.f32 %v1115_v10, %v1115_v10  ;;  %v1256_v2 = vsel %vm442_vm0, %v1177_v27, 0.0 }
 0x1db   :  { %v1237_v50 = vadd.f32 %v1236_v12, %v1235_v51  ;;  %v1248_v51 = vsel %vm442_vm0, %v1173_v15, 0.0  ;;  %v1250_v12 = vsel %vm442_vm0, %v1174_v34, 0.0  ;;  %v1252_v47 = vsel %vm442_vm0, %v1175_v22, 0.0 }
 0x1dc   :  { %v1258_v15 = vsel %vm442_vm0, %v1178_v35, 0.0  ;;  %v1260_v34 = vsel %vm442_vm0, %v1179_v37, 0.0 }
 0x1dd   :  { %v1239_v56 = vadd.f32 %v1238_v52, %v1237_v50 }
 0x1df   :  { %v1241_v3 = vadd.f32 %v1240_v0, %v1239_v56  ;;  %v1116_v56 = vsub.f32 %v3311_v44, %v3507_v61 }
 0x1e1   :  { %v1243_v11 = vadd.f32 %v1242_v14, %v1241_v3  ;;  %v1117_v3 = vsub.f32 %v3313_v46, %v3507_v61  ;;  %v1180_v49 = vmul.f32 %v1116_v56, %v1116_v56 }
 0x1e3   :  { %v1245_v39 = vadd.f32 %v1244_v32, %v1243_v11  ;;  %v1118_v11 = vsub.f32 %v3321_v59, %v3507_v61  ;;  %v1181_v54 = vmul.f32 %v1117_v3, %v1117_v3  ;;  %v1262_v22 = vsel %vm442_vm0, %v1180_v49, 0.0 }
 0x1e5   :  { %v1247_v41 = vadd.f32 %v1246_v17, %v1245_v39  ;;  %v1119_v39 = vsub.f32 %v3325_v4, %v3507_v61  ;;  %v1182_v62 = vmul.f32 %v1118_v11, %v1118_v11  ;;  %v1264_v8 = vsel %vm442_vm0, %v1181_v54, 0.0 }
 0x1e7   :  { %v1249_v21 = vadd.f32 %v1248_v51, %v1247_v41  ;;  %v1120_v41 = vsub.f32 %v3331_v9, %v3507_v61  ;;  %v1183_v6 = vmul.f32 %v1119_v39, %v1119_v39  ;;  %v1266_v27 = vsel %vm442_vm0, %v1182_v62, 0.0 }
 0x1e9   :  { %v1251_v50 = vadd.f32 %v1250_v12, %v1249_v21  ;;  %v1121_v21 = vsub.f32 %v3335_v19, %v3507_v61  ;;  %v1184_v10 = vmul.f32 %v1120_v41, %v1120_v41  ;;  %v1268_v35 = vsel %vm442_vm0, %v1183_v6, 0.0 }
 0x1eb   :  { %v1253_v52 = vadd.f32 %v1252_v47, %v1251_v50  ;;  %v1122_v50 = vsub.f32 %v3343_v31, %v3507_v61  ;;  %v1185_v56 = vmul.f32 %v1121_v21, %v1121_v21  ;;  %v1270_v37 = vsel %vm442_vm0, %v1184_v10, 0.0 }
 0x1ed   :  { %v1255_v0 = vadd.f32 %v1254_v1, %v1253_v52  ;;  %v1123_v52 = vsub.f32 %v3345_v33, %v3507_v61  ;;  %v1186_v3 = vmul.f32 %v1122_v50, %v1122_v50  ;;  %v1272_v49 = vsel %vm442_vm0, %v1185_v56, 0.0 }
 0x1ef   :  { %v1257_v14 = vadd.f32 %v1256_v2, %v1255_v0  ;;  %v1124_v0 = vsub.f32 %v3355_v53, %v3507_v61  ;;  %v1187_v11 = vmul.f32 %v1123_v52, %v1123_v52  ;;  %v1274_v54 = vsel %vm442_vm0, %v1186_v3, 0.0 }
 0x1f1   :  { %v1259_v32 = vadd.f32 %v1258_v15, %v1257_v14  ;;  %v1125_v14 = vsub.f32 %v3359_v57, %v3507_v61  ;;  %v1188_v39 = vmul.f32 %v1124_v0, %v1124_v0  ;;  %v1276_v62 = vsel %vm442_vm0, %v1187_v11, 0.0 }
 0x1f3   :  { %v1261_v17 = vadd.f32 %v1260_v34, %v1259_v32  ;;  %v1126_v32 = vsub.f32 %v3365_v5, %v3507_v61  ;;  %v1189_v41 = vmul.f32 %v1125_v14, %v1125_v14  ;;  %v1278_v6 = vsel %vm442_vm0, %v1188_v39, 0.0 }
 0x1f5   :  { %v1263_v51 = vadd.f32 %v1262_v22, %v1261_v17  ;;  %v1127_v17 = vsub.f32 %v3371_v20, %v3507_v61  ;;  %v1190_v21 = vmul.f32 %v1126_v32, %v1126_v32  ;;  %v1280_v10 = vsel %vm442_vm0, %v1189_v41, 0.0 }
 0x1f7   :  { %v1265_v12 = vadd.f32 %v1264_v8, %v1263_v51  ;;  %v1128_v51 = vsub.f32 %v3377_v25, %v3507_v61  ;;  %v1191_v50 = vmul.f32 %v1127_v17, %v1127_v17  ;;  %v1282_v56 = vsel %vm442_vm0, %v1190_v21, 0.0 }
 0x1f9   :  { %v1267_v47 = vadd.f32 %v1266_v27, %v1265_v12  ;;  %v1129_v12 = vsub.f32 %v3375_v23, %v3507_v61  ;;  %v1192_v52 = vmul.f32 %v1128_v51, %v1128_v51  ;;  %v1284_v3 = vsel %vm442_vm0, %v1191_v50, 0.0 }
 0x1fb   :  { %v1269_v1 = vadd.f32 %v1268_v35, %v1267_v47  ;;  %v1130_v47 = vsub.f32 %v3381_v29, %v3507_v61  ;;  %v1193_v0 = vmul.f32 %v1129_v12, %v1129_v12  ;;  %v1286_v11 = vsel %vm442_vm0, %v1192_v52, 0.0 }
 0x1fd   :  { %v1271_v2 = vadd.f32 %v1270_v37, %v1269_v1  ;;  %v1131_v1 = vsub.f32 %v3385_v36, %v3507_v61  ;;  %v1194_v14 = vmul.f32 %v1130_v47, %v1130_v47  ;;  %v1288_v39 = vsel %vm442_vm0, %v1193_v0, 0.0 }
 0x1ff   :  { %v1273_v15 = vadd.f32 %v1272_v49, %v1271_v2  ;;  %v1132_v2 = vsub.f32 %v3389_v40, %v3507_v61  ;;  %v1195_v32 = vmul.f32 %v1131_v1, %v1131_v1  ;;  %v1290_v41 = vsel %vm442_vm0, %v1194_v14, 0.0 }
 0x201   :  { %v1275_v34 = vadd.f32 %v1274_v54, %v1273_v15  ;;  %v1133_v15 = vsub.f32 %v3393_v43, %v3507_v61  ;;  %v1196_v17 = vmul.f32 %v1132_v2, %v1132_v2  ;;  %v1292_v21 = vsel %vm442_vm0, %v1195_v32, 0.0 }
 0x203   :  { %v1277_v22 = vadd.f32 %v1276_v62, %v1275_v34  ;;  %v1134_v34 = vsub.f32 %v3397_v48, %v3507_v61  ;;  %v1197_v51 = vmul.f32 %v1133_v15, %v1133_v15  ;;  %v1294_v50 = vsel %vm442_vm0, %v1196_v17, 0.0 }
 0x205   :  { %v1279_v8 = vadd.f32 %v1278_v6, %v1277_v22  ;;  %v1135_v22 = vsub.f32 %v3401_v58, %v3507_v61  ;;  %v1198_v12 = vmul.f32 %v1134_v34, %v1134_v34  ;;  %v1296_v52 = vsel %vm442_vm0, %v1197_v51, 0.0 }
 0x207   :  { %v1281_v27 = vadd.f32 %v1280_v10, %v1279_v8  ;;  %v1136_v8 = vsub.f32 %v3405_v63, %v3507_v61  ;;  %v1199_v47 = vmul.f32 %v1135_v22, %v1135_v22  ;;  %v1298_v0 = vsel %vm442_vm0, %v1198_v12, 0.0 }
 0x209   :  { %v1283_v35 = vadd.f32 %v1282_v56, %v1281_v27  ;;  %v1137_v27 = vsub.f32 %v3409_v7, %v3507_v61  ;;  %v1200_v1 = vmul.f32 %v1136_v8, %v1136_v8  ;;  %v1300_v14 = vsel %vm442_vm0, %v1199_v47, 0.0 }
 0x20b   :  { %v1285_v37 = vadd.f32 %v1284_v3, %v1283_v35  ;;  %v1138_v35 = vsub.f32 %v3413_v13, %v3507_v61  ;;  %v1201_v2 = vmul.f32 %v1137_v27, %v1137_v27  ;;  %v1302_v32 = vsel %vm442_vm0, %v1200_v1, 0.0 }
 0x20d   :  { %v1287_v49 = vadd.f32 %v1286_v11, %v1285_v37  ;;  %v1139_v37 = vsub.f32 %v3417_v16, %v3507_v61  ;;  %v1202_v15 = vmul.f32 %v1138_v35, %v1138_v35  ;;  %v1304_v17 = vsel %vm442_vm0, %v1201_v2, 0.0  ;;  %v6350_v35 = vld [vmem:[#allocation4_spill] sm:$0xff]  ;;  %v6351_v2 = vld [vmem:[#allocation5_spill] sm:$0xff] }
 0x20e   :  { %v1145_v1 = vsub.f32 %v6350_v35, %v3507_v61 }
 0x20f   :  { %v1289_v54 = vadd.f32 %v1288_v39, %v1287_v49  ;;  %v1140_v49 = vsub.f32 %v3421_v26, %v3507_v61  ;;  %v1203_v34 = vmul.f32 %v1139_v37, %v1139_v37  ;;  %v1306_v51 = vsel %vm442_vm0, %v1202_v15, 0.0 }
 0x211   :  { %v1291_v62 = vadd.f32 %v1290_v41, %v1289_v54  ;;  %v1141_v54 = vsub.f32 %v3425_v38, %v3507_v61  ;;  %v1204_v22 = vmul.f32 %v1140_v49, %v1140_v49  ;;  %v1308_v12 = vsel %vm442_vm0, %v1203_v34, 0.0 }
 0x213   :  { %v1293_v6 = vadd.f32 %v1292_v21, %v1291_v62  ;;  %v1142_v62 = vsub.f32 %v3429_v42, %v3507_v61  ;;  %v1205_v8 = vmul.f32 %v1141_v54, %v1141_v54  ;;  %v1209_v54 = vmul.f32 %v1145_v1, %v1145_v1 }
 0x215   :  { %v1295_v10 = vadd.f32 %v1294_v50, %v1293_v6  ;;  %v1143_v6 = vsub.f32 %v3433_v55, %v3507_v61  ;;  %v1206_v47 = vmul.f32 %v1142_v62, %v1142_v62 }
 0x217   :  { %v1297_v56 = vadd.f32 %v1296_v52, %v1295_v10  ;;  %v6349_v10 = vld [vmem:[#allocation3_spill] sm:$0xff]  ;;  %v1310_v52 = vsel %vm442_vm0, %v1204_v22, 0.0  ;;  %v1314_v49 = vsel %vm442_vm0, %v1206_v47, 0.0  ;;  %v6355_v47 = vld [vmem:[#allocation9_spill] sm:$0xff] }
 0x218   :  { %v1144_v27 = vsub.f32 %v6349_v10, %v3507_v61 }
 0x219   :  { %v1299_v3 = vadd.f32 %v1298_v0, %v1297_v56  ;;  %v1207_v0 = vmul.f32 %v1143_v6, %v1143_v6  ;;  %v6354_v6 = vld [vmem:[#allocation8_spill] sm:$0xff] }
 0x21b   :  { %v1301_v11 = vadd.f32 %v1300_v14, %v1299_v3  ;;  %v1312_v3 = vsel %vm442_vm0, %v1205_v8, 0.0  ;;  %v1146_v14 = vsub.f32 %v6351_v2, %v3507_v61  ;;  %v1316_v34 = vsel %vm442_vm0, %v1207_v0, 0.0 }
 0x21c   :  { %v1149_v8 = vsub.f32 %v6354_v6, %v3507_v61 }
 0x21d   :  { %v1303_v39 = vadd.f32 %v1302_v32, %v1301_v11  ;;  %v1208_v11 = vmul.f32 %v1144_v27, %v1144_v27  ;;  %v6352_v32 = vld [vmem:[#allocation6_spill] sm:$0xff]  ;;  %v1210_v22 = vmul.f32 %v1146_v14, %v1146_v14 }
 0x21e   :  { %v1213_v14 = vmul.f32 %v1149_v8, %v1149_v8 }
 0x21f   :  { %v1305_v41 = vadd.f32 %v1304_v17, %v1303_v39  ;;  %v1147_v39 = vsub.f32 %v6352_v32, %v3507_v61  ;;  %v1322_v1 = vsel %vm442_vm0, %v1210_v22, 0.0 }
 0x220   :  { %v1328_v22 = vsel %vm442_vm0, %v1213_v14, 0.0 }
 0x221   :  { %v1307_v21 = vadd.f32 %v1306_v51, %v1305_v41  ;;  %v6353_v41 = vld [vmem:[#allocation7_spill] sm:$0xff]  ;;  %v1318_v51 = vsel %vm442_vm0, %v1208_v11, 0.0 }
 0x222   :  { %v1148_v62 = vsub.f32 %v6353_v41, %v3507_v61 }
 0x223   :  { %v1309_v50 = vadd.f32 %v1308_v12, %v1307_v21  ;;  %v1211_v12 = vmul.f32 %v1147_v39, %v1147_v39 }
 0x225   :  { %v1311_v56 = vadd.f32 %v1310_v52, %v1309_v50  ;;  %v1320_v50 = vsel %vm442_vm0, %v1209_v54, 0.0  ;;  %v1150_v52 = vsub.f32 %v6355_v47, %v3507_v61  ;;  %v1324_v11 = vsel %vm442_vm0, %v1211_v12, 0.0 }
 0x227   :  { %v1313_v37 = vadd.f32 %v1312_v3, %v1311_v56  ;;  %v1212_v56 = vmul.f32 %v1148_v62, %v1148_v62  ;;  %v6356_v3 = vld [vmem:[#allocation10_spill] sm:$0xff] }
 0x229   :  { %v1315_v15 = vadd.f32 %v1314_v49, %v1313_v37  ;;  %v1151_v37 = vsub.f32 %v6356_v3, %v3507_v61  ;;  %v1326_v54 = vsel %vm442_vm0, %v1212_v56, 0.0 }
 0x22b   :  { %v1317_v17 = vadd.f32 %v1316_v34, %v1315_v15  ;;  %v6357_v15 = vld [vmem:[#allocation11_spill] sm:$0xff]  ;;  %v1214_v34 = vmul.f32 %v1150_v52, %v1150_v52 }
 0x22c   :  { %v1152_v39 = vsub.f32 %v6357_v15, %v3507_v61 }
 0x22d   :  { %v1319_v21 = vadd.f32 %v1318_v51, %v1317_v17  ;;  %v6358_v51 = vld [vmem:[#allocation12_spill] sm:$0xff]  ;;  %v1330_v12 = vsel %vm442_vm0, %v1214_v34, 0.0 }
 0x22e   :  { %v1153_v62 = vsub.f32 %v6358_v51, %v3507_v61 }
 0x22f   :  { %v1321_v27 = vadd.f32 %v1320_v50, %v1319_v21  ;;  %v1215_v21 = vmul.f32 %v1151_v37, %v1151_v37 }
 0x230   :  { %v1217_v15 = vmul.f32 %v1153_v62, %v1153_v62  ;;  %v1158_v62 = vsub.f32 %v3495_v45, %v3507_v61 }
 0x231   :  { %v1323_v0 = vadd.f32 %v1322_v1, %v1321_v27  ;;  %v6359_v27 = vld [vmem:[#allocation13_spill] sm:$0xff]  ;;  %v1216_v1 = vmul.f32 %v1152_v39, %v1152_v39  ;;  %v1332_v56 = vsel %vm442_vm0, %v1215_v21, 0.0 }
 0x232   :  { %v1154_v8 = vsub.f32 %v6359_v27, %v3507_v61  ;;  %v1336_v34 = vsel %vm442_vm0, %v1217_v15, 0.0 }
 0x233   :  { %v1325_v49 = vadd.f32 %v1324_v11, %v1323_v0  ;;  %v6360_v11 = vld [vmem:[#allocation14_spill] sm:$0xff]  ;;  %v1334_v14 = vsel %vm442_vm0, %v1216_v1, 0.0 }
 0x234   :  { %v1155_v52 = vsub.f32 %v6360_v11, %v3507_v61  ;;  %v1218_v51 = vmul.f32 %v1154_v8, %v1154_v8  ;;  %v1159_v8 = vsub.f32 %v3497_v60, %v3507_v61 }
 0x235   :  { %v1327_v17 = vadd.f32 %v1326_v54, %v1325_v49  ;;  %v6361_v54 = vld [vmem:[#allocation15_spill] sm:$0xff] }
 0x236   :  { %v1156_v37 = vsub.f32 %v6361_v54, %v3507_v61  ;;  %v1219_v27 = vmul.f32 %v1155_v52, %v1155_v52  ;;  %v1338_v21 = vsel %vm442_vm0, %v1218_v51, 0.0  ;;  %v1160_v52 = vsub.f32 %v3503_v24, %v3507_v61 }
 0x237   :  { %v1329_v50 = vadd.f32 %v1328_v22, %v1327_v17  ;;  %v6362_v22 = vld [vmem:[#allocation16_spill] sm:$0xff] }
 0x238   :  { %v1157_v39 = vsub.f32 %v6362_v22, %v3507_v61  ;;  %v1340_v1 = vsel %vm442_vm0, %v1219_v27, 0.0  ;;  %v1224_v51 = vmul.f32 %v1160_v52, %v1160_v52 }
 0x239   :  { %v1331_v0 = vadd.f32 %v1330_v12, %v1329_v50  ;;  %v1220_v12 = vmul.f32 %v1156_v37, %v1156_v37 }
 0x23a   :  { %v1350_v27 = vsel %vm442_vm0, %v1224_v51, 0.0  ;;  %v2894_v51 = vld [vmem:[#allocation2] sm:$0xff] }
 0x23b   :  { %v1333_v49 = vadd.f32 %v1332_v56, %v1331_v0  ;;  %v1221_v56 = vmul.f32 %v1157_v39, %v1157_v39  ;;  %v1342_v15 = vsel %vm442_vm0, %v1220_v12, 0.0 }
 0x23d   :  { %v1335_v17 = vadd.f32 %v1334_v14, %v1333_v49  ;;  %v1222_v14 = vmul.f32 %v1158_v62, %v1158_v62  ;;  %v1344_v37 = vsel %vm442_vm0, %v1221_v56, 0.0  ;;  %v1367_v56 = vlaneseq }
 0x23f   :  { %v1337_v50 = vadd.f32 %v1336_v34, %v1335_v17  ;;  %v1223_v34 = vmul.f32 %v1159_v8, %v1159_v8  ;;  %v3701_v52 = vshrl.u32 %v1367_v56, 7 }
 0x241   :  { %v1339_v0 = vadd.f32 %v1338_v21, %v1337_v50  ;;  %v1346_v50 = vsel %vm442_vm0, %v1222_v14, 0.0  ;;  %v1348_v39 = vsel %vm442_vm0, %v1223_v34, 0.0  ;;  %v6187_v14 = vsub.s32 0, %v3701_v52 }
 0x243   :  { %v1341_v49 = vadd.f32 %v1340_v1, %v1339_v0 }
 0x245   :  { %v1343_v17 = vadd.f32 %v1342_v15, %v1341_v49 }
 0x247   :  { %v1345_v45 = vadd.f32 %v1344_v37, %v1343_v17  ;;  %v2906_v37 = vld [vmem:[#allocation2 + $0x60] sm:$0xff] }
 0x249   :  { %v1347_v21 = vadd.f32 %v1346_v50, %v1345_v45  ;;  %v1361_v45 = vld [vmem:[%s6153_s2] sm:$0x1] }
 0x24b   :  { %v1349_v60 = vadd.f32 %v1348_v39, %v1347_v21  ;;  %v2895_v21 = vld [vmem:[#allocation2 + $0x8] sm:$0xff] }
 0x24d   :  { %v1351_v0 = vadd.f32 %v1350_v27, %v1349_v60  ;;  %v2896_v27 = vld [vmem:[#allocation2 + $0x10] sm:$0xff] }
 0x24f   :  { %v1352_v1 = vrot.slane %v1351_v0, 4 }
 0x251   :  { %v1353_v24 = vadd.f32 %v1352_v1, %v1351_v0 }
 0x253   :  { %v1354_v62 = vrot.slane %v1353_v24, 2 }
 0x255   :  { %v1355_v22 = vadd.f32 %v1354_v62, %v1353_v24  ;;  %v3710_v24 = vld [vmem:[%s6154_s3] sm:$0x1] }
 0x256   :  { %v2898_v62 = vld [vmem:[#allocation2 + $0x20] sm:$0xff] }
 0x257   :  { %v1356_v12 = vrot.slane %v1355_v22, 1 }
 0x259   :  { %v1357_v49 = vadd.f32 %v1356_v12, %v1355_v22 }
 0x25b   :  { %v1358_v8 = vmul.f32 0.001953125, %v1357_v49  ;;  %v2899_v49 = vld [vmem:[#allocation2 + $0x28] sm:$0xff] }
 0x25d   :  { %v1359_v15 = vadd.f32 1e-05, %v1358_v8 }
 0x25f   :  { %2764 = vrsqrt.f32 %v1359_v15  ;;  %v2900_v15 = vld [vmem:[#allocation2 + $0x30] sm:$0xff] }
 0x269   :  { %v2765_v17 = vpop.eup %2764 }
 0x26a   :  { %v1362_v60 = vmul.f32 %v2765_v17, %v1361_v45  ;;  %v2901_v45 = vld [vmem:[#allocation2 + $0x38] sm:$0xff] }
 0x26c   :  { %v3713_v22 = vmul.f32 %v1362_v60, %v3507_v61  ;;  %v3717_v34 = vrot.slane %v1362_v60, %v6187_v14  ;;  %v2897_v61 = vld [vmem:[#allocation2 + $0x18] sm:$0xff]  ;;  %v2902_v60 = vld [vmem:[#allocation2 + $0x40] sm:$0xff]  ;;  %v2907_v14 = vld [vmem:[#allocation2 + $0x68] sm:$0xff] }
 0x26e   :  { %v3722_v50 = vmul.f32 %v2894_v51, %v3717_v34  ;;  %v3725_v39 = vmul.f32 %v2895_v21, %v3717_v34  ;;  %v3728_v0 = vmul.f32 %v2896_v27, %v3717_v34  ;;  %v3731_v1 = vmul.f32 %v2897_v61, %v3717_v34  ;;  %v2903_v21 = vld [vmem:[#allocation2 + $0x48] sm:$0xff]  ;;  %v2904_v61 = vld [vmem:[#allocation2 + $0x50] sm:$0xff] }
 0x26f   :  { %v3734_v12 = vmul.f32 %v2898_v62, %v3717_v34  ;;  %v3737_v8 = vmul.f32 %v2899_v49, %v3717_v34  ;;  %v3740_v56 = vmul.f32 %v2900_v15, %v3717_v34  ;;  %v3743_v17 = vmul.f32 %v2901_v45, %v3717_v34  ;;  %v2905_v49 = vld [vmem:[#allocation2 + $0x58] sm:$0xff] }
 0x270   :  { %v3746_v51 = vmul.f32 %v2902_v60, %v3717_v34  ;;  %v3749_v27 = vmul.f32 %v2903_v21, %v3717_v34  ;;  %v3752_v62 = vmul.f32 %v2904_v61, %v3717_v34  ;;  %v3755_v15 = vmul.f32 %v2905_v49, %v3717_v34 }
 0x271   :  { %v3758_v45 = vmul.f32 %v2906_v37, %v3717_v34  ;;  %v3761_v60 = vmul.f32 %v2907_v14, %v3717_v34  ;;  %v3771_v49 = vmul.f32 %v3717_v34, %v3291_v18  ;;  %v3775_v37 = vmul.f32 %v3717_v34, %v3299_v28 }
 0x272   :  { %6363 = vst [vmem:[#allocation3_spill] sm:$0xff] %v3746_v51  ;;  %6364 = vst [vmem:[#allocation4_spill] sm:$0xff] %v3749_v27  ;;  %v2908_v51 = vld [vmem:[#allocation2 + $0x70] sm:$0xff]  ;;  %v2909_v27 = vld [vmem:[#allocation2 + $0x78] sm:$0xff]  ;;  %v3779_v14 = vmul.f32 %v3717_v34, %v3301_v30  ;;  %v3791_v18 = vmul.f32 %v3717_v34, %v3321_v59  ;;  %v3795_v28 = vmul.f32 %v3717_v34, %v3325_v4 }
 0x273   :  { %v3764_v21 = vmul.f32 %v2908_v51, %v3717_v34  ;;  %v3767_v61 = vmul.f32 %v2909_v27, %v3717_v34  ;;  %v3783_v51 = vmul.f32 %v3717_v34, %v3311_v44  ;;  %v3787_v27 = vmul.f32 %v3717_v34, %v3313_v46 }
 0x274   :  { %v3799_v30 = vmul.f32 %v3717_v34, %v3331_v9  ;;  %v3803_v44 = vmul.f32 %v3717_v34, %v3335_v19  ;;  %v3807_v46 = vmul.f32 %v3717_v34, %v3343_v31  ;;  %v3811_v59 = vmul.f32 %v3717_v34, %v3345_v33 }
 0x275   :  { %v3815_v4 = vmul.f32 %v3717_v34, %v3355_v53  ;;  %v3819_v9 = vmul.f32 %v3717_v34, %v3359_v57  ;;  %v3823_v19 = vmul.f32 %v3717_v34, %v3365_v5  ;;  %v3827_v31 = vmul.f32 %v3717_v34, %v3371_v20 }
 0x276   :  { %v3831_v33 = vmul.f32 %v3717_v34, %v3377_v25  ;;  %v3835_v53 = vmul.f32 %v3717_v34, %v3375_v23  ;;  %v3839_v57 = vmul.f32 %v3717_v34, %v3381_v29  ;;  %v3843_v5 = vmul.f32 %v3717_v34, %v3385_v36 }
 0x277   :  { %v3847_v20 = vmul.f32 %v3717_v34, %v3389_v40  ;;  %v3851_v25 = vmul.f32 %v3717_v34, %v3393_v43  ;;  %v3855_v23 = vmul.f32 %v3717_v34, %v3397_v48  ;;  %v3859_v29 = vmul.f32 %v3717_v34, %v3401_v58 }
 0x278   :  { %v3863_v36 = vmul.f32 %v3717_v34, %v3405_v63  ;;  %v3867_v40 = vmul.f32 %v3717_v34, %v3409_v7  ;;  %v3871_v43 = vmul.f32 %v3717_v34, %v3413_v13  ;;  %v3875_v48 = vmul.f32 %v3717_v34, %v3417_v16 }
 0x279   :  { %v3879_v58 = vmul.f32 %v3717_v34, %v3421_v26  ;;  %v3883_v63 = vmul.f32 %v3717_v34, %v3425_v38  ;;  %v3887_v7 = vmul.f32 %v3717_v34, %v3429_v42  ;;  %v3891_v13 = vmul.f32 %v3717_v34, %v3433_v55 }
 0x27a   :  { %v3895_v16 = vmul.f32 %v3717_v34, %v6349_v10  ;;  %v3899_v26 = vmul.f32 %v3717_v34, %v6350_v35  ;;  %v3903_v38 = vmul.f32 %v3717_v34, %v6351_v2  ;;  %v3907_v42 = vmul.f32 %v3717_v34, %v6352_v32 }
 0x27b   :  { %v3911_v55 = vmul.f32 %v3717_v34, %v6353_v41  ;;  %v3915_v10 = vmul.f32 %v3717_v34, %v6354_v6  ;;  %v3919_v35 = vmul.f32 %v3717_v34, %v6355_v47  ;;  %v3923_v2 = vmul.f32 %v3717_v34, %v6356_v3 }
 0x27c   :  { %6365 = vst [vmem:[#allocation5_spill] sm:$0xff] %v3903_v38  ;;  %6366 = vst [vmem:[#allocation6_spill] sm:$0xff] %v3907_v42  ;;  %v6369_v38 = vld [vmem:[#allocation11_spill] sm:$0xff]  ;;  %v6371_v42 = vld [vmem:[#allocation12_spill] sm:$0xff]  ;;  %v3939_v47 = vmul.f32 %v3717_v34, %v6360_v11  ;;  %v3943_v3 = vmul.f32 %v3717_v34, %v6361_v54 }
 0x27d   :  { %6367 = vst [vmem:[#allocation7_spill] sm:$0xff] %v3911_v55  ;;  %6368 = vst [vmem:[#allocation8_spill] sm:$0xff] %v3923_v2  ;;  %v3927_v32 = vmul.f32 %v3717_v34, %v6369_v38  ;;  %v3931_v41 = vmul.f32 %v3717_v34, %v6371_v42  ;;  %v6373_v55 = vld [vmem:[#allocation13_spill] sm:$0xff]  ;;  %v6376_v2 = vsub.s32 0, %v3701_v52  ;;  %v6377_v38 = vsub.f32 %v3710_v24, %v3713_v22  ;;  %v6378_v42 = vld [vmem:[#allocation16_spill] sm:$0xff] }
 0x27e   :  { %v3935_v6 = vmul.f32 %v3717_v34, %v6373_v55  ;;  %6375 = vst [vmem:[#allocation15_spill] sm:$0xff] %v3939_v47  ;;  %v6379_v55 = vld [vmem:[#allocation17_spill] sm:$0xff]  ;;  %v6380_v11 = vld [vmem:[#allocation18_spill] sm:$0xff]  ;;  %v6381_v54 = vld [vmem:[#allocation19_spill] sm:$0xff] }
 0x27f   :  { %6370 = vst [vmem:[#allocation9_spill] sm:$0xff] %v3927_v32  ;;  %6372 = vst [vmem:[#allocation10_spill] sm:$0xff] %v3931_v41  ;;  %v3950_v32 = vrot.slane %v6377_v38, %v6376_v2  ;;  %v3954_v41 = vmul.f32 %v3717_v34, %v6378_v42  ;;  %v3962_v47 = vmul.f32 %v3717_v34, %v6380_v11  ;;  %v6390_v42 = vld [vmem:[#allocation3_spill] sm:$0xff] }
 0x280   :  { %6374 = vst [vmem:[#allocation14_spill] sm:$0xff] %v3935_v6  ;;  %v3958_v6 = vmul.f32 %v3717_v34, %v6379_v55  ;;  %v3966_v52 = vmul.f32 %v3717_v34, %v6381_v54  ;;  %v6392_v55 = vld [vmem:[#allocation4_spill] sm:$0xff] }
 0x281   :  { %v3970_v24 = vadd.f32 %v3950_v32, %v3722_v50  ;;  %v3974_v22 = vadd.f32 %v3950_v32, %v3725_v39  ;;  %v3978_v2 = vadd.f32 %v3950_v32, %v3728_v0  ;;  %v3982_v38 = vadd.f32 %v3950_v32, %v3731_v1 }
 0x282   :  { %v3986_v34 = vadd.f32 %v3950_v32, %v3734_v12  ;;  %v3990_v50 = vadd.f32 %v3950_v32, %v3737_v8  ;;  %v3994_v39 = vadd.f32 %v3950_v32, %v3740_v56  ;;  %v3998_v0 = vadd.f32 %v3950_v32, %v3743_v17 }
 0x283   :  { %6382 = vst [vmem:[#allocation11_spill] sm:$0xff] %v3970_v24  ;;  %6383 = vst [vmem:[#allocation12_spill] sm:$0xff] %v3974_v22  ;;  %v4002_v1 = vadd.f32 %v3950_v32, %v6390_v42  ;;  %v4006_v12 = vadd.f32 %v3950_v32, %v6392_v55  ;;  %v4010_v8 = vadd.f32 %v3950_v32, %v3752_v62  ;;  %v6429_v42 = vld [vmem:[#allocation5_spill] sm:$0xff]  ;;  %v6431_v55 = vld [vmem:[#allocation6_spill] sm:$0xff] }
 0x284   :  { %6384 = vst [vmem:[#allocation13_spill] sm:$0xff] %v3978_v2  ;;  %6385 = vst [vmem:[#allocation16_spill] sm:$0xff] %v3982_v38  ;;  %v4014_v56 = vadd.f32 %v3950_v32, %v3755_v15  ;;  %v4018_v17 = vadd.f32 %v3950_v32, %v3758_v45  ;;  %v4022_v11 = vadd.f32 %v3950_v32, %v3761_v60 }
 0x285   :  { %6386 = vst [vmem:[#allocation17_spill] sm:$0xff] %v3986_v34  ;;  %6387 = vst [vmem:[#allocation18_spill] sm:$0xff] %v3990_v50  ;;  %v4026_v54 = vadd.f32 %v3950_v32, %v3764_v21  ;;  %v4030_v62 = vadd.f32 %v3950_v32, %v3767_v61  ;;  %v4034_v15 = vadd.f32 %v3950_v32, %v3771_v49 }
 0x286   :  { %6388 = vst [vmem:[#allocation19_spill] sm:$0xff] %v3994_v39  ;;  %6389 = vst [vmem:[#allocation20_spill] sm:$0xff] %v3998_v0  ;;  %v4038_v45 = vadd.f32 %v3950_v32, %v3775_v37  ;;  %v4042_v60 = vadd.f32 %v3950_v32, %v3779_v14  ;;  %v4046_v21 = vadd.f32 %v3950_v32, %v3783_v51 }
 0x287   :  { %6391 = vst [vmem:[#allocation3_spill] sm:$0xff] %v4002_v1  ;;  %6393 = vst [vmem:[#allocation4_spill] sm:$0xff] %v4006_v12  ;;  %v4050_v61 = vadd.f32 %v3950_v32, %v3787_v27  ;;  %v4054_v49 = vadd.f32 %v3950_v32, %v3791_v18  ;;  %v4058_v37 = vadd.f32 %v3950_v32, %v3795_v28 }
 0x288   :  { %6394 = vst [vmem:[#allocation21_spill] sm:$0xff] %v4010_v8  ;;  %6395 = vst [vmem:[#allocation22_spill] sm:$0xff] %v4014_v56  ;;  %v4062_v14 = vadd.f32 %v3950_v32, %v3799_v30  ;;  %v4066_v51 = vadd.f32 %v3950_v32, %v3803_v44  ;;  %v4070_v27 = vadd.f32 %v3950_v32, %v3807_v46 }
 0x289   :  { %6396 = vst [vmem:[#allocation23_spill] sm:$0xff] %v4018_v17  ;;  %6397 = vst [vmem:[#allocation24_spill] sm:$0xff] %v4022_v11  ;;  %v4074_v18 = vadd.f32 %v3950_v32, %v3811_v59  ;;  %v4078_v28 = vadd.f32 %v3950_v32, %v3815_v4  ;;  %v4082_v30 = vadd.f32 %v3950_v32, %v3819_v9 }
 0x28a   :  { %6398 = vst [vmem:[#allocation25_spill] sm:$0xff] %v4026_v54  ;;  %6399 = vst [vmem:[#allocation26_spill] sm:$0xff] %v4030_v62  ;;  %v4086_v44 = vadd.f32 %v3950_v32, %v3823_v19  ;;  %v4090_v46 = vadd.f32 %v3950_v32, %v3827_v31  ;;  %v4094_v59 = vadd.f32 %v3950_v32, %v3831_v33 }
 0x28b   :  { %6400 = vst [vmem:[#allocation27_spill] sm:$0xff] %v4034_v15  ;;  %6401 = vst [vmem:[#allocation28_spill] sm:$0xff] %v4038_v45  ;;  %v4098_v4 = vadd.f32 %v3950_v32, %v3835_v53  ;;  %v4102_v9 = vadd.f32 %v3950_v32, %v3839_v57  ;;  %v4106_v19 = vadd.f32 %v3950_v32, %v3843_v5 }
 0x28c   :  { %6402 = vst [vmem:[#allocation29_spill] sm:$0xff] %v4050_v61  ;;  %6403 = vst [vmem:[#allocation30_spill] sm:$0xff] %v4062_v14  ;;  %v4110_v31 = vadd.f32 %v3950_v32, %v3847_v20  ;;  %v4114_v33 = vadd.f32 %v3950_v32, %v3851_v25  ;;  %v4118_v53 = vadd.f32 %v3950_v32, %v3855_v23 }
 0x28d   :  { %6404 = vst [vmem:[#allocation31_spill] sm:$0xff] %v4066_v51  ;;  %6405 = vst [vmem:[#allocation32_spill] sm:$0xff] %v4070_v27  ;;  %v4122_v57 = vadd.f32 %v3950_v32, %v3859_v29  ;;  %v4126_v5 = vadd.f32 %v3950_v32, %v3863_v36  ;;  %v4130_v20 = vadd.f32 %v3950_v32, %v3867_v40 }
 0x28e   :  { %6406 = vst [vmem:[#allocation33_spill] sm:$0xff] %v4074_v18  ;;  %6407 = vst [vmem:[#allocation34_spill] sm:$0xff] %v4078_v28  ;;  %v4134_v25 = vadd.f32 %v3950_v32, %v3871_v43  ;;  %v4138_v23 = vadd.f32 %v3950_v32, %v3875_v48  ;;  %v4142_v29 = vadd.f32 %v3950_v32, %v3879_v58 }
 0x28f   :  { %6408 = vst [vmem:[#allocation35_spill] sm:$0xff] %v4082_v30  ;;  %6409 = vst [vmem:[#allocation36_spill] sm:$0xff] %v4086_v44  ;;  %v4146_v36 = vadd.f32 %v3950_v32, %v3883_v63  ;;  %v4150_v40 = vadd.f32 %v3950_v32, %v3887_v7  ;;  %v4154_v43 = vadd.f32 %v3950_v32, %v3891_v13 }
 0x290   :  { %6410 = vst [vmem:[#allocation37_spill] sm:$0xff] %v4090_v46  ;;  %6411 = vst [vmem:[#allocation38_spill] sm:$0xff] %v4094_v59  ;;  %v4158_v48 = vadd.f32 %v3950_v32, %v3895_v16  ;;  %v4162_v58 = vadd.f32 %v3950_v32, %v3899_v26  ;;  %v4166_v63 = vadd.f32 %v3950_v32, %v6429_v42 }
 0x291   :  { %6412 = vst [vmem:[#allocation39_spill] sm:$0xff] %v4098_v4  ;;  %6413 = vst [vmem:[#allocation40_spill] sm:$0xff] %v4102_v9  ;;  %v4170_v7 = vadd.f32 %v3950_v32, %v6431_v55  ;;  %v4178_v16 = vadd.f32 %v3950_v32, %v3915_v10  ;;  %v4182_v26 = vadd.f32 %v3950_v32, %v3919_v35 }
 0x292   :  { %6414 = vst [vmem:[#allocation41_spill] sm:$0xff] %v4106_v19  ;;  %6415 = vst [vmem:[#allocation42_spill] sm:$0xff] %v4110_v31 }
 0x293   :  { %6416 = vst [vmem:[#allocation43_spill] sm:$0xff] %v4114_v33  ;;  %6417 = vst [vmem:[#allocation44_spill] sm:$0xff] %v4118_v53 }
 0x294   :  { %6418 = vst [vmem:[#allocation45_spill] sm:$0xff] %v4122_v57  ;;  %6419 = vst [vmem:[#allocation46_spill] sm:$0xff] %v4126_v5 }
 0x295   :  { %6420 = vst [vmem:[#allocation47_spill] sm:$0xff] %v4130_v20  ;;  %6421 = vst [vmem:[#allocation48_spill] sm:$0xff] %v4134_v25 }
 0x296   :  { %6422 = vst [vmem:[#allocation49_spill] sm:$0xff] %v4138_v23  ;;  %6423 = vst [vmem:[#allocation50_spill] sm:$0xff] %v4142_v29 }
 0x297   :  { %6424 = vst [vmem:[#allocation51_spill] sm:$0xff] %v4146_v36  ;;  %6425 = vst [vmem:[#allocation52_spill] sm:$0xff] %v4150_v40  ;;  %v6433_v40 = vld [vmem:[#allocation7_spill] sm:$0xff] }
 0x298   :  { %6426 = vst [vmem:[#allocation53_spill] sm:$0xff] %v4154_v43  ;;  %6427 = vst [vmem:[#allocation54_spill] sm:$0xff] %v4158_v48  ;;  %v4174_v13 = vadd.f32 %v3950_v32, %v6433_v40 }
 0x299   :  { %6428 = vst [vmem:[#allocation55_spill] sm:$0xff] %v4162_v58  ;;  %6430 = vst [vmem:[#allocation5_spill] sm:$0xff] %v4166_v63  ;;  %v6437_v58 = vld [vmem:[#allocation8_spill] sm:$0xff]  ;;  %v6439_v63 = vld [vmem:[#allocation9_spill] sm:$0xff] }
 0x29a   :  { %6432 = vst [vmem:[#allocation6_spill] sm:$0xff] %v4170_v7  ;;  %6434 = vst [vmem:[#allocation7_spill] sm:$0xff] %v4174_v13  ;;  %v4186_v42 = vadd.f32 %v3950_v32, %v6437_v58  ;;  %v4190_v55 = vadd.f32 %v3950_v32, %v6439_v63  ;;  %v6441_v7 = vld [vmem:[#allocation10_spill] sm:$0xff]  ;;  %v4206_v58 = vadd.f32 %v3950_v32, %v3943_v3  ;;  %v4228_v3 = vmul.f32 0.5, %v3974_v22 }
 0x29b   :  { %6435 = vst [vmem:[#allocation56_spill] sm:$0xff] %v4178_v16  ;;  %6436 = vst [vmem:[#allocation57_spill] sm:$0xff] %v4182_v26  ;;  %v4194_v40 = vadd.f32 %v3950_v32, %v6441_v7  ;;  %v6443_v13 = vld [vmem:[#allocation14_spill] sm:$0xff]  ;;  %v6445_v16 = vld [vmem:[#allocation15_spill] sm:$0xff]  ;;  %v4210_v63 = vadd.f32 %v3950_v32, %v3954_v41  ;;  %v4214_v7 = vadd.f32 %v3950_v32, %v3958_v6  ;;  %v4231_v41 = vmul.f32 0.5, %v3978_v2 }
 0x29c   :  { %6438 = vst [vmem:[#allocation8_spill] sm:$0xff] %v4186_v42  ;;  %6440 = vst [vmem:[#allocation9_spill] sm:$0xff] %v4190_v55  ;;  %v4198_v10 = vadd.f32 %v3950_v32, %v6443_v13  ;;  %v4202_v35 = vadd.f32 %v3950_v32, %v6445_v16  ;;  %v4218_v13 = vadd.f32 %v3950_v32, %v3962_v47  ;;  %v4234_v6 = vmul.f32 0.5, %v3982_v38 }
 0x29d   :  { %6442 = vst [vmem:[#allocation10_spill] sm:$0xff] %v4194_v40  ;;  %6447 = vst [vmem:[#allocation58_spill] sm:$0xff] %v4206_v58  ;;  %v4222_v16 = vadd.f32 %v3950_v32, %v3966_v52  ;;  %v4240_v47 = vmul.f32 0.5, %v3990_v50  ;;  %v4243_v32 = vmul.f32 0.5, %v3994_v39  ;;  %v4246_v52 = vmul.f32 0.5, %v3998_v0 }
 0x29e   :  { %6444 = vst [vmem:[#allocation14_spill] sm:$0xff] %v4198_v10  ;;  %6446 = vst [vmem:[#allocation15_spill] sm:$0xff] %v4202_v35  ;;  %v4225_v35 = vmul.f32 0.5, %v3970_v24 }
 0x29f   :  { %6448 = vst [vmem:[#allocation59_spill] sm:$0xff] %v4210_v63  ;;  %6449 = vst [vmem:[#allocation60_spill] sm:$0xff] %v4214_v7  ;;  %v4237_v7 = vmul.f32 0.5, %v3986_v34 }
 0x2a0   :  { %6450 = vst [vmem:[#allocation61_spill] sm:$0xff] %v4218_v13  ;;  %6451 = vst [vmem:[#allocation62_spill] sm:$0xff] %v4222_v16 }
 0x2a1   :  { %6452 = vst [vmem:[#allocation63_spill] sm:$0xff] %v4225_v35  ;;  %6453 = vst [vmem:[#allocation64_spill] sm:$0xff] %v4228_v3  ;;  %v4249_v3 = vmul.f32 0.5, %v4002_v1  ;;  %v6497_v35 = vld [vmem:[#allocation52_spill] sm:$0xff] }
 0x2a2   :  { %6454 = vst [vmem:[#allocation65_spill] sm:$0xff] %v4231_v41  ;;  %6455 = vst [vmem:[#allocation66_spill] sm:$0xff] %v4234_v6  ;;  %v4252_v41 = vmul.f32 0.5, %v4006_v12  ;;  %v4255_v6 = vmul.f32 0.5, %v4010_v8 }
 0x2a3   :  { %6456 = vst [vmem:[#allocation67_spill] sm:$0xff] %v4237_v7  ;;  %6457 = vst [vmem:[#allocation68_spill] sm:$0xff] %v4240_v47  ;;  %v4258_v7 = vmul.f32 0.5, %v4014_v56  ;;  %v4261_v47 = vmul.f32 0.5, %v4018_v17 }
 0x2a4   :  { %6458 = vst [vmem:[#allocation69_spill] sm:$0xff] %v4243_v32  ;;  %6459 = vst [vmem:[#allocation70_spill] sm:$0xff] %v4246_v52  ;;  %v4264_v32 = vmul.f32 0.5, %v4022_v11  ;;  %v4267_v52 = vmul.f32 0.5, %v4026_v54 }
 0x2a5   :  { %6460 = vst [vmem:[#allocation71_spill] sm:$0xff] %v4249_v3  ;;  %6461 = vst [vmem:[#allocation72_spill] sm:$0xff] %v4252_v41  ;;  %v4270_v3 = vmul.f32 0.5, %v4030_v62  ;;  %v4273_v41 = vmul.f32 0.5, %v4034_v15 }
 0x2a6   :  { %6462 = vst [vmem:[#allocation73_spill] sm:$0xff] %v4255_v6  ;;  %6463 = vst [vmem:[#allocation74_spill] sm:$0xff] %v4258_v7  ;;  %v4276_v6 = vmul.f32 0.5, %v4038_v45  ;;  %v4279_v7 = vmul.f32 0.5, %v4042_v60 }
 0x2a7   :  { %6464 = vst [vmem:[#allocation75_spill] sm:$0xff] %v4261_v47  ;;  %6465 = vst [vmem:[#allocation76_spill] sm:$0xff] %v4264_v32  ;;  %v4282_v47 = vmul.f32 0.5, %v4046_v21  ;;  %v4285_v32 = vmul.f32 0.5, %v4050_v61 }
 0x2a8   :  { %6466 = vst [vmem:[#allocation77_spill] sm:$0xff] %v4267_v52  ;;  %6467 = vst [vmem:[#allocation78_spill] sm:$0xff] %v4270_v3  ;;  %v4288_v52 = vmul.f32 0.5, %v4054_v49  ;;  %v4291_v3 = vmul.f32 0.5, %v4058_v37 }
 0x2a9   :  { %6468 = vst [vmem:[#allocation79_spill] sm:$0xff] %v4273_v41  ;;  %6469 = vst [vmem:[#allocation80_spill] sm:$0xff] %v4276_v6  ;;  %v4294_v41 = vmul.f32 0.5, %v4062_v14  ;;  %v4297_v6 = vmul.f32 0.5, %v4066_v51 }
 0x2aa   :  { %6470 = vst [vmem:[#allocation81_spill] sm:$0xff] %v4279_v7  ;;  %6471 = vst [vmem:[#allocation82_spill] sm:$0xff] %v4282_v47  ;;  %v4300_v7 = vmul.f32 0.5, %v4070_v27  ;;  %v4303_v47 = vmul.f32 0.5, %v4074_v18 }
 0x2ab   :  { %6472 = vst [vmem:[#allocation83_spill] sm:$0xff] %v4285_v32  ;;  %6473 = vst [vmem:[#allocation84_spill] sm:$0xff] %v4288_v52  ;;  %v4306_v32 = vmul.f32 0.5, %v4078_v28  ;;  %v4309_v52 = vmul.f32 0.5, %v4082_v30 }
 0x2ac   :  { %6474 = vst [vmem:[#allocation85_spill] sm:$0xff] %v4291_v3  ;;  %6475 = vst [vmem:[#allocation86_spill] sm:$0xff] %v4294_v41  ;;  %v4312_v3 = vmul.f32 0.5, %v4086_v44  ;;  %v4315_v41 = vmul.f32 0.5, %v4090_v46 }
 0x2ad   :  { %6476 = vst [vmem:[#allocation87_spill] sm:$0xff] %v4297_v6  ;;  %6477 = vst [vmem:[#allocation88_spill] sm:$0xff] %v4300_v7  ;;  %v4318_v6 = vmul.f32 0.5, %v4094_v59  ;;  %v4321_v7 = vmul.f32 0.5, %v4098_v4 }
 0x2ae   :  { %6478 = vst [vmem:[#allocation89_spill] sm:$0xff] %v4303_v47  ;;  %6479 = vst [vmem:[#allocation90_spill] sm:$0xff] %v4306_v32  ;;  %v4324_v47 = vmul.f32 0.5, %v4102_v9  ;;  %v4327_v32 = vmul.f32 0.5, %v4106_v19 }
 0x2af   :  { %6480 = vst [vmem:[#allocation91_spill] sm:$0xff] %v4309_v52  ;;  %6481 = vst [vmem:[#allocation92_spill] sm:$0xff] %v4312_v3  ;;  %v4330_v52 = vmul.f32 0.5, %v4110_v31  ;;  %v4333_v3 = vmul.f32 0.5, %v4114_v33 }
 0x2b0   :  { %6482 = vst [vmem:[#allocation93_spill] sm:$0xff] %v4315_v41  ;;  %6483 = vst [vmem:[#allocation94_spill] sm:$0xff] %v4318_v6  ;;  %v4336_v41 = vmul.f32 0.5, %v4118_v53  ;;  %v4339_v6 = vmul.f32 0.5, %v4122_v57 }
 0x2b1   :  { %6484 = vst [vmem:[#allocation95_spill] sm:$0xff] %v4321_v7  ;;  %6485 = vst [vmem:[#allocation96_spill] sm:$0xff] %v4324_v47  ;;  %v4342_v7 = vmul.f32 0.5, %v4126_v5  ;;  %v4345_v47 = vmul.f32 0.5, %v4130_v20 }
 0x2b2   :  { %6486 = vst [vmem:[#allocation97_spill] sm:$0xff] %v4327_v32  ;;  %6487 = vst [vmem:[#allocation98_spill] sm:$0xff] %v4330_v52  ;;  %v4348_v32 = vmul.f32 0.5, %v4134_v25  ;;  %v4351_v52 = vmul.f32 0.5, %v4138_v23  ;;  %v6501_v25 = vld [vmem:[#allocation55_spill] sm:$0xff]  ;;  %v6503_v23 = vld [vmem:[#allocation5_spill] sm:$0xff] }
 0x2b3   :  { %6488 = vst [vmem:[#allocation99_spill] sm:$0xff] %v4333_v3  ;;  %6489 = vst [vmem:[#allocation100_spill] sm:$0xff] %v4336_v41  ;;  %v4354_v3 = vmul.f32 0.5, %v4142_v29  ;;  %v4357_v41 = vmul.f32 0.5, %v4146_v36  ;;  %v6505_v29 = vld [vmem:[#allocation6_spill] sm:$0xff]  ;;  %v6507_v36 = vld [vmem:[#allocation7_spill] sm:$0xff] }
 0x2b4   :  { %6490 = vst [vmem:[#allocation101_spill] sm:$0xff] %v4339_v6  ;;  %6491 = vst [vmem:[#allocation102_spill] sm:$0xff] %v4342_v7  ;;  %v4360_v6 = vmul.f32 0.5, %v6497_v35  ;;  %v4363_v7 = vmul.f32 0.5, %v4154_v43  ;;  %v6509_v35 = vld [vmem:[#allocation56_spill] sm:$0xff] }
 0x2b5   :  { %6492 = vst [vmem:[#allocation103_spill] sm:$0xff] %v4345_v47  ;;  %6493 = vst [vmem:[#allocation104_spill] sm:$0xff] %v4348_v32  ;;  %v4366_v47 = vmul.f32 0.5, %v4158_v48  ;;  %v4369_v32 = vmul.f32 0.5, %v6501_v25 }
 0x2b6   :  { %6494 = vst [vmem:[#allocation105_spill] sm:$0xff] %v4351_v52  ;;  %6495 = vst [vmem:[#allocation106_spill] sm:$0xff] %v4354_v3  ;;  %v4372_v52 = vmul.f32 0.5, %v6503_v23  ;;  %v4375_v3 = vmul.f32 0.5, %v6505_v29  ;;  %v1586_v29 = vmul.f32 0.044715, %v4034_v15 }
 0x2b7   :  { %6496 = vst [vmem:[#allocation107_spill] sm:$0xff] %v4357_v41  ;;  %6498 = vst [vmem:[#allocation108_spill] sm:$0xff] %v4360_v6  ;;  %v4378_v41 = vmul.f32 0.5, %v6507_v36  ;;  %v4381_v6 = vmul.f32 0.5, %v6509_v35  ;;  %v6516_v36 = vld [vmem:[#allocation15_spill] sm:$0xff] }
 0x2b8   :  { %6499 = vst [vmem:[#allocation109_spill] sm:$0xff] %v4363_v7  ;;  %6500 = vst [vmem:[#allocation110_spill] sm:$0xff] %v4366_v47  ;;  %v4384_v7 = vmul.f32 0.5, %v4182_v26  ;;  %v4387_v47 = vmul.f32 0.5, %v4186_v42  ;;  %v6520_v42 = vld [vmem:[#allocation60_spill] sm:$0xff] }
 0x2b9   :  { %6502 = vst [vmem:[#allocation111_spill] sm:$0xff] %v4369_v32  ;;  %6504 = vst [vmem:[#allocation112_spill] sm:$0xff] %v4372_v52  ;;  %v4390_v32 = vmul.f32 0.5, %v4190_v55  ;;  %v4393_v52 = vmul.f32 0.5, %v4194_v40  ;;  %v1583_v40 = vmul.f32 0.044715, %v4022_v11 }
 0x2ba   :  { %6506 = vst [vmem:[#allocation113_spill] sm:$0xff] %v4375_v3  ;;  %6508 = vst [vmem:[#allocation114_spill] sm:$0xff] %v4378_v41  ;;  %v4396_v3 = vmul.f32 0.5, %v4198_v10  ;;  %v4399_v41 = vmul.f32 0.5, %v6516_v36  ;;  %v1571_v36 = vmul.f32 0.044715, %v3974_v22 }
 0x2bb   :  { %6510 = vst [vmem:[#allocation115_spill] sm:$0xff] %v4381_v6  ;;  %6511 = vst [vmem:[#allocation116_spill] sm:$0xff] %v4384_v7  ;;  %v4402_v6 = vmul.f32 0.5, %v4206_v58  ;;  %v4405_v7 = vmul.f32 0.5, %v4210_v63  ;;  %v1574_v63 = vmul.f32 0.044715, %v3986_v34 }
 0x2bc   :  { %6512 = vst [vmem:[#allocation117_spill] sm:$0xff] %v4387_v47  ;;  %6513 = vst [vmem:[#allocation118_spill] sm:$0xff] %v4390_v32  ;;  %v4408_v47 = vmul.f32 0.5, %v6520_v42  ;;  %v4411_v32 = vmul.f32 0.5, %v4218_v13  ;;  %v1577_v13 = vmul.f32 0.044715, %v3998_v0  ;;  %v4435_v26 = vmul.f32 %v1571_v36, %v3974_v22 }
 0x2bd   :  { %6514 = vst [vmem:[#allocation119_spill] sm:$0xff] %v4393_v52  ;;  %6515 = vst [vmem:[#allocation120_spill] sm:$0xff] %v4396_v3  ;;  %v4414_v52 = vmul.f32 0.5, %v4222_v16  ;;  %v1570_v3 = vmul.f32 0.044715, %v3970_v24 }
 0x2be   :  { %6517 = vst [vmem:[#allocation121_spill] sm:$0xff] %v4399_v41  ;;  %6518 = vst [vmem:[#allocation122_spill] sm:$0xff] %v4402_v6  ;;  %v1572_v41 = vmul.f32 0.044715, %v3978_v2  ;;  %v1573_v6 = vmul.f32 0.044715, %v3982_v38 }
 0x2bf   :  { %6519 = vst [vmem:[#allocation123_spill] sm:$0xff] %v4405_v7  ;;  %6521 = vst [vmem:[#allocation124_spill] sm:$0xff] %v4408_v47  ;;  %v1575_v7 = vmul.f32 0.044715, %v3990_v50  ;;  %v1576_v47 = vmul.f32 0.044715, %v3994_v39  ;;  %v4429_v58 = vmul.f32 %v1570_v3, %v3970_v24 }
 0x2c0   :  { %6522 = vst [vmem:[#allocation125_spill] sm:$0xff] %v4411_v32  ;;  %6523 = vst [vmem:[#allocation126_spill] sm:$0xff] %v4414_v52  ;;  %v1578_v32 = vmul.f32 0.044715, %v4002_v1  ;;  %v1579_v52 = vmul.f32 0.044715, %v4006_v12  ;;  %v4441_v25 = vmul.f32 %v1572_v41, %v3978_v2 }
 0x2c1   :  { %v1580_v16 = vmul.f32 0.044715, %v4010_v8  ;;  %v1581_v42 = vmul.f32 0.044715, %v4014_v56  ;;  %6524 = vst [vmem:[#allocation127_spill] sm:$0xff] %v4429_v58  ;;  %6525 = vst [vmem:[#allocation128_spill] sm:$0xff] %v4435_v26 }
 0x2c2   :  { %v1582_v10 = vmul.f32 0.044715, %v4018_v17  ;;  %v1584_v55 = vmul.f32 0.044715, %v4026_v54  ;;  %v1585_v35 = vmul.f32 0.044715, %v4030_v62  ;;  %v4447_v54 = vmul.f32 %v1573_v6, %v3982_v38 }
 0x2c3   :  { %v1587_v23 = vmul.f32 0.044715, %v4038_v45  ;;  %6526 = vst [vmem:[#allocation129_spill] sm:$0xff] %v4441_v25  ;;  %v1588_v3 = vmul.f32 0.044715, %v4042_v60  ;;  %v4453_v45 = vmul.f32 %v1574_v63, %v3986_v34 }
 0x2c4   :  { %v1589_v58 = vmul.f32 0.044715, %v4046_v21  ;;  %v1590_v24 = vmul.f32 0.044715, %v4050_v61  ;;  %6527 = vst [vmem:[#allocation130_spill] sm:$0xff] %v4447_v54  ;;  %v4459_v61 = vmul.f32 %v1575_v7, %v3990_v50 }
 0x2c5   :  { %v1591_v36 = vmul.f32 0.044715, %v4054_v49  ;;  %v1592_v26 = vmul.f32 0.044715, %v4058_v37  ;;  %v1593_v22 = vmul.f32 0.044715, %v4062_v14  ;;  %v4465_v14 = vmul.f32 %v1576_v47, %v3994_v39 }
 0x2c6   :  { %6528 = vst [vmem:[#allocation131_spill] sm:$0xff] %v4453_v45  ;;  %v1594_v41 = vmul.f32 0.044715, %v4066_v51  ;;  %v1595_v25 = vmul.f32 0.044715, %v4070_v27  ;;  %6529 = vst [vmem:[#allocation132_spill] sm:$0xff] %v4459_v61 }
 0x2c7   :  { %v1596_v2 = vmul.f32 0.044715, %v4074_v18  ;;  %v1597_v6 = vmul.f32 0.044715, %v4078_v28  ;;  %v1598_v54 = vmul.f32 0.044715, %v4082_v30  ;;  %v4471_v18 = vmul.f32 %v1577_v13, %v3998_v0 }
 0x2c8   :  { %v1599_v38 = vmul.f32 0.044715, %v4086_v44  ;;  %6530 = vst [vmem:[#allocation133_spill] sm:$0xff] %v4465_v14  ;;  %v1600_v63 = vmul.f32 0.044715, %v4090_v46  ;;  %v4477_v44 = vmul.f32 %v1578_v32, %v4002_v1  ;;  %v6534_v0 = vld [vmem:[#allocation48_spill] sm:$0xff] }
 0x2c9   :  { %v1601_v45 = vmul.f32 0.044715, %v4094_v59  ;;  %v1602_v34 = vmul.f32 0.044715, %v4098_v4  ;;  %6531 = vst [vmem:[#allocation134_spill] sm:$0xff] %v4471_v18  ;;  %v4483_v4 = vmul.f32 %v1579_v52, %v4006_v12  ;;  %v6536_v32 = vld [vmem:[#allocation49_spill] sm:$0xff] }
 0x2ca   :  { %v1603_v7 = vmul.f32 0.044715, %v4102_v9  ;;  %v1604_v61 = vmul.f32 0.044715, %v4106_v19  ;;  %v1605_v50 = vmul.f32 0.044715, %v4110_v31  ;;  %v4489_v31 = vmul.f32 %v1580_v16, %v4010_v8 }
 0x2cb   :  { %6532 = vst [vmem:[#allocation135_spill] sm:$0xff] %v4477_v44  ;;  %v1606_v47 = vmul.f32 0.044715, %v4114_v33  ;;  %v1607_v14 = vmul.f32 0.044715, %v4118_v53  ;;  %6533 = vst [vmem:[#allocation136_spill] sm:$0xff] %v4483_v4 }
 0x2cc   :  { %v1608_v39 = vmul.f32 0.044715, %v4122_v57  ;;  %v1609_v13 = vmul.f32 0.044715, %v4126_v5  ;;  %v1610_v18 = vmul.f32 0.044715, %v4130_v20  ;;  %v4495_v57 = vmul.f32 %v1581_v42, %v4014_v56 }
 0x2cd   :  { %v1611_v19 = vmul.f32 0.044715, %v6534_v0  ;;  %6535 = vst [vmem:[#allocation137_spill] sm:$0xff] %v4489_v31  ;;  %v1612_v44 = vmul.f32 0.044715, %v6536_v32  ;;  %v6537_v1 = vld [vmem:[#allocation50_spill] sm:$0xff]  ;;  %v4501_v0 = vmul.f32 %v1582_v10, %v4018_v17 }
 0x2ce   :  { %v1613_v33 = vmul.f32 0.044715, %v6537_v1  ;;  %v6538_v9 = vld [vmem:[#allocation51_spill] sm:$0xff]  ;;  %6539 = vst [vmem:[#allocation138_spill] sm:$0xff] %v4495_v57  ;;  %v6540_v52 = vld [vmem:[#allocation52_spill] sm:$0xff]  ;;  %v6543_v8 = vld [vmem:[#allocation5_spill] sm:$0xff] }
 0x2cf   :  { %v1614_v53 = vmul.f32 0.044715, %v6538_v9  ;;  %v1615_v4 = vmul.f32 0.044715, %v6540_v52  ;;  %v1616_v12 = vmul.f32 0.044715, %v4154_v43  ;;  %v4507_v9 = vmul.f32 %v1583_v40, %v4022_v11 }
 0x2d0   :  { %v1617_v20 = vmul.f32 0.044715, %v4158_v48  ;;  %6541 = vst [vmem:[#allocation139_spill] sm:$0xff] %v4501_v0  ;;  %v6542_v16 = vld [vmem:[#allocation55_spill] sm:$0xff]  ;;  %v1619_v32 = vmul.f32 0.044715, %v6543_v8 }
 0x2d1   :  { %v1618_v31 = vmul.f32 0.044715, %v6542_v16  ;;  %v6544_v5 = vld [vmem:[#allocation6_spill] sm:$0xff]  ;;  %6545 = vst [vmem:[#allocation140_spill] sm:$0xff] %v4507_v9  ;;  %v6546_v42 = vld [vmem:[#allocation7_spill] sm:$0xff]  ;;  %v6547_v56 = vld [vmem:[#allocation56_spill] sm:$0xff] }
 0x2d2   :  { %v1620_v1 = vmul.f32 0.044715, %v6544_v5  ;;  %v1621_v57 = vmul.f32 0.044715, %v6546_v42  ;;  %v1622_v52 = vmul.f32 0.044715, %v6547_v56  ;;  %v4519_v5 = vmul.f32 %v1585_v35, %v4030_v62 }
 0x2d3   :  { %v6548_v59 = vld [vmem:[#allocation57_spill] sm:$0xff]  ;;  %v6551_v10 = vld [vmem:[#allocation8_spill] sm:$0xff]  ;;  %v6553_v30 = vld [vmem:[#allocation10_spill] sm:$0xff]  ;;  %v4535_v62 = vmul.f32 %v1588_v3, %v4042_v60 }
 0x2d4   :  { %v1623_v43 = vmul.f32 0.044715, %v6548_v59  ;;  %v6549_v46 = vld [vmem:[#allocation25_spill] sm:$0xff]  ;;  %v1624_v0 = vmul.f32 0.044715, %v6551_v10  ;;  %6554 = vst [vmem:[#allocation142_spill] sm:$0xff] %v4519_v5  ;;  %v4525_v59 = vmul.f32 %v1586_v29, %v4034_v15  ;;  %v4547_v15 = vmul.f32 %v1592_v26, %v4058_v37 }
 0x2d5   :  { %v4513_v48 = vmul.f32 %v1584_v55, %v6549_v46  ;;  %v6552_v17 = vld [vmem:[#allocation9_spill] sm:$0xff]  ;;  %v1626_v8 = vmul.f32 0.044715, %v6553_v30  ;;  %v6555_v40 = vld [vmem:[#allocation14_spill] sm:$0xff]  ;;  %v6556_v11 = vld [vmem:[#allocation15_spill] sm:$0xff]  ;;  %6565 = vst [vmem:[#allocation145_spill] sm:$0xff] %v4535_v62 }
 0x2d6   :  { %v1625_v16 = vmul.f32 0.044715, %v6552_v17  ;;  %v1627_v9 = vmul.f32 0.044715, %v6555_v40  ;;  %v1628_v42 = vmul.f32 0.044715, %v6556_v11  ;;  %v4538_v11 = vmul.f32 %v1589_v58, %v4046_v21 }
 0x2d7   :  { %6550 = vst [vmem:[#allocation141_spill] sm:$0xff] %v4513_v48  ;;  %v6557_v28 = vld [vmem:[#allocation58_spill] sm:$0xff]  ;;  %6558 = vst [vmem:[#allocation143_spill] sm:$0xff] %v4525_v59  ;;  %v6559_v55 = vld [vmem:[#allocation59_spill] sm:$0xff]  ;;  %v4544_v59 = vmul.f32 %v1591_v36, %v4054_v49 }
 0x2d8   :  { %v1629_v56 = vmul.f32 0.044715, %v6557_v28  ;;  %v1630_v48 = vmul.f32 0.044715, %v6559_v55  ;;  %v6560_v46 = vld [vmem:[#allocation60_spill] sm:$0xff]  ;;  %v6561_v27 = vld [vmem:[#allocation61_spill] sm:$0xff] }
 0x2d9   :  { %v1631_v10 = vmul.f32 0.044715, %v6560_v46  ;;  %v1632_v17 = vmul.f32 0.044715, %v6561_v27  ;;  %v6562_v51 = vld [vmem:[#allocation28_spill] sm:$0xff]  ;;  %v6564_v35 = vld [vmem:[#allocation62_spill] sm:$0xff] }
 0x2da   :  { %v4531_v30 = vmul.f32 %v1587_v23, %v6562_v51  ;;  %v1633_v5 = vmul.f32 0.044715, %v6564_v35  ;;  %6566 = vst [vmem:[#allocation146_spill] sm:$0xff] %v4538_v11  ;;  %v6567_v28 = vld [vmem:[#allocation29_spill] sm:$0xff]  ;;  %6569 = vst [vmem:[#allocation147_spill] sm:$0xff] %v4544_v59  ;;  %v6571_v27 = vld [vmem:[#allocation30_spill] sm:$0xff] }
 0x2db   :  { %v4541_v29 = vmul.f32 %v1590_v24, %v6567_v28  ;;  %6570 = vst [vmem:[#allocation148_spill] sm:$0xff] %v4547_v15  ;;  %v4550_v23 = vmul.f32 %v1593_v22, %v6571_v27  ;;  %v6575_v3 = vld [vmem:[#allocation32_spill] sm:$0xff]  ;;  %v6577_v58 = vld [vmem:[#allocation33_spill] sm:$0xff]  ;;  %v6579_v24 = vld [vmem:[#allocation34_spill] sm:$0xff] }
 0x2dc   :  { %6563 = vst [vmem:[#allocation144_spill] sm:$0xff] %v4531_v30  ;;  %v6573_v30 = vld [vmem:[#allocation31_spill] sm:$0xff]  ;;  %v4556_v62 = vmul.f32 %v1595_v25, %v6575_v3  ;;  %v4559_v11 = vmul.f32 %v1596_v2, %v6577_v58  ;;  %v6583_v26 = vld [vmem:[#allocation36_spill] sm:$0xff]  ;;  %v6585_v22 = vld [vmem:[#allocation37_spill] sm:$0xff] }
 0x2dd   :  { %6568 = vst [vmem:[#allocation29_spill] sm:$0xff] %v4541_v29  ;;  %6572 = vst [vmem:[#allocation30_spill] sm:$0xff] %v4550_v23  ;;  %v4553_v51 = vmul.f32 %v1594_v41, %v6573_v30  ;;  %v4562_v29 = vmul.f32 %v1597_v6, %v6579_v24  ;;  %v6581_v36 = vld [vmem:[#allocation35_spill] sm:$0xff]  ;;  %v4568_v15 = vmul.f32 %v1599_v38, %v6583_v26  ;;  %v6587_v41 = vld [vmem:[#allocation38_spill] sm:$0xff] }
 0x2de   :  { %6576 = vst [vmem:[#allocation32_spill] sm:$0xff] %v4556_v62  ;;  %6578 = vst [vmem:[#allocation33_spill] sm:$0xff] %v4559_v11  ;;  %v4565_v59 = vmul.f32 %v1598_v54, %v6581_v36  ;;  %v4571_v23 = vmul.f32 %v1600_v63, %v6585_v22  ;;  %v6589_v25 = vld [vmem:[#allocation39_spill] sm:$0xff]  ;;  %v6591_v2 = vld [vmem:[#allocation40_spill] sm:$0xff] }
 0x2df   :  { %6574 = vst [vmem:[#allocation31_spill] sm:$0xff] %v4553_v51  ;;  %6580 = vst [vmem:[#allocation34_spill] sm:$0xff] %v4562_v29  ;;  %v4574_v51 = vmul.f32 %v1601_v45, %v6587_v41  ;;  %v4577_v62 = vmul.f32 %v1602_v34, %v6589_v25  ;;  %v4580_v11 = vmul.f32 %v1603_v7, %v6591_v2  ;;  %v6593_v6 = vld [vmem:[#allocation41_spill] sm:$0xff]  ;;  %v6595_v54 = vld [vmem:[#allocation42_spill] sm:$0xff] }
 0x2e0   :  { %6582 = vst [vmem:[#allocation35_spill] sm:$0xff] %v4565_v59  ;;  %6584 = vst [vmem:[#allocation36_spill] sm:$0xff] %v4568_v15  ;;  %v4583_v29 = vmul.f32 %v1604_v61, %v6593_v6  ;;  %v4586_v59 = vmul.f32 %v1605_v50, %v6595_v54  ;;  %v6597_v38 = vld [vmem:[#allocation43_spill] sm:$0xff]  ;;  %v6599_v63 = vld [vmem:[#allocation44_spill] sm:$0xff] }
 0x2e1   :  { %6586 = vst [vmem:[#allocation37_spill] sm:$0xff] %v4571_v23  ;;  %6588 = vst [vmem:[#allocation38_spill] sm:$0xff] %v4574_v51  ;;  %v4589_v15 = vmul.f32 %v1606_v47, %v6597_v38  ;;  %v4592_v23 = vmul.f32 %v1607_v14, %v6599_v63  ;;  %v6601_v45 = vld [vmem:[#allocation45_spill] sm:$0xff]  ;;  %v6603_v34 = vld [vmem:[#allocation46_spill] sm:$0xff] }
 0x2e2   :  { %6590 = vst [vmem:[#allocation39_spill] sm:$0xff] %v4577_v62  ;;  %6592 = vst [vmem:[#allocation40_spill] sm:$0xff] %v4580_v11  ;;  %v4595_v51 = vmul.f32 %v1608_v39, %v6601_v45  ;;  %v4598_v62 = vmul.f32 %v1609_v13, %v6603_v34  ;;  %v6605_v7 = vld [vmem:[#allocation47_spill] sm:$0xff]  ;;  %v6607_v61 = vld [vmem:[#allocation48_spill] sm:$0xff] }
 0x2e3   :  { %6594 = vst [vmem:[#allocation41_spill] sm:$0xff] %v4583_v29  ;;  %6596 = vst [vmem:[#allocation42_spill] sm:$0xff] %v4586_v59  ;;  %v4601_v11 = vmul.f32 %v1610_v18, %v6605_v7  ;;  %v4604_v29 = vmul.f32 %v1611_v19, %v6607_v61  ;;  %v6609_v50 = vld [vmem:[#allocation49_spill] sm:$0xff]  ;;  %v6611_v47 = vld [vmem:[#allocation50_spill] sm:$0xff] }
 0x2e4   :  { %6598 = vst [vmem:[#allocation43_spill] sm:$0xff] %v4589_v15  ;;  %6600 = vst [vmem:[#allocation44_spill] sm:$0xff] %v4592_v23  ;;  %v4607_v59 = vmul.f32 %v1612_v44, %v6609_v50  ;;  %v4610_v15 = vmul.f32 %v1613_v33, %v6611_v47  ;;  %v6613_v14 = vld [vmem:[#allocation51_spill] sm:$0xff]  ;;  %v6615_v39 = vld [vmem:[#allocation52_spill] sm:$0xff] }
 0x2e5   :  { %6602 = vst [vmem:[#allocation45_spill] sm:$0xff] %v4595_v51  ;;  %6604 = vst [vmem:[#allocation46_spill] sm:$0xff] %v4598_v62  ;;  %v4613_v23 = vmul.f32 %v1614_v53, %v6613_v14  ;;  %v4616_v51 = vmul.f32 %v1615_v4, %v6615_v39  ;;  %v6617_v13 = vld [vmem:[#allocation53_spill] sm:$0xff]  ;;  %v6619_v18 = vld [vmem:[#allocation54_spill] sm:$0xff] }
 0x2e6   :  { %6606 = vst [vmem:[#allocation47_spill] sm:$0xff] %v4601_v11  ;;  %6608 = vst [vmem:[#allocation48_spill] sm:$0xff] %v4604_v29  ;;  %v4619_v62 = vmul.f32 %v1616_v12, %v6617_v13  ;;  %v4622_v11 = vmul.f32 %v1617_v20, %v6619_v18  ;;  %v6621_v19 = vld [vmem:[#allocation55_spill] sm:$0xff]  ;;  %v6623_v44 = vld [vmem:[#allocation5_spill] sm:$0xff] }
 0x2e7   :  { %6610 = vst [vmem:[#allocation49_spill] sm:$0xff] %v4607_v59  ;;  %6612 = vst [vmem:[#allocation50_spill] sm:$0xff] %v4610_v15  ;;  %v4625_v29 = vmul.f32 %v1618_v31, %v6621_v19  ;;  %v4628_v59 = vmul.f32 %v1619_v32, %v6623_v44  ;;  %v6625_v33 = vld [vmem:[#allocation6_spill] sm:$0xff]  ;;  %v6626_v53 = vld [vmem:[#allocation7_spill] sm:$0xff] }
 0x2e8   :  { %6614 = vst [vmem:[#allocation51_spill] sm:$0xff] %v4613_v23  ;;  %6616 = vst [vmem:[#allocation52_spill] sm:$0xff] %v4616_v51  ;;  %v4631_v15 = vmul.f32 %v1620_v1, %v6625_v33  ;;  %v4634_v23 = vmul.f32 %v1621_v57, %v6626_v53  ;;  %v6628_v4 = vld [vmem:[#allocation56_spill] sm:$0xff]  ;;  %v6630_v12 = vld [vmem:[#allocation57_spill] sm:$0xff]  ;;  %v4652_v1 = vmul.f32 %v1627_v9, %v6555_v40 }
 0x2e9   :  { %6618 = vst [vmem:[#allocation53_spill] sm:$0xff] %v4619_v62  ;;  %6620 = vst [vmem:[#allocation54_spill] sm:$0xff] %v4622_v11  ;;  %v4637_v51 = vmul.f32 %v1622_v52, %v6628_v4  ;;  %v4640_v62 = vmul.f32 %v1623_v43, %v6630_v12  ;;  %v6631_v20 = vld [vmem:[#allocation8_spill] sm:$0xff]  ;;  %v6632_v31 = vld [vmem:[#allocation9_spill] sm:$0xff]  ;;  %v4661_v43 = vmul.f32 %v1630_v48, %v6559_v55 }
 0x2ea   :  { %6622 = vst [vmem:[#allocation55_spill] sm:$0xff] %v4625_v29  ;;  %6624 = vst [vmem:[#allocation5_spill] sm:$0xff] %v4628_v59  ;;  %v4643_v11 = vmul.f32 %v1624_v0, %v6631_v20  ;;  %v4646_v29 = vmul.f32 %v1625_v16, %v6632_v31  ;;  %v6634_v32 = vld [vmem:[#allocation10_spill] sm:$0xff]  ;;  %v6636_v57 = vld [vmem:[#allocation15_spill] sm:$0xff]  ;;  %v4664_v0 = vmul.f32 %v1631_v10, %v6560_v46 }
 0x2eb   :  { %6627 = vst [vmem:[#allocation6_spill] sm:$0xff] %v4634_v23  ;;  %6629 = vst [vmem:[#allocation56_spill] sm:$0xff] %v4637_v51  ;;  %v4649_v59 = vmul.f32 %v1626_v8, %v6634_v32  ;;  %v4655_v23 = vmul.f32 %v1628_v42, %v6636_v57  ;;  %v6638_v52 = vld [vmem:[#allocation58_spill] sm:$0xff]  ;;  %v6642_v16 = vld [vmem:[#allocation61_spill] sm:$0xff]  ;;  %v4670_v8 = vmul.f32 %v1633_v5, %v6564_v35 }
 0x2ec   :  { %6633 = vst [vmem:[#allocation57_spill] sm:$0xff] %v4646_v29  ;;  %6635 = vst [vmem:[#allocation8_spill] sm:$0xff] %v4652_v1  ;;  %v4658_v51 = vmul.f32 %v1629_v56, %v6638_v52  ;;  %v4667_v29 = vmul.f32 %v1632_v17, %v6642_v16  ;;  %v6645_v9 = vld [vmem:[#allocation11_spill] sm:$0xff]  ;;  %v6648_v42 = vld [vmem:[#allocation12_spill] sm:$0xff] }
 0x2ed   :  { %6637 = vst [vmem:[#allocation149_spill] sm:$0xff] %v4655_v23  ;;  %6640 = vst [vmem:[#allocation151_spill] sm:$0xff] %v4661_v43  ;;  %v6646_v1 = vld [vmem:[#allocation127_spill] sm:$0xff]  ;;  %v6649_v23 = vld [vmem:[#allocation128_spill] sm:$0xff] }
 0x2ee   :  { %6639 = vst [vmem:[#allocation150_spill] sm:$0xff] %v4658_v51  ;;  %6641 = vst [vmem:[#allocation152_spill] sm:$0xff] %v4664_v0  ;;  %v4674_v40 = vmul.f32 %v6646_v1, %v6645_v9  ;;  %v4678_v56 = vmul.f32 %v6649_v23, %v6648_v42  ;;  %v6651_v51 = vld [vmem:[#allocation13_spill] sm:$0xff]  ;;  %v6654_v10 = vld [vmem:[#allocation16_spill] sm:$0xff] }
 0x2ef   :  { %6643 = vst [vmem:[#allocation153_spill] sm:$0xff] %v4667_v29  ;;  %6644 = vst [vmem:[#allocation154_spill] sm:$0xff] %v4670_v8  ;;  %v6652_v48 = vld [vmem:[#allocation129_spill] sm:$0xff]  ;;  %v6655_v0 = vld [vmem:[#allocation130_spill] sm:$0xff] }
 0x2f0   :  { %6647 = vst [vmem:[#allocation127_spill] sm:$0xff] %v4674_v40  ;;  %6650 = vst [vmem:[#allocation128_spill] sm:$0xff] %v4678_v56  ;;  %v4682_v43 = vmul.f32 %v6652_v48, %v6651_v51  ;;  %v4686_v46 = vmul.f32 %v6655_v0, %v6654_v10  ;;  %v6657_v17 = vld [vmem:[#allocation17_spill] sm:$0xff]  ;;  %v6658_v29 = vld [vmem:[#allocation131_spill] sm:$0xff] }
 0x2f1   :  { %v4690_v5 = vmul.f32 %v6658_v29, %v6657_v17  ;;  %v6660_v8 = vld [vmem:[#allocation18_spill] sm:$0xff]  ;;  %v6661_v35 = vld [vmem:[#allocation132_spill] sm:$0xff]  ;;  %v6663_v40 = vld [vmem:[#allocation19_spill] sm:$0xff] }
 0x2f2   :  { %6653 = vst [vmem:[#allocation129_spill] sm:$0xff] %v4682_v43  ;;  %6656 = vst [vmem:[#allocation130_spill] sm:$0xff] %v4686_v46  ;;  %v4694_v1 = vmul.f32 %v6661_v35, %v6660_v8  ;;  %v6664_v9 = vld [vmem:[#allocation133_spill] sm:$0xff]  ;;  %v6666_v56 = vld [vmem:[#allocation20_spill] sm:$0xff] }
 0x2f3   :  { %6659 = vst [vmem:[#allocation131_spill] sm:$0xff] %v4690_v5  ;;  %v4698_v23 = vmul.f32 %v6664_v9, %v6663_v40  ;;  %v6667_v42 = vld [vmem:[#allocation134_spill] sm:$0xff]  ;;  %v6669_v43 = vld [vmem:[#allocation3_spill] sm:$0xff]  ;;  %v6672_v46 = vld [vmem:[#allocation4_spill] sm:$0xff] }
 0x2f4   :  { %6662 = vst [vmem:[#allocation132_spill] sm:$0xff] %v4694_v1  ;;  %v4702_v48 = vmul.f32 %v6667_v42, %v6666_v56  ;;  %v6670_v51 = vld [vmem:[#allocation135_spill] sm:$0xff]  ;;  %v6673_v10 = vld [vmem:[#allocation136_spill] sm:$0xff]  ;;  %v6675_v5 = vld [vmem:[#allocation21_spill] sm:$0xff] }
 0x2f5   :  { %6665 = vst [vmem:[#allocation133_spill] sm:$0xff] %v4698_v23  ;;  %v4706_v0 = vmul.f32 %v6670_v51, %v6669_v43  ;;  %v4710_v29 = vmul.f32 %v6673_v10, %v6672_v46  ;;  %v6676_v17 = vld [vmem:[#allocation137_spill] sm:$0xff]  ;;  %v6678_v1 = vld [vmem:[#allocation22_spill] sm:$0xff]  ;;  %v6681_v23 = vld [vmem:[#allocation23_spill] sm:$0xff] }
 0x2f6   :  { %6668 = vst [vmem:[#allocation134_spill] sm:$0xff] %v4702_v48  ;;  %v4714_v35 = vmul.f32 %v6676_v17, %v6675_v5  ;;  %v6679_v8 = vld [vmem:[#allocation138_spill] sm:$0xff]  ;;  %v6682_v40 = vld [vmem:[#allocation139_spill] sm:$0xff]  ;;  %v6684_v48 = vld [vmem:[#allocation24_spill] sm:$0xff] }
 0x2f7   :  { %6671 = vst [vmem:[#allocation135_spill] sm:$0xff] %v4706_v0  ;;  %6674 = vst [vmem:[#allocation136_spill] sm:$0xff] %v4710_v29  ;;  %v4718_v9 = vmul.f32 %v6679_v8, %v6678_v1  ;;  %v4722_v42 = vmul.f32 %v6682_v40, %v6681_v23  ;;  %v6685_v56 = vld [vmem:[#allocation140_spill] sm:$0xff]  ;;  %v6687_v0 = vld [vmem:[#allocation25_spill] sm:$0xff] }
 0x2f8   :  { %6677 = vst [vmem:[#allocation137_spill] sm:$0xff] %v4714_v35  ;;  %v4726_v51 = vmul.f32 %v6685_v56, %v6684_v48  ;;  %v6688_v43 = vld [vmem:[#allocation141_spill] sm:$0xff]  ;;  %v6690_v29 = vld [vmem:[#allocation26_spill] sm:$0xff]  ;;  %v6693_v35 = vld [vmem:[#allocation27_spill] sm:$0xff] }
 0x2f9   :  { %6680 = vst [vmem:[#allocation138_spill] sm:$0xff] %v4718_v9  ;;  %6683 = vst [vmem:[#allocation23_spill] sm:$0xff] %v4722_v42  ;;  %v4730_v10 = vmul.f32 %v6688_v43, %v6687_v0  ;;  %v6691_v46 = vld [vmem:[#allocation142_spill] sm:$0xff]  ;;  %v6694_v5 = vld [vmem:[#allocation143_spill] sm:$0xff] }
 0x2fa   :  { %6686 = vst [vmem:[#allocation139_spill] sm:$0xff] %v4726_v51  ;;  %v4734_v17 = vmul.f32 %v6691_v46, %v6690_v29  ;;  %v4738_v8 = vmul.f32 %v6694_v5, %v6693_v35  ;;  %v6696_v9 = vld [vmem:[#allocation28_spill] sm:$0xff]  ;;  %v6699_v42 = vld [vmem:[#allocation145_spill] sm:$0xff]  ;;  %v6701_v51 = vld [vmem:[#allocation146_spill] sm:$0xff] }
 0x2fb   :  { %6689 = vst [vmem:[#allocation24_spill] sm:$0xff] %v4730_v10  ;;  %v6697_v1 = vld [vmem:[#allocation144_spill] sm:$0xff]  ;;  %v4746_v56 = vmul.f32 %v6699_v42, %v4042_v60  ;;  %v4750_v43 = vmul.f32 %v6701_v51, %v4046_v21  ;;  %v6703_v10 = vld [vmem:[#allocation29_spill] sm:$0xff] }
 0x2fc   :  { %6692 = vst [vmem:[#allocation140_spill] sm:$0xff] %v4734_v17  ;;  %6695 = vst [vmem:[#allocation25_spill] sm:$0xff] %v4738_v8  ;;  %v4742_v40 = vmul.f32 %v6697_v1, %v6696_v9  ;;  %v4754_v46 = vmul.f32 %v6703_v10, %v6567_v28  ;;  %v6705_v17 = vld [vmem:[#allocation147_spill] sm:$0xff]  ;;  %v6707_v8 = vld [vmem:[#allocation148_spill] sm:$0xff] }
 0x2fd   :  { %6700 = vst [vmem:[#allocation26_spill] sm:$0xff] %v4746_v56  ;;  %6702 = vst [vmem:[#allocation142_spill] sm:$0xff] %v4750_v43  ;;  %v4758_v5 = vmul.f32 %v6705_v17, %v4054_v49  ;;  %v4762_v1 = vmul.f32 %v6707_v8, %v4058_v37  ;;  %v6711_v56 = vld [vmem:[#allocation31_spill] sm:$0xff]  ;;  %v6713_v43 = vld [vmem:[#allocation32_spill] sm:$0xff] }
 0x2fe   :  { %6698 = vst [vmem:[#allocation141_spill] sm:$0xff] %v4742_v40  ;;  %6704 = vst [vmem:[#allocation27_spill] sm:$0xff] %v4754_v46  ;;  %v6709_v40 = vld [vmem:[#allocation30_spill] sm:$0xff]  ;;  %v4770_v51 = vmul.f32 %v6711_v56, %v6573_v30  ;;  %v4774_v10 = vmul.f32 %v6713_v43, %v6575_v3  ;;  %v6715_v46 = vld [vmem:[#allocation33_spill] sm:$0xff] }
 0x2ff   :  { %6706 = vst [vmem:[#allocation143_spill] sm:$0xff] %v4758_v5  ;;  %6708 = vst [vmem:[#allocation28_spill] sm:$0xff] %v4762_v1  ;;  %v4766_v42 = vmul.f32 %v6709_v40, %v6571_v27  ;;  %v4778_v17 = vmul.f32 %v6715_v46, %v6577_v58  ;;  %v6717_v5 = vld [vmem:[#allocation34_spill] sm:$0xff]  ;;  %v6719_v1 = vld [vmem:[#allocation35_spill] sm:$0xff] }
 0x300   :  { %6712 = vst [vmem:[#allocation145_spill] sm:$0xff] %v4770_v51  ;;  %6714 = vst [vmem:[#allocation146_spill] sm:$0xff] %v4774_v10  ;;  %v4782_v8 = vmul.f32 %v6717_v5, %v6579_v24  ;;  %v4786_v40 = vmul.f32 %v6719_v1, %v6581_v36  ;;  %v6723_v51 = vld [vmem:[#allocation37_spill] sm:$0xff]  ;;  %v6725_v10 = vld [vmem:[#allocation38_spill] sm:$0xff] }
 0x301   :  { %6710 = vst [vmem:[#allocation144_spill] sm:$0xff] %v4766_v42  ;;  %6716 = vst [vmem:[#allocation29_spill] sm:$0xff] %v4778_v17  ;;  %v6721_v42 = vld [vmem:[#allocation36_spill] sm:$0xff]  ;;  %v4794_v43 = vmul.f32 %v6723_v51, %v6585_v22  ;;  %v4798_v46 = vmul.f32 %v6725_v10, %v6587_v41  ;;  %v6727_v17 = vld [vmem:[#allocation39_spill] sm:$0xff] }
 0x302   :  { %6718 = vst [vmem:[#allocation147_spill] sm:$0xff] %v4782_v8  ;;  %6720 = vst [vmem:[#allocation148_spill] sm:$0xff] %v4786_v40  ;;  %v4790_v56 = vmul.f32 %v6721_v42, %v6583_v26  ;;  %v4802_v5 = vmul.f32 %v6727_v17, %v6589_v25  ;;  %v6729_v8 = vld [vmem:[#allocation40_spill] sm:$0xff]  ;;  %v6731_v40 = vld [vmem:[#allocation41_spill] sm:$0xff] }
 0x303   :  { %6724 = vst [vmem:[#allocation31_spill] sm:$0xff] %v4794_v43  ;;  %6726 = vst [vmem:[#allocation32_spill] sm:$0xff] %v4798_v46  ;;  %v4806_v1 = vmul.f32 %v6729_v8, %v6591_v2  ;;  %v4810_v42 = vmul.f32 %v6731_v40, %v6593_v6  ;;  %v6735_v43 = vld [vmem:[#allocation43_spill] sm:$0xff]  ;;  %v6737_v46 = vld [vmem:[#allocation44_spill] sm:$0xff] }
 0x304   :  { %6722 = vst [vmem:[#allocation30_spill] sm:$0xff] %v4790_v56  ;;  %6728 = vst [vmem:[#allocation33_spill] sm:$0xff] %v4802_v5  ;;  %v6733_v56 = vld [vmem:[#allocation42_spill] sm:$0xff]  ;;  %v4818_v10 = vmul.f32 %v6735_v43, %v6597_v38  ;;  %v4822_v17 = vmul.f32 %v6737_v46, %v6599_v63  ;;  %v6739_v5 = vld [vmem:[#allocation45_spill] sm:$0xff] }
 0x305   :  { %6730 = vst [vmem:[#allocation34_spill] sm:$0xff] %v4806_v1  ;;  %6732 = vst [vmem:[#allocation35_spill] sm:$0xff] %v4810_v42  ;;  %v4814_v51 = vmul.f32 %v6733_v56, %v6595_v54  ;;  %v4826_v8 = vmul.f32 %v6739_v5, %v6601_v45  ;;  %v6741_v1 = vld [vmem:[#allocation46_spill] sm:$0xff]  ;;  %v6743_v42 = vld [vmem:[#allocation47_spill] sm:$0xff] }
 0x306   :  { %6736 = vst [vmem:[#allocation37_spill] sm:$0xff] %v4818_v10  ;;  %6738 = vst [vmem:[#allocation38_spill] sm:$0xff] %v4822_v17  ;;  %v4830_v40 = vmul.f32 %v6741_v1, %v6603_v34  ;;  %v4834_v56 = vmul.f32 %v6743_v42, %v6605_v7  ;;  %v6747_v10 = vld [vmem:[#allocation49_spill] sm:$0xff]  ;;  %v6749_v17 = vld [vmem:[#allocation50_spill] sm:$0xff] }
 0x307   :  { %6734 = vst [vmem:[#allocation36_spill] sm:$0xff] %v4814_v51  ;;  %6740 = vst [vmem:[#allocation39_spill] sm:$0xff] %v4826_v8  ;;  %v6745_v51 = vld [vmem:[#allocation48_spill] sm:$0xff]  ;;  %v4842_v46 = vmul.f32 %v6747_v10, %v6609_v50  ;;  %v4846_v5 = vmul.f32 %v6749_v17, %v6611_v47  ;;  %v6751_v8 = vld [vmem:[#allocation51_spill] sm:$0xff] }
 0x308   :  { %6742 = vst [vmem:[#allocation40_spill] sm:$0xff] %v4830_v40  ;;  %6744 = vst [vmem:[#allocation41_spill] sm:$0xff] %v4834_v56  ;;  %v4838_v43 = vmul.f32 %v6745_v51, %v6607_v61  ;;  %v4850_v1 = vmul.f32 %v6751_v8, %v6613_v14  ;;  %v6752_v40 = vld [vmem:[#allocation52_spill] sm:$0xff]  ;;  %v6754_v56 = vld [vmem:[#allocation53_spill] sm:$0xff] }
 0x309   :  { %6748 = vst [vmem:[#allocation43_spill] sm:$0xff] %v4842_v46  ;;  %6750 = vst [vmem:[#allocation44_spill] sm:$0xff] %v4846_v5  ;;  %v4854_v42 = vmul.f32 %v6752_v40, %v6615_v39  ;;  %v4858_v51 = vmul.f32 %v6754_v56, %v6617_v13  ;;  %v6757_v46 = vld [vmem:[#allocation55_spill] sm:$0xff]  ;;  %v6758_v5 = vld [vmem:[#allocation5_spill] sm:$0xff]  ;;  %v4874_v40 = vmul.f32 %v4631_v15, %v6625_v33 }
 0x30a   :  { %6746 = vst [vmem:[#allocation42_spill] sm:$0xff] %v4838_v43  ;;  %v6756_v43 = vld [vmem:[#allocation54_spill] sm:$0xff]  ;;  %v4866_v17 = vmul.f32 %v6757_v46, %v6621_v19  ;;  %v4870_v8 = vmul.f32 %v6758_v5, %v6623_v44  ;;  %v4886_v46 = vmul.f32 %v4640_v62, %v6630_v12  ;;  %v4890_v5 = vmul.f32 %v4643_v11, %v6631_v20 }
 0x30b   :  { %6753 = vst [vmem:[#allocation45_spill] sm:$0xff] %v4854_v42  ;;  %6755 = vst [vmem:[#allocation46_spill] sm:$0xff] %v4858_v51  ;;  %v4862_v10 = vmul.f32 %v6756_v43, %v6619_v18  ;;  %v6760_v42 = vld [vmem:[#allocation6_spill] sm:$0xff]  ;;  %v6762_v51 = vld [vmem:[#allocation56_spill] sm:$0xff] }
 0x30c   :  { %6759 = vst [vmem:[#allocation47_spill] sm:$0xff] %v4870_v8  ;;  %v4878_v56 = vmul.f32 %v6760_v42, %v6626_v53  ;;  %v4882_v43 = vmul.f32 %v6762_v51, %v6628_v4  ;;  %6764 = vst [vmem:[#allocation50_spill] sm:$0xff] %v4886_v46  ;;  %v6766_v8 = vld [vmem:[#allocation57_spill] sm:$0xff]  ;;  %v4898_v42 = vmul.f32 %v4649_v59, %v6634_v32  ;;  %v6770_v53 = vld [vmem:[#allocation8_spill] sm:$0xff] }
 0x30d   :  { %6765 = vst [vmem:[#allocation51_spill] sm:$0xff] %v4890_v5  ;;  %v4894_v15 = vmul.f32 %v6766_v8, %v6632_v31  ;;  %v6774_v46 = vld [vmem:[#allocation150_spill] sm:$0xff]  ;;  %v6776_v5 = vld [vmem:[#allocation151_spill] sm:$0xff]  ;;  %v6779_v31 = vld [vmem:[#allocation152_spill] sm:$0xff] }
 0x30e   :  { %6761 = vst [vmem:[#allocation48_spill] sm:$0xff] %v4878_v56  ;;  %6763 = vst [vmem:[#allocation49_spill] sm:$0xff] %v4882_v43  ;;  %v6769_v56 = vld [vmem:[#allocation14_spill] sm:$0xff]  ;;  %v6772_v43 = vld [vmem:[#allocation149_spill] sm:$0xff]  ;;  %v4910_v11 = vmul.f32 %v6774_v46, %v6638_v52  ;;  %v4914_v8 = vmul.f32 %v6776_v5, %v6559_v55 }
 0x30f   :  { %6767 = vst [vmem:[#allocation52_spill] sm:$0xff] %v4894_v15  ;;  %6768 = vst [vmem:[#allocation53_spill] sm:$0xff] %v4898_v42  ;;  %v4902_v51 = vmul.f32 %v6770_v53, %v6769_v56  ;;  %v4906_v62 = vmul.f32 %v6772_v43, %v6636_v57  ;;  %v6778_v15 = vld [vmem:[#allocation60_spill] sm:$0xff]  ;;  %v6781_v42 = vld [vmem:[#allocation153_spill] sm:$0xff] }
 0x310   :  { %6775 = vst [vmem:[#allocation5_spill] sm:$0xff] %v4910_v11  ;;  %6777 = vst [vmem:[#allocation6_spill] sm:$0xff] %v4914_v8  ;;  %v4918_v59 = vmul.f32 %v6779_v31, %v6778_v15  ;;  %v4922_v53 = vmul.f32 %v6781_v42, %v6642_v16  ;;  %v6784_v56 = vld [vmem:[#allocation154_spill] sm:$0xff]  ;;  %v6787_v57 = vld [vmem:[#allocation127_spill] sm:$0xff] }
 0x311   :  { %6771 = vst [vmem:[#allocation54_spill] sm:$0xff] %v4902_v51  ;;  %6773 = vst [vmem:[#allocation55_spill] sm:$0xff] %v4906_v62  ;;  %v6783_v51 = vld [vmem:[#allocation62_spill] sm:$0xff]  ;;  %v6786_v62 = vld [vmem:[#allocation11_spill] sm:$0xff] }
 0x312   :  { %6780 = vst [vmem:[#allocation56_spill] sm:$0xff] %v4918_v59  ;;  %6782 = vst [vmem:[#allocation57_spill] sm:$0xff] %v4922_v53  ;;  %v4926_v43 = vmul.f32 %v6784_v56, %v6783_v51  ;;  %v4930_v46 = vadd.f32 %v6787_v57, %v6786_v62  ;;  %v6789_v11 = vld [vmem:[#allocation12_spill] sm:$0xff]  ;;  %v6791_v8 = vld [vmem:[#allocation13_spill] sm:$0xff] }
 0x313   :  { %v6790_v52 = vld [vmem:[#allocation128_spill] sm:$0xff]  ;;  %v6792_v55 = vld [vmem:[#allocation129_spill] sm:$0xff]  ;;  %v6795_v59 = vld [vmem:[#allocation130_spill] sm:$0xff] }
 0x314   :  { %6785 = vst [vmem:[#allocation8_spill] sm:$0xff] %v4926_v43  ;;  %6788 = vst [vmem:[#allocation149_spill] sm:$0xff] %v4930_v46  ;;  %v1763_v5 = vadd.f32 %v6790_v52, %v6789_v11  ;;  %v4936_v32 = vadd.f32 %v6792_v55, %v6791_v8  ;;  %v6794_v31 = vld [vmem:[#allocation16_spill] sm:$0xff]  ;;  %v6797_v42 = vld [vmem:[#allocation17_spill] sm:$0xff] }
 0x315   :  { %v4940_v15 = vadd.f32 %v6795_v59, %v6794_v31  ;;  %v6798_v53 = vld [vmem:[#allocation131_spill] sm:$0xff]  ;;  %v6800_v56 = vld [vmem:[#allocation18_spill] sm:$0xff]  ;;  %v6801_v43 = vld [vmem:[#allocation132_spill] sm:$0xff] }
 0x316   :  { %6793 = vst [vmem:[#allocation150_spill] sm:$0xff] %v4936_v32  ;;  %v4944_v16 = vadd.f32 %v6798_v53, %v6797_v42  ;;  %v4948_v51 = vadd.f32 %v6801_v43, %v6800_v56  ;;  %v6803_v57 = vld [vmem:[#allocation19_spill] sm:$0xff]  ;;  %v6804_v62 = vld [vmem:[#allocation133_spill] sm:$0xff]  ;;  %v6805_v52 = vld [vmem:[#allocation20_spill] sm:$0xff] }
 0x317   :  { %6796 = vst [vmem:[#allocation151_spill] sm:$0xff] %v4940_v15  ;;  %v4952_v46 = vadd.f32 %v6804_v62, %v6803_v57  ;;  %v6806_v11 = vld [vmem:[#allocation134_spill] sm:$0xff]  ;;  %v6807_v8 = vld [vmem:[#allocation3_spill] sm:$0xff]  ;;  %v6809_v31 = vld [vmem:[#allocation4_spill] sm:$0xff] }
 0x318   :  { %6799 = vst [vmem:[#allocation152_spill] sm:$0xff] %v4944_v16  ;;  %6802 = vst [vmem:[#allocation153_spill] sm:$0xff] %v4948_v51  ;;  %v4956_v55 = vadd.f32 %v6806_v11, %v6805_v52  ;;  %v6808_v32 = vld [vmem:[#allocation135_spill] sm:$0xff]  ;;  %v6810_v15 = vld [vmem:[#allocation136_spill] sm:$0xff] }
 0x319   :  { %v4960_v59 = vadd.f32 %v6808_v32, %v6807_v8  ;;  %v4964_v53 = vadd.f32 %v6810_v15, %v6809_v31  ;;  %v6811_v42 = vld [vmem:[#allocation21_spill] sm:$0xff]  ;;  %v6813_v56 = vld [vmem:[#allocation22_spill] sm:$0xff]  ;;  %v6815_v62 = vld [vmem:[#allocation23_spill] sm:$0xff] }
 0x31a   :  { %v6812_v16 = vld [vmem:[#allocation137_spill] sm:$0xff]  ;;  %v6814_v51 = vld [vmem:[#allocation138_spill] sm:$0xff]  ;;  %v4976_v52 = vadd.f32 %v6815_v62, %v6681_v23  ;;  %v6816_v11 = vld [vmem:[#allocation139_spill] sm:$0xff] }
 0x31b   :  { %v4968_v43 = vadd.f32 %v6812_v16, %v6811_v42  ;;  %v4972_v57 = vadd.f32 %v6814_v51, %v6813_v56  ;;  %v4980_v32 = vadd.f32 %v6816_v11, %v6684_v48  ;;  %v6817_v8 = vld [vmem:[#allocation24_spill] sm:$0xff]  ;;  %v6819_v42 = vld [vmem:[#allocation25_spill] sm:$0xff]  ;;  %v6821_v62 = vld [vmem:[#allocation26_spill] sm:$0xff] }
 0x31c   :  { %v4984_v15 = vadd.f32 %v6817_v8, %v6687_v0  ;;  %v6818_v31 = vld [vmem:[#allocation140_spill] sm:$0xff]  ;;  %v4992_v51 = vadd.f32 %v6819_v42, %v6693_v35  ;;  %v6820_v56 = vld [vmem:[#allocation141_spill] sm:$0xff]  ;;  %v5000_v48 = vadd.f32 %v6821_v62, %v4042_v60  ;;  %v6822_v11 = vld [vmem:[#allocation142_spill] sm:$0xff] }
 0x31d   :  { %v4988_v16 = vadd.f32 %v6818_v31, %v6690_v29  ;;  %v4996_v23 = vadd.f32 %v6820_v56, %v6696_v9  ;;  %v5004_v0 = vadd.f32 %v6822_v11, %v4046_v21  ;;  %v6823_v8 = vld [vmem:[#allocation27_spill] sm:$0xff]  ;;  %v6825_v42 = vld [vmem:[#allocation28_spill] sm:$0xff]  ;;  %v6827_v62 = vld [vmem:[#allocation145_spill] sm:$0xff] }
 0x31e   :  { %v5008_v29 = vadd.f32 %v6823_v8, %v6567_v28  ;;  %v6824_v31 = vld [vmem:[#allocation143_spill] sm:$0xff]  ;;  %v5016_v9 = vadd.f32 %v6825_v42, %v4058_v37  ;;  %v6826_v56 = vld [vmem:[#allocation144_spill] sm:$0xff]  ;;  %v5024_v21 = vadd.f32 %v6827_v62, %v6573_v30  ;;  %v6828_v11 = vld [vmem:[#allocation146_spill] sm:$0xff] }
 0x31f   :  { %v5012_v35 = vadd.f32 %v6824_v31, %v4054_v49  ;;  %v5020_v60 = vadd.f32 %v6826_v56, %v6571_v27  ;;  %v5028_v28 = vadd.f32 %v6828_v11, %v6575_v3  ;;  %v6829_v8 = vld [vmem:[#allocation29_spill] sm:$0xff]  ;;  %v6830_v31 = vld [vmem:[#allocation147_spill] sm:$0xff]  ;;  %v6831_v42 = vld [vmem:[#allocation148_spill] sm:$0xff] }
 0x320   :  { %v5032_v49 = vadd.f32 %v6829_v8, %v6577_v58  ;;  %v5036_v37 = vadd.f32 %v6830_v31, %v6579_v24  ;;  %v5040_v27 = vadd.f32 %v6831_v42, %v6581_v36  ;;  %v6832_v56 = vld [vmem:[#allocation30_spill] sm:$0xff]  ;;  %v6833_v62 = vld [vmem:[#allocation31_spill] sm:$0xff]  ;;  %v6834_v11 = vld [vmem:[#allocation32_spill] sm:$0xff] }
 0x321   :  { %v5044_v30 = vadd.f32 %v6832_v56, %v6583_v26  ;;  %v5048_v3 = vadd.f32 %v6833_v62, %v6585_v22  ;;  %v5052_v58 = vadd.f32 %v6834_v11, %v6587_v41  ;;  %v6835_v8 = vld [vmem:[#allocation33_spill] sm:$0xff]  ;;  %v6836_v31 = vld [vmem:[#allocation34_spill] sm:$0xff]  ;;  %v6837_v42 = vld [vmem:[#allocation35_spill] sm:$0xff] }
 0x322   :  { %v5056_v24 = vadd.f32 %v6835_v8, %v6589_v25  ;;  %v5060_v36 = vadd.f32 %v6836_v31, %v6591_v2  ;;  %v5064_v26 = vadd.f32 %v6837_v42, %v6593_v6  ;;  %v6838_v56 = vld [vmem:[#allocation36_spill] sm:$0xff]  ;;  %v6839_v62 = vld [vmem:[#allocation37_spill] sm:$0xff]  ;;  %v6840_v11 = vld [vmem:[#allocation38_spill] sm:$0xff] }
 0x323   :  { %v5068_v22 = vadd.f32 %v6838_v56, %v6595_v54  ;;  %v5072_v41 = vadd.f32 %v6839_v62, %v6597_v38  ;;  %v5076_v25 = vadd.f32 %v6840_v11, %v6599_v63  ;;  %v6841_v8 = vld [vmem:[#allocation39_spill] sm:$0xff]  ;;  %v6842_v31 = vld [vmem:[#allocation40_spill] sm:$0xff]  ;;  %v6843_v42 = vld [vmem:[#allocation41_spill] sm:$0xff] }
 0x324   :  { %v5080_v2 = vadd.f32 %v6841_v8, %v6601_v45  ;;  %v5084_v6 = vadd.f32 %v6842_v31, %v6603_v34  ;;  %v5088_v54 = vadd.f32 %v6843_v42, %v6605_v7  ;;  %v6844_v56 = vld [vmem:[#allocation42_spill] sm:$0xff]  ;;  %v6845_v62 = vld [vmem:[#allocation43_spill] sm:$0xff]  ;;  %v6846_v11 = vld [vmem:[#allocation44_spill] sm:$0xff]  ;;  %v5104_v34 = vadd.f32 %v4850_v1, %v6613_v14 }
 0x325   :  { %v5092_v38 = vadd.f32 %v6844_v56, %v6607_v61  ;;  %v5096_v63 = vadd.f32 %v6845_v62, %v6609_v50  ;;  %v5100_v45 = vadd.f32 %v6846_v11, %v6611_v47  ;;  %v6847_v8 = vld [vmem:[#allocation45_spill] sm:$0xff]  ;;  %v6848_v31 = vld [vmem:[#allocation46_spill] sm:$0xff]  ;;  %v5116_v50 = vadd.f32 %v4862_v10, %v6619_v18  ;;  %v6849_v42 = vld [vmem:[#allocation47_spill] sm:$0xff] }
 0x326   :  { %v5108_v7 = vadd.f32 %v6847_v8, %v6615_v39  ;;  %v5112_v61 = vadd.f32 %v6848_v31, %v6617_v13  ;;  %v5120_v47 = vadd.f32 %v4866_v17, %v6621_v19  ;;  %v5124_v14 = vadd.f32 %v6849_v42, %v6623_v44  ;;  %v6851_v1 = vld [vmem:[#allocation7_spill] sm:$0xff]  ;;  %v6852_v56 = vld [vmem:[#allocation48_spill] sm:$0xff]  ;;  %v6854_v62 = vld [vmem:[#allocation49_spill] sm:$0xff] }
 0x327   :  { %v5128_v39 = vadd.f32 %v4874_v40, %v6625_v33  ;;  %v5132_v13 = vadd.f32 %v6852_v56, %v6851_v1  ;;  %v5136_v18 = vadd.f32 %v6854_v62, %v6628_v4  ;;  %v6856_v10 = vld [vmem:[#allocation50_spill] sm:$0xff]  ;;  %v6858_v17 = vld [vmem:[#allocation51_spill] sm:$0xff]  ;;  %v6860_v11 = vld [vmem:[#allocation9_spill] sm:$0xff] }
 0x328   :  { %v5140_v19 = vadd.f32 %v6856_v10, %v6630_v12  ;;  %v5144_v44 = vadd.f32 %v6858_v17, %v6631_v20  ;;  %v6861_v8 = vld [vmem:[#allocation52_spill] sm:$0xff]  ;;  %v6863_v40 = vld [vmem:[#allocation10_spill] sm:$0xff]  ;;  %v6864_v31 = vld [vmem:[#allocation53_spill] sm:$0xff] }
 0x329   :  { %6850 = vst [vmem:[#allocation154_spill] sm:$0xff] %v5128_v39  ;;  %6853 = vst [vmem:[#allocation11_spill] sm:$0xff] %v5132_v13  ;;  %v5148_v33 = vadd.f32 %v6861_v8, %v6860_v11  ;;  %v5152_v42 = vadd.f32 %v6864_v31, %v6863_v40  ;;  %v6866_v1 = vld [vmem:[#allocation14_spill] sm:$0xff]  ;;  %v6869_v62 = vld [vmem:[#allocation15_spill] sm:$0xff] }
 0x32a   :  { %6855 = vst [vmem:[#allocation127_spill] sm:$0xff] %v5136_v18  ;;  %6857 = vst [vmem:[#allocation12_spill] sm:$0xff] %v5140_v19  ;;  %v6867_v56 = vld [vmem:[#allocation54_spill] sm:$0xff]  ;;  %v6870_v18 = vld [vmem:[#allocation55_spill] sm:$0xff] }
 0x32b   :  { %6859 = vst [vmem:[#allocation128_spill] sm:$0xff] %v5144_v44  ;;  %6862 = vst [vmem:[#allocation13_spill] sm:$0xff] %v5148_v33  ;;  %v5156_v4 = vadd.f32 %v6867_v56, %v6866_v1  ;;  %v5160_v12 = vadd.f32 %v6870_v18, %v6869_v62  ;;  %v6872_v10 = vld [vmem:[#allocation58_spill] sm:$0xff]  ;;  %v6873_v19 = vld [vmem:[#allocation5_spill] sm:$0xff]  ;;  %v1827_v18 = vmul.f32 0.7978846, %v1763_v5 }
 0x32c   :  { %6865 = vst [vmem:[#allocation129_spill] sm:$0xff] %v5152_v42  ;;  %v5164_v20 = vadd.f32 %v6873_v19, %v6872_v10  ;;  %v6875_v17 = vld [vmem:[#allocation59_spill] sm:$0xff]  ;;  %v6876_v44 = vld [vmem:[#allocation6_spill] sm:$0xff]  ;;  %v6878_v8 = vld [vmem:[#allocation60_spill] sm:$0xff]  ;;  %v1835_v5 = vmul.f32 0.7978846, %v4964_v53 }
 0x32d   :  { %6868 = vst [vmem:[#allocation16_spill] sm:$0xff] %v5156_v4  ;;  %6871 = vst [vmem:[#allocation130_spill] sm:$0xff] %v5160_v12  ;;  %v5168_v11 = vadd.f32 %v6876_v44, %v6875_v17  ;;  %v6879_v33 = vld [vmem:[#allocation56_spill] sm:$0xff]  ;;  %v6880_v31 = vld [vmem:[#allocation61_spill] sm:$0xff]  ;;  %v5200_v53 = vmul.f32 0.7978846, %v5000_v48 }
 0x32e   :  { %6874 = vst [vmem:[#allocation17_spill] sm:$0xff] %v5164_v20  ;;  %v5172_v40 = vadd.f32 %v6879_v33, %v6878_v8  ;;  %v6881_v42 = vld [vmem:[#allocation57_spill] sm:$0xff]  ;;  %v6883_v62 = vld [vmem:[#allocation62_spill] sm:$0xff]  ;;  %v6884_v12 = vld [vmem:[#allocation8_spill] sm:$0xff]  ;;  %v1832_v8 = vmul.f32 0.7978846, %v4952_v46 }
 0x32f   :  { %6877 = vst [vmem:[#allocation131_spill] sm:$0xff] %v5168_v11  ;;  %v5176_v1 = vadd.f32 %v6881_v42, %v6880_v31  ;;  %v6882_v56 = vld [vmem:[#allocation149_spill] sm:$0xff]  ;;  %v5181_v13 = vadd.f32 %v6884_v12, %v6883_v62  ;;  %v6885_v19 = vld [vmem:[#allocation150_spill] sm:$0xff]  ;;  %v6886_v20 = vld [vmem:[#allocation151_spill] sm:$0xff]  ;;  %v1833_v42 = vmul.f32 0.7978846, %v4956_v55 }
 0x330   :  { %v1826_v4 = vmul.f32 0.7978846, %v6882_v56  ;;  %v1828_v10 = vmul.f32 0.7978846, %v6885_v19  ;;  %v1829_v44 = vmul.f32 0.7978846, %v6886_v20 }
 0x331   :  { %v6887_v17 = vld [vmem:[#allocation152_spill] sm:$0xff]  ;;  %v6888_v39 = vld [vmem:[#allocation153_spill] sm:$0xff]  ;;  %v1834_v31 = vmul.f32 0.7978846, %v4960_v59  ;;  %v1836_v12 = vmul.f32 0.7978846, %v4968_v43 }
 0x332   :  { %v1830_v11 = vmul.f32 0.7978846, %v6887_v17  ;;  %v1831_v33 = vmul.f32 0.7978846, %v6888_v39  ;;  %2766 = vtanh.f32 %v1826_v4  ;;  %v1837_v56 = vmul.f32 0.7978846, %v4972_v57 }
 0x333   :  { %2768 = vtanh.f32 %v1827_v18  ;;  %v1838_v20 = vmul.f32 0.7978846, %v4976_v52  ;;  %v1839_v62 = vmul.f32 0.7978846, %v4980_v32  ;;  %v1840_v39 = vmul.f32 0.7978846, %v4984_v15 }
 0x334   :  { %2770 = vtanh.f32 %v1828_v10  ;;  %v1841_v46 = vmul.f32 0.7978846, %v4988_v16  ;;  %v1842_v55 = vmul.f32 0.7978846, %v4992_v51  ;;  %v1843_v59 = vmul.f32 0.7978846, %v4996_v23 }
 0x335   :  { %2772 = vtanh.f32 %v1829_v44  ;;  %v5203_v43 = vmul.f32 0.7978846, %v5004_v0  ;;  %v5206_v57 = vmul.f32 0.7978846, %v5008_v29  ;;  %v5209_v52 = vmul.f32 0.7978846, %v5012_v35 }
 0x336   :  { %2774 = vtanh.f32 %v1830_v11  ;;  %v5212_v32 = vmul.f32 0.7978846, %v5016_v9  ;;  %v5215_v15 = vmul.f32 0.7978846, %v5020_v60  ;;  %v5218_v16 = vmul.f32 0.7978846, %v5024_v21 }
 0x337   :  { %2776 = vtanh.f32 %v1831_v33  ;;  %v5221_v51 = vmul.f32 0.7978846, %v5028_v28  ;;  %v5224_v23 = vmul.f32 0.7978846, %v5032_v49  ;;  %v5227_v48 = vmul.f32 0.7978846, %v5036_v37 }
 0x338   :  { %2778 = vtanh.f32 %v1832_v8  ;;  %v5230_v0 = vmul.f32 0.7978846, %v5040_v27  ;;  %v5233_v29 = vmul.f32 0.7978846, %v5044_v30  ;;  %v5236_v35 = vmul.f32 0.7978846, %v5048_v3 }
 0x339   :  { %2780 = vtanh.f32 %v1833_v42  ;;  %v5239_v9 = vmul.f32 0.7978846, %v5052_v58  ;;  %v5242_v60 = vmul.f32 0.7978846, %v5056_v24  ;;  %v5245_v21 = vmul.f32 0.7978846, %v5060_v36 }
 0x33a   :  { %2782 = vtanh.f32 %v1834_v31  ;;  %v5248_v28 = vmul.f32 0.7978846, %v5064_v26  ;;  %v5251_v37 = vmul.f32 0.7978846, %v5068_v22  ;;  %v5254_v27 = vmul.f32 0.7978846, %v5072_v41 }
 0x33b   :  { %2784 = vtanh.f32 %v1835_v5  ;;  %v5257_v30 = vmul.f32 0.7978846, %v5076_v25  ;;  %v5260_v58 = vmul.f32 0.7978846, %v5080_v2  ;;  %v5263_v24 = vmul.f32 0.7978846, %v5084_v6 }
 0x33c   :  { %v2767_v49 = vpop.eup %2766  ;;  %2786 = vtanh.f32 %v1836_v12  ;;  %v5266_v36 = vmul.f32 0.7978846, %v5088_v54  ;;  %v5269_v22 = vmul.f32 0.7978846, %v5092_v38  ;;  %v5272_v41 = vmul.f32 0.7978846, %v5096_v63 }
 0x33d   :  { %v2769_v3 = vpop.eup %2768  ;;  %2788 = vtanh.f32 %v1837_v56  ;;  %v5275_v25 = vmul.f32 0.7978846, %v5100_v45  ;;  %v5278_v4 = vmul.f32 0.7978846, %v5104_v34  ;;  %v5281_v6 = vmul.f32 0.7978846, %v5108_v7 }
 0x33e   :  { %v2771_v26 = vpop.eup %2770  ;;  %2790 = vtanh.f32 %v1838_v20  ;;  %v5284_v54 = vmul.f32 0.7978846, %v5112_v61  ;;  %v5287_v11 = vmul.f32 0.7978846, %v5116_v50  ;;  %v5290_v63 = vmul.f32 0.7978846, %v5120_v47 }
 0x33f   :  { %v2773_v2 = vpop.eup %2772  ;;  %2792 = vtanh.f32 %v1839_v62  ;;  %v5293_v45 = vmul.f32 0.7978846, %v5124_v14  ;;  %v6889_v18 = vld [vmem:[#allocation154_spill] sm:$0xff]  ;;  %v6890_v7 = vld [vmem:[#allocation11_spill] sm:$0xff]  ;;  %v6892_v17 = vld [vmem:[#allocation12_spill] sm:$0xff] }
 0x340   :  { %v2775_v38 = vpop.eup %2774  ;;  %2794 = vtanh.f32 %v1840_v39  ;;  %v5296_v19 = vmul.f32 0.7978846, %v6889_v18  ;;  %v5299_v10 = vmul.f32 0.7978846, %v6890_v7  ;;  %v6891_v61 = vld [vmem:[#allocation127_spill] sm:$0xff]  ;;  %v6893_v47 = vld [vmem:[#allocation128_spill] sm:$0xff] }
 0x341   :  { %v2777_v34 = vpop.eup %2776  ;;  %v5302_v44 = vmul.f32 0.7978846, %v6891_v61  ;;  %2796 = vtanh.f32 %v1841_v46  ;;  %v5305_v33 = vmul.f32 0.7978846, %v6892_v17  ;;  %v5308_v8 = vmul.f32 0.7978846, %v6893_v47 }
 0x342   :  { %v2779_v50 = vpop.eup %2778  ;;  %v6894_v14 = vld [vmem:[#allocation13_spill] sm:$0xff]  ;;  %2798 = vtanh.f32 %v1842_v55  ;;  %v6896_v56 = vld [vmem:[#allocation16_spill] sm:$0xff]  ;;  %v6897_v62 = vld [vmem:[#allocation130_spill] sm:$0xff]  ;;  %v5329_v55 = vmul.f32 0.7978846, %v5172_v40 }
 0x343   :  { %v5311_v42 = vmul.f32 0.7978846, %v6894_v14  ;;  %v2781_v31 = vpop.eup %2780  ;;  %v6895_v5 = vld [vmem:[#allocation129_spill] sm:$0xff]  ;;  %v5317_v20 = vmul.f32 0.7978846, %v6896_v56  ;;  %2800 = vtanh.f32 %v1843_v59  ;;  %v6899_v61 = vld [vmem:[#allocation131_spill] sm:$0xff] }
 0x344   :  { %v5314_v12 = vmul.f32 0.7978846, %v6895_v5  ;;  %v5320_v39 = vmul.f32 0.7978846, %v6897_v62  ;;  %v2783_v46 = vpop.eup %2782  ;;  %v6898_v18 = vld [vmem:[#allocation17_spill] sm:$0xff]  ;;  %6901 = vst [vmem:[#allocation132_spill] sm:$0xff] %v5329_v55  ;;  %2802 = vtanh.f32 %v5200_v53 }
 0x345   :  { %v5323_v7 = vmul.f32 0.7978846, %v6898_v18  ;;  %v5326_v17 = vmul.f32 0.7978846, %v6899_v61  ;;  %v2785_v47 = vpop.eup %2784  ;;  %v5333_v14 = vmul.f32 0.7978846, %v5176_v1  ;;  %2804 = vtanh.f32 %v5203_v43 }
 0x346   :  { %v5336_v5 = vmul.f32 0.7978846, %v5181_v13  ;;  %v1954_v59 = vadd.f32 1.0, %v2767_v49  ;;  %v2787_v56 = vpop.eup %2786  ;;  %2806 = vtanh.f32 %v5206_v57  ;;  %v1955_v62 = vadd.f32 1.0, %v2769_v3 }
 0x347   :  { %6900 = vst [vmem:[#allocation18_spill] sm:$0xff] %v5326_v17  ;;  %6902 = vst [vmem:[#allocation19_spill] sm:$0xff] %v5333_v14  ;;  %v1956_v18 = vadd.f32 1.0, %v2771_v26  ;;  %v1957_v61 = vadd.f32 1.0, %v2773_v2  ;;  %v2789_v40 = vpop.eup %2788  ;;  %2808 = vtanh.f32 %v5209_v52  ;;  %v1958_v53 = vadd.f32 1.0, %v2775_v38  ;;  %v6904_v52 = vld [vmem:[#allocation63_spill] sm:$0xff] }
 0x348   :  { %6903 = vst [vmem:[#allocation133_spill] sm:$0xff] %v5336_v5  ;;  %v1959_v55 = vadd.f32 1.0, %v2777_v34  ;;  %v1960_v17 = vadd.f32 1.0, %v2779_v50  ;;  %v2791_v1 = vpop.eup %2790  ;;  %2810 = vtanh.f32 %v5212_v32  ;;  %v1961_v13 = vadd.f32 1.0, %v2781_v31  ;;  %v6905_v34 = vld [vmem:[#allocation64_spill] sm:$0xff] }
 0x349   :  { %v1962_v5 = vadd.f32 1.0, %v2783_v46  ;;  %v1963_v14 = vadd.f32 1.0, %v2785_v47  ;;  %v2793_v43 = vpop.eup %2792  ;;  %2812 = vtanh.f32 %v5215_v15  ;;  %v1964_v49 = vadd.f32 1.0, %v2787_v56  ;;  %v6906_v46 = vld [vmem:[#allocation65_spill] sm:$0xff]  ;;  %v6907_v15 = vld [vmem:[#allocation66_spill] sm:$0xff] }
 0x34a   :  { %v1965_v57 = vadd.f32 1.0, %v2789_v40  ;;  %v1966_v3 = vadd.f32 1.0, %v2791_v1  ;;  %v2795_v26 = vpop.eup %2794  ;;  %2814 = vtanh.f32 %v5218_v16  ;;  %v1967_v2 = vadd.f32 1.0, %v2793_v43  ;;  %v6908_v1 = vld [vmem:[#allocation67_spill] sm:$0xff]  ;;  %v6909_v43 = vld [vmem:[#allocation68_spill] sm:$0xff] }
 0x34b   :  { %v5345_v38 = vmul.f32 %v1954_v59, %v6904_v52  ;;  %v5348_v50 = vmul.f32 %v1955_v62, %v6905_v34  ;;  %v2797_v32 = vpop.eup %2796  ;;  %2816 = vtanh.f32 %v5221_v51  ;;  %v1968_v31 = vadd.f32 1.0, %v2795_v26  ;;  %v6910_v26 = vld [vmem:[#allocation69_spill] sm:$0xff]  ;;  %v6911_v34 = vld [vmem:[#allocation70_spill] sm:$0xff] }
 0x34c   :  { %v5352_v47 = vmul.f32 %v1956_v18, %v6906_v46  ;;  %v5355_v56 = vmul.f32 %v1957_v61, %v6907_v15  ;;  %v2799_v40 = vpop.eup %2798  ;;  %2818 = vtanh.f32 %v5224_v23  ;;  %v1969_v16 = vadd.f32 1.0, %v2797_v32  ;;  %v6912_v32 = vld [vmem:[#allocation71_spill] sm:$0xff]  ;;  %v6913_v15 = vld [vmem:[#allocation72_spill] sm:$0xff] }
 0x34d   :  { %v5359_v59 = vmul.f32 %v1958_v53, %v6908_v1  ;;  %v5362_v62 = vmul.f32 %v1959_v55, %v6909_v43  ;;  %v2801_v52 = vpop.eup %2800  ;;  %2820 = vtanh.f32 %v5227_v48  ;;  %v1970_v51 = vadd.f32 1.0, %v2799_v40  ;;  %v6914_v40 = vld [vmem:[#allocation73_spill] sm:$0xff]  ;;  %v6915_v43 = vld [vmem:[#allocation74_spill] sm:$0xff] }
 0x34e   :  { %v5366_v18 = vmul.f32 %v1960_v17, %v6910_v26  ;;  %v5369_v61 = vmul.f32 %v1961_v13, %v6911_v34  ;;  %v2803_v46 = vpop.eup %2802  ;;  %2822 = vtanh.f32 %v5230_v0  ;;  %v1971_v23 = vadd.f32 1.0, %v2801_v52  ;;  %v6916_v52 = vld [vmem:[#allocation75_spill] sm:$0xff]  ;;  %v6917_v34 = vld [vmem:[#allocation76_spill] sm:$0xff] }
 0x34f   :  { %v5373_v53 = vmul.f32 %v1962_v5, %v6912_v32  ;;  %v5376_v55 = vmul.f32 %v1963_v14, %v6913_v15  ;;  %v2805_v1 = vpop.eup %2804  ;;  %2824 = vtanh.f32 %v5233_v29  ;;  %v1972_v48 = vadd.f32 1.0, %v2803_v46  ;;  %v6918_v46 = vld [vmem:[#allocation77_spill] sm:$0xff]  ;;  %v6919_v15 = vld [vmem:[#allocation78_spill] sm:$0xff] }
 0x350   :  { %v5380_v17 = vmul.f32 %v1964_v49, %v6914_v40  ;;  %v5383_v13 = vmul.f32 %v1965_v57, %v6915_v43  ;;  %v2807_v26 = vpop.eup %2806  ;;  %2826 = vtanh.f32 %v5236_v35  ;;  %v1973_v0 = vadd.f32 1.0, %v2805_v1  ;;  %v6920_v1 = vld [vmem:[#allocation79_spill] sm:$0xff]  ;;  %v6921_v43 = vld [vmem:[#allocation80_spill] sm:$0xff] }
 0x351   :  { %v5387_v5 = vmul.f32 %v1966_v3, %v6916_v52  ;;  %v5390_v14 = vmul.f32 %v1967_v2, %v6917_v34  ;;  %v2809_v32 = vpop.eup %2808  ;;  %2828 = vtanh.f32 %v5239_v9  ;;  %v1974_v29 = vadd.f32 1.0, %v2807_v26  ;;  %v6922_v26 = vld [vmem:[#allocation81_spill] sm:$0xff]  ;;  %v6923_v34 = vld [vmem:[#allocation82_spill] sm:$0xff] }
 0x352   :  { %v5394_v49 = vmul.f32 %v1968_v31, %v6918_v46  ;;  %v5397_v57 = vmul.f32 %v1969_v16, %v6919_v15  ;;  %v2811_v40 = vpop.eup %2810  ;;  %2830 = vtanh.f32 %v5242_v60  ;;  %v1975_v35 = vadd.f32 1.0, %v2809_v32  ;;  %v6924_v32 = vld [vmem:[#allocation83_spill] sm:$0xff]  ;;  %v6925_v15 = vld [vmem:[#allocation84_spill] sm:$0xff] }
 0x353   :  { %v5401_v3 = vmul.f32 %v1970_v51, %v6920_v1  ;;  %v5404_v2 = vmul.f32 %v1971_v23, %v6921_v43  ;;  %v2813_v52 = vpop.eup %2812  ;;  %2832 = vtanh.f32 %v5245_v21  ;;  %v1976_v9 = vadd.f32 1.0, %v2811_v40  ;;  %v6926_v40 = vld [vmem:[#allocation85_spill] sm:$0xff] }
 0x354   :  { %v5408_v31 = vmul.f32 %v1972_v48, %v6922_v26  ;;  %v5411_v16 = vmul.f32 %v1973_v0, %v6923_v34  ;;  %v2815_v46 = vpop.eup %2814  ;;  %2834 = vtanh.f32 %v5248_v28  ;;  %v1977_v60 = vadd.f32 1.0, %v2813_v52  ;;  %v6927_v52 = vld [vmem:[#allocation86_spill] sm:$0xff]  ;;  %v6928_v34 = vld [vmem:[#allocation87_spill] sm:$0xff] }
 0x355   :  { %v5415_v51 = vmul.f32 %v1974_v29, %v6924_v32  ;;  %v5418_v23 = vmul.f32 %v1975_v35, %v6925_v15  ;;  %v2817_v1 = vpop.eup %2816  ;;  %2836 = vtanh.f32 %v5251_v37  ;;  %v1978_v21 = vadd.f32 1.0, %v2815_v46  ;;  %v6929_v15 = vld [vmem:[#allocation88_spill] sm:$0xff]  ;;  %v6962_v46 = vld [vmem:[#allocation18_spill] sm:$0xff]  ;;  %v6966_v0 = vld [vmem:[#allocation19_spill] sm:$0xff] }
 0x356   :  { %v5422_v48 = vmul.f32 %v1976_v9, %v6926_v40  ;;  %v2819_v43 = vpop.eup %2818  ;;  %2838 = vtanh.f32 %v5254_v27  ;;  %v1979_v28 = vadd.f32 1.0, %v2817_v1  ;;  %v5428_v29 = vmul.f32 %v1977_v60, %v6927_v52  ;;  %v6964_v35 = vld [vmem:[#allocation132_spill] sm:$0xff] }
 0x357   :  { %v2821_v26 = vpop.eup %2820  ;;  %2840 = vtanh.f32 %v5257_v30  ;;  %v1980_v37 = vadd.f32 1.0, %v2819_v43  ;;  %v5434_v9 = vmul.f32 %v1978_v21, %v6928_v34  ;;  %v6931_v43 = vld [vmem:[#allocation89_spill] sm:$0xff] }
 0x358   :  { %v2823_v32 = vpop.eup %2822  ;;  %2842 = vtanh.f32 %v5260_v58  ;;  %v1981_v27 = vadd.f32 1.0, %v2821_v26  ;;  %v5440_v60 = vmul.f32 %v1979_v28, %v6929_v15  ;;  %v6933_v26 = vld [vmem:[#allocation90_spill] sm:$0xff] }
 0x359   :  { %v2825_v40 = vpop.eup %2824  ;;  %2844 = vtanh.f32 %v5263_v24  ;;  %v1982_v30 = vadd.f32 1.0, %v2823_v32  ;;  %v5446_v21 = vmul.f32 %v1980_v37, %v6931_v43  ;;  %v6935_v32 = vld [vmem:[#allocation91_spill] sm:$0xff] }
 0x35a   :  { %6930 = vst [vmem:[#allocation20_spill] sm:$0xff] %v5440_v60  ;;  %v2827_v34 = vpop.eup %2826  ;;  %2846 = vtanh.f32 %v5266_v36  ;;  %v1983_v58 = vadd.f32 1.0, %v2825_v40  ;;  %v5452_v28 = vmul.f32 %v1981_v27, %v6933_v26  ;;  %v6936_v40 = vld [vmem:[#allocation92_spill] sm:$0xff]  ;;  %v6968_v60 = vld [vmem:[#allocation133_spill] sm:$0xff] }
 0x35b   :  { %6932 = vst [vmem:[#allocation134_spill] sm:$0xff] %v5446_v21  ;;  %v2829_v1 = vpop.eup %2828  ;;  %2848 = vtanh.f32 %v5269_v22  ;;  %v1984_v24 = vadd.f32 1.0, %v2827_v34  ;;  %v5458_v37 = vmul.f32 %v1982_v30, %v6935_v32  ;;  %v6937_v34 = vld [vmem:[#allocation93_spill] sm:$0xff] }
 0x35c   :  { %6934 = vst [vmem:[#allocation3_spill] sm:$0xff] %v5452_v28  ;;  %v2831_v52 = vpop.eup %2830  ;;  %2850 = vtanh.f32 %v5272_v41  ;;  %v1985_v36 = vadd.f32 1.0, %v2829_v1  ;;  %v5464_v27 = vmul.f32 %v1983_v58, %v6936_v40  ;;  %v6939_v1 = vld [vmem:[#allocation94_spill] sm:$0xff] }
 0x35d   :  { %v2833_v15 = vpop.eup %2832  ;;  %2852 = vtanh.f32 %v5275_v25  ;;  %v1986_v22 = vadd.f32 1.0, %v2831_v52  ;;  %v5470_v30 = vmul.f32 %v1984_v24, %v6937_v34  ;;  %v6940_v52 = vld [vmem:[#allocation95_spill] sm:$0xff] }
 0x35e   :  { %v2835_v43 = vpop.eup %2834  ;;  %2854 = vtanh.f32 %v5278_v4  ;;  %v1987_v41 = vadd.f32 1.0, %v2833_v15  ;;  %v5476_v58 = vmul.f32 %v1985_v36, %v6939_v1  ;;  %v6942_v15 = vld [vmem:[#allocation96_spill] sm:$0xff] }
 0x35f   :  { %6938 = vst [vmem:[#allocation135_spill] sm:$0xff] %v5470_v30  ;;  %v2837_v26 = vpop.eup %2836  ;;  %2856 = vtanh.f32 %v5281_v6  ;;  %v1988_v25 = vadd.f32 1.0, %v2835_v43  ;;  %v5482_v24 = vmul.f32 %v1986_v22, %v6940_v52  ;;  %v6943_v43 = vld [vmem:[#allocation97_spill] sm:$0xff] }
 0x360   :  { %v2839_v32 = vpop.eup %2838  ;;  %2858 = vtanh.f32 %v5284_v54  ;;  %v1989_v4 = vadd.f32 1.0, %v2837_v26  ;;  %v5488_v36 = vmul.f32 %v1987_v41, %v6942_v15  ;;  %v6945_v26 = vld [vmem:[#allocation98_spill] sm:$0xff] }
 0x361   :  { %6941 = vst [vmem:[#allocation4_spill] sm:$0xff] %v5482_v24  ;;  %v2841_v40 = vpop.eup %2840  ;;  %2860 = vtanh.f32 %v5287_v11  ;;  %v1990_v6 = vadd.f32 1.0, %v2839_v32  ;;  %v5494_v22 = vmul.f32 %v1988_v25, %v6943_v43  ;;  %v6946_v32 = vld [vmem:[#allocation99_spill] sm:$0xff] }
 0x362   :  { %v2843_v34 = vpop.eup %2842  ;;  %2862 = vtanh.f32 %v5290_v63  ;;  %v1991_v54 = vadd.f32 1.0, %v2841_v40  ;;  %v5500_v41 = vmul.f32 %v1989_v4, %v6945_v26  ;;  %v6948_v40 = vld [vmem:[#allocation100_spill] sm:$0xff] }
 0x363   :  { %6944 = vst [vmem:[#allocation136_spill] sm:$0xff] %v5494_v22  ;;  %v2845_v1 = vpop.eup %2844  ;;  %2864 = vtanh.f32 %v5293_v45  ;;  %v1992_v11 = vadd.f32 1.0, %v2843_v34  ;;  %v5506_v25 = vmul.f32 %v1990_v6, %v6946_v32  ;;  %v6949_v34 = vld [vmem:[#allocation101_spill] sm:$0xff] }
 0x364   :  { %v2847_v52 = vpop.eup %2846  ;;  %2866 = vtanh.f32 %v5296_v19  ;;  %v1993_v63 = vadd.f32 1.0, %v2845_v1  ;;  %v5512_v4 = vmul.f32 %v1991_v54, %v6948_v40  ;;  %v6951_v1 = vld [vmem:[#allocation102_spill] sm:$0xff] }
 0x365   :  { %6947 = vst [vmem:[#allocation21_spill] sm:$0xff] %v5506_v25  ;;  %v2849_v15 = vpop.eup %2848  ;;  %2868 = vtanh.f32 %v5299_v10  ;;  %v1994_v45 = vadd.f32 1.0, %v2847_v52  ;;  %v5518_v6 = vmul.f32 %v1992_v11, %v6949_v34  ;;  %v6952_v52 = vld [vmem:[#allocation103_spill] sm:$0xff] }
 0x366   :  { %v2851_v43 = vpop.eup %2850  ;;  %2870 = vtanh.f32 %v5302_v44  ;;  %v1995_v19 = vadd.f32 1.0, %v2849_v15  ;;  %v5524_v54 = vmul.f32 %v1993_v63, %v6951_v1  ;;  %v6954_v15 = vld [vmem:[#allocation104_spill] sm:$0xff] }
 0x367   :  { %6950 = vst [vmem:[#allocation137_spill] sm:$0xff] %v5518_v6  ;;  %v2853_v26 = vpop.eup %2852  ;;  %2872 = vtanh.f32 %v5305_v33  ;;  %v1996_v10 = vadd.f32 1.0, %v2851_v43  ;;  %v5530_v11 = vmul.f32 %v1994_v45, %v6952_v52  ;;  %v6955_v43 = vld [vmem:[#allocation105_spill] sm:$0xff] }
 0x368   :  { %v2855_v32 = vpop.eup %2854  ;;  %2874 = vtanh.f32 %v5308_v8  ;;  %v1997_v44 = vadd.f32 1.0, %v2853_v26  ;;  %v5536_v63 = vmul.f32 %v1995_v19, %v6954_v15  ;;  %v6957_v26 = vld [vmem:[#allocation106_spill] sm:$0xff] }
 0x369   :  { %6953 = vst [vmem:[#allocation22_spill] sm:$0xff] %v5530_v11  ;;  %v2857_v40 = vpop.eup %2856  ;;  %2876 = vtanh.f32 %v5311_v42  ;;  %v1998_v33 = vadd.f32 1.0, %v2855_v32  ;;  %v5542_v45 = vmul.f32 %v1996_v10, %v6955_v43  ;;  %v6958_v32 = vld [vmem:[#allocation107_spill] sm:$0xff] }
 0x36a   :  { %v2859_v34 = vpop.eup %2858  ;;  %2878 = vtanh.f32 %v5314_v12  ;;  %v1999_v8 = vadd.f32 1.0, %v2857_v40  ;;  %v5548_v19 = vmul.f32 %v1997_v44, %v6957_v26  ;;  %v6959_v40 = vld [vmem:[#allocation108_spill] sm:$0xff] }
 0x36b   :  { %6956 = vst [vmem:[#allocation138_spill] sm:$0xff] %v5542_v45  ;;  %v2861_v1 = vpop.eup %2860  ;;  %2880 = vtanh.f32 %v5317_v20  ;;  %v2000_v42 = vadd.f32 1.0, %v2859_v34  ;;  %v5554_v10 = vmul.f32 %v1998_v33, %v6958_v32  ;;  %v6960_v34 = vld [vmem:[#allocation109_spill] sm:$0xff] }
 0x36c   :  { %v2863_v52 = vpop.eup %2862  ;;  %2882 = vtanh.f32 %v5320_v39  ;;  %v2001_v12 = vadd.f32 1.0, %v2861_v1  ;;  %v5560_v44 = vmul.f32 %v1999_v8, %v6959_v40  ;;  %v6963_v1 = vld [vmem:[#allocation110_spill] sm:$0xff] }
 0x36d   :  { %v2865_v15 = vpop.eup %2864  ;;  %2884 = vtanh.f32 %v5323_v7  ;;  %v2002_v20 = vadd.f32 1.0, %v2863_v52  ;;  %v5566_v33 = vmul.f32 %v2000_v42, %v6960_v34  ;;  %v6965_v52 = vld [vmem:[#allocation111_spill] sm:$0xff] }
 0x36e   :  { %v2867_v43 = vpop.eup %2866  ;;  %2886 = vtanh.f32 %v6962_v46  ;;  %v2003_v39 = vadd.f32 1.0, %v2865_v15  ;;  %v5572_v8 = vmul.f32 %v2001_v12, %v6963_v1  ;;  %v6967_v15 = vld [vmem:[#allocation112_spill] sm:$0xff] }
 0x36f   :  { %6961 = vst [vmem:[#allocation23_spill] sm:$0xff] %v5566_v33  ;;  %v2869_v26 = vpop.eup %2868  ;;  %2888 = vtanh.f32 %v6964_v35  ;;  %v2004_v7 = vadd.f32 1.0, %v2867_v43  ;;  %v5578_v42 = vmul.f32 %v2002_v20, %v6965_v52  ;;  %v6969_v43 = vld [vmem:[#allocation113_spill] sm:$0xff] }
 0x370   :  { %v2871_v32 = vpop.eup %2870  ;;  %2890 = vtanh.f32 %v6966_v0  ;;  %v2005_v46 = vadd.f32 1.0, %v2869_v26  ;;  %v5584_v12 = vmul.f32 %v2003_v39, %v6967_v15  ;;  %v6970_v0 = vld [vmem:[#allocation114_spill] sm:$0xff] }
 0x371   :  { %v2873_v40 = vpop.eup %2872  ;;  %2892 = vtanh.f32 %v6968_v60  ;;  %v2006_v35 = vadd.f32 1.0, %v2871_v32  ;;  %v5590_v20 = vmul.f32 %v2004_v7, %v6969_v43  ;;  %v6971_v32 = vld [vmem:[#allocation115_spill] sm:$0xff]  ;;  %v2623_v7 = vpack.c.bf16 %v5572_v8, %v5572_v8 }
 0x372   :  { %v2875_v34 = vpop.eup %2874  ;;  %v2007_v21 = vadd.f32 1.0, %v2873_v40  ;;  %v5595_v26 = vmul.f32 %v2005_v46, %v6970_v0  ;;  %v6972_v0 = vld [vmem:[#allocation116_spill] sm:$0xff] }
 0x373   :  { %v2877_v1 = vpop.eup %2876  ;;  %v2008_v60 = vadd.f32 1.0, %v2875_v34  ;;  %v5602_v28 = vmul.f32 %v2006_v35, %v6971_v32  ;;  %v6973_v32 = vld [vmem:[#allocation117_spill] sm:$0xff]  ;;  %2386 = vst.msk [vmem:[%s6155_s4 + $0xbc] sm:$0xf] %vm2338_vm1, %v2623_v7 }
 0x374   :  { %v2879_v43 = vpop.eup %2878  ;;  %v2009_v46 = vadd.f32 1.0, %v2877_v1  ;;  %v5609_v52 = vmul.f32 %v2007_v21, %v6972_v0  ;;  %v6974_v0 = vld [vmem:[#allocation118_spill] sm:$0xff] }
 0x375   :  { %v2881_v15 = vpop.eup %2880  ;;  %v2010_v35 = vadd.f32 1.0, %v2879_v43  ;;  %v5616_v30 = vmul.f32 %v2008_v60, %v6973_v32  ;;  %v6975_v32 = vld [vmem:[#allocation119_spill] sm:$0xff]  ;;  %v7043_v8 = vpack.c.bf16 %v5602_v28, %v5602_v28 }
 0x376   :  { %v2883_v40 = vpop.eup %2882  ;;  %v2011_v21 = vadd.f32 1.0, %v2881_v15  ;;  %v5623_v24 = vmul.f32 %v2009_v46, %v6974_v0  ;;  %v6976_v0 = vld [vmem:[#allocation120_spill] sm:$0xff] }
 0x377   :  { %v2885_v34 = vpop.eup %2884  ;;  %v2012_v60 = vadd.f32 1.0, %v2883_v40  ;;  %v5630_v22 = vmul.f32 %v2010_v35, %v6975_v32  ;;  %v6977_v32 = vld [vmem:[#allocation121_spill] sm:$0xff]  ;;  %v2630_v39 = vpack.c.bf16 %v5616_v30, %v5616_v30  ;;  %2391 = vst.msk [vmem:[%s6155_s4 + $0xd0] sm:$0xf] %vm2338_vm1, %v7043_v8 }
 0x378   :  { %v2887_v1 = vpop.eup %2886  ;;  %v2013_v46 = vadd.f32 1.0, %v2885_v34  ;;  %v5637_v25 = vmul.f32 %v2011_v21, %v6976_v0  ;;  %v6978_v0 = vld [vmem:[#allocation122_spill] sm:$0xff]  ;;  %v7045_v28 = vpack.c.bf16 %v5623_v24, %v5623_v24 }
 0x379   :  { %v2889_v43 = vpop.eup %2888  ;;  %v2014_v35 = vadd.f32 1.0, %v2887_v1  ;;  %v5644_v6 = vmul.f32 %v2012_v60, %v6977_v32  ;;  %v6979_v32 = vld [vmem:[#allocation123_spill] sm:$0xff]  ;;  %2393 = vst.msk [vmem:[%s6155_s4 + $0xd8] sm:$0xf] %vm2338_vm1, %v2630_v39 }
 0x37a   :  { %v2891_v15 = vpop.eup %2890  ;;  %v2015_v21 = vadd.f32 1.0, %v2889_v43  ;;  %v5651_v11 = vmul.f32 %v2013_v46, %v6978_v0  ;;  %v2624_v43 = vpack.c.bf16 %v5578_v42, %v5578_v42  ;;  %v6980_v46 = vld [vmem:[#allocation124_spill] sm:$0xff]  ;;  %v7044_v42 = vpack.c.bf16 %v5609_v52, %v5609_v52  ;;  %2394 = vst.msk [vmem:[%s6155_s4 + $0xdc] sm:$0xf] %vm2338_vm1, %v7045_v28 }
 0x37b   :  { %v2893_v40 = vpop.eup %2892  ;;  %v2016_v60 = vadd.f32 1.0, %v2891_v15  ;;  %v5658_v45 = vmul.f32 %v2014_v35, %v6979_v32  ;;  %v6981_v15 = vld [vmem:[#allocation125_spill] sm:$0xff]  ;;  %v2627_v35 = vpack.c.bf16 %v5595_v26, %v5595_v26  ;;  %v2634_v32 = vpack.c.bf16 %v5644_v6, %v5644_v6 }
 0x37c   :  { %v2017_v34 = vadd.f32 1.0, %v2893_v40  ;;  %v5665_v0 = vmul.f32 %v2015_v21, %v6980_v46  ;;  %v6982_v21 = vld [vmem:[#allocation126_spill] sm:$0xff]  ;;  %v2635_v40 = vpack.c.bf16 %v5651_v11, %v5651_v11  ;;  %2387 = vst.msk [vmem:[%s6155_s4 + $0xc0] sm:$0xf] %vm2338_vm1, %v2624_v43  ;;  %2392 = vst.msk [vmem:[%s6155_s4 + $0xd4] sm:$0xf] %vm2338_vm1, %v7044_v42  ;;  %v7047_v30 = vpack.c.bf16 %v5637_v25, %v5637_v25 }
 0x37d   :  { %v5672_v33 = vmul.f32 %v2016_v60, %v6981_v15  ;;  %v6983_v15 = vpack.c.bf16 %v5345_v38, %v5345_v38  ;;  %v6985_v60 = vpack.c.bf16 %v5352_v47, %v5352_v47  ;;  %v6986_v38 = vpack.c.bf16 %v5355_v56, %v5355_v56  ;;  %2390 = vst.msk [vmem:[%s6155_s4 + $0xcc] sm:$0xf] %vm2338_vm1, %v2627_v35 }
 0x37e   :  { %v5681_v46 = vmul.f32 %v2017_v34, %v6982_v21  ;;  %v2637_v21 = vpack.c.bf16 %v5665_v0, %v5665_v0  ;;  %v6984_v34 = vpack.c.bf16 %v5348_v50, %v5348_v50  ;;  %v6987_v50 = vpack.c.bf16 %v5359_v59, %v5359_v59  ;;  %2396 = vst.msk [vmem:[%s6155_s4 + $0xe4] sm:$0xf] %vm2338_vm1, %v7047_v30 }
 0x37f   :  { %v2638_v1 = vpack.c.bf16 %v5672_v33, %v5672_v33  ;;  %2339 = vst.msk [vmem:[%s6155_s4] sm:$0xf] %vm2338_vm1, %v6983_v15  ;;  %2341 = vst.msk [vmem:[%s6155_s4 + $0x8] sm:$0xf] %vm2338_vm1, %v6985_v60  ;;  %v6988_v47 = vpack.c.bf16 %v5362_v62, %v5362_v62  ;;  %v6989_v56 = vpack.c.bf16 %v5366_v18, %v5366_v18 }
 0x380   :  { %2340 = vst.msk [vmem:[%s6155_s4 + $0x4] sm:$0xf] %vm2338_vm1, %v6984_v34  ;;  %2342 = vst.msk [vmem:[%s6155_s4 + $0xc] sm:$0xf] %vm2338_vm1, %v6986_v38  ;;  %v6990_v59 = vpack.c.bf16 %v5369_v61, %v5369_v61  ;;  %v6991_v62 = vpack.c.bf16 %v5373_v53, %v5373_v53  ;;  %v6992_v18 = vpack.c.bf16 %v5376_v55, %v5376_v55 }
 0x381   :  { %2343 = vst.msk [vmem:[%s6155_s4 + $0x10] sm:$0xf] %vm2338_vm1, %v6987_v50  ;;  %2344 = vst.msk [vmem:[%s6155_s4 + $0x14] sm:$0xf] %vm2338_vm1, %v6988_v47  ;;  %v6993_v61 = vpack.c.bf16 %v5380_v17, %v5380_v17  ;;  %v6994_v53 = vpack.c.bf16 %v5383_v13, %v5383_v13  ;;  %v6995_v55 = vpack.c.bf16 %v5387_v5, %v5387_v5  ;;  %v7016_v47 = vld [vmem:[#allocation135_spill] sm:$0xff] }
 0x382   :  { %2345 = vst.msk [vmem:[%s6155_s4 + $0x18] sm:$0xf] %vm2338_vm1, %v6989_v56  ;;  %2346 = vst.msk [vmem:[%s6155_s4 + $0x1c] sm:$0xf] %vm2338_vm1, %v6990_v59  ;;  %v6996_v17 = vpack.c.bf16 %v5390_v14, %v5390_v14  ;;  %v6997_v13 = vpack.c.bf16 %v5394_v49, %v5394_v49  ;;  %v6998_v5 = vpack.c.bf16 %v5397_v57, %v5397_v57 }
 0x383   :  { %2347 = vst.msk [vmem:[%s6155_s4 + $0x20] sm:$0xf] %vm2338_vm1, %v6991_v62  ;;  %2348 = vst.msk [vmem:[%s6155_s4 + $0x24] sm:$0xf] %vm2338_vm1, %v6992_v18  ;;  %v6999_v14 = vpack.c.bf16 %v5401_v3, %v5401_v3  ;;  %v7000_v49 = vpack.c.bf16 %v5404_v2, %v5404_v2  ;;  %v7001_v57 = vpack.c.bf16 %v5408_v31, %v5408_v31 }
 0x384   :  { %2349 = vst.msk [vmem:[%s6155_s4 + $0x28] sm:$0xf] %vm2338_vm1, %v6993_v61  ;;  %2350 = vst.msk [vmem:[%s6155_s4 + $0x2c] sm:$0xf] %vm2338_vm1, %v6994_v53  ;;  %v7002_v3 = vpack.c.bf16 %v5411_v16, %v5411_v16  ;;  %v7003_v2 = vpack.c.bf16 %v5415_v51, %v5415_v51  ;;  %v7004_v31 = vpack.c.bf16 %v5418_v23, %v5418_v23 }
 0x385   :  { %2351 = vst.msk [vmem:[%s6155_s4 + $0x30] sm:$0xf] %vm2338_vm1, %v6995_v55  ;;  %2352 = vst.msk [vmem:[%s6155_s4 + $0x34] sm:$0xf] %vm2338_vm1, %v6996_v17  ;;  %v7005_v16 = vpack.c.bf16 %v5422_v48, %v5422_v48  ;;  %v7006_v51 = vpack.c.bf16 %v5428_v29, %v5428_v29  ;;  %v7007_v23 = vpack.c.bf16 %v5434_v9, %v5434_v9  ;;  %v7008_v48 = vld [vmem:[#allocation20_spill] sm:$0xff]  ;;  %v7010_v29 = vld [vmem:[#allocation134_spill] sm:$0xff] }
 0x386   :  { %2353 = vst.msk [vmem:[%s6155_s4 + $0x38] sm:$0xf] %vm2338_vm1, %v6997_v13  ;;  %2354 = vst.msk [vmem:[%s6155_s4 + $0x3c] sm:$0xf] %vm2338_vm1, %v6998_v5  ;;  %v7009_v60 = vpack.c.bf16 %v7008_v48, %v7008_v48  ;;  %v7011_v15 = vpack.c.bf16 %v7010_v29, %v7010_v29  ;;  %v7012_v9 = vld [vmem:[#allocation3_spill] sm:$0xff]  ;;  %v7014_v38 = vpack.c.bf16 %v5458_v37, %v5458_v37 }
 0x387   :  { %2355 = vst.msk [vmem:[%s6155_s4 + $0x40] sm:$0xf] %vm2338_vm1, %v6999_v14  ;;  %2356 = vst.msk [vmem:[%s6155_s4 + $0x44] sm:$0xf] %vm2338_vm1, %v7000_v49  ;;  %v7013_v34 = vpack.c.bf16 %v7012_v9, %v7012_v9  ;;  %v7015_v50 = vpack.c.bf16 %v5464_v27, %v5464_v27  ;;  %v7017_v56 = vpack.c.bf16 %v7016_v47, %v7016_v47  ;;  %v7019_v27 = vld [vmem:[#allocation4_spill] sm:$0xff] }
 0x388   :  { %2357 = vst.msk [vmem:[%s6155_s4 + $0x48] sm:$0xf] %vm2338_vm1, %v7001_v57  ;;  %2358 = vst.msk [vmem:[%s6155_s4 + $0x4c] sm:$0xf] %vm2338_vm1, %v7002_v3  ;;  %v7018_v37 = vpack.c.bf16 %v5476_v58, %v5476_v58  ;;  %v7020_v59 = vpack.c.bf16 %v7019_v27, %v7019_v27  ;;  %v7021_v62 = vpack.c.bf16 %v5488_v36, %v5488_v36  ;;  %v7022_v58 = vld [vmem:[#allocation136_spill] sm:$0xff]  ;;  %v7025_v36 = vld [vmem:[#allocation21_spill] sm:$0xff] }
 0x389   :  { %2359 = vst.msk [vmem:[%s6155_s4 + $0x50] sm:$0xf] %vm2338_vm1, %v7003_v2  ;;  %2360 = vst.msk [vmem:[%s6155_s4 + $0x54] sm:$0xf] %vm2338_vm1, %v7004_v31  ;;  %v7023_v18 = vpack.c.bf16 %v7022_v58, %v7022_v58  ;;  %v7024_v61 = vpack.c.bf16 %v5500_v41, %v5500_v41  ;;  %v7026_v53 = vpack.c.bf16 %v7025_v36, %v7025_v36  ;;  %v7028_v41 = vld [vmem:[#allocation137_spill] sm:$0xff] }
 0x38a   :  { %2361 = vst.msk [vmem:[%s6155_s4 + $0x58] sm:$0xf] %vm2338_vm1, %v7005_v16  ;;  %2362 = vst.msk [vmem:[%s6155_s4 + $0x5c] sm:$0xf] %vm2338_vm1, %v7006_v51  ;;  %v7027_v55 = vpack.c.bf16 %v5512_v4, %v5512_v4  ;;  %v7029_v17 = vpack.c.bf16 %v7028_v41, %v7028_v41  ;;  %v7030_v13 = vpack.c.bf16 %v5524_v54, %v5524_v54  ;;  %v7031_v4 = vld [vmem:[#allocation22_spill] sm:$0xff] }
 0x38b   :  { %2363 = vst.msk [vmem:[%s6155_s4 + $0x60] sm:$0xf] %vm2338_vm1, %v7007_v23  ;;  %2364 = vst.msk [vmem:[%s6155_s4 + $0x64] sm:$0xf] %vm2338_vm1, %v7009_v60  ;;  %v7032_v5 = vpack.c.bf16 %v7031_v4, %v7031_v4  ;;  %v7033_v14 = vpack.c.bf16 %v5536_v63, %v5536_v63  ;;  %v7034_v54 = vld [vmem:[#allocation138_spill] sm:$0xff]  ;;  %v7036_v57 = vpack.c.bf16 %v5548_v19, %v5548_v19  ;;  %v7039_v19 = vld [vmem:[#allocation23_spill] sm:$0xff] }
 0x38c   :  { %2365 = vst.msk [vmem:[%s6155_s4 + $0x68] sm:$0xf] %vm2338_vm1, %v7011_v15  ;;  %2366 = vst.msk [vmem:[%s6155_s4 + $0x6c] sm:$0xf] %vm2338_vm1, %v7013_v34  ;;  %v7035_v49 = vpack.c.bf16 %v7034_v54, %v7034_v54  ;;  %v7037_v63 = vpack.c.bf16 %v5554_v10, %v5554_v10  ;;  %v7038_v3 = vpack.c.bf16 %v5560_v44, %v5560_v44 }
 0x38d   :  { %2367 = vst.msk [vmem:[%s6155_s4 + $0x70] sm:$0xf] %vm2338_vm1, %v7014_v38  ;;  %2368 = vst.msk [vmem:[%s6155_s4 + $0x74] sm:$0xf] %vm2338_vm1, %v7015_v50  ;;  %v7040_v2 = vpack.c.bf16 %v7039_v19, %v7039_v19  ;;  %v7041_v10 = vpack.c.bf16 %v5584_v12, %v5584_v12  ;;  %v7042_v44 = vpack.c.bf16 %v5590_v20, %v5590_v20 }
 0x38e   :  { %2369 = vst.msk [vmem:[%s6155_s4 + $0x78] sm:$0xf] %vm2338_vm1, %v7017_v56  ;;  %2370 = vst.msk [vmem:[%s6155_s4 + $0x7c] sm:$0xf] %vm2338_vm1, %v7018_v37  ;;  %v7046_v12 = vpack.c.bf16 %v5630_v22, %v5630_v22  ;;  %v7048_v24 = vpack.c.bf16 %v5658_v45, %v5658_v45  ;;  %v7049_v22 = vpack.c.bf16 %v5681_v46, %v5681_v46 }
 0x38f   :  { %2371 = vst.msk [vmem:[%s6155_s4 + $0x80] sm:$0xf] %vm2338_vm1, %v7020_v59  ;;  %2372 = vst.msk [vmem:[%s6155_s4 + $0x84] sm:$0xf] %vm2338_vm1, %v7021_v62 }
 0x390   :  { %2373 = vst.msk [vmem:[%s6155_s4 + $0x88] sm:$0xf] %vm2338_vm1, %v7023_v18  ;;  %2374 = vst.msk [vmem:[%s6155_s4 + $0x8c] sm:$0xf] %vm2338_vm1, %v7024_v61 }
 0x391   :  { %2375 = vst.msk [vmem:[%s6155_s4 + $0x90] sm:$0xf] %vm2338_vm1, %v7026_v53  ;;  %2376 = vst.msk [vmem:[%s6155_s4 + $0x94] sm:$0xf] %vm2338_vm1, %v7027_v55 }
 0x392   :  { %2377 = vst.msk [vmem:[%s6155_s4 + $0x98] sm:$0xf] %vm2338_vm1, %v7029_v17  ;;  %2378 = vst.msk [vmem:[%s6155_s4 + $0x9c] sm:$0xf] %vm2338_vm1, %v7030_v13 }
 0x393   :  { %2379 = vst.msk [vmem:[%s6155_s4 + $0xa0] sm:$0xf] %vm2338_vm1, %v7032_v5  ;;  %2380 = vst.msk [vmem:[%s6155_s4 + $0xa4] sm:$0xf] %vm2338_vm1, %v7033_v14 }
 0x394   :  { %2381 = vst.msk [vmem:[%s6155_s4 + $0xa8] sm:$0xf] %vm2338_vm1, %v7035_v49  ;;  %2382 = vst.msk [vmem:[%s6155_s4 + $0xac] sm:$0xf] %vm2338_vm1, %v7036_v57 }
 0x395   :  { %2383 = vst.msk [vmem:[%s6155_s4 + $0xb0] sm:$0xf] %vm2338_vm1, %v7037_v63  ;;  %2384 = vst.msk [vmem:[%s6155_s4 + $0xb4] sm:$0xf] %vm2338_vm1, %v7038_v3 }
 0x396   :  { %2385 = vst.msk [vmem:[%s6155_s4 + $0xb8] sm:$0xf] %vm2338_vm1, %v7040_v2  ;;  %2388 = vst.msk [vmem:[%s6155_s4 + $0xc4] sm:$0xf] %vm2338_vm1, %v7041_v10 }
 0x397   :  { %2389 = vst.msk [vmem:[%s6155_s4 + $0xc8] sm:$0xf] %vm2338_vm1, %v7042_v44  ;;  %2395 = vst.msk [vmem:[%s6155_s4 + $0xe0] sm:$0xf] %vm2338_vm1, %v7046_v12 }
 0x398   :  { %2397 = vst.msk [vmem:[%s6155_s4 + $0xe8] sm:$0xf] %vm2338_vm1, %v2634_v32  ;;  %2398 = vst.msk [vmem:[%s6155_s4 + $0xec] sm:$0xf] %vm2338_vm1, %v2635_v40 }
 0x399   :  { %2399 = vst.msk [vmem:[%s6155_s4 + $0xf0] sm:$0xf] %vm2338_vm1, %v7048_v24  ;;  %2400 = vst.msk [vmem:[%s6155_s4 + $0xf4] sm:$0xf] %vm2338_vm1, %v2637_v21 }
 0x39a   :  { %2401 = vst.msk [vmem:[%s6155_s4 + $0xf8] sm:$0xf] %vm2338_vm1, %v2638_v1  ;;  %2402 = vst.msk [vmem:[%s6155_s4 + $0xfc] sm:$0xf] %vm2338_vm1, %v7049_v22 }

// kernel: cnn_forward.10
= control target key start
LH: loop header
LB: loop body
LE: loop exit
PB: predicated region body
PF: predicated region fallthrough
CT: control target
= control target key end

     0   :  { %v879_v0 = vmov 0   ;;  %vm178_vm0 = vcmask 130048   ;;  %vm302_vm1 = vcmask 261120   ;;  %vm707_vm2 = vcmask 257024   ;;  %s1317_s1 = inlined_call_operand.vmem [shape: bf16[144,32], index: 1, kind: input, shape index: {}]   ;;  %s1318_s0 = inlined_call_operand.vmem [shape: bf16[128,144], index: 0, kind: input, shape index: {}]   ;;  %s1319_s2 = inlined_call_operand.vmem [shape: f32[1,32], index: 2, kind: input, shape index: {}]   ;;  %s1320_s3 = inlined_call_operand.vmem [shape: f32[1,32], index: 3, kind: input, shape index: {}]   ;;  %s1321_s4 = inlined_call_operand.vmem [shape: bf16[128,32], index: 4, kind: output, shape index: {}]  }
   0x1   :  { %203 = vmatprep.subr.bf16.mxu0 %v879_v0  ;;  %v812_v1 = vld [vmem:[%s1317_s1] sm:$0xff]   ;;  %793 = vmatprep.subr.bf16.mxu1 %v879_v0  ;;  %v813_v2 = vld [vmem:[%s1317_s1 + $0x8] sm:$0xff]   ;;  %v814_v3 = vld [vmem:[%s1317_s1 + $0x10] sm:$0xff]  }
   0x2   :  { %204 = vmatpush1.bf16.msra.mxu0 %v812_v1  ;;  %802 = vmatpush1.bf16.msra.mxu1 %v812_v1  ;;  %v815_v4 = vld [vmem:[%s1317_s1 + $0x18] sm:$0xff]   ;;  %v823_v5 = vld [vmem:[%s1318_s0 + $0x4] ss:$8 sps:$4 sm:$0xff]   ;;  %v818_v9 = vld [vmem:[%s1317_s1 + $0x30] sm:$0xff]  }
   0x3   :  { %205 = vmatprep.subr.bf16.mxu0 %v879_v0  ;;  %794 = vmatprep.subr.bf16.mxu1 %v879_v0  ;;  %v829_v6 = vld [vmem:[%s1318_s0 + $0x44] ss:$8 sps:$4 sm:$0xff]   ;;  %v819_v10 = vld [vmem:[%s1317_s1 + $0x38] sm:$0xff]   ;;  %v821_v12 = vld [vmem:[%s1318_s0] ss:$8 sps:$4 sm:$0xff]  }
   0x4   :  { %753 = vmatprep.mubr.msk.bf16.mxu0 %vm178_vm0, %v823_v5  ;;  %v816_v7 = vld [vmem:[%s1317_s1 + $0x20] sm:$0xff]   ;;  %757 = vmatprep.mubr.msk.bf16.mxu1 %vm178_vm0, %v829_v6  ;;  %v817_v8 = vld [vmem:[%s1317_s1 + $0x28] sm:$0xff]   ;;  %v824_v14 = vld [vmem:[%s1318_s0 + $0x14] ss:$8 sps:$4 sm:$0xff]  }
   0x5   :  { %v820_v11 = vld [vmem:[%s1317_s1 + $0x40] sm:$0xff]   ;;  %v833_v15 = vld [vmem:[%s1318_s0 + $0x54] ss:$8 sps:$4 sm:$0xff]   ;;  %v826_v16 = vld [vmem:[%s1318_s0 + $0x10] ss:$8 sps:$4 sm:$0xff]  }
   0x6   :  { %206 = vmatpush1.bf16.msra.mxu0 %v813_v2  ;;  %803 = vmatpush1.bf16.msra.mxu1 %v813_v2  ;;  %v827_v13 = vld [vmem:[%s1318_s0 + $0x40] ss:$8 sps:$4 sm:$0xff]   ;;  %v835_v17 = vld [vmem:[%s1318_s0 + $0x50] ss:$8 sps:$4 sm:$0xff]   ;;  %v830_v18 = vld [vmem:[%s1318_s0 + $0x24] ss:$8 sps:$4 sm:$0xff]  }
   0x7   :  { %207 = vmatprep.subr.bf16.mxu0 %v879_v0  ;;  %795 = vmatprep.subr.bf16.mxu1 %v879_v0  ;;  %v839_v19 = vld [vmem:[%s1318_s0 + $0x64] ss:$8 sps:$4 sm:$0xff]   ;;  %v832_v20 = vld [vmem:[%s1318_s0 + $0x20] ss:$8 sps:$4 sm:$0xff]   ;;  %v836_v22 = vld [vmem:[%s1318_s0 + $0x34] ss:$8 sps:$4 sm:$0xff]  }
   0x8   :  { %v841_v21 = vld [vmem:[%s1318_s0 + $0x60] ss:$8 sps:$4 sm:$0xff]   ;;  %v842_v23 = vld [vmem:[%s1318_s0 + $0x74] ss:$8 sps:$4 sm:$0xff]   ;;  %v838_v24 = vld [vmem:[%s1318_s0 + $0x30] ss:$8 sps:$4 sm:$0xff]  }
   0x9   :  { %v844_v25 = vld [vmem:[%s1318_s0 + $0x70] ss:$8 sps:$4 sm:$0xff]  }
   0xa   :  { %208 = vmatpush1.bf16.msra.mxu0 %v814_v3  ;;  %804 = vmatpush1.bf16.msra.mxu1 %v814_v3 }
   0xb   :  { %209 = vmatprep.subr.bf16.mxu0 %v879_v0  ;;  %796 = vmatprep.subr.bf16.mxu1 %v879_v0 }
   0xe   :  { %210 = vmatpush1.bf16.msra.mxu0 %v815_v4  ;;  %805 = vmatpush1.bf16.msra.mxu1 %v815_v4 }
   0xf   :  { %211 = vmatprep.subr.bf16.mxu0 %v879_v0  ;;  %797 = vmatprep.subr.bf16.mxu1 %v879_v0 }
  0x12   :  { %212 = vmatpush1.bf16.msra.mxu0 %v816_v7  ;;  %806 = vmatpush1.bf16.msra.mxu1 %v816_v7 }
  0x13   :  { %213 = vmatprep.subr.bf16.mxu0 %v879_v0  ;;  %798 = vmatprep.subr.bf16.mxu1 %v879_v0 }
  0x16   :  { %214 = vmatpush1.bf16.msra.mxu0 %v817_v8  ;;  %807 = vmatpush1.bf16.msra.mxu1 %v817_v8 }
  0x17   :  { %215 = vmatprep.subr.bf16.mxu0 %v879_v0  ;;  %799 = vmatprep.subr.bf16.mxu1 %v879_v0 }
  0x1a   :  { %216 = vmatpush1.bf16.msra.mxu0 %v818_v9  ;;  %808 = vmatpush1.bf16.msra.mxu1 %v818_v9 }
  0x1b   :  { %217 = vmatprep.subr.bf16.mxu0 %v879_v0  ;;  %800 = vmatprep.subr.bf16.mxu1 %v879_v0 }
  0x1e   :  { %218 = vmatpush1.bf16.msra.mxu0 %v819_v10  ;;  %809 = vmatpush1.bf16.msra.mxu1 %v819_v10 }
  0x1f   :  { %219 = vmatprep.subr.bf16.mxu0 %v879_v0  ;;  %801 = vmatprep.subr.bf16.mxu1 %v879_v0 }
  0x22   :  { %220 = vmatpush1.bf16.msra.mxu0 %v820_v11  ;;  %810 = vmatpush1.bf16.msra.mxu1 %v820_v11 }
  0x25   :  { %236 = vmatmul.mubr.bf16.vlgmr.msra.gmra.mrb[0].mxu0 %v821_v12  ;;  %268 = vmatmul.mubr.bf16.vlgmr.msra.gmra.mrb[0].mxu1 %v827_v13 }
  0x26   :  { %754 = vmatprep.mubr.msk.bf16.mxu0 %vm178_vm0, %v824_v14  ;;  %758 = vmatprep.mubr.msk.bf16.mxu1 %vm178_vm0, %v833_v15 }
  0x2d   :  { %244 = vmatmul.mubr.bf16.gmra.mrb[4].mxu0 %v826_v16  ;;  %276 = vmatmul.mubr.bf16.gmra.mrb[4].mxu1 %v835_v17 }
  0x2e   :  { %755 = vmatprep.mubr.msk.bf16.mxu0 %vm178_vm0, %v830_v18  ;;  %759 = vmatprep.mubr.msk.bf16.mxu1 %vm178_vm0, %v839_v19 }
  0x35   :  { %252 = vmatmul.mubr.bf16.gmra.mrb[8].mxu0 %v832_v20  ;;  %284 = vmatmul.mubr.bf16.gmra.mrb[8].mxu1 %v841_v21 }
  0x36   :  { %756 = vmatprep.mubr.msk.bf16.mxu0 %vm178_vm0, %v836_v22  ;;  %760 = vmatprep.mubr.msk.bf16.mxu1 %vm178_vm0, %v842_v23 }
  0x3d   :  { %260 = vmatmul.mubr.bf16.gmra.mrb[12].mxu0 %v838_v24  ;;  %292 = vmatmul.mubr.bf16.gmra.mrb[12].mxu1 %v844_v25 }
  0xf8   :  { %v237_v26 = vpop.f32.mrb[0].mxu0  ;;  %v269_v27 = vpop.f32.mrb[0].mxu1 }
  0xf9   :  { %303 = vst.msk [vmem:[#allocation2] sm:$0xff] %vm302_vm1, %v237_v26  ;;  %v239_v28 = vpop.f32.mrb[1].mxu0  ;;  %311 = vst.msk [vmem:[#allocation2 + $0x40] sm:$0xff] %vm302_vm1, %v269_v27  ;;  %v271_v29 = vpop.f32.mrb[1].mxu1 }
  0xfa   :  { %v240_v30 = vpop.f32.mrb[2].mxu0  ;;  %v272_v31 = vpop.f32.mrb[2].mxu1 }
  0xfb   :  { %304 = vst.msk [vmem:[#allocation2 + $0x8] sm:$0xff] %vm302_vm1, %v240_v30  ;;  %v242_v32 = vpop.f32.mrb[3].mxu0  ;;  %312 = vst.msk [vmem:[#allocation2 + $0x48] sm:$0xff] %vm302_vm1, %v272_v31  ;;  %v274_v33 = vpop.f32.mrb[3].mxu1 }
 0x100   :  { %v245_v34 = vpop.f32.mrb[4].mxu0  ;;  %v277_v35 = vpop.f32.mrb[4].mxu1  ;;  %v998_v43 = vld [vmem:[#allocation2] sm:$0xff] }
 0x101   :  { %305 = vst.msk [vmem:[#allocation2 + $0x10] sm:$0xff] %vm302_vm1, %v245_v34  ;;  %v247_v36 = vpop.f32.mrb[5].mxu0  ;;  %313 = vst.msk [vmem:[#allocation2 + $0x50] sm:$0xff] %vm302_vm1, %v277_v35  ;;  %v279_v37 = vpop.f32.mrb[5].mxu1  ;;  %v339_v52 = vsel %vm302_vm1, %v998_v43, 0.0  ;;  %v1032_v13 = vld [vmem:[#allocation2 + $0x40] sm:$0xff] }
 0x102   :  { %v248_v38 = vpop.f32.mrb[6].mxu0  ;;  %v280_v39 = vpop.f32.mrb[6].mxu1  ;;  %v996_v42 = vld [vmem:[#allocation2 + $0x8] sm:$0xff]  ;;  %v354_v19 = vsel %vm302_vm1, %v1032_v13, 0.0 }
 0x103   :  { %306 = vst.msk [vmem:[#allocation2 + $0x18] sm:$0xff] %vm302_vm1, %v248_v38  ;;  %v250_v40 = vpop.f32.mrb[7].mxu0  ;;  %314 = vst.msk [vmem:[#allocation2 + $0x58] sm:$0xff] %vm302_vm1, %v280_v39  ;;  %v282_v41 = vpop.f32.mrb[7].mxu1  ;;  %v340_v47 = vsel %vm302_vm1, %v996_v42, 0.0  ;;  %v1038_v17 = vld [vmem:[#allocation2 + $0x48] sm:$0xff] }
 0x104   :  { %v341_v56 = vadd.f32 %v340_v47, %v339_v52  ;;  %v356_v22 = vsel %vm302_vm1, %v1038_v17, 0.0 }
 0x108   :  { %v1000_v44 = vld [vmem:[#allocation2 + $0x10] sm:$0xff]  ;;  %v253_v45 = vpop.f32.mrb[8].mxu0  ;;  %v285_v46 = vpop.f32.mrb[8].mxu1 }
 0x109   :  { %307 = vst.msk [vmem:[#allocation2 + $0x20] sm:$0xff] %vm302_vm1, %v253_v45  ;;  %v255_v48 = vpop.f32.mrb[9].mxu0  ;;  %315 = vst.msk [vmem:[#allocation2 + $0x60] sm:$0xff] %vm302_vm1, %v285_v46  ;;  %v287_v49 = vpop.f32.mrb[9].mxu1  ;;  %v342_v53 = vsel %vm302_vm1, %v1000_v44, 0.0  ;;  %v1042_v20 = vld [vmem:[#allocation2 + $0x50] sm:$0xff] }
 0x10a   :  { %v256_v50 = vpop.f32.mrb[10].mxu0  ;;  %v288_v51 = vpop.f32.mrb[10].mxu1  ;;  %v1012_v57 = vld [vmem:[#allocation2 + $0x18] sm:$0xff]  ;;  %v343_v58 = vadd.f32 %v342_v53, %v341_v56  ;;  %v358_v25 = vsel %vm302_vm1, %v1042_v20, 0.0 }
 0x10b   :  { %308 = vst.msk [vmem:[#allocation2 + $0x28] sm:$0xff] %vm302_vm1, %v256_v50  ;;  %v258_v54 = vpop.f32.mrb[11].mxu0  ;;  %316 = vst.msk [vmem:[#allocation2 + $0x68] sm:$0xff] %vm302_vm1, %v288_v51  ;;  %v290_v55 = vpop.f32.mrb[11].mxu1  ;;  %v344_v59 = vsel %vm302_vm1, %v1012_v57, 0.0  ;;  %v1046_v23 = vld [vmem:[#allocation2 + $0x58] sm:$0xff] }
 0x10c   :  { %v345_v2 = vadd.f32 %v344_v59, %v343_v58  ;;  %v360_v28 = vsel %vm302_vm1, %v1046_v23, 0.0 }
 0x110   :  { %v1016_v60 = vld [vmem:[#allocation2 + $0x20] sm:$0xff]  ;;  %v261_v61 = vpop.f32.mrb[12].mxu0  ;;  %v293_v62 = vpop.f32.mrb[12].mxu1 }
 0x111   :  { %v346_v63 = vsel %vm302_vm1, %v1016_v60, 0.0  ;;  %309 = vst.msk [vmem:[#allocation2 + $0x30] sm:$0xff] %vm302_vm1, %v261_v61  ;;  %v263_v0 = vpop.f32.mrb[13].mxu0  ;;  %317 = vst.msk [vmem:[#allocation2 + $0x70] sm:$0xff] %vm302_vm1, %v293_v62  ;;  %v295_v1 = vpop.f32.mrb[13].mxu1  ;;  %v1050_v26 = vld [vmem:[#allocation2 + $0x60] sm:$0xff] }
 0x112   :  { %v1022_v3 = vld [vmem:[#allocation2 + $0x28] sm:$0xff]  ;;  %v264_v4 = vpop.f32.mrb[14].mxu0  ;;  %v296_v5 = vpop.f32.mrb[14].mxu1  ;;  %v347_v8 = vadd.f32 %v346_v63, %v345_v2  ;;  %v362_v32 = vsel %vm302_vm1, %v1050_v26, 0.0 }
 0x113   :  { %310 = vst.msk [vmem:[#allocation2 + $0x38] sm:$0xff] %vm302_vm1, %v264_v4  ;;  %v266_v6 = vpop.f32.mrb[15].mxu0  ;;  %318 = vst.msk [vmem:[#allocation2 + $0x78] sm:$0xff] %vm302_vm1, %v296_v5  ;;  %v298_v7 = vpop.f32.mrb[15].mxu1  ;;  %v348_v9 = vsel %vm302_vm1, %v1022_v3, 0.0  ;;  %v1054_v30 = vld [vmem:[#allocation2 + $0x68] sm:$0xff] }
 0x114   :  { %v349_v10 = vadd.f32 %v348_v9, %v347_v8  ;;  %v364_v34 = vsel %vm302_vm1, %v1054_v30, 0.0 }
 0x118   :  { %v1028_v11 = vld [vmem:[#allocation2 + $0x30] sm:$0xff] }
 0x119   :  { %v350_v12 = vsel %vm302_vm1, %v1028_v11, 0.0  ;;  %v1056_v31 = vld [vmem:[#allocation2 + $0x70] sm:$0xff] }
 0x11a   :  { %v351_v14 = vadd.f32 %v350_v12, %v349_v10  ;;  %v1034_v15 = vld [vmem:[#allocation2 + $0x38] sm:$0xff]  ;;  %v366_v35 = vsel %vm302_vm1, %v1056_v31, 0.0 }
 0x11b   :  { %v352_v16 = vsel %vm302_vm1, %v1034_v15, 0.0  ;;  %v1064_v37 = vld [vmem:[#allocation2 + $0x78] sm:$0xff] }
 0x11c   :  { %v353_v18 = vadd.f32 %v352_v16, %v351_v14  ;;  %v368_v39 = vsel %vm302_vm1, %v1064_v37, 0.0 }
 0x11e   :  { %v355_v21 = vadd.f32 %v354_v19, %v353_v18 }
 0x120   :  { %v357_v24 = vadd.f32 %v356_v22, %v355_v21 }
 0x122   :  { %v359_v27 = vadd.f32 %v358_v25, %v357_v24 }
 0x124   :  { %v361_v29 = vadd.f32 %v360_v28, %v359_v27 }
 0x126   :  { %v363_v33 = vadd.f32 %v362_v32, %v361_v29 }
 0x128   :  { %v365_v36 = vadd.f32 %v364_v34, %v363_v33 }
 0x12a   :  { %v367_v38 = vadd.f32 %v366_v35, %v365_v36 }
 0x12c   :  { %v369_v40 = vadd.f32 %v368_v39, %v367_v38 }
 0x12e   :  { %v370_v41 = vrot.slane %v369_v40, 4 }
 0x130   :  { %v371_v45 = vadd.f32 %v370_v41, %v369_v40 }
 0x132   :  { %v372_v46 = vrot.slane %v371_v45, 2 }
 0x134   :  { %v373_v47 = vadd.f32 %v372_v46, %v371_v45 }
 0x136   :  { %v374_v48 = vrot.slane %v373_v47, 1 }
 0x138   :  { %v375_v49 = vadd.f32 %v374_v48, %v373_v47 }
 0x13a   :  { %v1068_v50 = vmul.f32 0.0078125, %v375_v49 }
 0x13c   :  { %v378_v51 = vsub.f32 %v998_v43, %v1068_v50  ;;  %v379_v52 = vsub.f32 %v996_v42, %v1068_v50  ;;  %v380_v53 = vsub.f32 %v1000_v44, %v1068_v50  ;;  %v381_v54 = vsub.f32 %v1012_v57, %v1068_v50 }
 0x13d   :  { %v382_v58 = vsub.f32 %v1016_v60, %v1068_v50  ;;  %v383_v61 = vsub.f32 %v1022_v3, %v1068_v50  ;;  %v384_v2 = vsub.f32 %v1028_v11, %v1068_v50  ;;  %v385_v7 = vsub.f32 %v1034_v15, %v1068_v50 }
 0x13e   :  { %v394_v55 = vmul.f32 %v378_v51, %v378_v51  ;;  %v395_v56 = vmul.f32 %v379_v52, %v379_v52  ;;  %v396_v59 = vmul.f32 %v380_v53, %v380_v53  ;;  %v397_v62 = vmul.f32 %v381_v54, %v381_v54 }
 0x13f   :  { %v398_v4 = vmul.f32 %v382_v58, %v382_v58  ;;  %v399_v8 = vmul.f32 %v383_v61, %v383_v61  ;;  %v386_v12 = vsub.f32 %v1032_v13, %v1068_v50  ;;  %v400_v14 = vmul.f32 %v384_v2, %v384_v2 }
 0x140   :  { %v410_v63 = vsel %vm302_vm1, %v394_v55, 0.0  ;;  %v411_v0 = vsel %vm302_vm1, %v395_v56, 0.0  ;;  %v413_v5 = vsel %vm302_vm1, %v396_v59, 0.0  ;;  %v415_v9 = vsel %vm302_vm1, %v397_v62, 0.0 }
 0x141   :  { %v412_v1 = vadd.f32 %v411_v0, %v410_v63  ;;  %v417_v16 = vsel %vm302_vm1, %v398_v4, 0.0  ;;  %v387_v19 = vsub.f32 %v1038_v17, %v1068_v50  ;;  %v401_v21 = vmul.f32 %v385_v7, %v385_v7 }
 0x142   :  { %v419_v22 = vsel %vm302_vm1, %v399_v8, 0.0  ;;  %v388_v25 = vsub.f32 %v1042_v20, %v1068_v50  ;;  %v402_v27 = vmul.f32 %v386_v12, %v386_v12  ;;  %v421_v28 = vsel %vm302_vm1, %v400_v14, 0.0 }
 0x143   :  { %v414_v6 = vadd.f32 %v413_v5, %v412_v1  ;;  %v389_v32 = vsub.f32 %v1046_v23, %v1068_v50  ;;  %v403_v33 = vmul.f32 %v387_v19, %v387_v19  ;;  %v423_v34 = vsel %vm302_vm1, %v401_v21, 0.0  ;;  %v450_v19 = vld [vmem:[%s1319_s2] sm:$0x1] }
 0x144   :  { %v390_v36 = vsub.f32 %v1050_v26, %v1068_v50  ;;  %v404_v38 = vmul.f32 %v388_v25, %v388_v25  ;;  %v425_v39 = vsel %vm302_vm1, %v402_v27, 0.0  ;;  %v391_v41 = vsub.f32 %v1054_v30, %v1068_v50  ;;  %v452_v27 = vld [vmem:[%s1320_s3] sm:$0x1] }
 0x145   :  { %v416_v10 = vadd.f32 %v415_v9, %v414_v6  ;;  %v405_v45 = vmul.f32 %v389_v32, %v389_v32  ;;  %v427_v46 = vsel %vm302_vm1, %v403_v33, 0.0  ;;  %v392_v48 = vsub.f32 %v1056_v31, %v1068_v50 }
 0x146   :  { %v406_v49 = vmul.f32 %v390_v36, %v390_v36  ;;  %v429_v51 = vsel %vm302_vm1, %v404_v38, 0.0  ;;  %v393_v53 = vsub.f32 %v1064_v37, %v1068_v50  ;;  %v407_v54 = vmul.f32 %v391_v41, %v391_v41 }
 0x147   :  { %v418_v18 = vadd.f32 %v417_v16, %v416_v10  ;;  %v431_v55 = vsel %vm302_vm1, %v405_v45, 0.0  ;;  %v408_v58 = vmul.f32 %v392_v48, %v392_v48 }
 0x148   :  { %v433_v59 = vsel %vm302_vm1, %v406_v49, 0.0  ;;  %v409_v62 = vmul.f32 %v393_v53, %v393_v53  ;;  %v435_v63 = vsel %vm302_vm1, %v407_v54, 0.0 }
 0x149   :  { %v420_v24 = vadd.f32 %v419_v22, %v418_v18  ;;  %v437_v1 = vsel %vm302_vm1, %v408_v58, 0.0  ;;  %v456_v18 = vlaneseq }
 0x14a   :  { %v439_v4 = vsel %vm302_vm1, %v409_v62, 0.0 }
 0x14b   :  { %v422_v29 = vadd.f32 %v421_v28, %v420_v24  ;;  %v457_v24 = vshrl.u32 %v456_v18, 7 }
 0x14d   :  { %v424_v35 = vadd.f32 %v423_v34, %v422_v29  ;;  %v458_v28 = vsub.s32 0, %v457_v24 }
 0x14f   :  { %v426_v40 = vadd.f32 %v425_v39, %v424_v35 }
 0x151   :  { %v428_v47 = vadd.f32 %v427_v46, %v426_v40 }
 0x153   :  { %v430_v52 = vadd.f32 %v429_v51, %v428_v47 }
 0x155   :  { %v432_v56 = vadd.f32 %v431_v55, %v430_v52 }
 0x157   :  { %v434_v61 = vadd.f32 %v433_v59, %v432_v56 }
 0x159   :  { %v436_v0 = vadd.f32 %v435_v63, %v434_v61 }
 0x15b   :  { %v438_v2 = vadd.f32 %v437_v1, %v436_v0 }
 0x15d   :  { %v440_v5 = vadd.f32 %v439_v4, %v438_v2 }
 0x15f   :  { %v441_v6 = vrot.slane %v440_v5, 4 }
 0x161   :  { %v442_v7 = vadd.f32 %v441_v6, %v440_v5 }
 0x163   :  { %v443_v8 = vrot.slane %v442_v7, 2 }
 0x165   :  { %v444_v9 = vadd.f32 %v443_v8, %v442_v7 }
 0x167   :  { %v445_v10 = vrot.slane %v444_v9, 1 }
 0x169   :  { %v446_v12 = vadd.f32 %v445_v10, %v444_v9 }
 0x16b   :  { %v447_v14 = vmul.f32 0.0078125, %v446_v12 }
 0x16d   :  { %v448_v16 = vadd.f32 1e-05, %v447_v14 }
 0x16f   :  { %845 = vrsqrt.f32 %v448_v16 }
 0x179   :  { %v846_v21 = vpop.eup %845 }
 0x17a   :  { %v451_v22 = vmul.f32 %v846_v21, %v450_v19 }
 0x17c   :  { %v453_v25 = vmul.f32 %v451_v22, %v1068_v50  ;;  %v459_v32 = vrot.slane %v451_v22, %v458_v28 }
 0x17e   :  { %v454_v29 = vsub.f32 %v452_v27, %v453_v25  ;;  %v461_v34 = vmul.f32 %v459_v32, %v998_v43  ;;  %v462_v35 = vmul.f32 %v459_v32, %v996_v42  ;;  %v463_v36 = vmul.f32 %v459_v32, %v1000_v44 }
 0x17f   :  { %v464_v38 = vmul.f32 %v459_v32, %v1012_v57  ;;  %v465_v39 = vmul.f32 %v459_v32, %v1016_v60  ;;  %v466_v41 = vmul.f32 %v459_v32, %v1022_v3  ;;  %v467_v43 = vmul.f32 %v459_v32, %v1028_v11 }
 0x180   :  { %v481_v33 = vrot.slane %v454_v29, %v458_v28  ;;  %v468_v42 = vmul.f32 %v459_v32, %v1034_v15  ;;  %v469_v44 = vmul.f32 %v459_v32, %v1032_v13  ;;  %v470_v57 = vmul.f32 %v459_v32, %v1038_v17 }
 0x181   :  { %v471_v48 = vmul.f32 %v459_v32, %v1042_v20  ;;  %v472_v11 = vmul.f32 %v459_v32, %v1046_v23  ;;  %v473_v17 = vmul.f32 %v459_v32, %v1050_v26  ;;  %v474_v53 = vmul.f32 %v459_v32, %v1054_v30 }
 0x182   :  { %v1130_v40 = vadd.f32 %v481_v33, %v461_v34  ;;  %v1132_v50 = vadd.f32 %v481_v33, %v462_v35  ;;  %v1135_v45 = vadd.f32 %v481_v33, %v463_v36  ;;  %v1137_v46 = vadd.f32 %v481_v33, %v464_v38 }
 0x183   :  { %v1140_v47 = vadd.f32 %v481_v33, %v465_v39  ;;  %v1145_v60 = vadd.f32 %v481_v33, %v466_v41  ;;  %v1148_v49 = vadd.f32 %v481_v33, %v467_v43  ;;  %v1153_v52 = vadd.f32 %v481_v33, %v468_v42 }
 0x184   :  { %v515_v3 = vmul.f32 0.044715, %v1130_v40  ;;  %v516_v51 = vmul.f32 0.044715, %v1132_v50  ;;  %v517_v15 = vmul.f32 0.044715, %v1135_v45  ;;  %v1159_v54 = vadd.f32 %v481_v33, %v469_v44 }
 0x185   :  { %v518_v13 = vmul.f32 0.044715, %v1137_v46  ;;  %v519_v20 = vmul.f32 0.044715, %v1140_v47  ;;  %v475_v55 = vmul.f32 %v459_v32, %v1056_v31  ;;  %v476_v56 = vmul.f32 %v459_v32, %v1064_v37 }
 0x186   :  { %v1164_v58 = vadd.f32 %v481_v33, %v470_v57  ;;  %v520_v23 = vmul.f32 0.044715, %v1145_v60  ;;  %v1167_v59 = vadd.f32 %v481_v33, %v471_v48  ;;  %v521_v61 = vmul.f32 0.044715, %v1148_v49 }
 0x187   :  { %v531_v26 = vmul.f32 %v515_v3, %v1130_v40  ;;  %v532_v30 = vmul.f32 %v516_v51, %v1132_v50  ;;  %v1172_v62 = vadd.f32 %v481_v33, %v472_v11  ;;  %v522_v63 = vmul.f32 0.044715, %v1153_v52 }
 0x188   :  { %v533_v31 = vmul.f32 %v517_v15, %v1135_v45  ;;  %v534_v37 = vmul.f32 %v518_v13, %v1137_v46  ;;  %v1177_v0 = vadd.f32 %v481_v33, %v473_v17  ;;  %v1179_v1 = vadd.f32 %v481_v33, %v474_v53 }
 0x189   :  { %v523_v2 = vmul.f32 0.044715, %v1159_v54  ;;  %v535_v4 = vmul.f32 %v519_v20, %v1140_v47  ;;  %v1183_v5 = vadd.f32 %v481_v33, %v475_v55  ;;  %v1185_v6 = vadd.f32 %v481_v33, %v476_v56 }
 0x18a   :  { %v524_v7 = vmul.f32 0.044715, %v1164_v58  ;;  %v536_v8 = vmul.f32 %v520_v23, %v1145_v60  ;;  %v525_v9 = vmul.f32 0.044715, %v1167_v59  ;;  %v537_v10 = vmul.f32 %v521_v61, %v1148_v49 }
 0x18b   :  { %v547_v12 = vmul.f32 %v531_v26, %v1130_v40  ;;  %v548_v14 = vmul.f32 %v532_v30, %v1132_v50  ;;  %v526_v16 = vmul.f32 0.044715, %v1172_v62  ;;  %v538_v18 = vmul.f32 %v522_v63, %v1153_v52 }
 0x18c   :  { %v549_v19 = vmul.f32 %v533_v31, %v1135_v45  ;;  %v550_v21 = vmul.f32 %v534_v37, %v1137_v46  ;;  %v527_v22 = vmul.f32 0.044715, %v1177_v0  ;;  %v528_v24 = vmul.f32 0.044715, %v1179_v1 }
 0x18d   :  { %v539_v25 = vmul.f32 %v523_v2, %v1159_v54  ;;  %v551_v27 = vmul.f32 %v535_v4, %v1140_v47  ;;  %v529_v28 = vmul.f32 0.044715, %v1183_v5  ;;  %v530_v29 = vmul.f32 0.044715, %v1185_v6 }
 0x18e   :  { %v540_v32 = vmul.f32 %v524_v7, %v1164_v58  ;;  %v552_v33 = vmul.f32 %v536_v8, %v1145_v60  ;;  %v541_v34 = vmul.f32 %v525_v9, %v1167_v59  ;;  %v553_v35 = vmul.f32 %v537_v10, %v1148_v49 }
 0x18f   :  { %v563_v36 = vadd.f32 %v547_v12, %v1130_v40  ;;  %v564_v38 = vadd.f32 %v548_v14, %v1132_v50  ;;  %v542_v39 = vmul.f32 %v526_v16, %v1172_v62  ;;  %v554_v41 = vmul.f32 %v538_v18, %v1153_v52 }
 0x190   :  { %v565_v43 = vadd.f32 %v549_v19, %v1135_v45  ;;  %v566_v42 = vadd.f32 %v550_v21, %v1137_v46  ;;  %v543_v44 = vmul.f32 %v527_v22, %v1177_v0  ;;  %v544_v57 = vmul.f32 %v528_v24, %v1179_v1 }
 0x191   :  { %v555_v48 = vmul.f32 %v539_v25, %v1159_v54  ;;  %v567_v3 = vadd.f32 %v551_v27, %v1140_v47  ;;  %v545_v51 = vmul.f32 %v529_v28, %v1183_v5  ;;  %v546_v11 = vmul.f32 %v530_v29, %v1185_v6 }
 0x192   :  { %v556_v15 = vmul.f32 %v540_v32, %v1164_v58  ;;  %v568_v13 = vadd.f32 %v552_v33, %v1145_v60  ;;  %v557_v17 = vmul.f32 %v541_v34, %v1167_v59  ;;  %v569_v53 = vadd.f32 %v553_v35, %v1148_v49 }
 0x193   :  { %v579_v20 = vmul.f32 0.7978846, %v563_v36  ;;  %v580_v55 = vmul.f32 0.7978846, %v564_v38  ;;  %v558_v56 = vmul.f32 %v542_v39, %v1172_v62  ;;  %v570_v23 = vadd.f32 %v554_v41, %v1153_v52 }
 0x194   :  { %v581_v61 = vmul.f32 0.7978846, %v565_v43  ;;  %v582_v26 = vmul.f32 0.7978846, %v566_v42  ;;  %v559_v30 = vmul.f32 %v543_v44, %v1177_v0  ;;  %v571_v63 = vadd.f32 %v555_v48, %v1159_v54 }
 0x195   :  { %v583_v31 = vmul.f32 0.7978846, %v567_v3  ;;  %847 = vtanh.f32 %v579_v20  ;;  %v560_v37 = vmul.f32 %v544_v57, %v1179_v1  ;;  %v572_v2 = vadd.f32 %v556_v15, %v1164_v58 }
 0x196   :  { %v584_v4 = vmul.f32 0.7978846, %v568_v13  ;;  %849 = vtanh.f32 %v580_v55  ;;  %v561_v7 = vmul.f32 %v545_v51, %v1183_v5  ;;  %v573_v8 = vadd.f32 %v557_v17, %v1167_v59 }
 0x197   :  { %v585_v9 = vmul.f32 0.7978846, %v569_v53  ;;  %851 = vtanh.f32 %v581_v61  ;;  %v562_v10 = vmul.f32 %v546_v11, %v1185_v6  ;;  %v574_v12 = vadd.f32 %v558_v56, %v1172_v62 }
 0x198   :  { %v586_v14 = vmul.f32 0.7978846, %v570_v23  ;;  %853 = vtanh.f32 %v582_v26  ;;  %v575_v16 = vadd.f32 %v559_v30, %v1177_v0  ;;  %v587_v18 = vmul.f32 0.7978846, %v571_v63 }
 0x199   :  { %855 = vtanh.f32 %v583_v31  ;;  %v576_v19 = vadd.f32 %v560_v37, %v1179_v1  ;;  %v588_v21 = vmul.f32 0.7978846, %v572_v2  ;;  %v577_v22 = vadd.f32 %v561_v7, %v1183_v5 }
 0x19a   :  { %857 = vtanh.f32 %v584_v4  ;;  %v589_v24 = vmul.f32 0.7978846, %v573_v8  ;;  %v578_v25 = vadd.f32 %v562_v10, %v1185_v6  ;;  %v590_v27 = vmul.f32 0.7978846, %v574_v12 }
 0x19b   :  { %859 = vtanh.f32 %v585_v9  ;;  %v591_v28 = vmul.f32 0.7978846, %v575_v16  ;;  %v592_v29 = vmul.f32 0.7978846, %v576_v19  ;;  %v593_v33 = vmul.f32 0.7978846, %v577_v22 }
 0x19c   :  { %861 = vtanh.f32 %v586_v14  ;;  %v499_v35 = vmul.f32 0.5, %v1130_v40  ;;  %v594_v36 = vmul.f32 0.7978846, %v578_v25  ;;  %v500_v41 = vmul.f32 0.5, %v1132_v50 }
 0x19d   :  { %863 = vtanh.f32 %v587_v18  ;;  %v501_v43 = vmul.f32 0.5, %v1135_v45  ;;  %v502_v57 = vmul.f32 0.5, %v1137_v46  ;;  %v503_v11 = vmul.f32 0.5, %v1140_v47 }
 0x19e   :  { %865 = vtanh.f32 %v588_v21  ;;  %v504_v20 = vmul.f32 0.5, %v1145_v60  ;;  %v505_v61 = vmul.f32 0.5, %v1148_v49  ;;  %v506_v31 = vmul.f32 0.5, %v1153_v52 }
 0x19f   :  { %v848_v32 = vpop.eup %847  ;;  %867 = vtanh.f32 %v589_v24  ;;  %v507_v4 = vmul.f32 0.5, %v1159_v54  ;;  %v508_v10 = vmul.f32 0.5, %v1164_v58  ;;  %v509_v18 = vmul.f32 0.5, %v1167_v59 }
 0x1a0   :  { %v850_v34 = vpop.eup %849  ;;  %869 = vtanh.f32 %v590_v27  ;;  %v611_v38 = vadd.f32 1.0, %v848_v32  ;;  %v510_v24 = vmul.f32 0.5, %v1172_v62 }
 0x1a1   :  { %v852_v39 = vpop.eup %851  ;;  %871 = vtanh.f32 %v591_v28  ;;  %v612_v42 = vadd.f32 1.0, %v850_v34 }
 0x1a2   :  { %v854_v44 = vpop.eup %853  ;;  %873 = vtanh.f32 %v592_v29  ;;  %v613_v48 = vadd.f32 1.0, %v852_v39  ;;  %v627_v3 = vmul.f32 %v611_v38, %v499_v35  ;;  %v511_v29 = vmul.f32 0.5, %v1177_v0 }
 0x1a3   :  { %v856_v51 = vpop.eup %855  ;;  %875 = vtanh.f32 %v593_v33  ;;  %v614_v40 = vadd.f32 1.0, %v854_v44  ;;  %v628_v15 = vmul.f32 %v612_v42, %v500_v41  ;;  %v512_v35 = vmul.f32 0.5, %v1179_v1 }
 0x1a4   :  { %v858_v13 = vpop.eup %857  ;;  %877 = vtanh.f32 %v594_v36  ;;  %v615_v17 = vadd.f32 1.0, %v856_v51  ;;  %v629_v50 = vmul.f32 %v613_v48, %v501_v43  ;;  %v777_v53 = vpack.c.bf16 %v627_v3, %v627_v3 }
 0x1a5   :  { %v860_v45 = vpop.eup %859  ;;  %v616_v55 = vadd.f32 1.0, %v858_v13  ;;  %v630_v56 = vmul.f32 %v614_v40, %v502_v57  ;;  %v778_v46 = vpack.c.bf16 %v628_v15, %v628_v15  ;;  %v513_v41 = vmul.f32 0.5, %v1183_v5 }
 0x1a6   :  { %v862_v23 = vpop.eup %861  ;;  %v617_v26 = vadd.f32 1.0, %v860_v45  ;;  %v631_v30 = vmul.f32 %v615_v17, %v503_v11  ;;  %v779_v47 = vpack.c.bf16 %v629_v50, %v629_v50  ;;  %708 = vst.msk [vmem:[%s1321_s4] sm:$0xf] %vm707_vm2, %v777_v53  ;;  %v514_v1 = vmul.f32 0.5, %v1185_v6 }
 0x1a7   :  { %v864_v63 = vpop.eup %863  ;;  %v618_v37 = vadd.f32 1.0, %v862_v23  ;;  %v632_v2 = vmul.f32 %v616_v55, %v504_v20  ;;  %v780_v60 = vpack.c.bf16 %v630_v56, %v630_v56  ;;  %709 = vst.msk [vmem:[%s1321_s4 + $0x4] sm:$0xf] %vm707_vm2, %v778_v46 }
 0x1a8   :  { %v866_v49 = vpop.eup %865  ;;  %v619_v7 = vadd.f32 1.0, %v864_v63  ;;  %v633_v8 = vmul.f32 %v617_v26, %v505_v61  ;;  %v781_v9 = vpack.c.bf16 %v631_v30, %v631_v30  ;;  %710 = vst.msk [vmem:[%s1321_s4 + $0x8] sm:$0xf] %vm707_vm2, %v779_v47 }
 0x1a9   :  { %v868_v52 = vpop.eup %867  ;;  %v620_v12 = vadd.f32 1.0, %v866_v49  ;;  %v634_v14 = vmul.f32 %v618_v37, %v506_v31  ;;  %v782_v16 = vpack.c.bf16 %v632_v2, %v632_v2  ;;  %711 = vst.msk [vmem:[%s1321_s4 + $0xc] sm:$0xf] %vm707_vm2, %v780_v60 }
 0x1aa   :  { %v870_v54 = vpop.eup %869  ;;  %v621_v19 = vadd.f32 1.0, %v868_v52  ;;  %v635_v21 = vmul.f32 %v619_v7, %v507_v4  ;;  %v783_v22 = vpack.c.bf16 %v633_v8, %v633_v8  ;;  %712 = vst.msk [vmem:[%s1321_s4 + $0x10] sm:$0xf] %vm707_vm2, %v781_v9 }
 0x1ab   :  { %v872_v58 = vpop.eup %871  ;;  %v622_v25 = vadd.f32 1.0, %v870_v54  ;;  %v636_v27 = vmul.f32 %v620_v12, %v508_v10  ;;  %v784_v28 = vpack.c.bf16 %v634_v14, %v634_v14  ;;  %713 = vst.msk [vmem:[%s1321_s4 + $0x14] sm:$0xf] %vm707_vm2, %v782_v16 }
 0x1ac   :  { %v874_v59 = vpop.eup %873  ;;  %v623_v32 = vadd.f32 1.0, %v872_v58  ;;  %v637_v33 = vmul.f32 %v621_v19, %v509_v18  ;;  %v785_v34 = vpack.c.bf16 %v635_v21, %v635_v21  ;;  %714 = vst.msk [vmem:[%s1321_s4 + $0x18] sm:$0xf] %vm707_vm2, %v783_v22 }
 0x1ad   :  { %v876_v62 = vpop.eup %875  ;;  %v624_v36 = vadd.f32 1.0, %v874_v59  ;;  %v638_v38 = vmul.f32 %v622_v25, %v510_v24  ;;  %v786_v39 = vpack.c.bf16 %v636_v27, %v636_v27  ;;  %715 = vst.msk [vmem:[%s1321_s4 + $0x1c] sm:$0xf] %vm707_vm2, %v784_v28 }
 0x1ae   :  { %v878_v0 = vpop.eup %877  ;;  %v625_v43 = vadd.f32 1.0, %v876_v62  ;;  %v639_v42 = vmul.f32 %v623_v32, %v511_v29  ;;  %v787_v44 = vpack.c.bf16 %v637_v33, %v637_v33  ;;  %716 = vst.msk [vmem:[%s1321_s4 + $0x20] sm:$0xf] %vm707_vm2, %v785_v34 }
 0x1af   :  { %v626_v57 = vadd.f32 1.0, %v878_v0  ;;  %v640_v48 = vmul.f32 %v624_v36, %v512_v35  ;;  %v788_v3 = vpack.c.bf16 %v638_v38, %v638_v38  ;;  %717 = vst.msk [vmem:[%s1321_s4 + $0x24] sm:$0xf] %vm707_vm2, %v786_v39 }
 0x1b0   :  { %v641_v51 = vmul.f32 %v625_v43, %v513_v41  ;;  %v789_v5 = vpack.c.bf16 %v639_v42, %v639_v42  ;;  %718 = vst.msk [vmem:[%s1321_s4 + $0x28] sm:$0xf] %vm707_vm2, %v787_v44 }
 0x1b1   :  { %v642_v11 = vmul.f32 %v626_v57, %v514_v1  ;;  %v790_v40 = vpack.c.bf16 %v640_v48, %v640_v48  ;;  %719 = vst.msk [vmem:[%s1321_s4 + $0x2c] sm:$0xf] %vm707_vm2, %v788_v3 }
 0x1b2   :  { %v791_v6 = vpack.c.bf16 %v641_v51, %v641_v51  ;;  %720 = vst.msk [vmem:[%s1321_s4 + $0x30] sm:$0xf] %vm707_vm2, %v789_v5 }
 0x1b3   :  { %v792_v15 = vpack.c.bf16 %v642_v11, %v642_v11  ;;  %721 = vst.msk [vmem:[%s1321_s4 + $0x34] sm:$0xf] %vm707_vm2, %v790_v40 }
 0x1b4   :  { %722 = vst.msk [vmem:[%s1321_s4 + $0x38] sm:$0xf] %vm707_vm2, %v791_v6 }
 0x1b5   :  { %723 = vst.msk [vmem:[%s1321_s4 + $0x3c] sm:$0xf] %vm707_vm2, %v792_v15 }

// kernel: cnn_forward.11
= control target key start
LH: loop header
LB: loop body
LE: loop exit
PB: predicated region body
PF: predicated region fallthrough
CT: control target
= control target key end

     0   :  { %vm314_vm0 = vcmask 261120   ;;  %vm939_vm1 = vcmask 257024   ;;  %s1736_s1 = inlined_call_operand.vmem [shape: bf16[288,32], index: 1, kind: input, shape index: {}]   ;;  %s1737_s0 = inlined_call_operand.vmem [shape: bf16[128,288], index: 0, kind: input, shape index: {}]   ;;  %s1738_s2 = inlined_call_operand.vmem [shape: f32[1,32], index: 2, kind: input, shape index: {}]   ;;  %s1739_s3 = inlined_call_operand.vmem [shape: f32[1,32], index: 3, kind: input, shape index: {}]   ;;  %s1740_s4 = inlined_call_operand.vmem [shape: bf16[128,32], index: 4, kind: output, shape index: {}]  }
   0x1   :  { %v1152_v0 = vld [vmem:[%s1736_s1 + $0x40] sm:$0xff]   ;;  %v1154_v2 = vld [vmem:[%s1736_s1 + $0x48] sm:$0xff]   ;;  %v1156_v4 = vld [vmem:[%s1736_s1 + $0x50] sm:$0xff]  }
   0x2   :  { %v1153_v1 = vld [vmem:[%s1736_s1] sm:$0xff]   ;;  %1042 = vmatprep.subr.bf16.mxu0 %v1152_v0  ;;  %1136 = vmatprep.subr.bf16.mxu1 %v1152_v0  ;;  %v1155_v3 = vld [vmem:[%s1736_s1 + $0x8] sm:$0xff]   ;;  %v1157_v5 = vld [vmem:[%s1736_s1 + $0x10] sm:$0xff]  }
   0x3   :  { %1043 = vmatpush3.bf16.msra.mxu0 %v1153_v1  ;;  %1144 = vmatpush3.bf16.msra.mxu1 %v1153_v1  ;;  %v1158_v6 = vld [vmem:[%s1736_s1 + $0x58] sm:$0xff]   ;;  %v1160_v8 = vld [vmem:[%s1736_s1 + $0x60] sm:$0xff]   ;;  %v1162_v10 = vld [vmem:[%s1736_s1 + $0x68] sm:$0xff]  }
   0x4   :  { %1044 = vmatprep.subr.bf16.mxu0 %v1154_v2  ;;  %1137 = vmatprep.subr.bf16.mxu1 %v1154_v2  ;;  %v1159_v7 = vld [vmem:[%s1736_s1 + $0x18] sm:$0xff]   ;;  %v1161_v9 = vld [vmem:[%s1736_s1 + $0x20] sm:$0xff]   ;;  %v1163_v13 = vld [vmem:[%s1736_s1 + $0x28] sm:$0xff]  }
   0x5   :  { %v1170_v11 = vld [vmem:[%s1737_s0 + $0x4] ss:$12 sps:$4 sm:$0xff]   ;;  %v1173_v12 = vld [vmem:[%s1737_s0 + $0x94] ss:$12 sps:$4 sm:$0xff]   ;;  %v1166_v16 = vld [vmem:[%s1736_s1 + $0x78] sm:$0xff]  }
   0x6   :  { %v1164_v14 = vld [vmem:[%s1736_s1 + $0x70] sm:$0xff]   ;;  %371 = vmatprep.mubr.bf16.mxu0 %v1170_v11  ;;  %419 = vmatprep.mubr.bf16.mxu1 %v1173_v12  ;;  %v1167_v17 = vld [vmem:[%s1736_s1 + $0x38] sm:$0xff]   ;;  %v1168_v18 = vld [vmem:[%s1737_s0] ss:$12 sps:$4 sm:$0xff]  }
   0x7   :  { %1045 = vmatpush3.bf16.msra.mxu0 %v1155_v3  ;;  %1145 = vmatpush3.bf16.msra.mxu1 %v1155_v3  ;;  %v1165_v15 = vld [vmem:[%s1736_s1 + $0x30] sm:$0xff]   ;;  %v1174_v19 = vld [vmem:[%s1736_s1 + $0x80] sm:$0xff]   ;;  %v1175_v21 = vld [vmem:[%s1737_s0 + $0x1c] ss:$12 sps:$4 sm:$0xff]  }
   0x8   :  { %1046 = vmatprep.subr.bf16.mxu0 %v1156_v4  ;;  %1138 = vmatprep.subr.bf16.mxu1 %v1156_v4  ;;  %v1171_v20 = vld [vmem:[%s1737_s0 + $0x90] ss:$12 sps:$4 sm:$0xff]   ;;  %v1177_v22 = vld [vmem:[%s1737_s0 + $0xac] ss:$12 sps:$4 sm:$0xff]   ;;  %v1180_v25 = vld [vmem:[%s1737_s0 + $0xa8] ss:$12 sps:$4 sm:$0xff]  }
   0x9   :  { %v1181_v23 = vld [vmem:[%s1736_s1 + $0x88] sm:$0xff]   ;;  %v1179_v24 = vld [vmem:[%s1737_s0 + $0x18] ss:$12 sps:$4 sm:$0xff]   ;;  %v1182_v26 = vld [vmem:[%s1737_s0 + $0x34] ss:$12 sps:$4 sm:$0xff]  }
   0xa   :  { %v1184_v27 = vld [vmem:[%s1737_s0 + $0x8] ss:$12 sps:$4 sm:$0xff]   ;;  %v1185_v28 = vld [vmem:[%s1737_s0 + $0x30] ss:$12 sps:$4 sm:$0xff]   ;;  %v1186_v29 = vld [vmem:[%s1737_s0 + $0x20] ss:$12 sps:$4 sm:$0xff]  }
   0xb   :  { %1047 = vmatpush3.bf16.msra.mxu0 %v1157_v5  ;;  %1146 = vmatpush3.bf16.msra.mxu1 %v1157_v5  ;;  %v1187_v30 = vld [vmem:[%s1737_s0 + $0x4c] ss:$12 sps:$4 sm:$0xff]   ;;  %v1190_v32 = vld [vmem:[%s1737_s0 + $0x48] ss:$12 sps:$4 sm:$0xff]   ;;  %v1191_v33 = vld [vmem:[%s1737_s0 + $0x50] ss:$12 sps:$4 sm:$0xff]  }
   0xc   :  { %1048 = vmatprep.subr.bf16.mxu0 %v1158_v6  ;;  %1139 = vmatprep.subr.bf16.mxu1 %v1158_v6  ;;  %v1189_v31 = vld [vmem:[%s1737_s0 + $0x38] ss:$12 sps:$4 sm:$0xff]   ;;  %v1194_v35 = vld [vmem:[%s1737_s0 + $0x68] ss:$12 sps:$4 sm:$0xff]   ;;  %v1195_v36 = vld [vmem:[%s1737_s0 + $0x60] ss:$12 sps:$4 sm:$0xff]  }
   0xd   :  { %v1192_v34 = vld [vmem:[%s1737_s0 + $0x64] ss:$12 sps:$4 sm:$0xff]   ;;  %v1196_v37 = vld [vmem:[%s1737_s0 + $0x80] ss:$12 sps:$4 sm:$0xff]   ;;  %v1197_v38 = vld [vmem:[%s1737_s0 + $0x7c] ss:$12 sps:$4 sm:$0xff]  }
   0xe   :  { %v1199_v39 = vld [vmem:[%s1737_s0 + $0x98] ss:$12 sps:$4 sm:$0xff]   ;;  %v1201_v41 = vld [vmem:[%s1737_s0 + $0xb0] ss:$12 sps:$4 sm:$0xff]  }
   0xf   :  { %1049 = vmatpush3.bf16.msra.mxu0 %v1159_v7  ;;  %1147 = vmatpush3.bf16.msra.mxu1 %v1159_v7  ;;  %v1200_v40 = vld [vmem:[%s1737_s0 + $0x78] ss:$12 sps:$4 sm:$0xff]  }
  0x10   :  { %1050 = vmatprep.subr.bf16.mxu0 %v1160_v8  ;;  %1140 = vmatprep.subr.bf16.mxu1 %v1160_v8 }
  0x13   :  { %1051 = vmatpush3.bf16.msra.mxu0 %v1161_v9  ;;  %1148 = vmatpush3.bf16.msra.mxu1 %v1161_v9 }
  0x14   :  { %1052 = vmatprep.subr.bf16.mxu0 %v1162_v10  ;;  %1141 = vmatprep.subr.bf16.mxu1 %v1162_v10 }
  0x17   :  { %1053 = vmatpush3.bf16.msra.mxu0 %v1163_v13  ;;  %1149 = vmatpush3.bf16.msra.mxu1 %v1163_v13 }
  0x18   :  { %1054 = vmatprep.subr.bf16.mxu0 %v1164_v14  ;;  %1142 = vmatprep.subr.bf16.mxu1 %v1164_v14 }
  0x1b   :  { %1055 = vmatpush3.bf16.msra.mxu0 %v1165_v15  ;;  %1150 = vmatpush3.bf16.msra.mxu1 %v1165_v15 }
  0x1c   :  { %1056 = vmatprep.subr.bf16.mxu0 %v1166_v16  ;;  %1143 = vmatprep.subr.bf16.mxu1 %v1166_v16 }
  0x1f   :  { %1057 = vmatpush3.bf16.msra.mxu0 %v1167_v17  ;;  %1151 = vmatpush3.bf16.msra.mxu1 %v1167_v17 }
  0x20   :  { %1116 = vmatprep.subr.bf16.mxu1 %v1174_v19 }
  0x22   :  { %372 = vmatmul.mubr.bf16.vlgmr.msra.gmra.mrb[0].mxu0 %v1168_v18  ;;  %420 = vmatmul.mubr.bf16.vlgmr.msra.gmra.mrb[0].mxu1 %v1171_v20 }
  0x23   :  { %1117 = vmatpush3.bf16.msra.mxu1 %v1174_v19  ;;  %379 = vmatprep.mubr.bf16.mxu0 %v1175_v21 }
  0x24   :  { %427 = vmatprep.mubr.bf16.mxu1 %v1177_v22  ;;  %1118 = vmatprep.subr.bf16.mxu1 %v1181_v23 }
  0x27   :  { %1119 = vmatpush3.bf16.msra.mxu1 %v1181_v23 }
  0x2a   :  { %380 = vmatmul.mubr.bf16.gmra.mrb[4].mxu0 %v1179_v24  ;;  %428 = vmatmul.mubr.bf16.gmra.mrb[4].mxu1 %v1180_v25 }
  0x2b   :  { %387 = vmatprep.mubr.bf16.mxu0 %v1182_v26  ;;  %1120 = vmatprep.mubr.msk.bf16.mxu1 %vm314_vm0, %v1184_v27 }
  0x32   :  { %388 = vmatmul.mubr.bf16.gmra.mrb[8].mxu0 %v1185_v28  ;;  %1121 = vmatmul.mubr.msk.bf16.vlgmr.msra.gmra.mrb[8].mxu1 %vm314_vm0, %v1186_v29 }
  0x33   :  { %395 = vmatprep.mubr.bf16.mxu0 %v1187_v30  ;;  %1124 = vmatprep.mubr.msk.bf16.mxu1 %vm314_vm0, %v1189_v31 }
  0x3a   :  { %396 = vmatmul.mubr.bf16.gmra.mrb[12].mxu0 %v1190_v32  ;;  %1125 = vmatmul.mubr.msk.bf16.gmra.mrb[12].mxu1 %vm314_vm0, %v1191_v33 }
  0x3b   :  { %403 = vmatprep.mubr.bf16.mxu0 %v1192_v34  ;;  %1128 = vmatprep.mubr.msk.bf16.mxu1 %vm314_vm0, %v1194_v35 }
  0x42   :  { %404 = vmatmul.mubr.bf16.gmra.mrb[16].mxu0 %v1195_v36  ;;  %1129 = vmatmul.mubr.msk.bf16.gmra.mrb[16].mxu1 %vm314_vm0, %v1196_v37 }
  0x43   :  { %411 = vmatprep.mubr.bf16.mxu0 %v1197_v38  ;;  %1132 = vmatprep.mubr.msk.bf16.mxu1 %vm314_vm0, %v1199_v39 }
  0x4a   :  { %412 = vmatmul.mubr.bf16.gmra.mrb[20].mxu0 %v1200_v40  ;;  %1133 = vmatmul.mubr.msk.bf16.gmra.mrb[20].mxu1 %vm314_vm0, %v1201_v41 }
  0xf5   :  { %v1058_v42 = vpop.f32.mrb[0].mxu0  ;;  %v1094_v43 = vpop.f32.mrb[0].mxu1 }
  0xf6   :  { %v1059_v44 = vpop.f32.mrb[1].mxu0  ;;  %v1095_v45 = vpop.f32.mrb[1].mxu1 }
  0xf7   :  { %v1060_v46 = vadd.f32 %v1059_v44, %v1058_v42  ;;  %v1061_v47 = vpop.f32.mrb[2].mxu0  ;;  %v1395_v48 = vadd.f32 %v1095_v45, %v1094_v43  ;;  %v1097_v49 = vpop.f32.mrb[2].mxu1 }
  0xf8   :  { %v1062_v50 = vpop.f32.mrb[3].mxu0  ;;  %v1098_v51 = vpop.f32.mrb[3].mxu1 }
  0xf9   :  { %v1063_v52 = vadd.f32 %v1062_v50, %v1061_v47  ;;  %v1397_v53 = vadd.f32 %v1098_v51, %v1097_v49 }
  0xfd   :  { %v1064_v54 = vpop.f32.mrb[4].mxu0  ;;  %v1100_v55 = vpop.f32.mrb[4].mxu1 }
  0xfe   :  { %v1065_v56 = vpop.f32.mrb[5].mxu0  ;;  %v1101_v57 = vpop.f32.mrb[5].mxu1 }
  0xff   :  { %v1066_v58 = vadd.f32 %v1065_v56, %v1064_v54  ;;  %v1067_v59 = vpop.f32.mrb[6].mxu0  ;;  %v1399_v60 = vadd.f32 %v1101_v57, %v1100_v55  ;;  %v1103_v61 = vpop.f32.mrb[6].mxu1 }
 0x100   :  { %v1068_v62 = vpop.f32.mrb[7].mxu0  ;;  %v1104_v63 = vpop.f32.mrb[7].mxu1 }
 0x101   :  { %v1069_v0 = vadd.f32 %v1068_v62, %v1067_v59  ;;  %v1401_v1 = vadd.f32 %v1104_v63, %v1103_v61 }
 0x105   :  { %v1070_v2 = vpop.f32.mrb[8].mxu0  ;;  %v1122_v3 = vpop.f32.mrb[8].mxu1 }
 0x106   :  { %v479_v4 = vadd.f32 %v1122_v3, %v1066_v58  ;;  %v1071_v5 = vpop.f32.mrb[9].mxu0  ;;  %v470_v6 = vpop.f32.mrb[9].mxu1 }
 0x107   :  { %v1072_v7 = vadd.f32 %v1071_v5, %v1070_v2  ;;  %v471_v8 = vadd.f32 %v1060_v46, %v470_v6  ;;  %v1073_v9 = vpop.f32.mrb[10].mxu0  ;;  %v1123_v10 = vpop.f32.mrb[10].mxu1 }
 0x108   :  { %537 = vst.msk [vmem:[#allocation2 + $0x10] sm:$0xff] %vm314_vm0, %v479_v4  ;;  %v482_v11 = vadd.f32 %v1123_v10, %v1069_v0  ;;  %v1074_v12 = vpop.f32.mrb[11].mxu0  ;;  %v473_v13 = vpop.f32.mrb[11].mxu1 }
 0x109   :  { %535 = vst.msk [vmem:[#allocation2] sm:$0xff] %vm314_vm0, %v471_v8  ;;  %v1075_v14 = vadd.f32 %v1074_v12, %v1073_v9  ;;  %v474_v15 = vadd.f32 %v1063_v52, %v473_v13 }
 0x10a   :  { %538 = vst.msk [vmem:[#allocation2 + $0x18] sm:$0xff] %vm314_vm0, %v482_v11 }
 0x10b   :  { %536 = vst.msk [vmem:[#allocation2 + $0x8] sm:$0xff] %vm314_vm0, %v474_v15 }
 0x10d   :  { %v1076_v16 = vpop.f32.mrb[12].mxu0  ;;  %v1126_v17 = vpop.f32.mrb[12].mxu1 }
 0x10e   :  { %v1077_v18 = vpop.f32.mrb[13].mxu0  ;;  %v486_v19 = vpop.f32.mrb[13].mxu1 }
 0x10f   :  { %v1078_v20 = vadd.f32 %v1077_v18, %v1076_v16  ;;  %v487_v21 = vadd.f32 %v1072_v7, %v486_v19  ;;  %v1079_v22 = vpop.f32.mrb[14].mxu0  ;;  %v1127_v23 = vpop.f32.mrb[14].mxu1  ;;  %v1410_v30 = vld [vmem:[#allocation2 + $0x10] sm:$0xff] }
 0x110   :  { %v1407_v24 = vld [vmem:[#allocation2] sm:$0xff]  ;;  %v1080_v25 = vpop.f32.mrb[15].mxu0  ;;  %v489_v26 = vpop.f32.mrb[15].mxu1  ;;  %v574_v37 = vsel %vm314_vm0, %v1410_v30, 0.0 }
 0x111   :  { %v495_v27 = vadd.f32 %v1126_v17, %v1078_v20  ;;  %539 = vst.msk [vmem:[#allocation2 + $0x20] sm:$0xff] %vm314_vm0, %v487_v21  ;;  %v1081_v28 = vadd.f32 %v1080_v25, %v1079_v22  ;;  %v490_v29 = vadd.f32 %v1075_v14, %v489_v26  ;;  %v571_v32 = vsel %vm314_vm0, %v1407_v24, 0.0  ;;  %v1420_v35 = vld [vmem:[#allocation2 + $0x18] sm:$0xff] }
 0x112   :  { %v1412_v31 = vld [vmem:[#allocation2 + $0x8] sm:$0xff]  ;;  %v576_v43 = vsel %vm314_vm0, %v1420_v35, 0.0 }
 0x113   :  { %v572_v33 = vsel %vm314_vm0, %v1412_v31, 0.0  ;;  %541 = vst.msk [vmem:[#allocation2 + $0x30] sm:$0xff] %vm314_vm0, %v495_v27  ;;  %v498_v34 = vadd.f32 %v1127_v23, %v1081_v28  ;;  %540 = vst.msk [vmem:[#allocation2 + $0x28] sm:$0xff] %vm314_vm0, %v490_v29 }
 0x114   :  { %v573_v36 = vadd.f32 %v572_v33, %v571_v32 }
 0x115   :  { %542 = vst.msk [vmem:[#allocation2 + $0x38] sm:$0xff] %vm314_vm0, %v498_v34  ;;  %v1082_v38 = vpop.f32.mrb[16].mxu0  ;;  %v1130_v39 = vpop.f32.mrb[16].mxu1 }
 0x116   :  { %v575_v40 = vadd.f32 %v574_v37, %v573_v36  ;;  %v1083_v41 = vpop.f32.mrb[17].mxu0  ;;  %v502_v42 = vpop.f32.mrb[17].mxu1 }
 0x117   :  { %v1084_v44 = vadd.f32 %v1083_v41, %v1082_v38  ;;  %v1085_v45 = vpop.f32.mrb[18].mxu0  ;;  %v1131_v46 = vpop.f32.mrb[18].mxu1 }
 0x118   :  { %v1427_v47 = vld [vmem:[#allocation2 + $0x20] sm:$0xff]  ;;  %v577_v49 = vadd.f32 %v576_v43, %v575_v40  ;;  %v1086_v50 = vpop.f32.mrb[19].mxu0  ;;  %v505_v51 = vpop.f32.mrb[19].mxu1 }
 0x119   :  { %v578_v52 = vsel %vm314_vm0, %v1427_v47, 0.0  ;;  %v1087_v54 = vadd.f32 %v1086_v50, %v1085_v45  ;;  %v503_v55 = vadd.f32 %v1084_v44, %v502_v42 }
 0x11a   :  { %v579_v56 = vadd.f32 %v578_v52, %v577_v49  ;;  %v1431_v57 = vld [vmem:[#allocation2 + $0x28] sm:$0xff]  ;;  %v1436_v61 = vld [vmem:[#allocation2 + $0x30] sm:$0xff] }
 0x11b   :  { %v580_v58 = vsel %vm314_vm0, %v1431_v57, 0.0  ;;  %543 = vst.msk [vmem:[#allocation2 + $0x40] sm:$0xff] %vm314_vm0, %v503_v55  ;;  %v506_v59 = vadd.f32 %v1087_v54, %v505_v51  ;;  %v582_v5 = vsel %vm314_vm0, %v1436_v61, 0.0 }
 0x11c   :  { %v581_v62 = vadd.f32 %v580_v58, %v579_v56  ;;  %v1443_v10 = vld [vmem:[#allocation2 + $0x38] sm:$0xff] }
 0x11d   :  { %544 = vst.msk [vmem:[#allocation2 + $0x48] sm:$0xff] %vm314_vm0, %v506_v59  ;;  %v1088_v63 = vpop.f32.mrb[20].mxu0  ;;  %v1134_v0 = vpop.f32.mrb[20].mxu1 }
 0x11e   :  { %v527_v2 = vadd.f32 %v1134_v0, %v1399_v60  ;;  %v1089_v3 = vpop.f32.mrb[21].mxu0  ;;  %v518_v4 = vpop.f32.mrb[21].mxu1  ;;  %v583_v11 = vadd.f32 %v582_v5, %v581_v62 }
 0x11f   :  { %v1090_v6 = vadd.f32 %v1089_v3, %v1088_v63  ;;  %v519_v7 = vadd.f32 %v1395_v48, %v518_v4  ;;  %v1091_v8 = vpop.f32.mrb[22].mxu0  ;;  %v1135_v9 = vpop.f32.mrb[22].mxu1  ;;  %v584_v48 = vsel %vm314_vm0, %v1443_v10, 0.0 }
 0x120   :  { %549 = vst.msk [vmem:[#allocation2 + $0x70] sm:$0xff] %vm314_vm0, %v527_v2  ;;  %v530_v12 = vadd.f32 %v1135_v9, %v1401_v1  ;;  %v1092_v13 = vpop.f32.mrb[23].mxu0  ;;  %v521_v14 = vpop.f32.mrb[23].mxu1  ;;  %v585_v19 = vadd.f32 %v584_v48, %v583_v11 }
 0x121   :  { %v511_v60 = vadd.f32 %v1130_v39, %v1090_v6  ;;  %547 = vst.msk [vmem:[#allocation2 + $0x60] sm:$0xff] %vm314_vm0, %v519_v7  ;;  %v1093_v15 = vadd.f32 %v1092_v13, %v1091_v8  ;;  %v522_v16 = vadd.f32 %v1397_v53, %v521_v14 }
 0x122   :  { %v1449_v17 = vld [vmem:[#allocation2 + $0x40] sm:$0xff]  ;;  %550 = vst.msk [vmem:[#allocation2 + $0x78] sm:$0xff] %vm314_vm0, %v530_v12 }
 0x123   :  { %v586_v18 = vsel %vm314_vm0, %v1449_v17, 0.0  ;;  %545 = vst.msk [vmem:[#allocation2 + $0x50] sm:$0xff] %vm314_vm0, %v511_v60  ;;  %v514_v1 = vadd.f32 %v1131_v46, %v1093_v15  ;;  %548 = vst.msk [vmem:[#allocation2 + $0x68] sm:$0xff] %vm314_vm0, %v522_v16 }
 0x124   :  { %v1458_v20 = vld [vmem:[#allocation2 + $0x48] sm:$0xff]  ;;  %v587_v53 = vadd.f32 %v586_v18, %v585_v19 }
 0x125   :  { %546 = vst.msk [vmem:[#allocation2 + $0x58] sm:$0xff] %vm314_vm0, %v514_v1  ;;  %v588_v21 = vsel %vm314_vm0, %v1458_v20, 0.0 }
 0x126   :  { %v589_v22 = vadd.f32 %v588_v21, %v587_v53 }
 0x127   :  { %v1477_v36 = vld [vmem:[#allocation2 + $0x70] sm:$0xff] }
 0x128   :  { %v1467_v27 = vld [vmem:[#allocation2 + $0x60] sm:$0xff]  ;;  %v598_v41 = vsel %vm314_vm0, %v1477_v36, 0.0 }
 0x129   :  { %v594_v34 = vsel %vm314_vm0, %v1467_v27, 0.0  ;;  %v1481_v39 = vld [vmem:[#allocation2 + $0x78] sm:$0xff] }
 0x12a   :  { %v1463_v23 = vld [vmem:[#allocation2 + $0x50] sm:$0xff]  ;;  %v1473_v33 = vld [vmem:[#allocation2 + $0x68] sm:$0xff]  ;;  %v600_v43 = vsel %vm314_vm0, %v1481_v39, 0.0 }
 0x12b   :  { %v590_v25 = vsel %vm314_vm0, %v1463_v23, 0.0  ;;  %v596_v38 = vsel %vm314_vm0, %v1473_v33, 0.0 }
 0x12c   :  { %v591_v26 = vadd.f32 %v590_v25, %v589_v22  ;;  %v1469_v28 = vld [vmem:[#allocation2 + $0x58] sm:$0xff] }
 0x12d   :  { %v592_v29 = vsel %vm314_vm0, %v1469_v28, 0.0 }
 0x12e   :  { %v593_v32 = vadd.f32 %v592_v29, %v591_v26 }
 0x130   :  { %v595_v37 = vadd.f32 %v594_v34, %v593_v32 }
 0x132   :  { %v597_v40 = vadd.f32 %v596_v38, %v595_v37 }
 0x134   :  { %v599_v42 = vadd.f32 %v598_v41, %v597_v40 }
 0x136   :  { %v601_v44 = vadd.f32 %v600_v43, %v599_v42 }
 0x138   :  { %v602_v45 = vrot.slane %v601_v44, 4 }
 0x13a   :  { %v603_v46 = vadd.f32 %v602_v45, %v601_v44 }
 0x13c   :  { %v604_v49 = vrot.slane %v603_v46, 2 }
 0x13e   :  { %v605_v50 = vadd.f32 %v604_v49, %v603_v46 }
 0x140   :  { %v606_v51 = vrot.slane %v605_v50, 1 }
 0x142   :  { %v607_v52 = vadd.f32 %v606_v51, %v605_v50 }
 0x144   :  { %v1487_v54 = vmul.f32 0.0078125, %v607_v52 }
 0x146   :  { %v610_v55 = vsub.f32 %v1407_v24, %v1487_v54  ;;  %v611_v56 = vsub.f32 %v1412_v31, %v1487_v54  ;;  %v612_v58 = vsub.f32 %v1410_v30, %v1487_v54  ;;  %v613_v59 = vsub.f32 %v1420_v35, %v1487_v54 }
 0x147   :  { %v614_v0 = vsub.f32 %v1427_v47, %v1487_v54  ;;  %v615_v3 = vsub.f32 %v1431_v57, %v1487_v54  ;;  %v616_v8 = vsub.f32 %v1436_v61, %v1487_v54  ;;  %v617_v13 = vsub.f32 %v1443_v10, %v1487_v54 }
 0x148   :  { %v626_v62 = vmul.f32 %v610_v55, %v610_v55  ;;  %v627_v63 = vmul.f32 %v611_v56, %v611_v56  ;;  %v628_v2 = vmul.f32 %v612_v58, %v612_v58  ;;  %v629_v4 = vmul.f32 %v613_v59, %v613_v59 }
 0x149   :  { %v630_v9 = vmul.f32 %v614_v0, %v614_v0  ;;  %v631_v14 = vmul.f32 %v615_v3, %v615_v3  ;;  %v618_v16 = vsub.f32 %v1449_v17, %v1487_v54  ;;  %v632_v48 = vmul.f32 %v616_v8, %v616_v8 }
 0x14a   :  { %v642_v5 = vsel %vm314_vm0, %v626_v62, 0.0  ;;  %v643_v6 = vsel %vm314_vm0, %v627_v63, 0.0  ;;  %v645_v11 = vsel %vm314_vm0, %v628_v2, 0.0  ;;  %v647_v60 = vsel %vm314_vm0, %v629_v4, 0.0 }
 0x14b   :  { %v644_v7 = vadd.f32 %v643_v6, %v642_v5  ;;  %v649_v18 = vsel %vm314_vm0, %v630_v9, 0.0  ;;  %v619_v19 = vsub.f32 %v1458_v20, %v1487_v54  ;;  %v633_v53 = vmul.f32 %v617_v13, %v617_v13 }
 0x14c   :  { %v651_v21 = vsel %vm314_vm0, %v631_v14, 0.0  ;;  %v620_v25 = vsub.f32 %v1463_v23, %v1487_v54  ;;  %v634_v26 = vmul.f32 %v618_v16, %v618_v16  ;;  %v653_v29 = vsel %vm314_vm0, %v632_v48, 0.0 }
 0x14d   :  { %v646_v12 = vadd.f32 %v645_v11, %v644_v7  ;;  %v621_v34 = vsub.f32 %v1469_v28, %v1487_v54  ;;  %v635_v37 = vmul.f32 %v619_v19, %v619_v19  ;;  %v655_v38 = vsel %vm314_vm0, %v633_v53, 0.0  ;;  %v682_v19 = vld [vmem:[%s1738_s2] sm:$0x1] }
 0x14e   :  { %v622_v41 = vsub.f32 %v1467_v27, %v1487_v54  ;;  %v636_v42 = vmul.f32 %v620_v25, %v620_v25  ;;  %v657_v43 = vsel %vm314_vm0, %v634_v26, 0.0  ;;  %v623_v45 = vsub.f32 %v1473_v33, %v1487_v54  ;;  %v684_v26 = vld [vmem:[%s1739_s3] sm:$0x1] }
 0x14f   :  { %v648_v15 = vadd.f32 %v647_v60, %v646_v12  ;;  %v637_v46 = vmul.f32 %v621_v34, %v621_v34  ;;  %v659_v49 = vsel %vm314_vm0, %v635_v37, 0.0  ;;  %v624_v51 = vsub.f32 %v1477_v36, %v1487_v54 }
 0x150   :  { %v638_v52 = vmul.f32 %v622_v41, %v622_v41  ;;  %v661_v55 = vsel %vm314_vm0, %v636_v42, 0.0  ;;  %v625_v58 = vsub.f32 %v1481_v39, %v1487_v54  ;;  %v639_v59 = vmul.f32 %v623_v45, %v623_v45 }
 0x151   :  { %v650_v1 = vadd.f32 %v649_v18, %v648_v15  ;;  %v663_v62 = vsel %vm314_vm0, %v637_v46, 0.0  ;;  %v640_v0 = vmul.f32 %v624_v51, %v624_v51 }
 0x152   :  { %v665_v2 = vsel %vm314_vm0, %v638_v52, 0.0  ;;  %v641_v4 = vmul.f32 %v625_v58, %v625_v58  ;;  %v667_v5 = vsel %vm314_vm0, %v639_v59, 0.0 }
 0x153   :  { %v652_v22 = vadd.f32 %v651_v21, %v650_v1  ;;  %v669_v7 = vsel %vm314_vm0, %v640_v0, 0.0  ;;  %v688_v1 = vlaneseq }
 0x154   :  { %v671_v9 = vsel %vm314_vm0, %v641_v4, 0.0 }
 0x155   :  { %v654_v32 = vadd.f32 %v653_v29, %v652_v22  ;;  %v689_v22 = vshrl.u32 %v688_v1, 7 }
 0x157   :  { %v656_v40 = vadd.f32 %v655_v38, %v654_v32  ;;  %v690_v29 = vsub.s32 0, %v689_v22 }
 0x159   :  { %v658_v44 = vadd.f32 %v657_v43, %v656_v40 }
 0x15b   :  { %v660_v50 = vadd.f32 %v659_v49, %v658_v44 }
 0x15d   :  { %v662_v56 = vadd.f32 %v661_v55, %v660_v50 }
 0x15f   :  { %v664_v63 = vadd.f32 %v663_v62, %v662_v56 }
 0x161   :  { %v666_v3 = vadd.f32 %v665_v2, %v664_v63 }
 0x163   :  { %v668_v6 = vadd.f32 %v667_v5, %v666_v3 }
 0x165   :  { %v670_v8 = vadd.f32 %v669_v7, %v668_v6 }
 0x167   :  { %v672_v11 = vadd.f32 %v671_v9, %v670_v8 }
 0x169   :  { %v673_v12 = vrot.slane %v672_v11, 4 }
 0x16b   :  { %v674_v13 = vadd.f32 %v673_v12, %v672_v11 }
 0x16d   :  { %v675_v14 = vrot.slane %v674_v13, 2 }
 0x16f   :  { %v676_v60 = vadd.f32 %v675_v14, %v674_v13 }
 0x171   :  { %v677_v15 = vrot.slane %v676_v60, 1 }
 0x173   :  { %v678_v16 = vadd.f32 %v677_v15, %v676_v60 }
 0x175   :  { %v679_v48 = vmul.f32 0.0078125, %v678_v16 }
 0x177   :  { %v680_v18 = vadd.f32 1e-05, %v679_v48 }
 0x179   :  { %1202 = vrsqrt.f32 %v680_v18 }
 0x183   :  { %v1203_v53 = vpop.eup %1202 }
 0x184   :  { %v683_v21 = vmul.f32 %v1203_v53, %v682_v19 }
 0x186   :  { %v685_v25 = vmul.f32 %v683_v21, %v1487_v54  ;;  %v691_v34 = vrot.slane %v683_v21, %v690_v29 }
 0x188   :  { %v686_v32 = vsub.f32 %v684_v26, %v685_v25  ;;  %v693_v38 = vmul.f32 %v691_v34, %v1407_v24  ;;  %v694_v40 = vmul.f32 %v691_v34, %v1412_v31  ;;  %v695_v41 = vmul.f32 %v691_v34, %v1410_v30 }
 0x189   :  { %v696_v42 = vmul.f32 %v691_v34, %v1420_v35  ;;  %v697_v43 = vmul.f32 %v691_v34, %v1427_v47  ;;  %v698_v45 = vmul.f32 %v691_v34, %v1431_v57  ;;  %v699_v24 = vmul.f32 %v691_v34, %v1436_v61 }
 0x18a   :  { %v713_v37 = vrot.slane %v686_v32, %v690_v29  ;;  %v700_v30 = vmul.f32 %v691_v34, %v1443_v10  ;;  %v701_v31 = vmul.f32 %v691_v34, %v1449_v17  ;;  %v702_v35 = vmul.f32 %v691_v34, %v1458_v20 }
 0x18b   :  { %v703_v51 = vmul.f32 %v691_v34, %v1463_v23  ;;  %v704_v61 = vmul.f32 %v691_v34, %v1469_v28  ;;  %v705_v20 = vmul.f32 %v691_v34, %v1467_v27  ;;  %v706_v58 = vmul.f32 %v691_v34, %v1473_v33 }
 0x18c   :  { %v1549_v44 = vadd.f32 %v713_v37, %v693_v38  ;;  %v1551_v54 = vadd.f32 %v713_v37, %v694_v40  ;;  %v1554_v46 = vadd.f32 %v713_v37, %v695_v41  ;;  %v1556_v49 = vadd.f32 %v713_v37, %v696_v42 }
 0x18d   :  { %v1559_v50 = vadd.f32 %v713_v37, %v697_v43  ;;  %v1564_v47 = vadd.f32 %v713_v37, %v698_v45  ;;  %v1567_v52 = vadd.f32 %v713_v37, %v699_v24  ;;  %v1572_v56 = vadd.f32 %v713_v37, %v700_v30 }
 0x18e   :  { %v747_v57 = vmul.f32 0.044715, %v1549_v44  ;;  %v748_v55 = vmul.f32 0.044715, %v1551_v54  ;;  %v749_v10 = vmul.f32 0.044715, %v1554_v46  ;;  %v1578_v59 = vadd.f32 %v713_v37, %v701_v31 }
 0x18f   :  { %v750_v17 = vmul.f32 0.044715, %v1556_v49  ;;  %v751_v23 = vmul.f32 0.044715, %v1559_v50  ;;  %v707_v62 = vmul.f32 %v691_v34, %v1477_v36  ;;  %v708_v63 = vmul.f32 %v691_v34, %v1481_v39 }
 0x190   :  { %v1583_v0 = vadd.f32 %v713_v37, %v702_v35  ;;  %v752_v28 = vmul.f32 0.044715, %v1564_v47  ;;  %v1586_v2 = vadd.f32 %v713_v37, %v703_v51  ;;  %v753_v3 = vmul.f32 0.044715, %v1567_v52 }
 0x191   :  { %v763_v27 = vmul.f32 %v747_v57, %v1549_v44  ;;  %v764_v33 = vmul.f32 %v748_v55, %v1551_v54  ;;  %v1591_v4 = vadd.f32 %v713_v37, %v704_v61  ;;  %v754_v5 = vmul.f32 0.044715, %v1572_v56 }
 0x192   :  { %v765_v36 = vmul.f32 %v749_v10, %v1554_v46  ;;  %v766_v39 = vmul.f32 %v750_v17, %v1556_v49  ;;  %v1596_v6 = vadd.f32 %v713_v37, %v705_v20  ;;  %v1598_v7 = vadd.f32 %v713_v37, %v706_v58 }
 0x193   :  { %v755_v8 = vmul.f32 0.044715, %v1578_v59  ;;  %v767_v9 = vmul.f32 %v751_v23, %v1559_v50  ;;  %v1602_v11 = vadd.f32 %v713_v37, %v707_v62  ;;  %v1604_v12 = vadd.f32 %v713_v37, %v708_v63 }
 0x194   :  { %v756_v13 = vmul.f32 0.044715, %v1583_v0  ;;  %v768_v14 = vmul.f32 %v752_v28, %v1564_v47  ;;  %v757_v60 = vmul.f32 0.044715, %v1586_v2  ;;  %v769_v15 = vmul.f32 %v753_v3, %v1567_v52 }
 0x195   :  { %v779_v16 = vmul.f32 %v763_v27, %v1549_v44  ;;  %v780_v48 = vmul.f32 %v764_v33, %v1551_v54  ;;  %v758_v18 = vmul.f32 0.044715, %v1591_v4  ;;  %v770_v1 = vmul.f32 %v754_v5, %v1572_v56 }
 0x196   :  { %v781_v19 = vmul.f32 %v765_v36, %v1554_v46  ;;  %v782_v53 = vmul.f32 %v766_v39, %v1556_v49  ;;  %v759_v21 = vmul.f32 0.044715, %v1596_v6  ;;  %v760_v22 = vmul.f32 0.044715, %v1598_v7 }
 0x197   :  { %v771_v25 = vmul.f32 %v755_v8, %v1578_v59  ;;  %v783_v26 = vmul.f32 %v767_v9, %v1559_v50  ;;  %v761_v29 = vmul.f32 0.044715, %v1602_v11  ;;  %v762_v32 = vmul.f32 0.044715, %v1604_v12 }
 0x198   :  { %v772_v34 = vmul.f32 %v756_v13, %v1583_v0  ;;  %v784_v37 = vmul.f32 %v768_v14, %v1564_v47  ;;  %v773_v38 = vmul.f32 %v757_v60, %v1586_v2  ;;  %v785_v40 = vmul.f32 %v769_v15, %v1567_v52 }
 0x199   :  { %v795_v41 = vadd.f32 %v779_v16, %v1549_v44  ;;  %v796_v42 = vadd.f32 %v780_v48, %v1551_v54  ;;  %v774_v43 = vmul.f32 %v758_v18, %v1591_v4  ;;  %v786_v45 = vmul.f32 %v770_v1, %v1572_v56 }
 0x19a   :  { %v797_v24 = vadd.f32 %v781_v19, %v1554_v46  ;;  %v798_v30 = vadd.f32 %v782_v53, %v1556_v49  ;;  %v775_v31 = vmul.f32 %v759_v21, %v1596_v6  ;;  %v776_v35 = vmul.f32 %v760_v22, %v1598_v7 }
 0x19b   :  { %v787_v51 = vmul.f32 %v771_v25, %v1578_v59  ;;  %v799_v57 = vadd.f32 %v783_v26, %v1559_v50  ;;  %v777_v55 = vmul.f32 %v761_v29, %v1602_v11  ;;  %v778_v61 = vmul.f32 %v762_v32, %v1604_v12 }
 0x19c   :  { %v788_v10 = vmul.f32 %v772_v34, %v1583_v0  ;;  %v800_v17 = vadd.f32 %v784_v37, %v1564_v47  ;;  %v789_v20 = vmul.f32 %v773_v38, %v1586_v2  ;;  %v801_v58 = vadd.f32 %v785_v40, %v1567_v52 }
 0x19d   :  { %v811_v23 = vmul.f32 0.7978846, %v795_v41  ;;  %v812_v62 = vmul.f32 0.7978846, %v796_v42  ;;  %v790_v63 = vmul.f32 %v774_v43, %v1591_v4  ;;  %v802_v28 = vadd.f32 %v786_v45, %v1572_v56 }
 0x19e   :  { %v813_v3 = vmul.f32 0.7978846, %v797_v24  ;;  %v814_v27 = vmul.f32 0.7978846, %v798_v30  ;;  %v791_v33 = vmul.f32 %v775_v31, %v1596_v6  ;;  %v803_v5 = vadd.f32 %v787_v51, %v1578_v59 }
 0x19f   :  { %v815_v36 = vmul.f32 0.7978846, %v799_v57  ;;  %1204 = vtanh.f32 %v811_v23  ;;  %v792_v39 = vmul.f32 %v776_v35, %v1598_v7  ;;  %v804_v8 = vadd.f32 %v788_v10, %v1583_v0 }
 0x1a0   :  { %v816_v9 = vmul.f32 0.7978846, %v800_v17  ;;  %1206 = vtanh.f32 %v812_v62  ;;  %v793_v13 = vmul.f32 %v777_v55, %v1602_v11  ;;  %v805_v14 = vadd.f32 %v789_v20, %v1586_v2 }
 0x1a1   :  { %v817_v60 = vmul.f32 0.7978846, %v801_v58  ;;  %1208 = vtanh.f32 %v813_v3  ;;  %v794_v15 = vmul.f32 %v778_v61, %v1604_v12  ;;  %v806_v16 = vadd.f32 %v790_v63, %v1591_v4 }
 0x1a2   :  { %v818_v48 = vmul.f32 0.7978846, %v802_v28  ;;  %1210 = vtanh.f32 %v814_v27  ;;  %v807_v18 = vadd.f32 %v791_v33, %v1596_v6  ;;  %v819_v1 = vmul.f32 0.7978846, %v803_v5 }
 0x1a3   :  { %1212 = vtanh.f32 %v815_v36  ;;  %v808_v19 = vadd.f32 %v792_v39, %v1598_v7  ;;  %v820_v53 = vmul.f32 0.7978846, %v804_v8  ;;  %v809_v21 = vadd.f32 %v793_v13, %v1602_v11 }
 0x1a4   :  { %1214 = vtanh.f32 %v816_v9  ;;  %v821_v22 = vmul.f32 0.7978846, %v805_v14  ;;  %v810_v25 = vadd.f32 %v794_v15, %v1604_v12  ;;  %v822_v26 = vmul.f32 0.7978846, %v806_v16 }
 0x1a5   :  { %1216 = vtanh.f32 %v817_v60  ;;  %v823_v29 = vmul.f32 0.7978846, %v807_v18  ;;  %v824_v32 = vmul.f32 0.7978846, %v808_v19  ;;  %v825_v37 = vmul.f32 0.7978846, %v809_v21 }
 0x1a6   :  { %1218 = vtanh.f32 %v818_v48  ;;  %v731_v40 = vmul.f32 0.5, %v1549_v44  ;;  %v826_v41 = vmul.f32 0.7978846, %v810_v25  ;;  %v732_v45 = vmul.f32 0.5, %v1551_v54 }
 0x1a7   :  { %1220 = vtanh.f32 %v819_v1  ;;  %v733_v24 = vmul.f32 0.5, %v1554_v46  ;;  %v734_v35 = vmul.f32 0.5, %v1556_v49  ;;  %v735_v61 = vmul.f32 0.5, %v1559_v50 }
 0x1a8   :  { %1222 = vtanh.f32 %v820_v53  ;;  %v736_v23 = vmul.f32 0.5, %v1564_v47  ;;  %v737_v3 = vmul.f32 0.5, %v1567_v52  ;;  %v738_v36 = vmul.f32 0.5, %v1572_v56 }
 0x1a9   :  { %v1205_v34 = vpop.eup %1204  ;;  %1224 = vtanh.f32 %v821_v22  ;;  %v739_v9 = vmul.f32 0.5, %v1578_v59  ;;  %v740_v15 = vmul.f32 0.5, %v1583_v0  ;;  %v741_v1 = vmul.f32 0.5, %v1586_v2 }
 0x1aa   :  { %v1207_v38 = vpop.eup %1206  ;;  %1226 = vtanh.f32 %v822_v26  ;;  %v843_v42 = vadd.f32 1.0, %v1205_v34  ;;  %v742_v22 = vmul.f32 0.5, %v1591_v4 }
 0x1ab   :  { %v1209_v43 = vpop.eup %1208  ;;  %1228 = vtanh.f32 %v823_v29  ;;  %v844_v30 = vadd.f32 1.0, %v1207_v38 }
 0x1ac   :  { %v1211_v31 = vpop.eup %1210  ;;  %1230 = vtanh.f32 %v824_v32  ;;  %v845_v51 = vadd.f32 1.0, %v1209_v43  ;;  %v859_v57 = vmul.f32 %v843_v42, %v731_v40  ;;  %v743_v32 = vmul.f32 0.5, %v1596_v6 }
 0x1ad   :  { %v1213_v55 = vpop.eup %1212  ;;  %1232 = vtanh.f32 %v825_v37  ;;  %v846_v44 = vadd.f32 1.0, %v1211_v31  ;;  %v860_v10 = vmul.f32 %v844_v30, %v732_v45  ;;  %v744_v40 = vmul.f32 0.5, %v1598_v7 }
 0x1ae   :  { %v1215_v17 = vpop.eup %1214  ;;  %1234 = vtanh.f32 %v826_v41  ;;  %v847_v20 = vadd.f32 1.0, %v1213_v55  ;;  %v861_v54 = vmul.f32 %v845_v51, %v733_v24  ;;  %v1026_v58 = vpack.c.bf16 %v859_v57, %v859_v57 }
 0x1af   :  { %v1217_v46 = vpop.eup %1216  ;;  %v848_v62 = vadd.f32 1.0, %v1215_v17  ;;  %v862_v63 = vmul.f32 %v846_v44, %v734_v35  ;;  %v1027_v49 = vpack.c.bf16 %v860_v10, %v860_v10  ;;  %v745_v45 = vmul.f32 0.5, %v1602_v11 }
 0x1b0   :  { %v1219_v28 = vpop.eup %1218  ;;  %v849_v27 = vadd.f32 1.0, %v1217_v46  ;;  %v863_v33 = vmul.f32 %v847_v20, %v735_v61  ;;  %v1028_v50 = vpack.c.bf16 %v861_v54, %v861_v54  ;;  %940 = vst.msk [vmem:[%s1740_s4] sm:$0xf] %vm939_vm1, %v1026_v58  ;;  %v746_v7 = vmul.f32 0.5, %v1604_v12 }
 0x1b1   :  { %v1221_v5 = vpop.eup %1220  ;;  %v850_v39 = vadd.f32 1.0, %v1219_v28  ;;  %v864_v8 = vmul.f32 %v848_v62, %v736_v23  ;;  %v1029_v47 = vpack.c.bf16 %v862_v63, %v862_v63  ;;  %941 = vst.msk [vmem:[%s1740_s4 + $0x4] sm:$0xf] %vm939_vm1, %v1027_v49 }
 0x1b2   :  { %v1223_v52 = vpop.eup %1222  ;;  %v851_v13 = vadd.f32 1.0, %v1221_v5  ;;  %v865_v14 = vmul.f32 %v849_v27, %v737_v3  ;;  %v1030_v60 = vpack.c.bf16 %v863_v33, %v863_v33  ;;  %942 = vst.msk [vmem:[%s1740_s4 + $0x8] sm:$0xf] %vm939_vm1, %v1028_v50 }
 0x1b3   :  { %v1225_v56 = vpop.eup %1224  ;;  %v852_v16 = vadd.f32 1.0, %v1223_v52  ;;  %v866_v48 = vmul.f32 %v850_v39, %v738_v36  ;;  %v1031_v18 = vpack.c.bf16 %v864_v8, %v864_v8  ;;  %943 = vst.msk [vmem:[%s1740_s4 + $0xc] sm:$0xf] %vm939_vm1, %v1029_v47 }
 0x1b4   :  { %v1227_v59 = vpop.eup %1226  ;;  %v853_v19 = vadd.f32 1.0, %v1225_v56  ;;  %v867_v53 = vmul.f32 %v851_v13, %v739_v9  ;;  %v1032_v21 = vpack.c.bf16 %v865_v14, %v865_v14  ;;  %944 = vst.msk [vmem:[%s1740_s4 + $0x10] sm:$0xf] %vm939_vm1, %v1030_v60 }
 0x1b5   :  { %v1229_v0 = vpop.eup %1228  ;;  %v854_v25 = vadd.f32 1.0, %v1227_v59  ;;  %v868_v26 = vmul.f32 %v852_v16, %v740_v15  ;;  %v1033_v29 = vpack.c.bf16 %v866_v48, %v866_v48  ;;  %945 = vst.msk [vmem:[%s1740_s4 + $0x14] sm:$0xf] %vm939_vm1, %v1031_v18 }
 0x1b6   :  { %v1231_v2 = vpop.eup %1230  ;;  %v855_v34 = vadd.f32 1.0, %v1229_v0  ;;  %v869_v37 = vmul.f32 %v853_v19, %v741_v1  ;;  %v1034_v38 = vpack.c.bf16 %v867_v53, %v867_v53  ;;  %946 = vst.msk [vmem:[%s1740_s4 + $0x18] sm:$0xf] %vm939_vm1, %v1032_v21 }
 0x1b7   :  { %v1233_v4 = vpop.eup %1232  ;;  %v856_v41 = vadd.f32 1.0, %v1231_v2  ;;  %v870_v42 = vmul.f32 %v854_v25, %v742_v22  ;;  %v1035_v43 = vpack.c.bf16 %v868_v26, %v868_v26  ;;  %947 = vst.msk [vmem:[%s1740_s4 + $0x1c] sm:$0xf] %vm939_vm1, %v1033_v29 }
 0x1b8   :  { %v1235_v6 = vpop.eup %1234  ;;  %v857_v24 = vadd.f32 1.0, %v1233_v4  ;;  %v871_v30 = vmul.f32 %v855_v34, %v743_v32  ;;  %v1036_v31 = vpack.c.bf16 %v869_v37, %v869_v37  ;;  %948 = vst.msk [vmem:[%s1740_s4 + $0x20] sm:$0xf] %vm939_vm1, %v1034_v38 }
 0x1b9   :  { %v858_v35 = vadd.f32 1.0, %v1235_v6  ;;  %v872_v51 = vmul.f32 %v856_v41, %v744_v40  ;;  %v1037_v57 = vpack.c.bf16 %v870_v42, %v870_v42  ;;  %949 = vst.msk [vmem:[%s1740_s4 + $0x24] sm:$0xf] %vm939_vm1, %v1035_v43 }
 0x1ba   :  { %v873_v55 = vmul.f32 %v857_v24, %v745_v45  ;;  %v1038_v11 = vpack.c.bf16 %v871_v30, %v871_v30  ;;  %950 = vst.msk [vmem:[%s1740_s4 + $0x28] sm:$0xf] %vm939_vm1, %v1036_v31 }
 0x1bb   :  { %v874_v61 = vmul.f32 %v858_v35, %v746_v7  ;;  %v1039_v44 = vpack.c.bf16 %v872_v51, %v872_v51  ;;  %951 = vst.msk [vmem:[%s1740_s4 + $0x2c] sm:$0xf] %vm939_vm1, %v1037_v57 }
 0x1bc   :  { %v1040_v12 = vpack.c.bf16 %v873_v55, %v873_v55  ;;  %952 = vst.msk [vmem:[%s1740_s4 + $0x30] sm:$0xf] %vm939_vm1, %v1038_v11 }
 0x1bd   :  { %v1041_v10 = vpack.c.bf16 %v874_v61, %v874_v61  ;;  %953 = vst.msk [vmem:[%s1740_s4 + $0x34] sm:$0xf] %vm939_vm1, %v1039_v44 }
 0x1be   :  { %954 = vst.msk [vmem:[%s1740_s4 + $0x38] sm:$0xf] %vm939_vm1, %v1040_v12 }
 0x1bf   :  { %955 = vst.msk [vmem:[%s1740_s4 + $0x3c] sm:$0xf] %vm939_vm1, %v1041_v10 }

// kernel: cnn_forward.12
= control target key start
LH: loop header
LB: loop body
LE: loop exit
PB: predicated region body
PF: predicated region fallthrough
CT: control target
= control target key end

     0   :  { %vm200_vm0 = vcmask 261120   ;;  %vm307_vm1 = vcmask 523264   ;;  %vm436_vm2 = vcmask 519168   ;;  %s682_s1 = inlined_call_operand.vmem [shape: bf16[288,64], index: 1, kind: input, shape index: {}]   ;;  %s683_s0 = inlined_call_operand.vmem [shape: bf16[32,288], index: 0, kind: input, shape index: {}]   ;;  %s684_s2 = inlined_call_operand.vmem [shape: f32[1,64], index: 2, kind: input, shape index: {}]   ;;  %s685_s3 = inlined_call_operand.vmem [shape: f32[1,64], index: 3, kind: input, shape index: {}]   ;;  %s686_s4 = inlined_call_operand.vmem [shape: bf16[32,64], index: 4, kind: output, shape index: {}]  }
   0x1   :  { %v519_v0 = vld [vmem:[%s682_s1 + $0x40] sm:$0xff]   ;;  %v521_v2 = vld [vmem:[%s682_s1 + $0x48] sm:$0xff]   ;;  %v523_v4 = vld [vmem:[%s682_s1 + $0x50] sm:$0xff]  }
   0x2   :  { %v520_v1 = vld [vmem:[%s682_s1] sm:$0xff]   ;;  %479 = vmatprep.subr.bf16.mxu0 %v519_v0  ;;  %v522_v3 = vld [vmem:[%s682_s1 + $0x8] sm:$0xff]   ;;  %v524_v5 = vld [vmem:[%s682_s1 + $0x10] sm:$0xff]  }
   0x3   :  { %480 = vmatpush3.bf16.msra.mxu0 %v520_v1  ;;  %v525_v6 = vld [vmem:[%s682_s1 + $0x58] sm:$0xff]   ;;  %v527_v8 = vld [vmem:[%s682_s1 + $0x60] sm:$0xff]   ;;  %v529_v11 = vld [vmem:[%s682_s1 + $0x68] sm:$0xff]  }
   0x4   :  { %481 = vmatprep.subr.bf16.mxu0 %v521_v2  ;;  %v526_v7 = vld [vmem:[%s682_s1 + $0x18] sm:$0xff]   ;;  %v533_v9 = vld [vmem:[%s682_s1 + $0x80] sm:$0xff]   ;;  %v530_v12 = vld [vmem:[%s682_s1 + $0x28] sm:$0xff]  }
   0x5   :  { %v528_v10 = vld [vmem:[%s682_s1 + $0x20] sm:$0xff]   ;;  %511 = vmatprep.subr.bf16.mxu1 %v533_v9  ;;  %v536_v13 = vld [vmem:[%s682_s1 + $0x88] sm:$0xff]   ;;  %v531_v14 = vld [vmem:[%s682_s1 + $0x70] sm:$0xff]  }
   0x6   :  { %512 = vmatpush3.bf16.msra.mxu1 %v533_v9  ;;  %v539_v15 = vld [vmem:[%s683_s0 + $0x4] ss:$12 sps:$4 sm:$0xff]   ;;  %v540_v16 = vld [vmem:[%s683_s0 + $0x8] ss:$12 sps:$4 sm:$0xff]   ;;  %v541_v17 = vld [vmem:[%s683_s0 + $0x20] ss:$12 sps:$4 sm:$0xff]  }
   0x7   :  { %482 = vmatpush3.bf16.msra.mxu0 %v522_v3  ;;  %513 = vmatprep.subr.bf16.mxu1 %v536_v13  ;;  %v532_v18 = vld [vmem:[%s682_s1 + $0x30] sm:$0xff]   ;;  %v534_v19 = vld [vmem:[%s682_s1 + $0x78] sm:$0xff]   ;;  %v537_v21 = vld [vmem:[%s683_s0] ss:$12 sps:$4 sm:$0xff]  }
   0x8   :  { %483 = vmatprep.subr.bf16.mxu0 %v523_v4  ;;  %239 = vmatprep.mubr.bf16.mxu0 %v539_v15  ;;  %v535_v20 = vld [vmem:[%s682_s1 + $0x38] sm:$0xff]  }
   0x9   :  { %515 = vmatprep.mubr.msk.bf16.mxu1 %vm200_vm0, %v540_v16  ;;  %v542_v22 = vld [vmem:[%s683_s0 + $0x1c] ss:$12 sps:$4 sm:$0xff]   ;;  %v544_v23 = vld [vmem:[%s683_s0 + $0x18] ss:$12 sps:$4 sm:$0xff]  }
   0xa   :  { %514 = vmatpush3.bf16.msra.mxu1 %v536_v13 }
   0xb   :  { %484 = vmatpush3.bf16.msra.mxu0 %v524_v5 }
   0xc   :  { %485 = vmatprep.subr.bf16.mxu0 %v525_v6 }
   0xd   :  { %516 = vmatmul.mubr.msk.bf16.vlgmr.msra.gmra.mrb[0].mxu1 %vm200_vm0, %v541_v17 }
   0xf   :  { %486 = vmatpush3.bf16.msra.mxu0 %v526_v7 }
  0x10   :  { %487 = vmatprep.subr.bf16.mxu0 %v527_v8 }
  0x13   :  { %488 = vmatpush3.bf16.msra.mxu0 %v528_v10 }
  0x14   :  { %489 = vmatprep.subr.bf16.mxu0 %v529_v11 }
  0x17   :  { %490 = vmatpush3.bf16.msra.mxu0 %v530_v12 }
  0x18   :  { %491 = vmatprep.subr.bf16.mxu0 %v531_v14 }
  0x1b   :  { %492 = vmatpush3.bf16.msra.mxu0 %v532_v18 }
  0x1c   :  { %493 = vmatprep.subr.bf16.mxu0 %v534_v19 }
  0x1f   :  { %494 = vmatpush3.bf16.msra.mxu0 %v535_v20 }
  0x22   :  { %240 = vmatmul.mubr.bf16.vlgmr.msra.gmra.mrb[0].mxu0 %v537_v21  ;;  %v365_v21 = vlaneseq }
  0x23   :  { %247 = vmatprep.mubr.bf16.mxu0 %v542_v22 }
  0x24   :  { %v366_v22 = vshrl.u32 %v365_v21, 7 }
  0x2a   :  { %248 = vmatmul.mubr.bf16.gmra.mrb[4].mxu0 %v544_v23  ;;  %v359_v23 = vld [vmem:[%s684_s2] sm:$0x1] }
  0xe0   :  { %v517_v24 = vpop.f32.mrb[0].mxu1 }
  0xe1   :  { %v290_v25 = vpop.f32.mrb[1].mxu1 }
  0xe2   :  { %v518_v26 = vpop.f32.mrb[2].mxu1 }
  0xe3   :  { %v293_v27 = vpop.f32.mrb[3].mxu1 }
  0xf5   :  { %v495_v28 = vpop.f32.mrb[0].mxu0 }
  0xf6   :  { %v496_v29 = vpop.f32.mrb[1].mxu0 }
  0xf7   :  { %v497_v30 = vadd.f32 %v496_v29, %v495_v28  ;;  %v498_v31 = vpop.f32.mrb[2].mxu0 }
  0xf8   :  { %v499_v32 = vpop.f32.mrb[3].mxu0 }
  0xf9   :  { %v500_v33 = vadd.f32 %v499_v32, %v498_v31  ;;  %v291_v34 = vadd.f32 %v497_v30, %v290_v25 }
  0xfb   :  { %308 = vst.msk [vmem:[#allocation2] sm:$0xff] %vm307_vm1, %v291_v34  ;;  %v294_v35 = vadd.f32 %v500_v33, %v293_v27  ;;  %v361_v27 = vld [vmem:[%s685_s3] sm:$0x1] }
  0xfd   :  { %309 = vst.msk [vmem:[#allocation2 + $0x8] sm:$0xff] %vm307_vm1, %v294_v35  ;;  %v501_v36 = vpop.f32.mrb[4].mxu0 }
  0xfe   :  { %v502_v37 = vpop.f32.mrb[5].mxu0 }
  0xff   :  { %v503_v38 = vadd.f32 %v502_v37, %v501_v36  ;;  %v504_v39 = vpop.f32.mrb[6].mxu0 }
 0x100   :  { %v505_v40 = vpop.f32.mrb[7].mxu0 }
 0x101   :  { %v299_v41 = vadd.f32 %v517_v24, %v503_v38  ;;  %v506_v42 = vadd.f32 %v505_v40, %v504_v39  ;;  %v367_v24 = vsub.s32 0, %v366_v22 }
 0x102   :  { %v316_v45 = vld [vmem:[#allocation2] sm:$0xff] }
 0x103   :  { %310 = vst.msk [vmem:[#allocation2 + $0x10] sm:$0xff] %vm307_vm1, %v299_v41  ;;  %v302_v43 = vadd.f32 %v518_v26, %v506_v42  ;;  %v320_v47 = vsel %vm307_vm1, %v316_v45, 0.0 }
 0x104   :  { %v317_v44 = vld [vmem:[#allocation2 + $0x8] sm:$0xff] }
 0x105   :  { %311 = vst.msk [vmem:[#allocation2 + $0x18] sm:$0xff] %vm307_vm1, %v302_v43  ;;  %v321_v46 = vsel %vm307_vm1, %v317_v44, 0.0 }
 0x106   :  { %v322_v48 = vadd.f32 %v321_v46, %v320_v47 }
 0x10a   :  { %v318_v49 = vld [vmem:[#allocation2 + $0x10] sm:$0xff] }
 0x10b   :  { %v323_v50 = vsel %vm307_vm1, %v318_v49, 0.0 }
 0x10c   :  { %v324_v51 = vadd.f32 %v323_v50, %v322_v48  ;;  %v319_v52 = vld [vmem:[#allocation2 + $0x18] sm:$0xff] }
 0x10d   :  { %v325_v53 = vsel %vm307_vm1, %v319_v52, 0.0 }
 0x10e   :  { %v326_v54 = vadd.f32 %v325_v53, %v324_v51 }
 0x110   :  { %v327_v55 = vrot.slane %v326_v54, 4 }
 0x112   :  { %v328_v56 = vadd.f32 %v327_v55, %v326_v54 }
 0x114   :  { %v329_v57 = vrot.slane %v328_v56, 2 }
 0x116   :  { %v330_v58 = vadd.f32 %v329_v57, %v328_v56 }
 0x118   :  { %v331_v59 = vrot.slane %v330_v58, 1 }
 0x11a   :  { %v332_v60 = vadd.f32 %v331_v59, %v330_v58 }
 0x11c   :  { %v334_v61 = vmul.f32 0.03125, %v332_v60 }
 0x11e   :  { %v335_v62 = vsub.f32 %v316_v45, %v334_v61  ;;  %v336_v63 = vsub.f32 %v317_v44, %v334_v61  ;;  %v337_v0 = vsub.f32 %v318_v49, %v334_v61  ;;  %v338_v1 = vsub.f32 %v319_v52, %v334_v61 }
 0x120   :  { %v339_v2 = vmul.f32 %v335_v62, %v335_v62  ;;  %v340_v3 = vmul.f32 %v336_v63, %v336_v63  ;;  %v341_v4 = vmul.f32 %v337_v0, %v337_v0  ;;  %v342_v5 = vmul.f32 %v338_v1, %v338_v1 }
 0x122   :  { %v343_v6 = vsel %vm307_vm1, %v339_v2, 0.0  ;;  %v344_v7 = vsel %vm307_vm1, %v340_v3, 0.0  ;;  %v346_v9 = vsel %vm307_vm1, %v341_v4, 0.0  ;;  %v348_v11 = vsel %vm307_vm1, %v342_v5, 0.0 }
 0x123   :  { %v345_v8 = vadd.f32 %v344_v7, %v343_v6 }
 0x125   :  { %v347_v10 = vadd.f32 %v346_v9, %v345_v8 }
 0x127   :  { %v349_v12 = vadd.f32 %v348_v11, %v347_v10 }
 0x129   :  { %v350_v13 = vrot.slane %v349_v12, 4 }
 0x12b   :  { %v351_v14 = vadd.f32 %v350_v13, %v349_v12 }
 0x12d   :  { %v352_v15 = vrot.slane %v351_v14, 2 }
 0x12f   :  { %v353_v16 = vadd.f32 %v352_v15, %v351_v14 }
 0x131   :  { %v354_v17 = vrot.slane %v353_v16, 1 }
 0x133   :  { %v355_v18 = vadd.f32 %v354_v17, %v353_v16 }
 0x135   :  { %v356_v19 = vmul.f32 0.03125, %v355_v18 }
 0x137   :  { %v357_v20 = vadd.f32 1e-05, %v356_v19 }
 0x139   :  { %545 = vrsqrt.f32 %v357_v20 }
 0x143   :  { %v546_v25 = vpop.eup %545 }
 0x144   :  { %v360_v26 = vmul.f32 %v546_v25, %v359_v23 }
 0x146   :  { %v362_v28 = vmul.f32 %v360_v26, %v334_v61  ;;  %v368_v29 = vrot.slane %v360_v26, %v367_v24 }
 0x148   :  { %v363_v30 = vsub.f32 %v361_v27, %v362_v28  ;;  %v370_v31 = vmul.f32 %v368_v29, %v316_v45  ;;  %v371_v32 = vmul.f32 %v368_v29, %v317_v44  ;;  %v372_v33 = vmul.f32 %v368_v29, %v318_v49 }
 0x149   :  { %v373_v34 = vmul.f32 %v368_v29, %v319_v52 }
 0x14a   :  { %v378_v35 = vrot.slane %v363_v30, %v367_v24 }
 0x14c   :  { %v380_v36 = vadd.f32 %v378_v35, %v370_v31  ;;  %v381_v37 = vadd.f32 %v378_v35, %v371_v32  ;;  %v382_v38 = vadd.f32 %v378_v35, %v372_v33  ;;  %v383_v39 = vadd.f32 %v378_v35, %v373_v34 }
 0x14e   :  { %v388_v40 = vmul.f32 0.044715, %v380_v36  ;;  %v389_v41 = vmul.f32 0.044715, %v381_v37  ;;  %v390_v42 = vmul.f32 0.044715, %v382_v38 }
 0x14f   :  { %v391_v43 = vmul.f32 0.044715, %v383_v39  ;;  %v384_v62 = vmul.f32 0.5, %v380_v36  ;;  %v385_v1 = vmul.f32 0.5, %v381_v37  ;;  %v386_v4 = vmul.f32 0.5, %v382_v38 }
 0x150   :  { %v392_v46 = vmul.f32 %v388_v40, %v380_v36  ;;  %v393_v47 = vmul.f32 %v389_v41, %v381_v37  ;;  %v394_v48 = vmul.f32 %v390_v42, %v382_v38  ;;  %v387_v7 = vmul.f32 0.5, %v383_v39 }
 0x151   :  { %v395_v50 = vmul.f32 %v391_v43, %v383_v39 }
 0x152   :  { %v396_v51 = vmul.f32 %v392_v46, %v380_v36  ;;  %v397_v53 = vmul.f32 %v393_v47, %v381_v37  ;;  %v398_v54 = vmul.f32 %v394_v48, %v382_v38 }
 0x153   :  { %v399_v45 = vmul.f32 %v395_v50, %v383_v39 }
 0x154   :  { %v400_v44 = vadd.f32 %v396_v51, %v380_v36  ;;  %v401_v49 = vadd.f32 %v397_v53, %v381_v37  ;;  %v402_v52 = vadd.f32 %v398_v54, %v382_v38 }
 0x155   :  { %v403_v55 = vadd.f32 %v399_v45, %v383_v39 }
 0x156   :  { %v404_v56 = vmul.f32 0.7978846, %v400_v44  ;;  %v405_v57 = vmul.f32 0.7978846, %v401_v49  ;;  %v406_v58 = vmul.f32 0.7978846, %v402_v52 }
 0x157   :  { %v407_v59 = vmul.f32 0.7978846, %v403_v55 }
 0x158   :  { %547 = vtanh.f32 %v404_v56 }
 0x159   :  { %549 = vtanh.f32 %v405_v57 }
 0x15a   :  { %551 = vtanh.f32 %v406_v58 }
 0x15b   :  { %553 = vtanh.f32 %v407_v59 }
 0x162   :  { %v548_v60 = vpop.eup %547 }
 0x163   :  { %v550_v61 = vpop.eup %549  ;;  %v412_v63 = vadd.f32 1.0, %v548_v60 }
 0x164   :  { %v552_v0 = vpop.eup %551  ;;  %v413_v2 = vadd.f32 1.0, %v550_v61 }
 0x165   :  { %v554_v3 = vpop.eup %553  ;;  %v414_v5 = vadd.f32 1.0, %v552_v0  ;;  %v416_v6 = vmul.f32 %v412_v63, %v384_v62 }
 0x166   :  { %v415_v8 = vadd.f32 1.0, %v554_v3  ;;  %v417_v9 = vmul.f32 %v413_v2, %v385_v1 }
 0x167   :  { %v418_v10 = vmul.f32 %v414_v5, %v386_v4  ;;  %v475_v11 = vpack.c.bf16 %v416_v6, %v416_v6 }
 0x168   :  { %v419_v12 = vmul.f32 %v415_v8, %v387_v7  ;;  %v476_v13 = vpack.c.bf16 %v417_v9, %v417_v9 }
 0x169   :  { %v477_v14 = vpack.c.bf16 %v418_v10, %v418_v10  ;;  %437 = vst.msk [vmem:[%s686_s4] sm:$0xf] %vm436_vm2, %v475_v11 }
 0x16a   :  { %v478_v15 = vpack.c.bf16 %v419_v12, %v419_v12  ;;  %438 = vst.msk [vmem:[%s686_s4 + $0x4] sm:$0xf] %vm436_vm2, %v476_v13 }
 0x16b   :  { %439 = vst.msk [vmem:[%s686_s4 + $0x8] sm:$0xf] %vm436_vm2, %v477_v14 }
 0x16c   :  { %440 = vst.msk [vmem:[%s686_s4 + $0xc] sm:$0xf] %vm436_vm2, %v478_v15 }

// kernel: cnn_forward.13
= control target key start
LH: loop header
LB: loop body
LE: loop exit
PB: predicated region body
PF: predicated region fallthrough
CT: control target
= control target key end

     0   :  { %vm368_vm0 = vcmask 523264   ;;  %vm652_vm1 = vcmask 519168   ;;  %s1046_s1 = inlined_call_operand.vmem [shape: bf16[576,64], index: 1, kind: input, shape index: {}]   ;;  %s1047_s0 = inlined_call_operand.vmem [shape: bf16[32,576], index: 0, kind: input, shape index: {}]   ;;  %s1048_s2 = inlined_call_operand.vmem [shape: f32[1,64], index: 2, kind: input, shape index: {}]   ;;  %s1049_s3 = inlined_call_operand.vmem [shape: f32[1,64], index: 3, kind: input, shape index: {}]   ;;  %s1050_s4 = inlined_call_operand.vmem [shape: bf16[32,64], index: 4, kind: output, shape index: {}]  }
   0x1   :  { %v791_v0 = vld [vmem:[%s1046_s1 + $0x40] sm:$0xff]   ;;  %v795_v4 = vld [vmem:[%s1046_s1 + $0x48] sm:$0xff]   ;;  %v799_v8 = vld [vmem:[%s1046_s1 + $0x50] sm:$0xff]  }
   0x2   :  { %v792_v1 = vld [vmem:[%s1046_s1 + $0xc0] sm:$0xff]   ;;  %717 = vmatprep.subr.bf16.mxu0 %v791_v0  ;;  %v796_v5 = vld [vmem:[%s1046_s1 + $0xc8] sm:$0xff]   ;;  %v800_v9 = vld [vmem:[%s1046_s1 + $0xd0] sm:$0xff]  }
   0x3   :  { %v793_v2 = vld [vmem:[%s1046_s1] sm:$0xff]   ;;  %745 = vmatprep.subr.bf16.mxu1 %v792_v1  ;;  %v797_v6 = vld [vmem:[%s1046_s1 + $0x8] sm:$0xff]   ;;  %v801_v10 = vld [vmem:[%s1046_s1 + $0x10] sm:$0xff]  }
   0x4   :  { %v794_v3 = vld [vmem:[%s1046_s1 + $0x80] sm:$0xff]   ;;  %718 = vmatpush3.bf16.msra.mxu0 %v793_v2  ;;  %v798_v7 = vld [vmem:[%s1046_s1 + $0x88] sm:$0xff]   ;;  %v802_v11 = vld [vmem:[%s1046_s1 + $0x90] sm:$0xff]  }
   0x5   :  { %746 = vmatpush3.bf16.msra.mxu1 %v794_v3  ;;  %719 = vmatprep.subr.bf16.mxu0 %v795_v4  ;;  %v803_v12 = vld [vmem:[%s1046_s1 + $0x58] sm:$0xff]   ;;  %v807_v16 = vld [vmem:[%s1046_s1 + $0x60] sm:$0xff]   ;;  %v811_v20 = vld [vmem:[%s1046_s1 + $0x68] sm:$0xff]  }
   0x6   :  { %747 = vmatprep.subr.bf16.mxu1 %v796_v5  ;;  %v804_v13 = vld [vmem:[%s1046_s1 + $0xd8] sm:$0xff]   ;;  %v808_v17 = vld [vmem:[%s1046_s1 + $0xe0] sm:$0xff]   ;;  %v812_v21 = vld [vmem:[%s1046_s1 + $0xe8] sm:$0xff]  }
   0x7   :  { %v805_v14 = vld [vmem:[%s1046_s1 + $0x18] sm:$0xff]   ;;  %v809_v18 = vld [vmem:[%s1046_s1 + $0x20] sm:$0xff]   ;;  %v813_v22 = vld [vmem:[%s1046_s1 + $0x28] sm:$0xff]  }
   0x8   :  { %720 = vmatpush3.bf16.msra.mxu0 %v797_v6  ;;  %v806_v15 = vld [vmem:[%s1046_s1 + $0x98] sm:$0xff]   ;;  %v810_v19 = vld [vmem:[%s1046_s1 + $0xa0] sm:$0xff]   ;;  %v814_v23 = vld [vmem:[%s1046_s1 + $0xa8] sm:$0xff]  }
   0x9   :  { %748 = vmatpush3.bf16.msra.mxu1 %v798_v7  ;;  %721 = vmatprep.subr.bf16.mxu0 %v799_v8  ;;  %v815_v24 = vld [vmem:[%s1046_s1 + $0x70] sm:$0xff]   ;;  %v819_v28 = vld [vmem:[%s1046_s1 + $0x78] sm:$0xff]   ;;  %v828_v35 = vld [vmem:[%s1047_s0 + $0xc] ss:$20 sps:$4 sm:$0xff]  }
   0xa   :  { %749 = vmatprep.subr.bf16.mxu1 %v800_v9  ;;  %v816_v25 = vld [vmem:[%s1046_s1 + $0xf0] sm:$0xff]   ;;  %v820_v29 = vld [vmem:[%s1046_s1 + $0xf8] sm:$0xff]   ;;  %v829_v36 = vld [vmem:[%s1046_s1 + $0x100] sm:$0xff]   ;;  %456 = vmatprep.mubr.bf16.mxu1 %v828_v35 }
   0xb   :  { %v817_v26 = vld [vmem:[%s1046_s1 + $0x30] sm:$0xff]   ;;  %v821_v30 = vld [vmem:[%s1046_s1 + $0x38] sm:$0xff]   ;;  %v830_v37 = vld [vmem:[%s1046_s1 + $0x108] sm:$0xff]  }
   0xc   :  { %722 = vmatpush3.bf16.msra.mxu0 %v801_v10  ;;  %v818_v27 = vld [vmem:[%s1046_s1 + $0xb0] sm:$0xff]   ;;  %v822_v31 = vld [vmem:[%s1046_s1 + $0xb8] sm:$0xff]   ;;  %v831_v38 = vld [vmem:[%s1047_s0 + $0x2c] ss:$20 sps:$4 sm:$0xff]  }
   0xd   :  { %750 = vmatpush3.bf16.msra.mxu1 %v802_v11  ;;  %723 = vmatprep.subr.bf16.mxu0 %v803_v12  ;;  %v823_v32 = vld [vmem:[%s1047_s0] ss:$20 sps:$4 sm:$0xff]   ;;  %v825_v33 = vld [vmem:[%s1047_s0 + $0x4] ss:$20 sps:$4 sm:$0xff]   ;;  %v826_v34 = vld [vmem:[%s1047_s0 + $0x8] ss:$20 sps:$4 sm:$0xff]  }
   0xe   :  { %751 = vmatprep.subr.bf16.mxu1 %v804_v13  ;;  %407 = vmatprep.mubr.bf16.mxu0 %v825_v33  ;;  %v833_v39 = vld [vmem:[%s1047_s0 + $0x34] ss:$20 sps:$4 sm:$0xff]   ;;  %v836_v42 = vld [vmem:[%s1047_s0 + $0x30] ss:$20 sps:$4 sm:$0xff]   ;;  %v838_v44 = vld [vmem:[%s1046_s1 + $0x118] sm:$0xff]  }
   0xf   :  { %v835_v40 = vld [vmem:[%s1047_s0 + $0x28] ss:$20 sps:$4 sm:$0xff]   ;;  %v837_v41 = vld [vmem:[%s1046_s1 + $0x110] sm:$0xff]   ;;  %v840_v45 = vld [vmem:[%s1047_s0 + $0x38] ss:$20 sps:$4 sm:$0xff]  }
  0x10   :  { %724 = vmatpush3.bf16.msra.mxu0 %v805_v14  ;;  %v839_v43 = vld [vmem:[%s1047_s0 + $0x10] ss:$20 sps:$4 sm:$0xff]  }
  0x11   :  { %752 = vmatpush3.bf16.msra.mxu1 %v806_v15  ;;  %725 = vmatprep.subr.bf16.mxu0 %v807_v16 }
  0x12   :  { %753 = vmatprep.subr.bf16.mxu1 %v808_v17 }
  0x14   :  { %726 = vmatpush3.bf16.msra.mxu0 %v809_v18 }
  0x15   :  { %754 = vmatpush3.bf16.msra.mxu1 %v810_v19  ;;  %727 = vmatprep.subr.bf16.mxu0 %v811_v20 }
  0x16   :  { %755 = vmatprep.subr.bf16.mxu1 %v812_v21 }
  0x18   :  { %728 = vmatpush3.bf16.msra.mxu0 %v813_v22 }
  0x19   :  { %756 = vmatpush3.bf16.msra.mxu1 %v814_v23  ;;  %729 = vmatprep.subr.bf16.mxu0 %v815_v24 }
  0x1a   :  { %757 = vmatprep.subr.bf16.mxu1 %v816_v25 }
  0x1c   :  { %730 = vmatpush3.bf16.msra.mxu0 %v817_v26 }
  0x1d   :  { %758 = vmatpush3.bf16.msra.mxu1 %v818_v27  ;;  %731 = vmatprep.subr.bf16.mxu0 %v819_v28 }
  0x1e   :  { %759 = vmatprep.subr.bf16.mxu1 %v820_v29 }
  0x20   :  { %732 = vmatpush3.bf16.msra.mxu0 %v821_v30 }
  0x21   :  { %760 = vmatpush3.bf16.msra.mxu1 %v822_v31  ;;  %779 = vmatprep.subr.bf16.mxu0 %v829_v36 }
  0x23   :  { %408 = vmatmul.mubr.bf16.vlgmr.msra.gmra.mrb[0].mxu0 %v823_v32 }
  0x24   :  { %457 = vmatmul.mubr.bf16.vlgmr.msra.gmra.mrb[0].mxu1 %v826_v34  ;;  %780 = vmatpush3.bf16.msra.mxu0 %v829_v36 }
  0x25   :  { %781 = vmatprep.subr.bf16.mxu0 %v830_v37  ;;  %415 = vmatprep.mubr.bf16.mxu0 %v831_v38 }
  0x26   :  { %464 = vmatprep.mubr.bf16.mxu1 %v833_v39 }
  0x28   :  { %782 = vmatpush3.bf16.msra.mxu0 %v830_v37 }
  0x29   :  { %783 = vmatprep.subr.bf16.mxu0 %v837_v41 }
  0x2b   :  { %416 = vmatmul.mubr.bf16.gmra.mrb[4].mxu0 %v835_v40 }
  0x2c   :  { %465 = vmatmul.mubr.bf16.gmra.mrb[4].mxu1 %v836_v42  ;;  %787 = vmatprep.mubr.msk.bf16.mxu0 %vm368_vm0, %v839_v43 }
  0x2d   :  { %784 = vmatpush3.bf16.msra.mxu0 %v837_v41 }
  0x2e   :  { %785 = vmatprep.subr.bf16.mxu0 %v838_v44 }
  0x31   :  { %786 = vmatpush3.bf16.msra.mxu0 %v838_v44 }
  0x34   :  { %788 = vmatmul.mubr.msk.bf16.vlgmr.msra.gmra.mrb[8].mxu0 %vm368_vm0, %v840_v45 }
  0xf6   :  { %v733_v46 = vpop.f32.mrb[0].mxu0 }
  0xf7   :  { %v761_v47 = vpop.f32.mrb[0].mxu1  ;;  %v734_v48 = vpop.f32.mrb[1].mxu0 }
  0xf8   :  { %v735_v49 = vadd.f32 %v734_v48, %v733_v46  ;;  %v762_v50 = vpop.f32.mrb[1].mxu1  ;;  %v736_v51 = vpop.f32.mrb[2].mxu0 }
  0xf9   :  { %v763_v52 = vadd.f32 %v762_v50, %v761_v47  ;;  %v764_v53 = vpop.f32.mrb[2].mxu1  ;;  %v737_v54 = vpop.f32.mrb[3].mxu0 }
  0xfa   :  { %v738_v55 = vadd.f32 %v737_v54, %v736_v51  ;;  %v765_v56 = vpop.f32.mrb[3].mxu1 }
  0xfb   :  { %v766_v57 = vadd.f32 %v765_v56, %v764_v53  ;;  %v459_v58 = vadd.f32 %v763_v52, %v735_v49 }
  0xfd   :  { %v462_v59 = vadd.f32 %v766_v57, %v738_v55 }
  0xfe   :  { %v739_v60 = vpop.f32.mrb[4].mxu0 }
  0xff   :  { %v767_v61 = vpop.f32.mrb[4].mxu1  ;;  %v740_v62 = vpop.f32.mrb[5].mxu0 }
 0x100   :  { %v741_v63 = vadd.f32 %v740_v62, %v739_v60  ;;  %v768_v0 = vpop.f32.mrb[5].mxu1  ;;  %v742_v1 = vpop.f32.mrb[6].mxu0 }
 0x101   :  { %v769_v2 = vadd.f32 %v768_v0, %v767_v61  ;;  %v770_v3 = vpop.f32.mrb[6].mxu1  ;;  %v743_v4 = vpop.f32.mrb[7].mxu0  ;;  %v575_v61 = vld [vmem:[%s1048_s2] sm:$0x1] }
 0x102   :  { %v744_v5 = vadd.f32 %v743_v4, %v742_v1  ;;  %v771_v6 = vpop.f32.mrb[7].mxu1  ;;  %v577_v1 = vld [vmem:[%s1049_s3] sm:$0x1] }
 0x103   :  { %v772_v7 = vadd.f32 %v771_v6, %v770_v3  ;;  %v467_v8 = vadd.f32 %v769_v2, %v741_v63 }
 0x105   :  { %v470_v9 = vadd.f32 %v772_v7, %v744_v5 }
 0x107   :  { %v789_v10 = vpop.f32.mrb[8].mxu0 }
 0x108   :  { %v516_v11 = vadd.f32 %v789_v10, %v467_v8  ;;  %v507_v12 = vpop.f32.mrb[9].mxu0 }
 0x109   :  { %v508_v13 = vadd.f32 %v507_v12, %v459_v58  ;;  %v790_v14 = vpop.f32.mrb[10].mxu0 }
 0x10a   :  { %526 = vst.msk [vmem:[#allocation2 + $0x10] sm:$0xff] %vm368_vm0, %v516_v11  ;;  %v519_v15 = vadd.f32 %v790_v14, %v470_v9  ;;  %v510_v16 = vpop.f32.mrb[11].mxu0 }
 0x10b   :  { %524 = vst.msk [vmem:[#allocation2] sm:$0xff] %vm368_vm0, %v508_v13  ;;  %v511_v17 = vadd.f32 %v510_v16, %v462_v59  ;;  %v581_v59 = vlaneseq }
 0x10c   :  { %527 = vst.msk [vmem:[#allocation2 + $0x18] sm:$0xff] %vm368_vm0, %v519_v15 }
 0x10d   :  { %525 = vst.msk [vmem:[#allocation2 + $0x8] sm:$0xff] %vm368_vm0, %v511_v17  ;;  %v582_v60 = vshrl.u32 %v581_v59, 7 }
 0x10f   :  { %v583_v62 = vsub.s32 0, %v582_v60 }
 0x111   :  { %v534_v19 = vld [vmem:[#allocation2 + $0x10] sm:$0xff] }
 0x112   :  { %v532_v18 = vld [vmem:[#allocation2] sm:$0xff]  ;;  %v539_v25 = vsel %vm368_vm0, %v534_v19, 0.0 }
 0x113   :  { %v536_v21 = vsel %vm368_vm0, %v532_v18, 0.0  ;;  %v535_v23 = vld [vmem:[#allocation2 + $0x18] sm:$0xff] }
 0x114   :  { %v533_v20 = vld [vmem:[#allocation2 + $0x8] sm:$0xff]  ;;  %v541_v27 = vsel %vm368_vm0, %v535_v23, 0.0 }
 0x115   :  { %v537_v22 = vsel %vm368_vm0, %v533_v20, 0.0 }
 0x116   :  { %v538_v24 = vadd.f32 %v537_v22, %v536_v21 }
 0x118   :  { %v540_v26 = vadd.f32 %v539_v25, %v538_v24 }
 0x11a   :  { %v542_v28 = vadd.f32 %v541_v27, %v540_v26 }
 0x11c   :  { %v543_v29 = vrot.slane %v542_v28, 4 }
 0x11e   :  { %v544_v30 = vadd.f32 %v543_v29, %v542_v28 }
 0x120   :  { %v545_v31 = vrot.slane %v544_v30, 2 }
 0x122   :  { %v546_v32 = vadd.f32 %v545_v31, %v544_v30 }
 0x124   :  { %v547_v33 = vrot.slane %v546_v32, 1 }
 0x126   :  { %v548_v34 = vadd.f32 %v547_v33, %v546_v32 }
 0x128   :  { %v550_v35 = vmul.f32 0.03125, %v548_v34 }
 0x12a   :  { %v551_v36 = vsub.f32 %v532_v18, %v550_v35  ;;  %v552_v37 = vsub.f32 %v533_v20, %v550_v35  ;;  %v553_v38 = vsub.f32 %v534_v19, %v550_v35  ;;  %v554_v39 = vsub.f32 %v535_v23, %v550_v35 }
 0x12c   :  { %v555_v40 = vmul.f32 %v551_v36, %v551_v36  ;;  %v556_v41 = vmul.f32 %v552_v37, %v552_v37  ;;  %v557_v42 = vmul.f32 %v553_v38, %v553_v38  ;;  %v558_v43 = vmul.f32 %v554_v39, %v554_v39 }
 0x12e   :  { %v559_v44 = vsel %vm368_vm0, %v555_v40, 0.0  ;;  %v560_v45 = vsel %vm368_vm0, %v556_v41, 0.0  ;;  %v562_v47 = vsel %vm368_vm0, %v557_v42, 0.0  ;;  %v564_v49 = vsel %vm368_vm0, %v558_v43, 0.0 }
 0x12f   :  { %v561_v46 = vadd.f32 %v560_v45, %v559_v44 }
 0x131   :  { %v563_v48 = vadd.f32 %v562_v47, %v561_v46 }
 0x133   :  { %v565_v50 = vadd.f32 %v564_v49, %v563_v48 }
 0x135   :  { %v566_v51 = vrot.slane %v565_v50, 4 }
 0x137   :  { %v567_v52 = vadd.f32 %v566_v51, %v565_v50 }
 0x139   :  { %v568_v53 = vrot.slane %v567_v52, 2 }
 0x13b   :  { %v569_v54 = vadd.f32 %v568_v53, %v567_v52 }
 0x13d   :  { %v570_v55 = vrot.slane %v569_v54, 1 }
 0x13f   :  { %v571_v56 = vadd.f32 %v570_v55, %v569_v54 }
 0x141   :  { %v572_v57 = vmul.f32 0.03125, %v571_v56 }
 0x143   :  { %v573_v58 = vadd.f32 1e-05, %v572_v57 }
 0x145   :  { %841 = vrsqrt.f32 %v573_v58 }
 0x14f   :  { %v842_v63 = vpop.eup %841 }
 0x150   :  { %v576_v0 = vmul.f32 %v842_v63, %v575_v61 }
 0x152   :  { %v578_v2 = vmul.f32 %v576_v0, %v550_v35  ;;  %v584_v3 = vrot.slane %v576_v0, %v583_v62 }
 0x154   :  { %v579_v4 = vsub.f32 %v577_v1, %v578_v2  ;;  %v586_v5 = vmul.f32 %v584_v3, %v532_v18  ;;  %v587_v6 = vmul.f32 %v584_v3, %v533_v20  ;;  %v588_v7 = vmul.f32 %v584_v3, %v534_v19 }
 0x155   :  { %v589_v8 = vmul.f32 %v584_v3, %v535_v23 }
 0x156   :  { %v594_v9 = vrot.slane %v579_v4, %v583_v62 }
 0x158   :  { %v596_v10 = vadd.f32 %v594_v9, %v586_v5  ;;  %v597_v11 = vadd.f32 %v594_v9, %v587_v6  ;;  %v598_v12 = vadd.f32 %v594_v9, %v588_v7  ;;  %v599_v13 = vadd.f32 %v594_v9, %v589_v8 }
 0x15a   :  { %v604_v14 = vmul.f32 0.044715, %v596_v10  ;;  %v605_v15 = vmul.f32 0.044715, %v597_v11  ;;  %v606_v16 = vmul.f32 0.044715, %v598_v12 }
 0x15b   :  { %v607_v17 = vmul.f32 0.044715, %v599_v13  ;;  %v600_v36 = vmul.f32 0.5, %v596_v10  ;;  %v601_v39 = vmul.f32 0.5, %v597_v11  ;;  %v602_v42 = vmul.f32 0.5, %v598_v12 }
 0x15c   :  { %v608_v21 = vmul.f32 %v604_v14, %v596_v10  ;;  %v609_v22 = vmul.f32 %v605_v15, %v597_v11  ;;  %v610_v24 = vmul.f32 %v606_v16, %v598_v12  ;;  %v603_v45 = vmul.f32 0.5, %v599_v13 }
 0x15d   :  { %v611_v25 = vmul.f32 %v607_v17, %v599_v13 }
 0x15e   :  { %v612_v26 = vmul.f32 %v608_v21, %v596_v10  ;;  %v613_v27 = vmul.f32 %v609_v22, %v597_v11  ;;  %v614_v28 = vmul.f32 %v610_v24, %v598_v12 }
 0x15f   :  { %v615_v18 = vmul.f32 %v611_v25, %v599_v13 }
 0x160   :  { %v616_v20 = vadd.f32 %v612_v26, %v596_v10  ;;  %v617_v19 = vadd.f32 %v613_v27, %v597_v11  ;;  %v618_v23 = vadd.f32 %v614_v28, %v598_v12 }
 0x161   :  { %v619_v29 = vadd.f32 %v615_v18, %v599_v13 }
 0x162   :  { %v620_v30 = vmul.f32 0.7978846, %v616_v20  ;;  %v621_v31 = vmul.f32 0.7978846, %v617_v19  ;;  %v622_v32 = vmul.f32 0.7978846, %v618_v23 }
 0x163   :  { %v623_v33 = vmul.f32 0.7978846, %v619_v29 }
 0x164   :  { %843 = vtanh.f32 %v620_v30 }
 0x165   :  { %845 = vtanh.f32 %v621_v31 }
 0x166   :  { %847 = vtanh.f32 %v622_v32 }
 0x167   :  { %849 = vtanh.f32 %v623_v33 }
 0x16e   :  { %v844_v34 = vpop.eup %843 }
 0x16f   :  { %v846_v35 = vpop.eup %845  ;;  %v628_v37 = vadd.f32 1.0, %v844_v34 }
 0x170   :  { %v848_v38 = vpop.eup %847  ;;  %v629_v40 = vadd.f32 1.0, %v846_v35 }
 0x171   :  { %v850_v41 = vpop.eup %849  ;;  %v630_v43 = vadd.f32 1.0, %v848_v38  ;;  %v632_v44 = vmul.f32 %v628_v37, %v600_v36 }
 0x172   :  { %v631_v46 = vadd.f32 1.0, %v850_v41  ;;  %v633_v47 = vmul.f32 %v629_v40, %v601_v39 }
 0x173   :  { %v634_v48 = vmul.f32 %v630_v43, %v602_v42  ;;  %v713_v49 = vpack.c.bf16 %v632_v44, %v632_v44 }
 0x174   :  { %v635_v50 = vmul.f32 %v631_v46, %v603_v45  ;;  %v714_v51 = vpack.c.bf16 %v633_v47, %v633_v47 }
 0x175   :  { %v715_v52 = vpack.c.bf16 %v634_v48, %v634_v48  ;;  %653 = vst.msk [vmem:[%s1050_s4] sm:$0xf] %vm652_vm1, %v713_v49 }
 0x176   :  { %v716_v53 = vpack.c.bf16 %v635_v50, %v635_v50  ;;  %654 = vst.msk [vmem:[%s1050_s4 + $0x4] sm:$0xf] %vm652_vm1, %v714_v51 }
 0x177   :  { %655 = vst.msk [vmem:[%s1050_s4 + $0x8] sm:$0xf] %vm652_vm1, %v715_v52 }
 0x178   :  { %656 = vst.msk [vmem:[%s1050_s4 + $0xc] sm:$0xf] %vm652_vm1, %v716_v53 }

</bundles_post_ra>
